<compile_context>
chip_gen: v6e
topology: v6e:2x2x1
jax: 0.10.0
libtpu: 0.0.40
codegen_flags: <defaults>
</compile_context>

<pallas_src>
import functools
import math

import jax
import jax.numpy as jnp
from jax.experimental import pallas as pl
from jax.experimental.pallas import tpu as pltpu

# ---------------- small, module-consistent config ----------------
IMG_SIZE = 16
PATCH_SIZE = 8
IN_CHANS = 3
EMBED_DIM = 32
DEPTH = 4
NUM_HEADS = 4
MLP_RATIO = 4.0
NUM_CLASSES = 10
MASK_RATE = 0.5
MASK_LAYER = 2
LN_EPS = 1e-5

L = (IMG_SIZE // PATCH_SIZE) ** 2            # number of patches (4)
N_TOK = L + 1                                # + cls token (5)
TOK_PAD = 8                                  # token rows padded to one sublane tile
LEN_KEEP = int(L * (1 - MASK_RATE))          # kept patches in masked path (2)
HEAD_DIM = EMBED_DIM // NUM_HEADS
SCALE = HEAD_DIM ** -0.5
MLP_HIDDEN = int(EMBED_DIM * MLP_RATIO)
PATCH_DIM = IN_CHANS * PATCH_SIZE * PATCH_SIZE
OUT_PAD = 128                                # lane-dense padded logits width
MAX_BLOCK_B = 16                             # 16 samples * 8 token rows = 128 MXU rows
NEG_INF = -1e30


# ---------------- in-kernel math helpers ----------------
def _erf(x):
    # TODO(synk): torch.nn.GELU (default) uses exact erf; Mosaic lowering of
    # lax.erf is not guaranteed, so use Abramowitz-Stegun 7.1.26 (|err|<1.5e-7).
    a1, a2, a3, a4, a5 = (0.254829592, -0.284496736, 1.421413741,
                          -1.453152027, 1.061405429)
    ax = jnp.abs(x)
    t = 1.0 / (1.0 + 0.3275911 * ax)
    poly = ((((a5 * t + a4) * t + a3) * t + a2) * t + a1) * t
    y = 1.0 - poly * jnp.exp(-ax * ax)
    return jnp.where(x >= 0, y, -y)


def _gelu(x):
    return 0.5 * x * (1.0 + _erf(x * (2.0 ** -0.5)))


def _layernorm(x, w, b, eps):
    mu = jnp.mean(x, axis=-1, keepdims=True)
    var = jnp.mean((x - mu) ** 2, axis=-1, keepdims=True)
    return (x - mu) * jax.lax.rsqrt(var + eps) * w + b


# ---------------- fused forward kernel (Bt batch elements per grid step) ----
def fused_forward_kernel(
        patches_ref, patch_w_ref, patch_b_ref, cls_ref, pos_ref,
        ln1w_ref, ln1b_ref, qkvw_ref, projw_ref, projb_ref,
        ln2w_ref, ln2b_ref, fc1w_ref, fc1b_ref, fc2w_ref, fc2b_ref,
        normw_ref, normb_ref, headw_ref, headb_ref,
        out_ref, *, bt, num_heads, eps):
    c = EMBED_DIM
    hd = c // num_heads
    rows = bt * TOK_PAD

    # small static iotas, hoisted once and reused by every block / select below
    key_iota = jax.lax.broadcasted_iota(jnp.int32, (1, 1, TOK_PAD), 2)   # key column
    tok_iota = jax.lax.broadcasted_iota(jnp.int32, (1, TOK_PAD, 1), 1)   # token row
    src_iota = jax.lax.broadcasted_iota(jnp.int32, (1, 1, L), 2)         # patch index

    norm_w = normw_ref[...]
    norm_b = normb_ref[...]

    def block(x, i, n_valid, want_cls_attn=False):
        """Pre-LN transformer block i on x: (bt*TOK_PAD, C).
        Per-sample attention over the first n_valid token rows; padding rows
        are masked as keys (their query rows produce unused garbage)."""
        xn = _layernorm(x, ln1w_ref[i], ln1b_ref[i], eps)
        # attention scale is pre-folded into the Q output columns of qkv_w
        qkv = jnp.dot(xn, qkvw_ref[i], preferred_element_type=jnp.float32)  # (rows, 3C)
        qkv3 = qkv.reshape(bt, TOK_PAD, 3 * c)
        key_mask = jnp.where(key_iota < n_valid, 0.0, NEG_INF)              # (1,1,8)
        heads = []
        cls_attn = None
        for h in range(num_heads):
            q = qkv3[:, :, 0 * c + h * hd: 0 * c + (h + 1) * hd]            # (bt, 8, hd)
            k = qkv3[:, :, 1 * c + h * hd: 1 * c + (h + 1) * hd]
            v = qkv3[:, :, 2 * c + h * hd: 2 * c + (h + 1) * hd]
            s = jnp.einsum('bnd,bmd->bnm', q, k,
                           preferred_element_type=jnp.float32) + key_mask   # (bt, 8, 8)
            s = s - jnp.max(s, axis=-1, keepdims=True)
            e = jnp.exp(s)
            denom = jnp.sum(e, axis=-1, keepdims=True)
            if want_cls_attn:
                # exact divide: these probabilities decide the discrete token mask
                p = e / denom
            else:
                p = e * pl.reciprocal(denom, approx=True)
            heads.append(jnp.einsum('bnm,bmd->bnd', p, v,
                                    preferred_element_type=jnp.float32))    # (bt, 8, hd)
            if want_cls_attn:
                row = p[:, 0:1, 1:1 + L]                                     # (bt,1,L) cls->patch attn
                cls_attn = row if cls_attn is None else cls_attn + row
        att = jnp.concatenate(heads, axis=-1).reshape(rows, c)
        att = jnp.dot(att, projw_ref[i],
                      preferred_element_type=jnp.float32) + projb_ref[i]
        x1 = x + att                                                         # drop_path = Identity
        xn2 = _layernorm(x1, ln2w_ref[i], ln2b_ref[i], eps)
        h1 = jnp.dot(xn2, fc1w_ref[i],
                     preferred_element_type=jnp.float32) + fc1b_ref[i]
        h1 = _gelu(h1)
        h2 = jnp.dot(h1, fc2w_ref[i],
                     preferred_element_type=jnp.float32) + fc2b_ref[i]
        return x1 + h2, cls_attn

    # ---- patch embedding: all bt samples packed into the matmul rows ----
    pe = jnp.dot(patches_ref[...].reshape(rows, PATCH_DIM), patch_w_ref[...],
                 preferred_element_type=jnp.float32) + patch_b_ref[...]      # (rows, C)
    pe3 = pe.reshape(bt, TOK_PAD, c)
    cls = cls_ref[...]                                                       # (1, 1, C)
    pos = pos_ref[...]                                                       # (1, TOK_PAD, C), rows >= N_TOK are 0

    # slab layout: row 0 = cls+pos0, rows 1..L = patch tokens + pos, rows L+1..7 = finite padding
    x0 = jnp.where(tok_iota == 0, cls, pe3) + pos                            # (bt, TOK_PAD, C)

    # ---- path 1: forward_features(return_attention=True) ----
    x = x0.reshape(rows, c)
    for i in range(DEPTH - 1):
        x, _ = block(x, i, N_TOK)
    x, noise = block(x, DEPTH - 1, N_TOK, want_cls_attn=True)                # noise: (bt,1,L), head-sum cls attn
    h_full = _layernorm(x.reshape(bt, TOK_PAD, c)[:, 0:1, :],
                        norm_w, norm_b, eps)                                 # (bt, 1, C)

    # ---- stable ascending rank of each patch token's noise (== argsort ranks) ----
    rank = jnp.zeros((bt, 1, L), jnp.int32)
    for kk in range(L):
        nk = noise[:, :, kk:kk + 1]                                          # (bt,1,1)
        before = (nk < noise) | ((nk == noise) & (kk < src_iota))            # token kk sorts before token j
        rank = rank + before.astype(jnp.int32)                               # rank[b,0,j]

    # ---- path 2: forward_features_with_mask(mask = sum_h attn[:,0,1:]) ----
    # token j's initial embedding (tok_j + pos[1+j]) lives at x0[:, 1+j, :]
    # stage-1 slab: row 0 = raw cls (no pos, matches reference), row 1+r = token with rank r (r < LEN_KEEP)
    xk0 = jnp.where(tok_iota == 0, cls, 0.0)
    for j in range(L):
        rj = rank[:, :, j:j + 1]                                             # (bt,1,1)
        sel = (tok_iota == 1 + rj) & (rj < LEN_KEEP)                         # (bt,TOK_PAD,1)
        xk0 = jnp.where(sel, x0[:, 1 + j:2 + j, :], xk0)
    xk = xk0.reshape(rows, c)
    for i in range(MASK_LAYER):
        xk, _ = block(xk, i, 1 + LEN_KEEP)
    xk3 = xk.reshape(bt, TOK_PAD, c)
    cls_m = xk3[:, 0:1, :]
    kept_upd = xk3[:, 1:1 + LEN_KEEP, :] + xk0[:, 1:1 + LEN_KEEP, :]         # + x_init residual

    # stage-2 slab: row 0 = cls_m, row 1+j = restored token j
    #   restored_j = kept_upd[rank_j]  if rank_j < LEN_KEEP  (kept, block-updated)
    #              = x0[1+j]           otherwise             (removed, original embedding)
    x20 = jnp.where(tok_iota == 0, cls_m, 0.0)
    for j in range(L):
        rj = rank[:, :, j:j + 1]
        val = x0[:, 1 + j:2 + j, :]
        for r in range(LEN_KEEP):
            val = jnp.where(rj == r, kept_upd[:, r:r + 1, :], val)
        x20 = jnp.where(tok_iota == 1 + j, val, x20)
    x2 = x20.reshape(rows, c)
    for i in range(MASK_LAYER, DEPTH):
        x2, _ = block(x2, i, N_TOK)
    h_mask = _layernorm(x2.reshape(bt, TOK_PAD, c)[:, 0:1, :],
                        norm_w, norm_b, eps)                                 # (bt, 1, C)

    # ---- combine + classifier head (lane-dense, 128-padded logits) ----
    h = (0.5 * (h_full + h_mask)).reshape(bt, c)
    logits = jnp.dot(h, headw_ref[...],
                     preferred_element_type=jnp.float32) + headb_ref[...]    # (bt, OUT_PAD)
    out_ref[0] = logits.astype(out_ref.dtype)


# ---------------- wrapper ----------------
def _extract_patches(x_img):
    """Conv2d(kernel=stride=patch) expressed as per-patch flatten + matmul."""
    B = x_img.shape[0]
    p = PATCH_SIZE
    hp = IMG_SIZE // p
    patches = x_img.reshape(B, IN_CHANS, hp, p, hp, p).transpose(0, 2, 4, 1, 3, 5)
    return patches.reshape(B, hp * hp, PATCH_DIM)


def mask_vit_forward(x_img, params, *, block_b=None):
    B = x_img.shape[0]
    if block_b is None:
        # pack up to 16 samples (= 128 padded token rows) per grid step, but keep
        # >= 2 grid steps when possible so both v7x TensorCores get work.
        block_b = max(1, min(MAX_BLOCK_B, B // 2)) if B >= 2 else 1
    g = math.ceil(B / block_b)
    b_pad = g * block_b

    patches = _extract_patches(x_img.astype(jnp.float32))                    # (B, L, PATCH_DIM)
    # token rows padded to 8 per sample (patch j at row 1+j; rows 0 and L+1..7 zero),
    # batch zero-padded up to a multiple of block_b (extra rows sliced off below).
    patches_pad = jnp.zeros((b_pad, TOK_PAD, PATCH_DIM), jnp.float32)
    patches_pad = patches_pad.at[:B, 1:1 + L, :].set(patches)

    cls3 = params["cls_token"].reshape(1, 1, EMBED_DIM)
    pos_pad = jnp.zeros((1, TOK_PAD, EMBED_DIM), jnp.float32)
    pos_pad = pos_pad.at[:, :N_TOK, :].set(params["pos_embed"][None])
    # lane-dense classifier head: pad NUM_CLASSES up to 128 output lanes
    head_w = jnp.zeros((EMBED_DIM, OUT_PAD), jnp.float32)
    head_w = head_w.at[:, :NUM_CLASSES].set(params["head_w"])
    head_b = jnp.zeros((1, OUT_PAD), jnp.float32)
    head_b = head_b.at[:, :NUM_CLASSES].set(params["head_b"])
    # fold attention scale (head_dim**-0.5) into Q output columns (qkv_bias=False -> exact)
    qkv_w = params["qkv_w"].at[:, :, :EMBED_DIM].multiply(SCALE)

    def full(shape):
        return pl.BlockSpec(shape, lambda gi, _n=len(shape): (0,) * _n)

    kern = functools.partial(fused_forward_kernel, bt=block_b,
                             num_heads=NUM_HEADS, eps=LN_EPS)

    out = pl.pallas_call(
        kern,
        out_shape=jax.ShapeDtypeStruct((g, block_b, OUT_PAD), jnp.float32),
        grid=(g,),
        in_specs=[
            pl.BlockSpec((block_b, TOK_PAD, PATCH_DIM), lambda gi: (gi, 0, 0)),  # patches
            full((PATCH_DIM, EMBED_DIM)),                                   # patch_w
            full((1, EMBED_DIM)),                                           # patch_b
            full((1, 1, EMBED_DIM)),                                        # cls_token
            full((1, TOK_PAD, EMBED_DIM)),                                  # pos_embed (padded rows)
            full((DEPTH, 1, EMBED_DIM)),                                    # ln1_w
            full((DEPTH, 1, EMBED_DIM)),                                    # ln1_b
            full((DEPTH, EMBED_DIM, 3 * EMBED_DIM)),                        # qkv_w (scale folded)
            full((DEPTH, EMBED_DIM, EMBED_DIM)),                            # proj_w
            full((DEPTH, 1, EMBED_DIM)),                                    # proj_b
            full((DEPTH, 1, EMBED_DIM)),                                    # ln2_w
            full((DEPTH, 1, EMBED_DIM)),                                    # ln2_b
            full((DEPTH, EMBED_DIM, MLP_HIDDEN)),                           # fc1_w
            full((DEPTH, 1, MLP_HIDDEN)),                                   # fc1_b
            full((DEPTH, MLP_HIDDEN, EMBED_DIM)),                           # fc2_w
            full((DEPTH, 1, EMBED_DIM)),                                    # fc2_b
            full((1, EMBED_DIM)),                                           # norm_w
            full((1, EMBED_DIM)),                                           # norm_b
            full((EMBED_DIM, OUT_PAD)),                                     # head_w (lane-padded)
            full((1, OUT_PAD)),                                             # head_b (lane-padded)
        ],
        out_specs=pl.BlockSpec((1, block_b, OUT_PAD), lambda gi: (gi, 0, 0)),
        compiler_params=pltpu.CompilerParams(
            dimension_semantics=("parallel",)),
    )(patches_pad, params["patch_w"], params["patch_b"], cls3, pos_pad,
      params["ln1_w"], params["ln1_b"], qkv_w, params["proj_w"], params["proj_b"],
      params["ln2_w"], params["ln2_b"], params["fc1_w"], params["fc1_b"],
      params["fc2_w"], params["fc2_b"], params["norm_w"], params["norm_b"],
      head_w, head_b)

    return out.reshape(b_pad, OUT_PAD)[:B, :NUM_CLASSES]


# ---------------- parameter init (deterministic, synthetic) ----------------
def init_params(key):
    keys = jax.random.split(key, 4 + 4 * DEPTH)

    def tn(k, shape, std=0.02):
        return jax.random.truncated_normal(k, -2.0, 2.0, shape, jnp.float32) * std

    params = {
        "patch_w": tn(keys[0], (PATCH_DIM, EMBED_DIM)),
        "patch_b": jnp.zeros((1, EMBED_DIM), jnp.float32),
        "cls_token": tn(keys[1], (1, EMBED_DIM)),
        "pos_embed": tn(keys[2], (N_TOK, EMBED_DIM)),
        "norm_w": jnp.ones((1, EMBED_DIM), jnp.float32),
        "norm_b": jnp.zeros((1, EMBED_DIM), jnp.float32),
        "head_w": tn(keys[3], (EMBED_DIM, NUM_CLASSES)),
        "head_b": jnp.zeros((1, NUM_CLASSES), jnp.float32),
    }

    qkv_w, proj_w, fc1_w, fc2_w = [], [], [], []
    for i in range(DEPTH):
        k0, k1, k2, k3 = keys[4 + 4 * i: 8 + 4 * i]
        qkv_w.append(tn(k0, (EMBED_DIM, 3 * EMBED_DIM)))      # (in, out) layout
        proj_w.append(tn(k1, (EMBED_DIM, EMBED_DIM)))
        fc1_w.append(tn(k2, (EMBED_DIM, MLP_HIDDEN)))
        fc2_w.append(tn(k3, (MLP_HIDDEN, EMBED_DIM)))

    params.update({
        "ln1_w": jnp.ones((DEPTH, 1, EMBED_DIM), jnp.float32),
        "ln1_b": jnp.zeros((DEPTH, 1, EMBED_DIM), jnp.float32),
        "qkv_w": jnp.stack(qkv_w),
        "proj_w": jnp.stack(proj_w),
        "proj_b": jnp.zeros((DEPTH, 1, EMBED_DIM), jnp.float32),
        "ln2_w": jnp.ones((DEPTH, 1, EMBED_DIM), jnp.float32),
        "ln2_b": jnp.zeros((DEPTH, 1, EMBED_DIM), jnp.float32),
        "fc1_w": jnp.stack(fc1_w),
        "fc1_b": jnp.zeros((DEPTH, 1, MLP_HIDDEN), jnp.float32),
        "fc2_w": jnp.stack(fc2_w),
        "fc2_b": jnp.zeros((DEPTH, 1, EMBED_DIM), jnp.float32),
    })
    return params


if __name__ == "__main__":
    key = jax.random.PRNGKey(0)
    pkey, xkey, xkey2 = jax.random.split(key, 3)
    params = init_params(pkey)

    fwd = jax.jit(mask_vit_forward)

    # small canonical input (B=2) -> block_b=1, 2 grid steps
    x = jax.random.normal(xkey, (2, IN_CHANS, IMG_SIZE, IMG_SIZE), jnp.float32)
    logits = jax.block_until_ready(fwd(x, params))
    assert logits.shape == (2, NUM_CLASSES)
    assert bool(jnp.all(jnp.isfinite(logits)))

    # larger batch exercises the packed path (16 samples * 8 token rows = 128 MXU rows/step)
    xb = jax.random.normal(xkey2, (32, IN_CHANS, IMG_SIZE, IMG_SIZE), jnp.float32)
    logits_b = jax.block_until_ready(fwd(xb, params))
    assert logits_b.shape == (32, NUM_CLASSES)
    assert bool(jnp.all(jnp.isfinite(logits_b)))

    print("KERNEL_OK")
</pallas_src>

<mosaic_0001>
module attributes {stable_mosaic.version = 11 : i64} {
  func.func @fused_forward_kernel(%arg0: i32, %arg1: memref<1x8x192xf32, #tpu.memory_space<vmem>>, %arg2: memref<192x32xf32, #tpu.memory_space<vmem>>, %arg3: memref<1x32xf32, #tpu.memory_space<vmem>>, %arg4: memref<1x1x32xf32, #tpu.memory_space<vmem>>, %arg5: memref<1x8x32xf32, #tpu.memory_space<vmem>>, %arg6: memref<4x1x32xf32, #tpu.memory_space<vmem>>, %arg7: memref<4x1x32xf32, #tpu.memory_space<vmem>>, %arg8: memref<4x32x96xf32, #tpu.memory_space<vmem>>, %arg9: memref<4x32x32xf32, #tpu.memory_space<vmem>>, %arg10: memref<4x1x32xf32, #tpu.memory_space<vmem>>, %arg11: memref<4x1x32xf32, #tpu.memory_space<vmem>>, %arg12: memref<4x1x32xf32, #tpu.memory_space<vmem>>, %arg13: memref<4x32x128xf32, #tpu.memory_space<vmem>>, %arg14: memref<4x1x128xf32, #tpu.memory_space<vmem>>, %arg15: memref<4x128x32xf32, #tpu.memory_space<vmem>>, %arg16: memref<4x1x32xf32, #tpu.memory_space<vmem>>, %arg17: memref<1x32xf32, #tpu.memory_space<vmem>>, %arg18: memref<1x32xf32, #tpu.memory_space<vmem>>, %arg19: memref<32x128xf32, #tpu.memory_space<vmem>>, %arg20: memref<1x128xf32, #tpu.memory_space<vmem>>, %arg21: memref<1x1x128xf32, #tpu.memory_space<vmem>>) attributes {dimension_semantics = [#tpu.dimension_semantics<parallel>], iteration_bounds = array<i64: 2>, scalar_prefetch = 0 : i64, scratch_operands = 0 : i64, tpu.core_type = #tpu.core_type<tc>, window_params = [{transform_indices = @transform_0, window_bounds = array<i64: 1, 8, 192>}, {pipeline_mode = #tpu.pipeline_mode<synchronous>, transform_indices = @transform_1, window_bounds = array<i64: 192, 32>}, {pipeline_mode = #tpu.pipeline_mode<synchronous>, transform_indices = @transform_2, window_bounds = array<i64: 1, 32>}, {pipeline_mode = #tpu.pipeline_mode<synchronous>, transform_indices = @transform_3, window_bounds = array<i64: 1, 1, 32>}, {pipeline_mode = #tpu.pipeline_mode<synchronous>, transform_indices = @transform_4, window_bounds = array<i64: 1, 8, 32>}, {pipeline_mode = #tpu.pipeline_mode<synchronous>, transform_indices = @transform_5, window_bounds = array<i64: 4, 1, 32>}, {pipeline_mode = #tpu.pipeline_mode<synchronous>, transform_indices = @transform_6, window_bounds = array<i64: 4, 1, 32>}, {pipeline_mode = #tpu.pipeline_mode<synchronous>, transform_indices = @transform_7, window_bounds = array<i64: 4, 32, 96>}, {pipeline_mode = #tpu.pipeline_mode<synchronous>, transform_indices = @transform_8, window_bounds = array<i64: 4, 32, 32>}, {pipeline_mode = #tpu.pipeline_mode<synchronous>, transform_indices = @transform_9, window_bounds = array<i64: 4, 1, 32>}, {pipeline_mode = #tpu.pipeline_mode<synchronous>, transform_indices = @transform_10, window_bounds = array<i64: 4, 1, 32>}, {pipeline_mode = #tpu.pipeline_mode<synchronous>, transform_indices = @transform_11, window_bounds = array<i64: 4, 1, 32>}, {pipeline_mode = #tpu.pipeline_mode<synchronous>, transform_indices = @transform_12, window_bounds = array<i64: 4, 32, 128>}, {pipeline_mode = #tpu.pipeline_mode<synchronous>, transform_indices = @transform_13, window_bounds = array<i64: 4, 1, 128>}, {pipeline_mode = #tpu.pipeline_mode<synchronous>, transform_indices = @transform_14, window_bounds = array<i64: 4, 128, 32>}, {pipeline_mode = #tpu.pipeline_mode<synchronous>, transform_indices = @transform_15, window_bounds = array<i64: 4, 1, 32>}, {pipeline_mode = #tpu.pipeline_mode<synchronous>, transform_indices = @transform_16, window_bounds = array<i64: 1, 32>}, {pipeline_mode = #tpu.pipeline_mode<synchronous>, transform_indices = @transform_17, window_bounds = array<i64: 1, 32>}, {pipeline_mode = #tpu.pipeline_mode<synchronous>, transform_indices = @transform_18, window_bounds = array<i64: 32, 128>}, {pipeline_mode = #tpu.pipeline_mode<synchronous>, transform_indices = @transform_19, window_bounds = array<i64: 1, 128>}, {transform_indices = @transform_20, window_bounds = array<i64: 1, 1, 128>}]} {
    %0 = tpu.iota {dimensions = array<i32: 2>} : vector<1x1x8xi32>
    %1 = tpu.iota {dimensions = array<i32: 1>} : vector<1x8x1xi32>
    %2 = tpu.iota {dimensions = array<i32: 2>} : vector<1x1x4xi32>
    %c0 = arith.constant 0 : index
    %c0_0 = arith.constant 0 : index
    %3 = vector.load %arg17[%c0, %c0_0] : memref<1x32xf32, #tpu.memory_space<vmem>>, vector<1x32xf32>
    %c0_1 = arith.constant 0 : index
    %c0_2 = arith.constant 0 : index
    %4 = vector.load %arg18[%c0_1, %c0_2] : memref<1x32xf32, #tpu.memory_space<vmem>>, vector<1x32xf32>
    %c0_3 = arith.constant 0 : index
    %c0_4 = arith.constant 0 : index
    %c0_5 = arith.constant 0 : index
    %5 = vector.load %arg1[%c0_3, %c0_4, %c0_5] : memref<1x8x192xf32, #tpu.memory_space<vmem>>, vector<1x8x192xf32>
    %6 = vector.shape_cast %5 : vector<1x8x192xf32> to vector<8x192xf32>
    %c0_6 = arith.constant 0 : index
    %c0_7 = arith.constant 0 : index
    %7 = vector.load %arg2[%c0_6, %c0_7] : memref<192x32xf32, #tpu.memory_space<vmem>>, vector<192x32xf32>
    %cst = arith.constant dense<0.000000e+00> : vector<8x32xf32>
    %8 = tpu.matmul %6, %7, %cst {dimension_numbers = #tpu.dot_dimension_numbers<[1], [0], [0], [1], [0, 0, 1, 1], [], []>} : vector<8x192xf32>, vector<192x32xf32>, vector<8x32xf32> -> vector<8x32xf32>
    %c0_8 = arith.constant 0 : index
    %c0_9 = arith.constant 0 : index
    %9 = vector.load %arg3[%c0_8, %c0_9] : memref<1x32xf32, #tpu.memory_space<vmem>>, vector<1x32xf32>
    %10 = vector.broadcast %9 : vector<1x32xf32> to vector<8x32xf32>
    %11 = arith.addf %8, %10 : vector<8x32xf32>
    %12 = vector.shape_cast %11 : vector<8x32xf32> to vector<1x8x32xf32>
    %c0_10 = arith.constant 0 : index
    %c0_11 = arith.constant 0 : index
    %c0_12 = arith.constant 0 : index
    %13 = vector.load %arg4[%c0_10, %c0_11, %c0_12] : memref<1x1x32xf32, #tpu.memory_space<vmem>>, vector<1x1x32xf32>
    %c0_13 = arith.constant 0 : index
    %c0_14 = arith.constant 0 : index
    %c0_15 = arith.constant 0 : index
    %14 = vector.load %arg5[%c0_13, %c0_14, %c0_15] : memref<1x8x32xf32, #tpu.memory_space<vmem>>, vector<1x8x32xf32>
    %c0_i32 = arith.constant 0 : i32
    %15 = vector.broadcast %c0_i32 : i32 to vector<1x8x1xi32>
    %16 = arith.cmpi eq, %1, %15 : vector<1x8x1xi32>
    %17 = vector.shape_cast %16 : vector<1x8x1xi1> to vector<1x8x1xi1>
    %18 = vector.broadcast %17 : vector<1x8x1xi1> to vector<1x8x32xi1>
    %19 = vector.shape_cast %13 : vector<1x1x32xf32> to vector<1x1x32xf32>
    %20 = vector.broadcast %19 : vector<1x1x32xf32> to vector<1x8x32xf32>
    %21 = arith.select %18, %20, %12 : vector<1x8x32xi1>, vector<1x8x32xf32>
    %22 = arith.addf %21, %14 : vector<1x8x32xf32>
    %23 = vector.shape_cast %22 : vector<1x8x32xf32> to vector<8x32xf32>
    %c0_16 = arith.constant 0 : index
    %c0_17 = arith.constant 0 : index
    %c0_18 = arith.constant 0 : index
    %24 = vector.load %arg6[%c0_16, %c0_17, %c0_18] : memref<4x1x32xf32, #tpu.memory_space<vmem>>, vector<1x1x32xf32>
    %25 = vector.shape_cast %24 : vector<1x1x32xf32> to vector<1x32xf32>
    %c0_19 = arith.constant 0 : index
    %c0_20 = arith.constant 0 : index
    %c0_21 = arith.constant 0 : index
    %26 = vector.load %arg7[%c0_19, %c0_20, %c0_21] : memref<4x1x32xf32, #tpu.memory_space<vmem>>, vector<1x1x32xf32>
    %27 = vector.shape_cast %26 : vector<1x1x32xf32> to vector<1x32xf32>
    %cst_22 = arith.constant dense<0.000000e+00> : vector<8xf32>
    %28 = vector.multi_reduction <add>, %23, %cst_22 [1] : vector<8x32xf32> to vector<8xf32>
    %29 = vector.shape_cast %28 : vector<8xf32> to vector<8x1xf32>
    %cst_23 = arith.constant 3.200000e+01 : f32
    %30 = vector.broadcast %cst_23 : f32 to vector<8x1xf32>
    %31 = arith.divf %29, %30 : vector<8x1xf32>
    %32 = vector.broadcast %31 : vector<8x1xf32> to vector<8x32xf32>
    %33 = arith.subf %23, %32 : vector<8x32xf32>
    %34 = arith.mulf %33, %33 : vector<8x32xf32>
    %cst_24 = arith.constant dense<0.000000e+00> : vector<8xf32>
    %35 = vector.multi_reduction <add>, %34, %cst_24 [1] : vector<8x32xf32> to vector<8xf32>
    %36 = vector.shape_cast %35 : vector<8xf32> to vector<8x1xf32>
    %cst_25 = arith.constant 3.200000e+01 : f32
    %37 = vector.broadcast %cst_25 : f32 to vector<8x1xf32>
    %38 = arith.divf %36, %37 : vector<8x1xf32>
    %39 = vector.broadcast %31 : vector<8x1xf32> to vector<8x32xf32>
    %40 = arith.subf %23, %39 : vector<8x32xf32>
    %cst_26 = arith.constant 9.99999974E-6 : f32
    %41 = vector.broadcast %cst_26 : f32 to vector<8x1xf32>
    %42 = arith.addf %38, %41 : vector<8x1xf32>
    %43 = math.rsqrt %42 : vector<8x1xf32>
    %44 = vector.broadcast %43 : vector<8x1xf32> to vector<8x32xf32>
    %45 = arith.mulf %40, %44 : vector<8x32xf32>
    %46 = vector.broadcast %25 : vector<1x32xf32> to vector<8x32xf32>
    %47 = arith.mulf %45, %46 : vector<8x32xf32>
    %48 = vector.broadcast %27 : vector<1x32xf32> to vector<8x32xf32>
    %49 = arith.addf %47, %48 : vector<8x32xf32>
    %c0_27 = arith.constant 0 : index
    %c0_28 = arith.constant 0 : index
    %c0_29 = arith.constant 0 : index
    %50 = vector.load %arg8[%c0_27, %c0_28, %c0_29] : memref<4x32x96xf32, #tpu.memory_space<vmem>>, vector<1x32x96xf32>
    %51 = vector.shape_cast %50 : vector<1x32x96xf32> to vector<32x96xf32>
    %cst_30 = arith.constant dense<0.000000e+00> : vector<8x96xf32>
    %52 = tpu.matmul %49, %51, %cst_30 {dimension_numbers = #tpu.dot_dimension_numbers<[1], [0], [0], [1], [0, 0, 1, 1], [], []>} : vector<8x32xf32>, vector<32x96xf32>, vector<8x96xf32> -> vector<8x96xf32>
    %53 = vector.shape_cast %52 : vector<8x96xf32> to vector<1x8x96xf32>
    %c5_i32 = arith.constant 5 : i32
    %54 = vector.broadcast %c5_i32 : i32 to vector<1x1x8xi32>
    %55 = arith.cmpi slt, %0, %54 : vector<1x1x8xi32>
    %cst_31 = arith.constant 0.000000e+00 : f32
    %cst_32 = arith.constant -1.000000e+30 : f32
    %56 = vector.broadcast %cst_31 : f32 to vector<1x1x8xf32>
    %57 = vector.broadcast %cst_32 : f32 to vector<1x1x8xf32>
    %58 = arith.select %55, %56, %57 : vector<1x1x8xi1>, vector<1x1x8xf32>
    %59 = vector.extract_strided_slice %53 {offsets = [0, 0, 0], sizes = [1, 8, 8], strides = [1, 1, 1]} : vector<1x8x96xf32> to vector<1x8x8xf32>
    %60 = vector.extract_strided_slice %53 {offsets = [0, 0, 32], sizes = [1, 8, 8], strides = [1, 1, 1]} : vector<1x8x96xf32> to vector<1x8x8xf32>
    %61 = vector.extract_strided_slice %53 {offsets = [0, 0, 64], sizes = [1, 8, 8], strides = [1, 1, 1]} : vector<1x8x96xf32> to vector<1x8x8xf32>
    "tpu.trace_start"() <{level = 10 : i32, message = "bnd,bmd->bnm"}> : () -> ()
    %cst_33 = arith.constant dense<0.000000e+00> : vector<1x8x8xf32>
    %62 = tpu.matmul %59, %60, %cst_33 {dimension_numbers = #tpu.dot_dimension_numbers<[2], [2], [1], [1], [0, 0, 0, 1, 1, 1], [0], [0]>} : vector<1x8x8xf32>, vector<1x8x8xf32>, vector<1x8x8xf32> -> vector<1x8x8xf32>
    "tpu.trace_stop"() : () -> ()
    %63 = vector.broadcast %58 : vector<1x1x8xf32> to vector<1x8x8xf32>
    %64 = arith.addf %62, %63 : vector<1x8x8xf32>
    %cst_34 = arith.constant dense<0xFF800000> : vector<1x8xf32>
    %65 = vector.multi_reduction <maximumf>, %64, %cst_34 [2] : vector<1x8x8xf32> to vector<1x8xf32>
    %66 = vector.shape_cast %65 : vector<1x8xf32> to vector<1x8x1xf32>
    %67 = vector.broadcast %66 : vector<1x8x1xf32> to vector<1x8x8xf32>
    %68 = arith.subf %64, %67 : vector<1x8x8xf32>
    %69 = math.exp %68 : vector<1x8x8xf32>
    %cst_35 = arith.constant dense<0.000000e+00> : vector<1x8xf32>
    %70 = vector.multi_reduction <add>, %69, %cst_35 [2] : vector<1x8x8xf32> to vector<1x8xf32>
    %71 = vector.shape_cast %70 : vector<1x8xf32> to vector<1x8x1xf32>
    %72 = tpu.reciprocal %71 {approx = true} : vector<1x8x1xf32> -> vector<1x8x1xf32>
    %73 = vector.broadcast %72 : vector<1x8x1xf32> to vector<1x8x8xf32>
    %74 = arith.mulf %69, %73 : vector<1x8x8xf32>
    "tpu.trace_start"() <{level = 10 : i32, message = "bnm,bmd->bnd"}> : () -> ()
    %cst_36 = arith.constant dense<0.000000e+00> : vector<1x8x8xf32>
    %75 = tpu.matmul %74, %61, %cst_36 {dimension_numbers = #tpu.dot_dimension_numbers<[2], [1], [1], [2], [0, 0, 0, 1, 1, 2], [0], [0]>} : vector<1x8x8xf32>, vector<1x8x8xf32>, vector<1x8x8xf32> -> vector<1x8x8xf32>
    "tpu.trace_stop"() : () -> ()
    %76 = vector.extract_strided_slice %53 {offsets = [0, 0, 8], sizes = [1, 8, 8], strides = [1, 1, 1]} : vector<1x8x96xf32> to vector<1x8x8xf32>
    %77 = vector.extract_strided_slice %53 {offsets = [0, 0, 40], sizes = [1, 8, 8], strides = [1, 1, 1]} : vector<1x8x96xf32> to vector<1x8x8xf32>
    %78 = vector.extract_strided_slice %53 {offsets = [0, 0, 72], sizes = [1, 8, 8], strides = [1, 1, 1]} : vector<1x8x96xf32> to vector<1x8x8xf32>
    "tpu.trace_start"() <{level = 10 : i32, message = "bnd,bmd->bnm"}> : () -> ()
    %cst_37 = arith.constant dense<0.000000e+00> : vector<1x8x8xf32>
    %79 = tpu.matmul %76, %77, %cst_37 {dimension_numbers = #tpu.dot_dimension_numbers<[2], [2], [1], [1], [0, 0, 0, 1, 1, 1], [0], [0]>} : vector<1x8x8xf32>, vector<1x8x8xf32>, vector<1x8x8xf32> -> vector<1x8x8xf32>
    "tpu.trace_stop"() : () -> ()
    %80 = vector.broadcast %58 : vector<1x1x8xf32> to vector<1x8x8xf32>
    %81 = arith.addf %79, %80 : vector<1x8x8xf32>
    %cst_38 = arith.constant dense<0xFF800000> : vector<1x8xf32>
    %82 = vector.multi_reduction <maximumf>, %81, %cst_38 [2] : vector<1x8x8xf32> to vector<1x8xf32>
    %83 = vector.shape_cast %82 : vector<1x8xf32> to vector<1x8x1xf32>
    %84 = vector.broadcast %83 : vector<1x8x1xf32> to vector<1x8x8xf32>
    %85 = arith.subf %81, %84 : vector<1x8x8xf32>
    %86 = math.exp %85 : vector<1x8x8xf32>
    %cst_39 = arith.constant dense<0.000000e+00> : vector<1x8xf32>
    %87 = vector.multi_reduction <add>, %86, %cst_39 [2] : vector<1x8x8xf32> to vector<1x8xf32>
    %88 = vector.shape_cast %87 : vector<1x8xf32> to vector<1x8x1xf32>
    %89 = tpu.reciprocal %88 {approx = true} : vector<1x8x1xf32> -> vector<1x8x1xf32>
    %90 = vector.broadcast %89 : vector<1x8x1xf32> to vector<1x8x8xf32>
    %91 = arith.mulf %86, %90 : vector<1x8x8xf32>
    "tpu.trace_start"() <{level = 10 : i32, message = "bnm,bmd->bnd"}> : () -> ()
    %cst_40 = arith.constant dense<0.000000e+00> : vector<1x8x8xf32>
    %92 = tpu.matmul %91, %78, %cst_40 {dimension_numbers = #tpu.dot_dimension_numbers<[2], [1], [1], [2], [0, 0, 0, 1, 1, 2], [0], [0]>} : vector<1x8x8xf32>, vector<1x8x8xf32>, vector<1x8x8xf32> -> vector<1x8x8xf32>
    "tpu.trace_stop"() : () -> ()
    %93 = vector.extract_strided_slice %53 {offsets = [0, 0, 16], sizes = [1, 8, 8], strides = [1, 1, 1]} : vector<1x8x96xf32> to vector<1x8x8xf32>
    %94 = vector.extract_strided_slice %53 {offsets = [0, 0, 48], sizes = [1, 8, 8], strides = [1, 1, 1]} : vector<1x8x96xf32> to vector<1x8x8xf32>
    %95 = vector.extract_strided_slice %53 {offsets = [0, 0, 80], sizes = [1, 8, 8], strides = [1, 1, 1]} : vector<1x8x96xf32> to vector<1x8x8xf32>
    "tpu.trace_start"() <{level = 10 : i32, message = "bnd,bmd->bnm"}> : () -> ()
    %cst_41 = arith.constant dense<0.000000e+00> : vector<1x8x8xf32>
    %96 = tpu.matmul %93, %94, %cst_41 {dimension_numbers = #tpu.dot_dimension_numbers<[2], [2], [1], [1], [0, 0, 0, 1, 1, 1], [0], [0]>} : vector<1x8x8xf32>, vector<1x8x8xf32>, vector<1x8x8xf32> -> vector<1x8x8xf32>
    "tpu.trace_stop"() : () -> ()
    %97 = vector.broadcast %58 : vector<1x1x8xf32> to vector<1x8x8xf32>
    %98 = arith.addf %96, %97 : vector<1x8x8xf32>
    %cst_42 = arith.constant dense<0xFF800000> : vector<1x8xf32>
    %99 = vector.multi_reduction <maximumf>, %98, %cst_42 [2] : vector<1x8x8xf32> to vector<1x8xf32>
    %100 = vector.shape_cast %99 : vector<1x8xf32> to vector<1x8x1xf32>
    %101 = vector.broadcast %100 : vector<1x8x1xf32> to vector<1x8x8xf32>
    %102 = arith.subf %98, %101 : vector<1x8x8xf32>
    %103 = math.exp %102 : vector<1x8x8xf32>
    %cst_43 = arith.constant dense<0.000000e+00> : vector<1x8xf32>
    %104 = vector.multi_reduction <add>, %103, %cst_43 [2] : vector<1x8x8xf32> to vector<1x8xf32>
    %105 = vector.shape_cast %104 : vector<1x8xf32> to vector<1x8x1xf32>
    %106 = tpu.reciprocal %105 {approx = true} : vector<1x8x1xf32> -> vector<1x8x1xf32>
    %107 = vector.broadcast %106 : vector<1x8x1xf32> to vector<1x8x8xf32>
    %108 = arith.mulf %103, %107 : vector<1x8x8xf32>
    "tpu.trace_start"() <{level = 10 : i32, message = "bnm,bmd->bnd"}> : () -> ()
    %cst_44 = arith.constant dense<0.000000e+00> : vector<1x8x8xf32>
    %109 = tpu.matmul %108, %95, %cst_44 {dimension_numbers = #tpu.dot_dimension_numbers<[2], [1], [1], [2], [0, 0, 0, 1, 1, 2], [0], [0]>} : vector<1x8x8xf32>, vector<1x8x8xf32>, vector<1x8x8xf32> -> vector<1x8x8xf32>
    "tpu.trace_stop"() : () -> ()
    %110 = vector.extract_strided_slice %53 {offsets = [0, 0, 24], sizes = [1, 8, 8], strides = [1, 1, 1]} : vector<1x8x96xf32> to vector<1x8x8xf32>
    %111 = vector.extract_strided_slice %53 {offsets = [0, 0, 56], sizes = [1, 8, 8], strides = [1, 1, 1]} : vector<1x8x96xf32> to vector<1x8x8xf32>
    %112 = vector.extract_strided_slice %53 {offsets = [0, 0, 88], sizes = [1, 8, 8], strides = [1, 1, 1]} : vector<1x8x96xf32> to vector<1x8x8xf32>
    "tpu.trace_start"() <{level = 10 : i32, message = "bnd,bmd->bnm"}> : () -> ()
    %cst_45 = arith.constant dense<0.000000e+00> : vector<1x8x8xf32>
    %113 = tpu.matmul %110, %111, %cst_45 {dimension_numbers = #tpu.dot_dimension_numbers<[2], [2], [1], [1], [0, 0, 0, 1, 1, 1], [0], [0]>} : vector<1x8x8xf32>, vector<1x8x8xf32>, vector<1x8x8xf32> -> vector<1x8x8xf32>
    "tpu.trace_stop"() : () -> ()
    %114 = vector.broadcast %58 : vector<1x1x8xf32> to vector<1x8x8xf32>
    %115 = arith.addf %113, %114 : vector<1x8x8xf32>
    %cst_46 = arith.constant dense<0xFF800000> : vector<1x8xf32>
    %116 = vector.multi_reduction <maximumf>, %115, %cst_46 [2] : vector<1x8x8xf32> to vector<1x8xf32>
    %117 = vector.shape_cast %116 : vector<1x8xf32> to vector<1x8x1xf32>
    %118 = vector.broadcast %117 : vector<1x8x1xf32> to vector<1x8x8xf32>
    %119 = arith.subf %115, %118 : vector<1x8x8xf32>
    %120 = math.exp %119 : vector<1x8x8xf32>
    %cst_47 = arith.constant dense<0.000000e+00> : vector<1x8xf32>
    %121 = vector.multi_reduction <add>, %120, %cst_47 [2] : vector<1x8x8xf32> to vector<1x8xf32>
    %122 = vector.shape_cast %121 : vector<1x8xf32> to vector<1x8x1xf32>
    %123 = tpu.reciprocal %122 {approx = true} : vector<1x8x1xf32> -> vector<1x8x1xf32>
    %124 = vector.broadcast %123 : vector<1x8x1xf32> to vector<1x8x8xf32>
    %125 = arith.mulf %120, %124 : vector<1x8x8xf32>
    "tpu.trace_start"() <{level = 10 : i32, message = "bnm,bmd->bnd"}> : () -> ()
    %cst_48 = arith.constant dense<0.000000e+00> : vector<1x8x8xf32>
    %126 = tpu.matmul %125, %112, %cst_48 {dimension_numbers = #tpu.dot_dimension_numbers<[2], [1], [1], [2], [0, 0, 0, 1, 1, 2], [0], [0]>} : vector<1x8x8xf32>, vector<1x8x8xf32>, vector<1x8x8xf32> -> vector<1x8x8xf32>
    "tpu.trace_stop"() : () -> ()
    %127 = tpu.concatenate %75, %92, %109, %126 in 2 : vector<1x8x8xf32>, vector<1x8x8xf32>, vector<1x8x8xf32>, vector<1x8x8xf32> -> vector<1x8x32xf32>
    %128 = vector.shape_cast %127 : vector<1x8x32xf32> to vector<8x32xf32>
    %c0_49 = arith.constant 0 : index
    %c0_50 = arith.constant 0 : index
    %c0_51 = arith.constant 0 : index
    %129 = vector.load %arg9[%c0_49, %c0_50, %c0_51] : memref<4x32x32xf32, #tpu.memory_space<vmem>>, vector<1x32x32xf32>
    %130 = vector.shape_cast %129 : vector<1x32x32xf32> to vector<32x32xf32>
    %cst_52 = arith.constant dense<0.000000e+00> : vector<8x32xf32>
    %131 = tpu.matmul %128, %130, %cst_52 {dimension_numbers = #tpu.dot_dimension_numbers<[1], [0], [0], [1], [0, 0, 1, 1], [], []>} : vector<8x32xf32>, vector<32x32xf32>, vector<8x32xf32> -> vector<8x32xf32>
    %c0_53 = arith.constant 0 : index
    %c0_54 = arith.constant 0 : index
    %c0_55 = arith.constant 0 : index
    %132 = vector.load %arg10[%c0_53, %c0_54, %c0_55] : memref<4x1x32xf32, #tpu.memory_space<vmem>>, vector<1x1x32xf32>
    %133 = vector.shape_cast %132 : vector<1x1x32xf32> to vector<1x32xf32>
    %134 = vector.broadcast %133 : vector<1x32xf32> to vector<8x32xf32>
    %135 = arith.addf %131, %134 : vector<8x32xf32>
    %136 = arith.addf %23, %135 : vector<8x32xf32>
    %c0_56 = arith.constant 0 : index
    %c0_57 = arith.constant 0 : index
    %c0_58 = arith.constant 0 : index
    %137 = vector.load %arg11[%c0_56, %c0_57, %c0_58] : memref<4x1x32xf32, #tpu.memory_space<vmem>>, vector<1x1x32xf32>
    %138 = vector.shape_cast %137 : vector<1x1x32xf32> to vector<1x32xf32>
    %c0_59 = arith.constant 0 : index
    %c0_60 = arith.constant 0 : index
    %c0_61 = arith.constant 0 : index
    %139 = vector.load %arg12[%c0_59, %c0_60, %c0_61] : memref<4x1x32xf32, #tpu.memory_space<vmem>>, vector<1x1x32xf32>
    %140 = vector.shape_cast %139 : vector<1x1x32xf32> to vector<1x32xf32>
    %cst_62 = arith.constant dense<0.000000e+00> : vector<8xf32>
    %141 = vector.multi_reduction <add>, %136, %cst_62 [1] : vector<8x32xf32> to vector<8xf32>
    %142 = vector.shape_cast %141 : vector<8xf32> to vector<8x1xf32>
    %cst_63 = arith.constant 3.200000e+01 : f32
    %143 = vector.broadcast %cst_63 : f32 to vector<8x1xf32>
    %144 = arith.divf %142, %143 : vector<8x1xf32>
    %145 = vector.broadcast %144 : vector<8x1xf32> to vector<8x32xf32>
    %146 = arith.subf %136, %145 : vector<8x32xf32>
    %147 = arith.mulf %146, %146 : vector<8x32xf32>
    %cst_64 = arith.constant dense<0.000000e+00> : vector<8xf32>
    %148 = vector.multi_reduction <add>, %147, %cst_64 [1] : vector<8x32xf32> to vector<8xf32>
    %149 = vector.shape_cast %148 : vector<8xf32> to vector<8x1xf32>
    %cst_65 = arith.constant 3.200000e+01 : f32
    %150 = vector.broadcast %cst_65 : f32 to vector<8x1xf32>
    %151 = arith.divf %149, %150 : vector<8x1xf32>
    %152 = vector.broadcast %144 : vector<8x1xf32> to vector<8x32xf32>
    %153 = arith.subf %136, %152 : vector<8x32xf32>
    %cst_66 = arith.constant 9.99999974E-6 : f32
    %154 = vector.broadcast %cst_66 : f32 to vector<8x1xf32>
    %155 = arith.addf %151, %154 : vector<8x1xf32>
    %156 = math.rsqrt %155 : vector<8x1xf32>
    %157 = vector.broadcast %156 : vector<8x1xf32> to vector<8x32xf32>
    %158 = arith.mulf %153, %157 : vector<8x32xf32>
    %159 = vector.broadcast %138 : vector<1x32xf32> to vector<8x32xf32>
    %160 = arith.mulf %158, %159 : vector<8x32xf32>
    %161 = vector.broadcast %140 : vector<1x32xf32> to vector<8x32xf32>
    %162 = arith.addf %160, %161 : vector<8x32xf32>
    %c0_67 = arith.constant 0 : index
    %c0_68 = arith.constant 0 : index
    %c0_69 = arith.constant 0 : index
    %163 = vector.load %arg13[%c0_67, %c0_68, %c0_69] : memref<4x32x128xf32, #tpu.memory_space<vmem>>, vector<1x32x128xf32>
    %164 = vector.shape_cast %163 : vector<1x32x128xf32> to vector<32x128xf32>
    %cst_70 = arith.constant dense<0.000000e+00> : vector<8x128xf32>
    %165 = tpu.matmul %162, %164, %cst_70 {dimension_numbers = #tpu.dot_dimension_numbers<[1], [0], [0], [1], [0, 0, 1, 1], [], []>} : vector<8x32xf32>, vector<32x128xf32>, vector<8x128xf32> -> vector<8x128xf32>
    %c0_71 = arith.constant 0 : index
    %c0_72 = arith.constant 0 : index
    %c0_73 = arith.constant 0 : index
    %166 = vector.load %arg14[%c0_71, %c0_72, %c0_73] : memref<4x1x128xf32, #tpu.memory_space<vmem>>, vector<1x1x128xf32>
    %167 = vector.shape_cast %166 : vector<1x1x128xf32> to vector<1x128xf32>
    %168 = vector.broadcast %167 : vector<1x128xf32> to vector<8x128xf32>
    %169 = arith.addf %165, %168 : vector<8x128xf32>
    %cst_74 = arith.constant 5.000000e-01 : f32
    %170 = vector.broadcast %cst_74 : f32 to vector<8x128xf32>
    %171 = arith.mulf %170, %169 : vector<8x128xf32>
    %cst_75 = arith.constant 0.707106769 : f32
    %172 = vector.broadcast %cst_75 : f32 to vector<8x128xf32>
    %173 = arith.mulf %169, %172 : vector<8x128xf32>
    %174 = math.absf %173 : vector<8x128xf32>
    %cst_76 = arith.constant 0.327591091 : f32
    %175 = vector.broadcast %cst_76 : f32 to vector<8x128xf32>
    %176 = arith.mulf %175, %174 : vector<8x128xf32>
    %cst_77 = arith.constant 1.000000e+00 : f32
    %177 = vector.broadcast %cst_77 : f32 to vector<8x128xf32>
    %178 = arith.addf %177, %176 : vector<8x128xf32>
    %cst_78 = arith.constant 1.000000e+00 : f32
    %179 = vector.broadcast %cst_78 : f32 to vector<8x128xf32>
    %180 = arith.divf %179, %178 : vector<8x128xf32>
    %cst_79 = arith.constant 1.06140542 : f32
    %181 = vector.broadcast %cst_79 : f32 to vector<8x128xf32>
    %182 = arith.mulf %181, %180 : vector<8x128xf32>
    %cst_80 = arith.constant -1.45315206 : f32
    %183 = vector.broadcast %cst_80 : f32 to vector<8x128xf32>
    %184 = arith.addf %182, %183 : vector<8x128xf32>
    %185 = arith.mulf %184, %180 : vector<8x128xf32>
    %cst_81 = arith.constant 1.42141378 : f32
    %186 = vector.broadcast %cst_81 : f32 to vector<8x128xf32>
    %187 = arith.addf %185, %186 : vector<8x128xf32>
    %188 = arith.mulf %187, %180 : vector<8x128xf32>
    %cst_82 = arith.constant -0.284496725 : f32
    %189 = vector.broadcast %cst_82 : f32 to vector<8x128xf32>
    %190 = arith.addf %188, %189 : vector<8x128xf32>
    %191 = arith.mulf %190, %180 : vector<8x128xf32>
    %cst_83 = arith.constant 0.254829586 : f32
    %192 = vector.broadcast %cst_83 : f32 to vector<8x128xf32>
    %193 = arith.addf %191, %192 : vector<8x128xf32>
    %194 = arith.mulf %193, %180 : vector<8x128xf32>
    %cst_84 = arith.constant 0.000000e+00 : f32
    %195 = vector.broadcast %cst_84 : f32 to vector<8x128xf32>
    %196 = arith.subf %195, %174 : vector<8x128xf32>
    %197 = arith.mulf %196, %174 : vector<8x128xf32>
    %198 = math.exp %197 : vector<8x128xf32>
    %199 = arith.mulf %194, %198 : vector<8x128xf32>
    %cst_85 = arith.constant 1.000000e+00 : f32
    %200 = vector.broadcast %cst_85 : f32 to vector<8x128xf32>
    %201 = arith.subf %200, %199 : vector<8x128xf32>
    %cst_86 = arith.constant 0.000000e+00 : f32
    %202 = vector.broadcast %cst_86 : f32 to vector<8x128xf32>
    %203 = arith.cmpf oge, %173, %202 : vector<8x128xf32>
    %cst_87 = arith.constant 0.000000e+00 : f32
    %204 = vector.broadcast %cst_87 : f32 to vector<8x128xf32>
    %205 = arith.subf %204, %201 : vector<8x128xf32>
    %206 = arith.select %203, %201, %205 : vector<8x128xi1>, vector<8x128xf32>
    %cst_88 = arith.constant 1.000000e+00 : f32
    %207 = vector.broadcast %cst_88 : f32 to vector<8x128xf32>
    %208 = arith.addf %207, %206 : vector<8x128xf32>
    %209 = arith.mulf %171, %208 : vector<8x128xf32>
    %c0_89 = arith.constant 0 : index
    %c0_90 = arith.constant 0 : index
    %c0_91 = arith.constant 0 : index
    %210 = vector.load %arg15[%c0_89, %c0_90, %c0_91] : memref<4x128x32xf32, #tpu.memory_space<vmem>>, vector<1x128x32xf32>
    %211 = vector.shape_cast %210 : vector<1x128x32xf32> to vector<128x32xf32>
    %cst_92 = arith.constant dense<0.000000e+00> : vector<8x32xf32>
    %212 = tpu.matmul %209, %211, %cst_92 {dimension_numbers = #tpu.dot_dimension_numbers<[1], [0], [0], [1], [0, 0, 1, 1], [], []>} : vector<8x128xf32>, vector<128x32xf32>, vector<8x32xf32> -> vector<8x32xf32>
    %c0_93 = arith.constant 0 : index
    %c0_94 = arith.constant 0 : index
    %c0_95 = arith.constant 0 : index
    %213 = vector.load %arg16[%c0_93, %c0_94, %c0_95] : memref<4x1x32xf32, #tpu.memory_space<vmem>>, vector<1x1x32xf32>
    %214 = vector.shape_cast %213 : vector<1x1x32xf32> to vector<1x32xf32>
    %215 = vector.broadcast %214 : vector<1x32xf32> to vector<8x32xf32>
    %216 = arith.addf %212, %215 : vector<8x32xf32>
    %217 = arith.addf %136, %216 : vector<8x32xf32>
    %c1 = arith.constant 1 : index
    %c0_96 = arith.constant 0 : index
    %c0_97 = arith.constant 0 : index
    %218 = vector.load %arg6[%c1, %c0_96, %c0_97] : memref<4x1x32xf32, #tpu.memory_space<vmem>>, vector<1x1x32xf32>
    %219 = vector.shape_cast %218 : vector<1x1x32xf32> to vector<1x32xf32>
    %c1_98 = arith.constant 1 : index
    %c0_99 = arith.constant 0 : index
    %c0_100 = arith.constant 0 : index
    %220 = vector.load %arg7[%c1_98, %c0_99, %c0_100] : memref<4x1x32xf32, #tpu.memory_space<vmem>>, vector<1x1x32xf32>
    %221 = vector.shape_cast %220 : vector<1x1x32xf32> to vector<1x32xf32>
    %cst_101 = arith.constant dense<0.000000e+00> : vector<8xf32>
    %222 = vector.multi_reduction <add>, %217, %cst_101 [1] : vector<8x32xf32> to vector<8xf32>
    %223 = vector.shape_cast %222 : vector<8xf32> to vector<8x1xf32>
    %cst_102 = arith.constant 3.200000e+01 : f32
    %224 = vector.broadcast %cst_102 : f32 to vector<8x1xf32>
    %225 = arith.divf %223, %224 : vector<8x1xf32>
    %226 = vector.broadcast %225 : vector<8x1xf32> to vector<8x32xf32>
    %227 = arith.subf %217, %226 : vector<8x32xf32>
    %228 = arith.mulf %227, %227 : vector<8x32xf32>
    %cst_103 = arith.constant dense<0.000000e+00> : vector<8xf32>
    %229 = vector.multi_reduction <add>, %228, %cst_103 [1] : vector<8x32xf32> to vector<8xf32>
    %230 = vector.shape_cast %229 : vector<8xf32> to vector<8x1xf32>
    %cst_104 = arith.constant 3.200000e+01 : f32
    %231 = vector.broadcast %cst_104 : f32 to vector<8x1xf32>
    %232 = arith.divf %230, %231 : vector<8x1xf32>
    %233 = vector.broadcast %225 : vector<8x1xf32> to vector<8x32xf32>
    %234 = arith.subf %217, %233 : vector<8x32xf32>
    %cst_105 = arith.constant 9.99999974E-6 : f32
    %235 = vector.broadcast %cst_105 : f32 to vector<8x1xf32>
    %236 = arith.addf %232, %235 : vector<8x1xf32>
    %237 = math.rsqrt %236 : vector<8x1xf32>
    %238 = vector.broadcast %237 : vector<8x1xf32> to vector<8x32xf32>
    %239 = arith.mulf %234, %238 : vector<8x32xf32>
    %240 = vector.broadcast %219 : vector<1x32xf32> to vector<8x32xf32>
    %241 = arith.mulf %239, %240 : vector<8x32xf32>
    %242 = vector.broadcast %221 : vector<1x32xf32> to vector<8x32xf32>
    %243 = arith.addf %241, %242 : vector<8x32xf32>
    %c1_106 = arith.constant 1 : index
    %c0_107 = arith.constant 0 : index
    %c0_108 = arith.constant 0 : index
    %244 = vector.load %arg8[%c1_106, %c0_107, %c0_108] : memref<4x32x96xf32, #tpu.memory_space<vmem>>, vector<1x32x96xf32>
    %245 = vector.shape_cast %244 : vector<1x32x96xf32> to vector<32x96xf32>
    %cst_109 = arith.constant dense<0.000000e+00> : vector<8x96xf32>
    %246 = tpu.matmul %243, %245, %cst_109 {dimension_numbers = #tpu.dot_dimension_numbers<[1], [0], [0], [1], [0, 0, 1, 1], [], []>} : vector<8x32xf32>, vector<32x96xf32>, vector<8x96xf32> -> vector<8x96xf32>
    %247 = vector.shape_cast %246 : vector<8x96xf32> to vector<1x8x96xf32>
    %c5_i32_110 = arith.constant 5 : i32
    %248 = vector.broadcast %c5_i32_110 : i32 to vector<1x1x8xi32>
    %249 = arith.cmpi slt, %0, %248 : vector<1x1x8xi32>
    %cst_111 = arith.constant 0.000000e+00 : f32
    %cst_112 = arith.constant -1.000000e+30 : f32
    %250 = vector.broadcast %cst_111 : f32 to vector<1x1x8xf32>
    %251 = vector.broadcast %cst_112 : f32 to vector<1x1x8xf32>
    %252 = arith.select %249, %250, %251 : vector<1x1x8xi1>, vector<1x1x8xf32>
    %253 = vector.extract_strided_slice %247 {offsets = [0, 0, 0], sizes = [1, 8, 8], strides = [1, 1, 1]} : vector<1x8x96xf32> to vector<1x8x8xf32>
    %254 = vector.extract_strided_slice %247 {offsets = [0, 0, 32], sizes = [1, 8, 8], strides = [1, 1, 1]} : vector<1x8x96xf32> to vector<1x8x8xf32>
    %255 = vector.extract_strided_slice %247 {offsets = [0, 0, 64], sizes = [1, 8, 8], strides = [1, 1, 1]} : vector<1x8x96xf32> to vector<1x8x8xf32>
    "tpu.trace_start"() <{level = 10 : i32, message = "bnd,bmd->bnm"}> : () -> ()
    %cst_113 = arith.constant dense<0.000000e+00> : vector<1x8x8xf32>
    %256 = tpu.matmul %253, %254, %cst_113 {dimension_numbers = #tpu.dot_dimension_numbers<[2], [2], [1], [1], [0, 0, 0, 1, 1, 1], [0], [0]>} : vector<1x8x8xf32>, vector<1x8x8xf32>, vector<1x8x8xf32> -> vector<1x8x8xf32>
    "tpu.trace_stop"() : () -> ()
    %257 = vector.broadcast %252 : vector<1x1x8xf32> to vector<1x8x8xf32>
    %258 = arith.addf %256, %257 : vector<1x8x8xf32>
    %cst_114 = arith.constant dense<0xFF800000> : vector<1x8xf32>
    %259 = vector.multi_reduction <maximumf>, %258, %cst_114 [2] : vector<1x8x8xf32> to vector<1x8xf32>
    %260 = vector.shape_cast %259 : vector<1x8xf32> to vector<1x8x1xf32>
    %261 = vector.broadcast %260 : vector<1x8x1xf32> to vector<1x8x8xf32>
    %262 = arith.subf %258, %261 : vector<1x8x8xf32>
    %263 = math.exp %262 : vector<1x8x8xf32>
    %cst_115 = arith.constant dense<0.000000e+00> : vector<1x8xf32>
    %264 = vector.multi_reduction <add>, %263, %cst_115 [2] : vector<1x8x8xf32> to vector<1x8xf32>
    %265 = vector.shape_cast %264 : vector<1x8xf32> to vector<1x8x1xf32>
    %266 = tpu.reciprocal %265 {approx = true} : vector<1x8x1xf32> -> vector<1x8x1xf32>
    %267 = vector.broadcast %266 : vector<1x8x1xf32> to vector<1x8x8xf32>
    %268 = arith.mulf %263, %267 : vector<1x8x8xf32>
    "tpu.trace_start"() <{level = 10 : i32, message = "bnm,bmd->bnd"}> : () -> ()
    %cst_116 = arith.constant dense<0.000000e+00> : vector<1x8x8xf32>
    %269 = tpu.matmul %268, %255, %cst_116 {dimension_numbers = #tpu.dot_dimension_numbers<[2], [1], [1], [2], [0, 0, 0, 1, 1, 2], [0], [0]>} : vector<1x8x8xf32>, vector<1x8x8xf32>, vector<1x8x8xf32> -> vector<1x8x8xf32>
    "tpu.trace_stop"() : () -> ()
    %270 = vector.extract_strided_slice %247 {offsets = [0, 0, 8], sizes = [1, 8, 8], strides = [1, 1, 1]} : vector<1x8x96xf32> to vector<1x8x8xf32>
    %271 = vector.extract_strided_slice %247 {offsets = [0, 0, 40], sizes = [1, 8, 8], strides = [1, 1, 1]} : vector<1x8x96xf32> to vector<1x8x8xf32>
    %272 = vector.extract_strided_slice %247 {offsets = [0, 0, 72], sizes = [1, 8, 8], strides = [1, 1, 1]} : vector<1x8x96xf32> to vector<1x8x8xf32>
    "tpu.trace_start"() <{level = 10 : i32, message = "bnd,bmd->bnm"}> : () -> ()
    %cst_117 = arith.constant dense<0.000000e+00> : vector<1x8x8xf32>
    %273 = tpu.matmul %270, %271, %cst_117 {dimension_numbers = #tpu.dot_dimension_numbers<[2], [2], [1], [1], [0, 0, 0, 1, 1, 1], [0], [0]>} : vector<1x8x8xf32>, vector<1x8x8xf32>, vector<1x8x8xf32> -> vector<1x8x8xf32>
    "tpu.trace_stop"() : () -> ()
    %274 = vector.broadcast %252 : vector<1x1x8xf32> to vector<1x8x8xf32>
    %275 = arith.addf %273, %274 : vector<1x8x8xf32>
    %cst_118 = arith.constant dense<0xFF800000> : vector<1x8xf32>
    %276 = vector.multi_reduction <maximumf>, %275, %cst_118 [2] : vector<1x8x8xf32> to vector<1x8xf32>
    %277 = vector.shape_cast %276 : vector<1x8xf32> to vector<1x8x1xf32>
    %278 = vector.broadcast %277 : vector<1x8x1xf32> to vector<1x8x8xf32>
    %279 = arith.subf %275, %278 : vector<1x8x8xf32>
    %280 = math.exp %279 : vector<1x8x8xf32>
    %cst_119 = arith.constant dense<0.000000e+00> : vector<1x8xf32>
    %281 = vector.multi_reduction <add>, %280, %cst_119 [2] : vector<1x8x8xf32> to vector<1x8xf32>
    %282 = vector.shape_cast %281 : vector<1x8xf32> to vector<1x8x1xf32>
    %283 = tpu.reciprocal %282 {approx = true} : vector<1x8x1xf32> -> vector<1x8x1xf32>
    %284 = vector.broadcast %283 : vector<1x8x1xf32> to vector<1x8x8xf32>
    %285 = arith.mulf %280, %284 : vector<1x8x8xf32>
    "tpu.trace_start"() <{level = 10 : i32, message = "bnm,bmd->bnd"}> : () -> ()
    %cst_120 = arith.constant dense<0.000000e+00> : vector<1x8x8xf32>
    %286 = tpu.matmul %285, %272, %cst_120 {dimension_numbers = #tpu.dot_dimension_numbers<[2], [1], [1], [2], [0, 0, 0, 1, 1, 2], [0], [0]>} : vector<1x8x8xf32>, vector<1x8x8xf32>, vector<1x8x8xf32> -> vector<1x8x8xf32>
    "tpu.trace_stop"() : () -> ()
    %287 = vector.extract_strided_slice %247 {offsets = [0, 0, 16], sizes = [1, 8, 8], strides = [1, 1, 1]} : vector<1x8x96xf32> to vector<1x8x8xf32>
    %288 = vector.extract_strided_slice %247 {offsets = [0, 0, 48], sizes = [1, 8, 8], strides = [1, 1, 1]} : vector<1x8x96xf32> to vector<1x8x8xf32>
    %289 = vector.extract_strided_slice %247 {offsets = [0, 0, 80], sizes = [1, 8, 8], strides = [1, 1, 1]} : vector<1x8x96xf32> to vector<1x8x8xf32>
    "tpu.trace_start"() <{level = 10 : i32, message = "bnd,bmd->bnm"}> : () -> ()
    %cst_121 = arith.constant dense<0.000000e+00> : vector<1x8x8xf32>
    %290 = tpu.matmul %287, %288, %cst_121 {dimension_numbers = #tpu.dot_dimension_numbers<[2], [2], [1], [1], [0, 0, 0, 1, 1, 1], [0], [0]>} : vector<1x8x8xf32>, vector<1x8x8xf32>, vector<1x8x8xf32> -> vector<1x8x8xf32>
    "tpu.trace_stop"() : () -> ()
    %291 = vector.broadcast %252 : vector<1x1x8xf32> to vector<1x8x8xf32>
    %292 = arith.addf %290, %291 : vector<1x8x8xf32>
    %cst_122 = arith.constant dense<0xFF800000> : vector<1x8xf32>
    %293 = vector.multi_reduction <maximumf>, %292, %cst_122 [2] : vector<1x8x8xf32> to vector<1x8xf32>
    %294 = vector.shape_cast %293 : vector<1x8xf32> to vector<1x8x1xf32>
    %295 = vector.broadcast %294 : vector<1x8x1xf32> to vector<1x8x8xf32>
    %296 = arith.subf %292, %295 : vector<1x8x8xf32>
    %297 = math.exp %296 : vector<1x8x8xf32>
    %cst_123 = arith.constant dense<0.000000e+00> : vector<1x8xf32>
    %298 = vector.multi_reduction <add>, %297, %cst_123 [2] : vector<1x8x8xf32> to vector<1x8xf32>
    %299 = vector.shape_cast %298 : vector<1x8xf32> to vector<1x8x1xf32>
    %300 = tpu.reciprocal %299 {approx = true} : vector<1x8x1xf32> -> vector<1x8x1xf32>
    %301 = vector.broadcast %300 : vector<1x8x1xf32> to vector<1x8x8xf32>
    %302 = arith.mulf %297, %301 : vector<1x8x8xf32>
    "tpu.trace_start"() <{level = 10 : i32, message = "bnm,bmd->bnd"}> : () -> ()
    %cst_124 = arith.constant dense<0.000000e+00> : vector<1x8x8xf32>
    %303 = tpu.matmul %302, %289, %cst_124 {dimension_numbers = #tpu.dot_dimension_numbers<[2], [1], [1], [2], [0, 0, 0, 1, 1, 2], [0], [0]>} : vector<1x8x8xf32>, vector<1x8x8xf32>, vector<1x8x8xf32> -> vector<1x8x8xf32>
    "tpu.trace_stop"() : () -> ()
    %304 = vector.extract_strided_slice %247 {offsets = [0, 0, 24], sizes = [1, 8, 8], strides = [1, 1, 1]} : vector<1x8x96xf32> to vector<1x8x8xf32>
    %305 = vector.extract_strided_slice %247 {offsets = [0, 0, 56], sizes = [1, 8, 8], strides = [1, 1, 1]} : vector<1x8x96xf32> to vector<1x8x8xf32>
    %306 = vector.extract_strided_slice %247 {offsets = [0, 0, 88], sizes = [1, 8, 8], strides = [1, 1, 1]} : vector<1x8x96xf32> to vector<1x8x8xf32>
    "tpu.trace_start"() <{level = 10 : i32, message = "bnd,bmd->bnm"}> : () -> ()
    %cst_125 = arith.constant dense<0.000000e+00> : vector<1x8x8xf32>
    %307 = tpu.matmul %304, %305, %cst_125 {dimension_numbers = #tpu.dot_dimension_numbers<[2], [2], [1], [1], [0, 0, 0, 1, 1, 1], [0], [0]>} : vector<1x8x8xf32>, vector<1x8x8xf32>, vector<1x8x8xf32> -> vector<1x8x8xf32>
    "tpu.trace_stop"() : () -> ()
    %308 = vector.broadcast %252 : vector<1x1x8xf32> to vector<1x8x8xf32>
    %309 = arith.addf %307, %308 : vector<1x8x8xf32>
    %cst_126 = arith.constant dense<0xFF800000> : vector<1x8xf32>
    %310 = vector.multi_reduction <maximumf>, %309, %cst_126 [2] : vector<1x8x8xf32> to vector<1x8xf32>
    %311 = vector.shape_cast %310 : vector<1x8xf32> to vector<1x8x1xf32>
    %312 = vector.broadcast %311 : vector<1x8x1xf32> to vector<1x8x8xf32>
    %313 = arith.subf %309, %312 : vector<1x8x8xf32>
    %314 = math.exp %313 : vector<1x8x8xf32>
    %cst_127 = arith.constant dense<0.000000e+00> : vector<1x8xf32>
    %315 = vector.multi_reduction <add>, %314, %cst_127 [2] : vector<1x8x8xf32> to vector<1x8xf32>
    %316 = vector.shape_cast %315 : vector<1x8xf32> to vector<1x8x1xf32>
    %317 = tpu.reciprocal %316 {approx = true} : vector<1x8x1xf32> -> vector<1x8x1xf32>
    %318 = vector.broadcast %317 : vector<1x8x1xf32> to vector<1x8x8xf32>
    %319 = arith.mulf %314, %318 : vector<1x8x8xf32>
    "tpu.trace_start"() <{level = 10 : i32, message = "bnm,bmd->bnd"}> : () -> ()
    %cst_128 = arith.constant dense<0.000000e+00> : vector<1x8x8xf32>
    %320 = tpu.matmul %319, %306, %cst_128 {dimension_numbers = #tpu.dot_dimension_numbers<[2], [1], [1], [2], [0, 0, 0, 1, 1, 2], [0], [0]>} : vector<1x8x8xf32>, vector<1x8x8xf32>, vector<1x8x8xf32> -> vector<1x8x8xf32>
    "tpu.trace_stop"() : () -> ()
    %321 = tpu.concatenate %269, %286, %303, %320 in 2 : vector<1x8x8xf32>, vector<1x8x8xf32>, vector<1x8x8xf32>, vector<1x8x8xf32> -> vector<1x8x32xf32>
    %322 = vector.shape_cast %321 : vector<1x8x32xf32> to vector<8x32xf32>
    %c1_129 = arith.constant 1 : index
    %c0_130 = arith.constant 0 : index
    %c0_131 = arith.constant 0 : index
    %323 = vector.load %arg9[%c1_129, %c0_130, %c0_131] : memref<4x32x32xf32, #tpu.memory_space<vmem>>, vector<1x32x32xf32>
    %324 = vector.shape_cast %323 : vector<1x32x32xf32> to vector<32x32xf32>
    %cst_132 = arith.constant dense<0.000000e+00> : vector<8x32xf32>
    %325 = tpu.matmul %322, %324, %cst_132 {dimension_numbers = #tpu.dot_dimension_numbers<[1], [0], [0], [1], [0, 0, 1, 1], [], []>} : vector<8x32xf32>, vector<32x32xf32>, vector<8x32xf32> -> vector<8x32xf32>
    %c1_133 = arith.constant 1 : index
    %c0_134 = arith.constant 0 : index
    %c0_135 = arith.constant 0 : index
    %326 = vector.load %arg10[%c1_133, %c0_134, %c0_135] : memref<4x1x32xf32, #tpu.memory_space<vmem>>, vector<1x1x32xf32>
    %327 = vector.shape_cast %326 : vector<1x1x32xf32> to vector<1x32xf32>
    %328 = vector.broadcast %327 : vector<1x32xf32> to vector<8x32xf32>
    %329 = arith.addf %325, %328 : vector<8x32xf32>
    %330 = arith.addf %217, %329 : vector<8x32xf32>
    %c1_136 = arith.constant 1 : index
    %c0_137 = arith.constant 0 : index
    %c0_138 = arith.constant 0 : index
    %331 = vector.load %arg11[%c1_136, %c0_137, %c0_138] : memref<4x1x32xf32, #tpu.memory_space<vmem>>, vector<1x1x32xf32>
    %332 = vector.shape_cast %331 : vector<1x1x32xf32> to vector<1x32xf32>
    %c1_139 = arith.constant 1 : index
    %c0_140 = arith.constant 0 : index
    %c0_141 = arith.constant 0 : index
    %333 = vector.load %arg12[%c1_139, %c0_140, %c0_141] : memref<4x1x32xf32, #tpu.memory_space<vmem>>, vector<1x1x32xf32>
    %334 = vector.shape_cast %333 : vector<1x1x32xf32> to vector<1x32xf32>
    %cst_142 = arith.constant dense<0.000000e+00> : vector<8xf32>
    %335 = vector.multi_reduction <add>, %330, %cst_142 [1] : vector<8x32xf32> to vector<8xf32>
    %336 = vector.shape_cast %335 : vector<8xf32> to vector<8x1xf32>
    %cst_143 = arith.constant 3.200000e+01 : f32
    %337 = vector.broadcast %cst_143 : f32 to vector<8x1xf32>
    %338 = arith.divf %336, %337 : vector<8x1xf32>
    %339 = vector.broadcast %338 : vector<8x1xf32> to vector<8x32xf32>
    %340 = arith.subf %330, %339 : vector<8x32xf32>
    %341 = arith.mulf %340, %340 : vector<8x32xf32>
    %cst_144 = arith.constant dense<0.000000e+00> : vector<8xf32>
    %342 = vector.multi_reduction <add>, %341, %cst_144 [1] : vector<8x32xf32> to vector<8xf32>
    %343 = vector.shape_cast %342 : vector<8xf32> to vector<8x1xf32>
    %cst_145 = arith.constant 3.200000e+01 : f32
    %344 = vector.broadcast %cst_145 : f32 to vector<8x1xf32>
    %345 = arith.divf %343, %344 : vector<8x1xf32>
    %346 = vector.broadcast %338 : vector<8x1xf32> to vector<8x32xf32>
    %347 = arith.subf %330, %346 : vector<8x32xf32>
    %cst_146 = arith.constant 9.99999974E-6 : f32
    %348 = vector.broadcast %cst_146 : f32 to vector<8x1xf32>
    %349 = arith.addf %345, %348 : vector<8x1xf32>
    %350 = math.rsqrt %349 : vector<8x1xf32>
    %351 = vector.broadcast %350 : vector<8x1xf32> to vector<8x32xf32>
    %352 = arith.mulf %347, %351 : vector<8x32xf32>
    %353 = vector.broadcast %332 : vector<1x32xf32> to vector<8x32xf32>
    %354 = arith.mulf %352, %353 : vector<8x32xf32>
    %355 = vector.broadcast %334 : vector<1x32xf32> to vector<8x32xf32>
    %356 = arith.addf %354, %355 : vector<8x32xf32>
    %c1_147 = arith.constant 1 : index
    %c0_148 = arith.constant 0 : index
    %c0_149 = arith.constant 0 : index
    %357 = vector.load %arg13[%c1_147, %c0_148, %c0_149] : memref<4x32x128xf32, #tpu.memory_space<vmem>>, vector<1x32x128xf32>
    %358 = vector.shape_cast %357 : vector<1x32x128xf32> to vector<32x128xf32>
    %cst_150 = arith.constant dense<0.000000e+00> : vector<8x128xf32>
    %359 = tpu.matmul %356, %358, %cst_150 {dimension_numbers = #tpu.dot_dimension_numbers<[1], [0], [0], [1], [0, 0, 1, 1], [], []>} : vector<8x32xf32>, vector<32x128xf32>, vector<8x128xf32> -> vector<8x128xf32>
    %c1_151 = arith.constant 1 : index
    %c0_152 = arith.constant 0 : index
    %c0_153 = arith.constant 0 : index
    %360 = vector.load %arg14[%c1_151, %c0_152, %c0_153] : memref<4x1x128xf32, #tpu.memory_space<vmem>>, vector<1x1x128xf32>
    %361 = vector.shape_cast %360 : vector<1x1x128xf32> to vector<1x128xf32>
    %362 = vector.broadcast %361 : vector<1x128xf32> to vector<8x128xf32>
    %363 = arith.addf %359, %362 : vector<8x128xf32>
    %cst_154 = arith.constant 5.000000e-01 : f32
    %364 = vector.broadcast %cst_154 : f32 to vector<8x128xf32>
    %365 = arith.mulf %364, %363 : vector<8x128xf32>
    %cst_155 = arith.constant 0.707106769 : f32
    %366 = vector.broadcast %cst_155 : f32 to vector<8x128xf32>
    %367 = arith.mulf %363, %366 : vector<8x128xf32>
    %368 = math.absf %367 : vector<8x128xf32>
    %cst_156 = arith.constant 0.327591091 : f32
    %369 = vector.broadcast %cst_156 : f32 to vector<8x128xf32>
    %370 = arith.mulf %369, %368 : vector<8x128xf32>
    %cst_157 = arith.constant 1.000000e+00 : f32
    %371 = vector.broadcast %cst_157 : f32 to vector<8x128xf32>
    %372 = arith.addf %371, %370 : vector<8x128xf32>
    %cst_158 = arith.constant 1.000000e+00 : f32
    %373 = vector.broadcast %cst_158 : f32 to vector<8x128xf32>
    %374 = arith.divf %373, %372 : vector<8x128xf32>
    %cst_159 = arith.constant 1.06140542 : f32
    %375 = vector.broadcast %cst_159 : f32 to vector<8x128xf32>
    %376 = arith.mulf %375, %374 : vector<8x128xf32>
    %cst_160 = arith.constant -1.45315206 : f32
    %377 = vector.broadcast %cst_160 : f32 to vector<8x128xf32>
    %378 = arith.addf %376, %377 : vector<8x128xf32>
    %379 = arith.mulf %378, %374 : vector<8x128xf32>
    %cst_161 = arith.constant 1.42141378 : f32
    %380 = vector.broadcast %cst_161 : f32 to vector<8x128xf32>
    %381 = arith.addf %379, %380 : vector<8x128xf32>
    %382 = arith.mulf %381, %374 : vector<8x128xf32>
    %cst_162 = arith.constant -0.284496725 : f32
    %383 = vector.broadcast %cst_162 : f32 to vector<8x128xf32>
    %384 = arith.addf %382, %383 : vector<8x128xf32>
    %385 = arith.mulf %384, %374 : vector<8x128xf32>
    %cst_163 = arith.constant 0.254829586 : f32
    %386 = vector.broadcast %cst_163 : f32 to vector<8x128xf32>
    %387 = arith.addf %385, %386 : vector<8x128xf32>
    %388 = arith.mulf %387, %374 : vector<8x128xf32>
    %cst_164 = arith.constant 0.000000e+00 : f32
    %389 = vector.broadcast %cst_164 : f32 to vector<8x128xf32>
    %390 = arith.subf %389, %368 : vector<8x128xf32>
    %391 = arith.mulf %390, %368 : vector<8x128xf32>
    %392 = math.exp %391 : vector<8x128xf32>
    %393 = arith.mulf %388, %392 : vector<8x128xf32>
    %cst_165 = arith.constant 1.000000e+00 : f32
    %394 = vector.broadcast %cst_165 : f32 to vector<8x128xf32>
    %395 = arith.subf %394, %393 : vector<8x128xf32>
    %cst_166 = arith.constant 0.000000e+00 : f32
    %396 = vector.broadcast %cst_166 : f32 to vector<8x128xf32>
    %397 = arith.cmpf oge, %367, %396 : vector<8x128xf32>
    %cst_167 = arith.constant 0.000000e+00 : f32
    %398 = vector.broadcast %cst_167 : f32 to vector<8x128xf32>
    %399 = arith.subf %398, %395 : vector<8x128xf32>
    %400 = arith.select %397, %395, %399 : vector<8x128xi1>, vector<8x128xf32>
    %cst_168 = arith.constant 1.000000e+00 : f32
    %401 = vector.broadcast %cst_168 : f32 to vector<8x128xf32>
    %402 = arith.addf %401, %400 : vector<8x128xf32>
    %403 = arith.mulf %365, %402 : vector<8x128xf32>
    %c1_169 = arith.constant 1 : index
    %c0_170 = arith.constant 0 : index
    %c0_171 = arith.constant 0 : index
    %404 = vector.load %arg15[%c1_169, %c0_170, %c0_171] : memref<4x128x32xf32, #tpu.memory_space<vmem>>, vector<1x128x32xf32>
    %405 = vector.shape_cast %404 : vector<1x128x32xf32> to vector<128x32xf32>
    %cst_172 = arith.constant dense<0.000000e+00> : vector<8x32xf32>
    %406 = tpu.matmul %403, %405, %cst_172 {dimension_numbers = #tpu.dot_dimension_numbers<[1], [0], [0], [1], [0, 0, 1, 1], [], []>} : vector<8x128xf32>, vector<128x32xf32>, vector<8x32xf32> -> vector<8x32xf32>
    %c1_173 = arith.constant 1 : index
    %c0_174 = arith.constant 0 : index
    %c0_175 = arith.constant 0 : index
    %407 = vector.load %arg16[%c1_173, %c0_174, %c0_175] : memref<4x1x32xf32, #tpu.memory_space<vmem>>, vector<1x1x32xf32>
    %408 = vector.shape_cast %407 : vector<1x1x32xf32> to vector<1x32xf32>
    %409 = vector.broadcast %408 : vector<1x32xf32> to vector<8x32xf32>
    %410 = arith.addf %406, %409 : vector<8x32xf32>
    %411 = arith.addf %330, %410 : vector<8x32xf32>
    %c2 = arith.constant 2 : index
    %c0_176 = arith.constant 0 : index
    %c0_177 = arith.constant 0 : index
    %412 = vector.load %arg6[%c2, %c0_176, %c0_177] : memref<4x1x32xf32, #tpu.memory_space<vmem>>, vector<1x1x32xf32>
    %413 = vector.shape_cast %412 : vector<1x1x32xf32> to vector<1x32xf32>
    %c2_178 = arith.constant 2 : index
    %c0_179 = arith.constant 0 : index
    %c0_180 = arith.constant 0 : index
    %414 = vector.load %arg7[%c2_178, %c0_179, %c0_180] : memref<4x1x32xf32, #tpu.memory_space<vmem>>, vector<1x1x32xf32>
    %415 = vector.shape_cast %414 : vector<1x1x32xf32> to vector<1x32xf32>
    %cst_181 = arith.constant dense<0.000000e+00> : vector<8xf32>
    %416 = vector.multi_reduction <add>, %411, %cst_181 [1] : vector<8x32xf32> to vector<8xf32>
    %417 = vector.shape_cast %416 : vector<8xf32> to vector<8x1xf32>
    %cst_182 = arith.constant 3.200000e+01 : f32
    %418 = vector.broadcast %cst_182 : f32 to vector<8x1xf32>
    %419 = arith.divf %417, %418 : vector<8x1xf32>
    %420 = vector.broadcast %419 : vector<8x1xf32> to vector<8x32xf32>
    %421 = arith.subf %411, %420 : vector<8x32xf32>
    %422 = arith.mulf %421, %421 : vector<8x32xf32>
    %cst_183 = arith.constant dense<0.000000e+00> : vector<8xf32>
    %423 = vector.multi_reduction <add>, %422, %cst_183 [1] : vector<8x32xf32> to vector<8xf32>
    %424 = vector.shape_cast %423 : vector<8xf32> to vector<8x1xf32>
    %cst_184 = arith.constant 3.200000e+01 : f32
    %425 = vector.broadcast %cst_184 : f32 to vector<8x1xf32>
    %426 = arith.divf %424, %425 : vector<8x1xf32>
    %427 = vector.broadcast %419 : vector<8x1xf32> to vector<8x32xf32>
    %428 = arith.subf %411, %427 : vector<8x32xf32>
    %cst_185 = arith.constant 9.99999974E-6 : f32
    %429 = vector.broadcast %cst_185 : f32 to vector<8x1xf32>
    %430 = arith.addf %426, %429 : vector<8x1xf32>
    %431 = math.rsqrt %430 : vector<8x1xf32>
    %432 = vector.broadcast %431 : vector<8x1xf32> to vector<8x32xf32>
    %433 = arith.mulf %428, %432 : vector<8x32xf32>
    %434 = vector.broadcast %413 : vector<1x32xf32> to vector<8x32xf32>
    %435 = arith.mulf %433, %434 : vector<8x32xf32>
    %436 = vector.broadcast %415 : vector<1x32xf32> to vector<8x32xf32>
    %437 = arith.addf %435, %436 : vector<8x32xf32>
    %c2_186 = arith.constant 2 : index
    %c0_187 = arith.constant 0 : index
    %c0_188 = arith.constant 0 : index
    %438 = vector.load %arg8[%c2_186, %c0_187, %c0_188] : memref<4x32x96xf32, #tpu.memory_space<vmem>>, vector<1x32x96xf32>
    %439 = vector.shape_cast %438 : vector<1x32x96xf32> to vector<32x96xf32>
    %cst_189 = arith.constant dense<0.000000e+00> : vector<8x96xf32>
    %440 = tpu.matmul %437, %439, %cst_189 {dimension_numbers = #tpu.dot_dimension_numbers<[1], [0], [0], [1], [0, 0, 1, 1], [], []>} : vector<8x32xf32>, vector<32x96xf32>, vector<8x96xf32> -> vector<8x96xf32>
    %441 = vector.shape_cast %440 : vector<8x96xf32> to vector<1x8x96xf32>
    %c5_i32_190 = arith.constant 5 : i32
    %442 = vector.broadcast %c5_i32_190 : i32 to vector<1x1x8xi32>
    %443 = arith.cmpi slt, %0, %442 : vector<1x1x8xi32>
    %cst_191 = arith.constant 0.000000e+00 : f32
    %cst_192 = arith.constant -1.000000e+30 : f32
    %444 = vector.broadcast %cst_191 : f32 to vector<1x1x8xf32>
    %445 = vector.broadcast %cst_192 : f32 to vector<1x1x8xf32>
    %446 = arith.select %443, %444, %445 : vector<1x1x8xi1>, vector<1x1x8xf32>
    %447 = vector.extract_strided_slice %441 {offsets = [0, 0, 0], sizes = [1, 8, 8], strides = [1, 1, 1]} : vector<1x8x96xf32> to vector<1x8x8xf32>
    %448 = vector.extract_strided_slice %441 {offsets = [0, 0, 32], sizes = [1, 8, 8], strides = [1, 1, 1]} : vector<1x8x96xf32> to vector<1x8x8xf32>
    %449 = vector.extract_strided_slice %441 {offsets = [0, 0, 64], sizes = [1, 8, 8], strides = [1, 1, 1]} : vector<1x8x96xf32> to vector<1x8x8xf32>
    "tpu.trace_start"() <{level = 10 : i32, message = "bnd,bmd->bnm"}> : () -> ()
    %cst_193 = arith.constant dense<0.000000e+00> : vector<1x8x8xf32>
    %450 = tpu.matmul %447, %448, %cst_193 {dimension_numbers = #tpu.dot_dimension_numbers<[2], [2], [1], [1], [0, 0, 0, 1, 1, 1], [0], [0]>} : vector<1x8x8xf32>, vector<1x8x8xf32>, vector<1x8x8xf32> -> vector<1x8x8xf32>
    "tpu.trace_stop"() : () -> ()
    %451 = vector.broadcast %446 : vector<1x1x8xf32> to vector<1x8x8xf32>
    %452 = arith.addf %450, %451 : vector<1x8x8xf32>
    %cst_194 = arith.constant dense<0xFF800000> : vector<1x8xf32>
    %453 = vector.multi_reduction <maximumf>, %452, %cst_194 [2] : vector<1x8x8xf32> to vector<1x8xf32>
    %454 = vector.shape_cast %453 : vector<1x8xf32> to vector<1x8x1xf32>
    %455 = vector.broadcast %454 : vector<1x8x1xf32> to vector<1x8x8xf32>
    %456 = arith.subf %452, %455 : vector<1x8x8xf32>
    %457 = math.exp %456 : vector<1x8x8xf32>
    %cst_195 = arith.constant dense<0.000000e+00> : vector<1x8xf32>
    %458 = vector.multi_reduction <add>, %457, %cst_195 [2] : vector<1x8x8xf32> to vector<1x8xf32>
    %459 = vector.shape_cast %458 : vector<1x8xf32> to vector<1x8x1xf32>
    %460 = tpu.reciprocal %459 {approx = true} : vector<1x8x1xf32> -> vector<1x8x1xf32>
    %461 = vector.broadcast %460 : vector<1x8x1xf32> to vector<1x8x8xf32>
    %462 = arith.mulf %457, %461 : vector<1x8x8xf32>
    "tpu.trace_start"() <{level = 10 : i32, message = "bnm,bmd->bnd"}> : () -> ()
    %cst_196 = arith.constant dense<0.000000e+00> : vector<1x8x8xf32>
    %463 = tpu.matmul %462, %449, %cst_196 {dimension_numbers = #tpu.dot_dimension_numbers<[2], [1], [1], [2], [0, 0, 0, 1, 1, 2], [0], [0]>} : vector<1x8x8xf32>, vector<1x8x8xf32>, vector<1x8x8xf32> -> vector<1x8x8xf32>
    "tpu.trace_stop"() : () -> ()
    %464 = vector.extract_strided_slice %441 {offsets = [0, 0, 8], sizes = [1, 8, 8], strides = [1, 1, 1]} : vector<1x8x96xf32> to vector<1x8x8xf32>
    %465 = vector.extract_strided_slice %441 {offsets = [0, 0, 40], sizes = [1, 8, 8], strides = [1, 1, 1]} : vector<1x8x96xf32> to vector<1x8x8xf32>
    %466 = vector.extract_strided_slice %441 {offsets = [0, 0, 72], sizes = [1, 8, 8], strides = [1, 1, 1]} : vector<1x8x96xf32> to vector<1x8x8xf32>
    "tpu.trace_start"() <{level = 10 : i32, message = "bnd,bmd->bnm"}> : () -> ()
    %cst_197 = arith.constant dense<0.000000e+00> : vector<1x8x8xf32>
    %467 = tpu.matmul %464, %465, %cst_197 {dimension_numbers = #tpu.dot_dimension_numbers<[2], [2], [1], [1], [0, 0, 0, 1, 1, 1], [0], [0]>} : vector<1x8x8xf32>, vector<1x8x8xf32>, vector<1x8x8xf32> -> vector<1x8x8xf32>
    "tpu.trace_stop"() : () -> ()
    %468 = vector.broadcast %446 : vector<1x1x8xf32> to vector<1x8x8xf32>
    %469 = arith.addf %467, %468 : vector<1x8x8xf32>
    %cst_198 = arith.constant dense<0xFF800000> : vector<1x8xf32>
    %470 = vector.multi_reduction <maximumf>, %469, %cst_198 [2] : vector<1x8x8xf32> to vector<1x8xf32>
    %471 = vector.shape_cast %470 : vector<1x8xf32> to vector<1x8x1xf32>
    %472 = vector.broadcast %471 : vector<1x8x1xf32> to vector<1x8x8xf32>
    %473 = arith.subf %469, %472 : vector<1x8x8xf32>
    %474 = math.exp %473 : vector<1x8x8xf32>
    %cst_199 = arith.constant dense<0.000000e+00> : vector<1x8xf32>
    %475 = vector.multi_reduction <add>, %474, %cst_199 [2] : vector<1x8x8xf32> to vector<1x8xf32>
    %476 = vector.shape_cast %475 : vector<1x8xf32> to vector<1x8x1xf32>
    %477 = tpu.reciprocal %476 {approx = true} : vector<1x8x1xf32> -> vector<1x8x1xf32>
    %478 = vector.broadcast %477 : vector<1x8x1xf32> to vector<1x8x8xf32>
    %479 = arith.mulf %474, %478 : vector<1x8x8xf32>
    "tpu.trace_start"() <{level = 10 : i32, message = "bnm,bmd->bnd"}> : () -> ()
    %cst_200 = arith.constant dense<0.000000e+00> : vector<1x8x8xf32>
    %480 = tpu.matmul %479, %466, %cst_200 {dimension_numbers = #tpu.dot_dimension_numbers<[2], [1], [1], [2], [0, 0, 0, 1, 1, 2], [0], [0]>} : vector<1x8x8xf32>, vector<1x8x8xf32>, vector<1x8x8xf32> -> vector<1x8x8xf32>
    "tpu.trace_stop"() : () -> ()
    %481 = vector.extract_strided_slice %441 {offsets = [0, 0, 16], sizes = [1, 8, 8], strides = [1, 1, 1]} : vector<1x8x96xf32> to vector<1x8x8xf32>
    %482 = vector.extract_strided_slice %441 {offsets = [0, 0, 48], sizes = [1, 8, 8], strides = [1, 1, 1]} : vector<1x8x96xf32> to vector<1x8x8xf32>
    %483 = vector.extract_strided_slice %441 {offsets = [0, 0, 80], sizes = [1, 8, 8], strides = [1, 1, 1]} : vector<1x8x96xf32> to vector<1x8x8xf32>
    "tpu.trace_start"() <{level = 10 : i32, message = "bnd,bmd->bnm"}> : () -> ()
    %cst_201 = arith.constant dense<0.000000e+00> : vector<1x8x8xf32>
    %484 = tpu.matmul %481, %482, %cst_201 {dimension_numbers = #tpu.dot_dimension_numbers<[2], [2], [1], [1], [0, 0, 0, 1, 1, 1], [0], [0]>} : vector<1x8x8xf32>, vector<1x8x8xf32>, vector<1x8x8xf32> -> vector<1x8x8xf32>
    "tpu.trace_stop"() : () -> ()
    %485 = vector.broadcast %446 : vector<1x1x8xf32> to vector<1x8x8xf32>
    %486 = arith.addf %484, %485 : vector<1x8x8xf32>
    %cst_202 = arith.constant dense<0xFF800000> : vector<1x8xf32>
    %487 = vector.multi_reduction <maximumf>, %486, %cst_202 [2] : vector<1x8x8xf32> to vector<1x8xf32>
    %488 = vector.shape_cast %487 : vector<1x8xf32> to vector<1x8x1xf32>
    %489 = vector.broadcast %488 : vector<1x8x1xf32> to vector<1x8x8xf32>
    %490 = arith.subf %486, %489 : vector<1x8x8xf32>
    %491 = math.exp %490 : vector<1x8x8xf32>
    %cst_203 = arith.constant dense<0.000000e+00> : vector<1x8xf32>
    %492 = vector.multi_reduction <add>, %491, %cst_203 [2] : vector<1x8x8xf32> to vector<1x8xf32>
    %493 = vector.shape_cast %492 : vector<1x8xf32> to vector<1x8x1xf32>
    %494 = tpu.reciprocal %493 {approx = true} : vector<1x8x1xf32> -> vector<1x8x1xf32>
    %495 = vector.broadcast %494 : vector<1x8x1xf32> to vector<1x8x8xf32>
    %496 = arith.mulf %491, %495 : vector<1x8x8xf32>
    "tpu.trace_start"() <{level = 10 : i32, message = "bnm,bmd->bnd"}> : () -> ()
    %cst_204 = arith.constant dense<0.000000e+00> : vector<1x8x8xf32>
    %497 = tpu.matmul %496, %483, %cst_204 {dimension_numbers = #tpu.dot_dimension_numbers<[2], [1], [1], [2], [0, 0, 0, 1, 1, 2], [0], [0]>} : vector<1x8x8xf32>, vector<1x8x8xf32>, vector<1x8x8xf32> -> vector<1x8x8xf32>
    "tpu.trace_stop"() : () -> ()
    %498 = vector.extract_strided_slice %441 {offsets = [0, 0, 24], sizes = [1, 8, 8], strides = [1, 1, 1]} : vector<1x8x96xf32> to vector<1x8x8xf32>
    %499 = vector.extract_strided_slice %441 {offsets = [0, 0, 56], sizes = [1, 8, 8], strides = [1, 1, 1]} : vector<1x8x96xf32> to vector<1x8x8xf32>
    %500 = vector.extract_strided_slice %441 {offsets = [0, 0, 88], sizes = [1, 8, 8], strides = [1, 1, 1]} : vector<1x8x96xf32> to vector<1x8x8xf32>
    "tpu.trace_start"() <{level = 10 : i32, message = "bnd,bmd->bnm"}> : () -> ()
    %cst_205 = arith.constant dense<0.000000e+00> : vector<1x8x8xf32>
    %501 = tpu.matmul %498, %499, %cst_205 {dimension_numbers = #tpu.dot_dimension_numbers<[2], [2], [1], [1], [0, 0, 0, 1, 1, 1], [0], [0]>} : vector<1x8x8xf32>, vector<1x8x8xf32>, vector<1x8x8xf32> -> vector<1x8x8xf32>
    "tpu.trace_stop"() : () -> ()
    %502 = vector.broadcast %446 : vector<1x1x8xf32> to vector<1x8x8xf32>
    %503 = arith.addf %501, %502 : vector<1x8x8xf32>
    %cst_206 = arith.constant dense<0xFF800000> : vector<1x8xf32>
    %504 = vector.multi_reduction <maximumf>, %503, %cst_206 [2] : vector<1x8x8xf32> to vector<1x8xf32>
    %505 = vector.shape_cast %504 : vector<1x8xf32> to vector<1x8x1xf32>
    %506 = vector.broadcast %505 : vector<1x8x1xf32> to vector<1x8x8xf32>
    %507 = arith.subf %503, %506 : vector<1x8x8xf32>
    %508 = math.exp %507 : vector<1x8x8xf32>
    %cst_207 = arith.constant dense<0.000000e+00> : vector<1x8xf32>
    %509 = vector.multi_reduction <add>, %508, %cst_207 [2] : vector<1x8x8xf32> to vector<1x8xf32>
    %510 = vector.shape_cast %509 : vector<1x8xf32> to vector<1x8x1xf32>
    %511 = tpu.reciprocal %510 {approx = true} : vector<1x8x1xf32> -> vector<1x8x1xf32>
    %512 = vector.broadcast %511 : vector<1x8x1xf32> to vector<1x8x8xf32>
    %513 = arith.mulf %508, %512 : vector<1x8x8xf32>
    "tpu.trace_start"() <{level = 10 : i32, message = "bnm,bmd->bnd"}> : () -> ()
    %cst_208 = arith.constant dense<0.000000e+00> : vector<1x8x8xf32>
    %514 = tpu.matmul %513, %500, %cst_208 {dimension_numbers = #tpu.dot_dimension_numbers<[2], [1], [1], [2], [0, 0, 0, 1, 1, 2], [0], [0]>} : vector<1x8x8xf32>, vector<1x8x8xf32>, vector<1x8x8xf32> -> vector<1x8x8xf32>
    "tpu.trace_stop"() : () -> ()
    %515 = tpu.concatenate %463, %480, %497, %514 in 2 : vector<1x8x8xf32>, vector<1x8x8xf32>, vector<1x8x8xf32>, vector<1x8x8xf32> -> vector<1x8x32xf32>
    %516 = vector.shape_cast %515 : vector<1x8x32xf32> to vector<8x32xf32>
    %c2_209 = arith.constant 2 : index
    %c0_210 = arith.constant 0 : index
    %c0_211 = arith.constant 0 : index
    %517 = vector.load %arg9[%c2_209, %c0_210, %c0_211] : memref<4x32x32xf32, #tpu.memory_space<vmem>>, vector<1x32x32xf32>
    %518 = vector.shape_cast %517 : vector<1x32x32xf32> to vector<32x32xf32>
    %cst_212 = arith.constant dense<0.000000e+00> : vector<8x32xf32>
    %519 = tpu.matmul %516, %518, %cst_212 {dimension_numbers = #tpu.dot_dimension_numbers<[1], [0], [0], [1], [0, 0, 1, 1], [], []>} : vector<8x32xf32>, vector<32x32xf32>, vector<8x32xf32> -> vector<8x32xf32>
    %c2_213 = arith.constant 2 : index
    %c0_214 = arith.constant 0 : index
    %c0_215 = arith.constant 0 : index
    %520 = vector.load %arg10[%c2_213, %c0_214, %c0_215] : memref<4x1x32xf32, #tpu.memory_space<vmem>>, vector<1x1x32xf32>
    %521 = vector.shape_cast %520 : vector<1x1x32xf32> to vector<1x32xf32>
    %522 = vector.broadcast %521 : vector<1x32xf32> to vector<8x32xf32>
    %523 = arith.addf %519, %522 : vector<8x32xf32>
    %524 = arith.addf %411, %523 : vector<8x32xf32>
    %c2_216 = arith.constant 2 : index
    %c0_217 = arith.constant 0 : index
    %c0_218 = arith.constant 0 : index
    %525 = vector.load %arg11[%c2_216, %c0_217, %c0_218] : memref<4x1x32xf32, #tpu.memory_space<vmem>>, vector<1x1x32xf32>
    %526 = vector.shape_cast %525 : vector<1x1x32xf32> to vector<1x32xf32>
    %c2_219 = arith.constant 2 : index
    %c0_220 = arith.constant 0 : index
    %c0_221 = arith.constant 0 : index
    %527 = vector.load %arg12[%c2_219, %c0_220, %c0_221] : memref<4x1x32xf32, #tpu.memory_space<vmem>>, vector<1x1x32xf32>
    %528 = vector.shape_cast %527 : vector<1x1x32xf32> to vector<1x32xf32>
    %cst_222 = arith.constant dense<0.000000e+00> : vector<8xf32>
    %529 = vector.multi_reduction <add>, %524, %cst_222 [1] : vector<8x32xf32> to vector<8xf32>
    %530 = vector.shape_cast %529 : vector<8xf32> to vector<8x1xf32>
    %cst_223 = arith.constant 3.200000e+01 : f32
    %531 = vector.broadcast %cst_223 : f32 to vector<8x1xf32>
    %532 = arith.divf %530, %531 : vector<8x1xf32>
    %533 = vector.broadcast %532 : vector<8x1xf32> to vector<8x32xf32>
    %534 = arith.subf %524, %533 : vector<8x32xf32>
    %535 = arith.mulf %534, %534 : vector<8x32xf32>
    %cst_224 = arith.constant dense<0.000000e+00> : vector<8xf32>
    %536 = vector.multi_reduction <add>, %535, %cst_224 [1] : vector<8x32xf32> to vector<8xf32>
    %537 = vector.shape_cast %536 : vector<8xf32> to vector<8x1xf32>
    %cst_225 = arith.constant 3.200000e+01 : f32
    %538 = vector.broadcast %cst_225 : f32 to vector<8x1xf32>
    %539 = arith.divf %537, %538 : vector<8x1xf32>
    %540 = vector.broadcast %532 : vector<8x1xf32> to vector<8x32xf32>
    %541 = arith.subf %524, %540 : vector<8x32xf32>
    %cst_226 = arith.constant 9.99999974E-6 : f32
    %542 = vector.broadcast %cst_226 : f32 to vector<8x1xf32>
    %543 = arith.addf %539, %542 : vector<8x1xf32>
    %544 = math.rsqrt %543 : vector<8x1xf32>
    %545 = vector.broadcast %544 : vector<8x1xf32> to vector<8x32xf32>
    %546 = arith.mulf %541, %545 : vector<8x32xf32>
    %547 = vector.broadcast %526 : vector<1x32xf32> to vector<8x32xf32>
    %548 = arith.mulf %546, %547 : vector<8x32xf32>
    %549 = vector.broadcast %528 : vector<1x32xf32> to vector<8x32xf32>
    %550 = arith.addf %548, %549 : vector<8x32xf32>
    %c2_227 = arith.constant 2 : index
    %c0_228 = arith.constant 0 : index
    %c0_229 = arith.constant 0 : index
    %551 = vector.load %arg13[%c2_227, %c0_228, %c0_229] : memref<4x32x128xf32, #tpu.memory_space<vmem>>, vector<1x32x128xf32>
    %552 = vector.shape_cast %551 : vector<1x32x128xf32> to vector<32x128xf32>
    %cst_230 = arith.constant dense<0.000000e+00> : vector<8x128xf32>
    %553 = tpu.matmul %550, %552, %cst_230 {dimension_numbers = #tpu.dot_dimension_numbers<[1], [0], [0], [1], [0, 0, 1, 1], [], []>} : vector<8x32xf32>, vector<32x128xf32>, vector<8x128xf32> -> vector<8x128xf32>
    %c2_231 = arith.constant 2 : index
    %c0_232 = arith.constant 0 : index
    %c0_233 = arith.constant 0 : index
    %554 = vector.load %arg14[%c2_231, %c0_232, %c0_233] : memref<4x1x128xf32, #tpu.memory_space<vmem>>, vector<1x1x128xf32>
    %555 = vector.shape_cast %554 : vector<1x1x128xf32> to vector<1x128xf32>
    %556 = vector.broadcast %555 : vector<1x128xf32> to vector<8x128xf32>
    %557 = arith.addf %553, %556 : vector<8x128xf32>
    %cst_234 = arith.constant 5.000000e-01 : f32
    %558 = vector.broadcast %cst_234 : f32 to vector<8x128xf32>
    %559 = arith.mulf %558, %557 : vector<8x128xf32>
    %cst_235 = arith.constant 0.707106769 : f32
    %560 = vector.broadcast %cst_235 : f32 to vector<8x128xf32>
    %561 = arith.mulf %557, %560 : vector<8x128xf32>
    %562 = math.absf %561 : vector<8x128xf32>
    %cst_236 = arith.constant 0.327591091 : f32
    %563 = vector.broadcast %cst_236 : f32 to vector<8x128xf32>
    %564 = arith.mulf %563, %562 : vector<8x128xf32>
    %cst_237 = arith.constant 1.000000e+00 : f32
    %565 = vector.broadcast %cst_237 : f32 to vector<8x128xf32>
    %566 = arith.addf %565, %564 : vector<8x128xf32>
    %cst_238 = arith.constant 1.000000e+00 : f32
    %567 = vector.broadcast %cst_238 : f32 to vector<8x128xf32>
    %568 = arith.divf %567, %566 : vector<8x128xf32>
    %cst_239 = arith.constant 1.06140542 : f32
    %569 = vector.broadcast %cst_239 : f32 to vector<8x128xf32>
    %570 = arith.mulf %569, %568 : vector<8x128xf32>
    %cst_240 = arith.constant -1.45315206 : f32
    %571 = vector.broadcast %cst_240 : f32 to vector<8x128xf32>
    %572 = arith.addf %570, %571 : vector<8x128xf32>
    %573 = arith.mulf %572, %568 : vector<8x128xf32>
    %cst_241 = arith.constant 1.42141378 : f32
    %574 = vector.broadcast %cst_241 : f32 to vector<8x128xf32>
    %575 = arith.addf %573, %574 : vector<8x128xf32>
    %576 = arith.mulf %575, %568 : vector<8x128xf32>
    %cst_242 = arith.constant -0.284496725 : f32
    %577 = vector.broadcast %cst_242 : f32 to vector<8x128xf32>
    %578 = arith.addf %576, %577 : vector<8x128xf32>
    %579 = arith.mulf %578, %568 : vector<8x128xf32>
    %cst_243 = arith.constant 0.254829586 : f32
    %580 = vector.broadcast %cst_243 : f32 to vector<8x128xf32>
    %581 = arith.addf %579, %580 : vector<8x128xf32>
    %582 = arith.mulf %581, %568 : vector<8x128xf32>
    %cst_244 = arith.constant 0.000000e+00 : f32
    %583 = vector.broadcast %cst_244 : f32 to vector<8x128xf32>
    %584 = arith.subf %583, %562 : vector<8x128xf32>
    %585 = arith.mulf %584, %562 : vector<8x128xf32>
    %586 = math.exp %585 : vector<8x128xf32>
    %587 = arith.mulf %582, %586 : vector<8x128xf32>
    %cst_245 = arith.constant 1.000000e+00 : f32
    %588 = vector.broadcast %cst_245 : f32 to vector<8x128xf32>
    %589 = arith.subf %588, %587 : vector<8x128xf32>
    %cst_246 = arith.constant 0.000000e+00 : f32
    %590 = vector.broadcast %cst_246 : f32 to vector<8x128xf32>
    %591 = arith.cmpf oge, %561, %590 : vector<8x128xf32>
    %cst_247 = arith.constant 0.000000e+00 : f32
    %592 = vector.broadcast %cst_247 : f32 to vector<8x128xf32>
    %593 = arith.subf %592, %589 : vector<8x128xf32>
    %594 = arith.select %591, %589, %593 : vector<8x128xi1>, vector<8x128xf32>
    %cst_248 = arith.constant 1.000000e+00 : f32
    %595 = vector.broadcast %cst_248 : f32 to vector<8x128xf32>
    %596 = arith.addf %595, %594 : vector<8x128xf32>
    %597 = arith.mulf %559, %596 : vector<8x128xf32>
    %c2_249 = arith.constant 2 : index
    %c0_250 = arith.constant 0 : index
    %c0_251 = arith.constant 0 : index
    %598 = vector.load %arg15[%c2_249, %c0_250, %c0_251] : memref<4x128x32xf32, #tpu.memory_space<vmem>>, vector<1x128x32xf32>
    %599 = vector.shape_cast %598 : vector<1x128x32xf32> to vector<128x32xf32>
    %cst_252 = arith.constant dense<0.000000e+00> : vector<8x32xf32>
    %600 = tpu.matmul %597, %599, %cst_252 {dimension_numbers = #tpu.dot_dimension_numbers<[1], [0], [0], [1], [0, 0, 1, 1], [], []>} : vector<8x128xf32>, vector<128x32xf32>, vector<8x32xf32> -> vector<8x32xf32>
    %c2_253 = arith.constant 2 : index
    %c0_254 = arith.constant 0 : index
    %c0_255 = arith.constant 0 : index
    %601 = vector.load %arg16[%c2_253, %c0_254, %c0_255] : memref<4x1x32xf32, #tpu.memory_space<vmem>>, vector<1x1x32xf32>
    %602 = vector.shape_cast %601 : vector<1x1x32xf32> to vector<1x32xf32>
    %603 = vector.broadcast %602 : vector<1x32xf32> to vector<8x32xf32>
    %604 = arith.addf %600, %603 : vector<8x32xf32>
    %605 = arith.addf %524, %604 : vector<8x32xf32>
    %c3 = arith.constant 3 : index
    %c0_256 = arith.constant 0 : index
    %c0_257 = arith.constant 0 : index
    %606 = vector.load %arg6[%c3, %c0_256, %c0_257] : memref<4x1x32xf32, #tpu.memory_space<vmem>>, vector<1x1x32xf32>
    %607 = vector.shape_cast %606 : vector<1x1x32xf32> to vector<1x32xf32>
    %c3_258 = arith.constant 3 : index
    %c0_259 = arith.constant 0 : index
    %c0_260 = arith.constant 0 : index
    %608 = vector.load %arg7[%c3_258, %c0_259, %c0_260] : memref<4x1x32xf32, #tpu.memory_space<vmem>>, vector<1x1x32xf32>
    %609 = vector.shape_cast %608 : vector<1x1x32xf32> to vector<1x32xf32>
    %cst_261 = arith.constant dense<0.000000e+00> : vector<8xf32>
    %610 = vector.multi_reduction <add>, %605, %cst_261 [1] : vector<8x32xf32> to vector<8xf32>
    %611 = vector.shape_cast %610 : vector<8xf32> to vector<8x1xf32>
    %cst_262 = arith.constant 3.200000e+01 : f32
    %612 = vector.broadcast %cst_262 : f32 to vector<8x1xf32>
    %613 = arith.divf %611, %612 : vector<8x1xf32>
    %614 = vector.broadcast %613 : vector<8x1xf32> to vector<8x32xf32>
    %615 = arith.subf %605, %614 : vector<8x32xf32>
    %616 = arith.mulf %615, %615 : vector<8x32xf32>
    %cst_263 = arith.constant dense<0.000000e+00> : vector<8xf32>
    %617 = vector.multi_reduction <add>, %616, %cst_263 [1] : vector<8x32xf32> to vector<8xf32>
    %618 = vector.shape_cast %617 : vector<8xf32> to vector<8x1xf32>
    %cst_264 = arith.constant 3.200000e+01 : f32
    %619 = vector.broadcast %cst_264 : f32 to vector<8x1xf32>
    %620 = arith.divf %618, %619 : vector<8x1xf32>
    %621 = vector.broadcast %613 : vector<8x1xf32> to vector<8x32xf32>
    %622 = arith.subf %605, %621 : vector<8x32xf32>
    %cst_265 = arith.constant 9.99999974E-6 : f32
    %623 = vector.broadcast %cst_265 : f32 to vector<8x1xf32>
    %624 = arith.addf %620, %623 : vector<8x1xf32>
    %625 = math.rsqrt %624 : vector<8x1xf32>
    %626 = vector.broadcast %625 : vector<8x1xf32> to vector<8x32xf32>
    %627 = arith.mulf %622, %626 : vector<8x32xf32>
    %628 = vector.broadcast %607 : vector<1x32xf32> to vector<8x32xf32>
    %629 = arith.mulf %627, %628 : vector<8x32xf32>
    %630 = vector.broadcast %609 : vector<1x32xf32> to vector<8x32xf32>
    %631 = arith.addf %629, %630 : vector<8x32xf32>
    %c3_266 = arith.constant 3 : index
    %c0_267 = arith.constant 0 : index
    %c0_268 = arith.constant 0 : index
    %632 = vector.load %arg8[%c3_266, %c0_267, %c0_268] : memref<4x32x96xf32, #tpu.memory_space<vmem>>, vector<1x32x96xf32>
    %633 = vector.shape_cast %632 : vector<1x32x96xf32> to vector<32x96xf32>
    %cst_269 = arith.constant dense<0.000000e+00> : vector<8x96xf32>
    %634 = tpu.matmul %631, %633, %cst_269 {dimension_numbers = #tpu.dot_dimension_numbers<[1], [0], [0], [1], [0, 0, 1, 1], [], []>} : vector<8x32xf32>, vector<32x96xf32>, vector<8x96xf32> -> vector<8x96xf32>
    %635 = vector.shape_cast %634 : vector<8x96xf32> to vector<1x8x96xf32>
    %c5_i32_270 = arith.constant 5 : i32
    %636 = vector.broadcast %c5_i32_270 : i32 to vector<1x1x8xi32>
    %637 = arith.cmpi slt, %0, %636 : vector<1x1x8xi32>
    %cst_271 = arith.constant 0.000000e+00 : f32
    %cst_272 = arith.constant -1.000000e+30 : f32
    %638 = vector.broadcast %cst_271 : f32 to vector<1x1x8xf32>
    %639 = vector.broadcast %cst_272 : f32 to vector<1x1x8xf32>
    %640 = arith.select %637, %638, %639 : vector<1x1x8xi1>, vector<1x1x8xf32>
    %641 = vector.extract_strided_slice %635 {offsets = [0, 0, 0], sizes = [1, 8, 8], strides = [1, 1, 1]} : vector<1x8x96xf32> to vector<1x8x8xf32>
    %642 = vector.extract_strided_slice %635 {offsets = [0, 0, 32], sizes = [1, 8, 8], strides = [1, 1, 1]} : vector<1x8x96xf32> to vector<1x8x8xf32>
    %643 = vector.extract_strided_slice %635 {offsets = [0, 0, 64], sizes = [1, 8, 8], strides = [1, 1, 1]} : vector<1x8x96xf32> to vector<1x8x8xf32>
    "tpu.trace_start"() <{level = 10 : i32, message = "bnd,bmd->bnm"}> : () -> ()
    %cst_273 = arith.constant dense<0.000000e+00> : vector<1x8x8xf32>
    %644 = tpu.matmul %641, %642, %cst_273 {dimension_numbers = #tpu.dot_dimension_numbers<[2], [2], [1], [1], [0, 0, 0, 1, 1, 1], [0], [0]>} : vector<1x8x8xf32>, vector<1x8x8xf32>, vector<1x8x8xf32> -> vector<1x8x8xf32>
    "tpu.trace_stop"() : () -> ()
    %645 = vector.broadcast %640 : vector<1x1x8xf32> to vector<1x8x8xf32>
    %646 = arith.addf %644, %645 : vector<1x8x8xf32>
    %cst_274 = arith.constant dense<0xFF800000> : vector<1x8xf32>
    %647 = vector.multi_reduction <maximumf>, %646, %cst_274 [2] : vector<1x8x8xf32> to vector<1x8xf32>
    %648 = vector.shape_cast %647 : vector<1x8xf32> to vector<1x8x1xf32>
    %649 = vector.broadcast %648 : vector<1x8x1xf32> to vector<1x8x8xf32>
    %650 = arith.subf %646, %649 : vector<1x8x8xf32>
    %651 = math.exp %650 : vector<1x8x8xf32>
    %cst_275 = arith.constant dense<0.000000e+00> : vector<1x8xf32>
    %652 = vector.multi_reduction <add>, %651, %cst_275 [2] : vector<1x8x8xf32> to vector<1x8xf32>
    %653 = vector.shape_cast %652 : vector<1x8xf32> to vector<1x8x1xf32>
    %654 = vector.broadcast %653 : vector<1x8x1xf32> to vector<1x8x8xf32>
    %655 = arith.divf %651, %654 : vector<1x8x8xf32>
    "tpu.trace_start"() <{level = 10 : i32, message = "bnm,bmd->bnd"}> : () -> ()
    %cst_276 = arith.constant dense<0.000000e+00> : vector<1x8x8xf32>
    %656 = tpu.matmul %655, %643, %cst_276 {dimension_numbers = #tpu.dot_dimension_numbers<[2], [1], [1], [2], [0, 0, 0, 1, 1, 2], [0], [0]>} : vector<1x8x8xf32>, vector<1x8x8xf32>, vector<1x8x8xf32> -> vector<1x8x8xf32>
    "tpu.trace_stop"() : () -> ()
    %657 = vector.extract_strided_slice %655 {offsets = [0, 0, 1], sizes = [1, 1, 4], strides = [1, 1, 1]} : vector<1x8x8xf32> to vector<1x1x4xf32>
    %658 = vector.extract_strided_slice %635 {offsets = [0, 0, 8], sizes = [1, 8, 8], strides = [1, 1, 1]} : vector<1x8x96xf32> to vector<1x8x8xf32>
    %659 = vector.extract_strided_slice %635 {offsets = [0, 0, 40], sizes = [1, 8, 8], strides = [1, 1, 1]} : vector<1x8x96xf32> to vector<1x8x8xf32>
    %660 = vector.extract_strided_slice %635 {offsets = [0, 0, 72], sizes = [1, 8, 8], strides = [1, 1, 1]} : vector<1x8x96xf32> to vector<1x8x8xf32>
    "tpu.trace_start"() <{level = 10 : i32, message = "bnd,bmd->bnm"}> : () -> ()
    %cst_277 = arith.constant dense<0.000000e+00> : vector<1x8x8xf32>
    %661 = tpu.matmul %658, %659, %cst_277 {dimension_numbers = #tpu.dot_dimension_numbers<[2], [2], [1], [1], [0, 0, 0, 1, 1, 1], [0], [0]>} : vector<1x8x8xf32>, vector<1x8x8xf32>, vector<1x8x8xf32> -> vector<1x8x8xf32>
    "tpu.trace_stop"() : () -> ()
    %662 = vector.broadcast %640 : vector<1x1x8xf32> to vector<1x8x8xf32>
    %663 = arith.addf %661, %662 : vector<1x8x8xf32>
    %cst_278 = arith.constant dense<0xFF800000> : vector<1x8xf32>
    %664 = vector.multi_reduction <maximumf>, %663, %cst_278 [2] : vector<1x8x8xf32> to vector<1x8xf32>
    %665 = vector.shape_cast %664 : vector<1x8xf32> to vector<1x8x1xf32>
    %666 = vector.broadcast %665 : vector<1x8x1xf32> to vector<1x8x8xf32>
    %667 = arith.subf %663, %666 : vector<1x8x8xf32>
    %668 = math.exp %667 : vector<1x8x8xf32>
    %cst_279 = arith.constant dense<0.000000e+00> : vector<1x8xf32>
    %669 = vector.multi_reduction <add>, %668, %cst_279 [2] : vector<1x8x8xf32> to vector<1x8xf32>
    %670 = vector.shape_cast %669 : vector<1x8xf32> to vector<1x8x1xf32>
    %671 = vector.broadcast %670 : vector<1x8x1xf32> to vector<1x8x8xf32>
    %672 = arith.divf %668, %671 : vector<1x8x8xf32>
    "tpu.trace_start"() <{level = 10 : i32, message = "bnm,bmd->bnd"}> : () -> ()
    %cst_280 = arith.constant dense<0.000000e+00> : vector<1x8x8xf32>
    %673 = tpu.matmul %672, %660, %cst_280 {dimension_numbers = #tpu.dot_dimension_numbers<[2], [1], [1], [2], [0, 0, 0, 1, 1, 2], [0], [0]>} : vector<1x8x8xf32>, vector<1x8x8xf32>, vector<1x8x8xf32> -> vector<1x8x8xf32>
    "tpu.trace_stop"() : () -> ()
    %674 = vector.extract_strided_slice %672 {offsets = [0, 0, 1], sizes = [1, 1, 4], strides = [1, 1, 1]} : vector<1x8x8xf32> to vector<1x1x4xf32>
    %675 = arith.addf %657, %674 : vector<1x1x4xf32>
    %676 = vector.extract_strided_slice %635 {offsets = [0, 0, 16], sizes = [1, 8, 8], strides = [1, 1, 1]} : vector<1x8x96xf32> to vector<1x8x8xf32>
    %677 = vector.extract_strided_slice %635 {offsets = [0, 0, 48], sizes = [1, 8, 8], strides = [1, 1, 1]} : vector<1x8x96xf32> to vector<1x8x8xf32>
    %678 = vector.extract_strided_slice %635 {offsets = [0, 0, 80], sizes = [1, 8, 8], strides = [1, 1, 1]} : vector<1x8x96xf32> to vector<1x8x8xf32>
    "tpu.trace_start"() <{level = 10 : i32, message = "bnd,bmd->bnm"}> : () -> ()
    %cst_281 = arith.constant dense<0.000000e+00> : vector<1x8x8xf32>
    %679 = tpu.matmul %676, %677, %cst_281 {dimension_numbers = #tpu.dot_dimension_numbers<[2], [2], [1], [1], [0, 0, 0, 1, 1, 1], [0], [0]>} : vector<1x8x8xf32>, vector<1x8x8xf32>, vector<1x8x8xf32> -> vector<1x8x8xf32>
    "tpu.trace_stop"() : () -> ()
    %680 = vector.broadcast %640 : vector<1x1x8xf32> to vector<1x8x8xf32>
    %681 = arith.addf %679, %680 : vector<1x8x8xf32>
    %cst_282 = arith.constant dense<0xFF800000> : vector<1x8xf32>
    %682 = vector.multi_reduction <maximumf>, %681, %cst_282 [2] : vector<1x8x8xf32> to vector<1x8xf32>
    %683 = vector.shape_cast %682 : vector<1x8xf32> to vector<1x8x1xf32>
    %684 = vector.broadcast %683 : vector<1x8x1xf32> to vector<1x8x8xf32>
    %685 = arith.subf %681, %684 : vector<1x8x8xf32>
    %686 = math.exp %685 : vector<1x8x8xf32>
    %cst_283 = arith.constant dense<0.000000e+00> : vector<1x8xf32>
    %687 = vector.multi_reduction <add>, %686, %cst_283 [2] : vector<1x8x8xf32> to vector<1x8xf32>
    %688 = vector.shape_cast %687 : vector<1x8xf32> to vector<1x8x1xf32>
    %689 = vector.broadcast %688 : vector<1x8x1xf32> to vector<1x8x8xf32>
    %690 = arith.divf %686, %689 : vector<1x8x8xf32>
    "tpu.trace_start"() <{level = 10 : i32, message = "bnm,bmd->bnd"}> : () -> ()
    %cst_284 = arith.constant dense<0.000000e+00> : vector<1x8x8xf32>
    %691 = tpu.matmul %690, %678, %cst_284 {dimension_numbers = #tpu.dot_dimension_numbers<[2], [1], [1], [2], [0, 0, 0, 1, 1, 2], [0], [0]>} : vector<1x8x8xf32>, vector<1x8x8xf32>, vector<1x8x8xf32> -> vector<1x8x8xf32>
    "tpu.trace_stop"() : () -> ()
    %692 = vector.extract_strided_slice %690 {offsets = [0, 0, 1], sizes = [1, 1, 4], strides = [1, 1, 1]} : vector<1x8x8xf32> to vector<1x1x4xf32>
    %693 = arith.addf %675, %692 : vector<1x1x4xf32>
    %694 = vector.extract_strided_slice %635 {offsets = [0, 0, 24], sizes = [1, 8, 8], strides = [1, 1, 1]} : vector<1x8x96xf32> to vector<1x8x8xf32>
    %695 = vector.extract_strided_slice %635 {offsets = [0, 0, 56], sizes = [1, 8, 8], strides = [1, 1, 1]} : vector<1x8x96xf32> to vector<1x8x8xf32>
    %696 = vector.extract_strided_slice %635 {offsets = [0, 0, 88], sizes = [1, 8, 8], strides = [1, 1, 1]} : vector<1x8x96xf32> to vector<1x8x8xf32>
    "tpu.trace_start"() <{level = 10 : i32, message = "bnd,bmd->bnm"}> : () -> ()
    %cst_285 = arith.constant dense<0.000000e+00> : vector<1x8x8xf32>
    %697 = tpu.matmul %694, %695, %cst_285 {dimension_numbers = #tpu.dot_dimension_numbers<[2], [2], [1], [1], [0, 0, 0, 1, 1, 1], [0], [0]>} : vector<1x8x8xf32>, vector<1x8x8xf32>, vector<1x8x8xf32> -> vector<1x8x8xf32>
    "tpu.trace_stop"() : () -> ()
    %698 = vector.broadcast %640 : vector<1x1x8xf32> to vector<1x8x8xf32>
    %699 = arith.addf %697, %698 : vector<1x8x8xf32>
    %cst_286 = arith.constant dense<0xFF800000> : vector<1x8xf32>
    %700 = vector.multi_reduction <maximumf>, %699, %cst_286 [2] : vector<1x8x8xf32> to vector<1x8xf32>
    %701 = vector.shape_cast %700 : vector<1x8xf32> to vector<1x8x1xf32>
    %702 = vector.broadcast %701 : vector<1x8x1xf32> to vector<1x8x8xf32>
    %703 = arith.subf %699, %702 : vector<1x8x8xf32>
    %704 = math.exp %703 : vector<1x8x8xf32>
    %cst_287 = arith.constant dense<0.000000e+00> : vector<1x8xf32>
    %705 = vector.multi_reduction <add>, %704, %cst_287 [2] : vector<1x8x8xf32> to vector<1x8xf32>
    %706 = vector.shape_cast %705 : vector<1x8xf32> to vector<1x8x1xf32>
    %707 = vector.broadcast %706 : vector<1x8x1xf32> to vector<1x8x8xf32>
    %708 = arith.divf %704, %707 : vector<1x8x8xf32>
    "tpu.trace_start"() <{level = 10 : i32, message = "bnm,bmd->bnd"}> : () -> ()
    %cst_288 = arith.constant dense<0.000000e+00> : vector<1x8x8xf32>
    %709 = tpu.matmul %708, %696, %cst_288 {dimension_numbers = #tpu.dot_dimension_numbers<[2], [1], [1], [2], [0, 0, 0, 1, 1, 2], [0], [0]>} : vector<1x8x8xf32>, vector<1x8x8xf32>, vector<1x8x8xf32> -> vector<1x8x8xf32>
    "tpu.trace_stop"() : () -> ()
    %710 = vector.extract_strided_slice %708 {offsets = [0, 0, 1], sizes = [1, 1, 4], strides = [1, 1, 1]} : vector<1x8x8xf32> to vector<1x1x4xf32>
    %711 = arith.addf %693, %710 : vector<1x1x4xf32>
    %712 = tpu.concatenate %656, %673, %691, %709 in 2 : vector<1x8x8xf32>, vector<1x8x8xf32>, vector<1x8x8xf32>, vector<1x8x8xf32> -> vector<1x8x32xf32>
    %713 = vector.shape_cast %712 : vector<1x8x32xf32> to vector<8x32xf32>
    %c3_289 = arith.constant 3 : index
    %c0_290 = arith.constant 0 : index
    %c0_291 = arith.constant 0 : index
    %714 = vector.load %arg9[%c3_289, %c0_290, %c0_291] : memref<4x32x32xf32, #tpu.memory_space<vmem>>, vector<1x32x32xf32>
    %715 = vector.shape_cast %714 : vector<1x32x32xf32> to vector<32x32xf32>
    %cst_292 = arith.constant dense<0.000000e+00> : vector<8x32xf32>
    %716 = tpu.matmul %713, %715, %cst_292 {dimension_numbers = #tpu.dot_dimension_numbers<[1], [0], [0], [1], [0, 0, 1, 1], [], []>} : vector<8x32xf32>, vector<32x32xf32>, vector<8x32xf32> -> vector<8x32xf32>
    %c3_293 = arith.constant 3 : index
    %c0_294 = arith.constant 0 : index
    %c0_295 = arith.constant 0 : index
    %717 = vector.load %arg10[%c3_293, %c0_294, %c0_295] : memref<4x1x32xf32, #tpu.memory_space<vmem>>, vector<1x1x32xf32>
    %718 = vector.shape_cast %717 : vector<1x1x32xf32> to vector<1x32xf32>
    %719 = vector.broadcast %718 : vector<1x32xf32> to vector<8x32xf32>
    %720 = arith.addf %716, %719 : vector<8x32xf32>
    %721 = arith.addf %605, %720 : vector<8x32xf32>
    %c3_296 = arith.constant 3 : index
    %c0_297 = arith.constant 0 : index
    %c0_298 = arith.constant 0 : index
    %722 = vector.load %arg11[%c3_296, %c0_297, %c0_298] : memref<4x1x32xf32, #tpu.memory_space<vmem>>, vector<1x1x32xf32>
    %723 = vector.shape_cast %722 : vector<1x1x32xf32> to vector<1x32xf32>
    %c3_299 = arith.constant 3 : index
    %c0_300 = arith.constant 0 : index
    %c0_301 = arith.constant 0 : index
    %724 = vector.load %arg12[%c3_299, %c0_300, %c0_301] : memref<4x1x32xf32, #tpu.memory_space<vmem>>, vector<1x1x32xf32>
    %725 = vector.shape_cast %724 : vector<1x1x32xf32> to vector<1x32xf32>
    %cst_302 = arith.constant dense<0.000000e+00> : vector<8xf32>
    %726 = vector.multi_reduction <add>, %721, %cst_302 [1] : vector<8x32xf32> to vector<8xf32>
    %727 = vector.shape_cast %726 : vector<8xf32> to vector<8x1xf32>
    %cst_303 = arith.constant 3.200000e+01 : f32
    %728 = vector.broadcast %cst_303 : f32 to vector<8x1xf32>
    %729 = arith.divf %727, %728 : vector<8x1xf32>
    %730 = vector.broadcast %729 : vector<8x1xf32> to vector<8x32xf32>
    %731 = arith.subf %721, %730 : vector<8x32xf32>
    %732 = arith.mulf %731, %731 : vector<8x32xf32>
    %cst_304 = arith.constant dense<0.000000e+00> : vector<8xf32>
    %733 = vector.multi_reduction <add>, %732, %cst_304 [1] : vector<8x32xf32> to vector<8xf32>
    %734 = vector.shape_cast %733 : vector<8xf32> to vector<8x1xf32>
    %cst_305 = arith.constant 3.200000e+01 : f32
    %735 = vector.broadcast %cst_305 : f32 to vector<8x1xf32>
    %736 = arith.divf %734, %735 : vector<8x1xf32>
    %737 = vector.broadcast %729 : vector<8x1xf32> to vector<8x32xf32>
    %738 = arith.subf %721, %737 : vector<8x32xf32>
    %cst_306 = arith.constant 9.99999974E-6 : f32
    %739 = vector.broadcast %cst_306 : f32 to vector<8x1xf32>
    %740 = arith.addf %736, %739 : vector<8x1xf32>
    %741 = math.rsqrt %740 : vector<8x1xf32>
    %742 = vector.broadcast %741 : vector<8x1xf32> to vector<8x32xf32>
    %743 = arith.mulf %738, %742 : vector<8x32xf32>
    %744 = vector.broadcast %723 : vector<1x32xf32> to vector<8x32xf32>
    %745 = arith.mulf %743, %744 : vector<8x32xf32>
    %746 = vector.broadcast %725 : vector<1x32xf32> to vector<8x32xf32>
    %747 = arith.addf %745, %746 : vector<8x32xf32>
    %c3_307 = arith.constant 3 : index
    %c0_308 = arith.constant 0 : index
    %c0_309 = arith.constant 0 : index
    %748 = vector.load %arg13[%c3_307, %c0_308, %c0_309] : memref<4x32x128xf32, #tpu.memory_space<vmem>>, vector<1x32x128xf32>
    %749 = vector.shape_cast %748 : vector<1x32x128xf32> to vector<32x128xf32>
    %cst_310 = arith.constant dense<0.000000e+00> : vector<8x128xf32>
    %750 = tpu.matmul %747, %749, %cst_310 {dimension_numbers = #tpu.dot_dimension_numbers<[1], [0], [0], [1], [0, 0, 1, 1], [], []>} : vector<8x32xf32>, vector<32x128xf32>, vector<8x128xf32> -> vector<8x128xf32>
    %c3_311 = arith.constant 3 : index
    %c0_312 = arith.constant 0 : index
    %c0_313 = arith.constant 0 : index
    %751 = vector.load %arg14[%c3_311, %c0_312, %c0_313] : memref<4x1x128xf32, #tpu.memory_space<vmem>>, vector<1x1x128xf32>
    %752 = vector.shape_cast %751 : vector<1x1x128xf32> to vector<1x128xf32>
    %753 = vector.broadcast %752 : vector<1x128xf32> to vector<8x128xf32>
    %754 = arith.addf %750, %753 : vector<8x128xf32>
    %cst_314 = arith.constant 5.000000e-01 : f32
    %755 = vector.broadcast %cst_314 : f32 to vector<8x128xf32>
    %756 = arith.mulf %755, %754 : vector<8x128xf32>
    %cst_315 = arith.constant 0.707106769 : f32
    %757 = vector.broadcast %cst_315 : f32 to vector<8x128xf32>
    %758 = arith.mulf %754, %757 : vector<8x128xf32>
    %759 = math.absf %758 : vector<8x128xf32>
    %cst_316 = arith.constant 0.327591091 : f32
    %760 = vector.broadcast %cst_316 : f32 to vector<8x128xf32>
    %761 = arith.mulf %760, %759 : vector<8x128xf32>
    %cst_317 = arith.constant 1.000000e+00 : f32
    %762 = vector.broadcast %cst_317 : f32 to vector<8x128xf32>
    %763 = arith.addf %762, %761 : vector<8x128xf32>
    %cst_318 = arith.constant 1.000000e+00 : f32
    %764 = vector.broadcast %cst_318 : f32 to vector<8x128xf32>
    %765 = arith.divf %764, %763 : vector<8x128xf32>
    %cst_319 = arith.constant 1.06140542 : f32
    %766 = vector.broadcast %cst_319 : f32 to vector<8x128xf32>
    %767 = arith.mulf %766, %765 : vector<8x128xf32>
    %cst_320 = arith.constant -1.45315206 : f32
    %768 = vector.broadcast %cst_320 : f32 to vector<8x128xf32>
    %769 = arith.addf %767, %768 : vector<8x128xf32>
    %770 = arith.mulf %769, %765 : vector<8x128xf32>
    %cst_321 = arith.constant 1.42141378 : f32
    %771 = vector.broadcast %cst_321 : f32 to vector<8x128xf32>
    %772 = arith.addf %770, %771 : vector<8x128xf32>
    %773 = arith.mulf %772, %765 : vector<8x128xf32>
    %cst_322 = arith.constant -0.284496725 : f32
    %774 = vector.broadcast %cst_322 : f32 to vector<8x128xf32>
    %775 = arith.addf %773, %774 : vector<8x128xf32>
    %776 = arith.mulf %775, %765 : vector<8x128xf32>
    %cst_323 = arith.constant 0.254829586 : f32
    %777 = vector.broadcast %cst_323 : f32 to vector<8x128xf32>
    %778 = arith.addf %776, %777 : vector<8x128xf32>
    %779 = arith.mulf %778, %765 : vector<8x128xf32>
    %cst_324 = arith.constant 0.000000e+00 : f32
    %780 = vector.broadcast %cst_324 : f32 to vector<8x128xf32>
    %781 = arith.subf %780, %759 : vector<8x128xf32>
    %782 = arith.mulf %781, %759 : vector<8x128xf32>
    %783 = math.exp %782 : vector<8x128xf32>
    %784 = arith.mulf %779, %783 : vector<8x128xf32>
    %cst_325 = arith.constant 1.000000e+00 : f32
    %785 = vector.broadcast %cst_325 : f32 to vector<8x128xf32>
    %786 = arith.subf %785, %784 : vector<8x128xf32>
    %cst_326 = arith.constant 0.000000e+00 : f32
    %787 = vector.broadcast %cst_326 : f32 to vector<8x128xf32>
    %788 = arith.cmpf oge, %758, %787 : vector<8x128xf32>
    %cst_327 = arith.constant 0.000000e+00 : f32
    %789 = vector.broadcast %cst_327 : f32 to vector<8x128xf32>
    %790 = arith.subf %789, %786 : vector<8x128xf32>
    %791 = arith.select %788, %786, %790 : vector<8x128xi1>, vector<8x128xf32>
    %cst_328 = arith.constant 1.000000e+00 : f32
    %792 = vector.broadcast %cst_328 : f32 to vector<8x128xf32>
    %793 = arith.addf %792, %791 : vector<8x128xf32>
    %794 = arith.mulf %756, %793 : vector<8x128xf32>
    %c3_329 = arith.constant 3 : index
    %c0_330 = arith.constant 0 : index
    %c0_331 = arith.constant 0 : index
    %795 = vector.load %arg15[%c3_329, %c0_330, %c0_331] : memref<4x128x32xf32, #tpu.memory_space<vmem>>, vector<1x128x32xf32>
    %796 = vector.shape_cast %795 : vector<1x128x32xf32> to vector<128x32xf32>
    %cst_332 = arith.constant dense<0.000000e+00> : vector<8x32xf32>
    %797 = tpu.matmul %794, %796, %cst_332 {dimension_numbers = #tpu.dot_dimension_numbers<[1], [0], [0], [1], [0, 0, 1, 1], [], []>} : vector<8x128xf32>, vector<128x32xf32>, vector<8x32xf32> -> vector<8x32xf32>
    %c3_333 = arith.constant 3 : index
    %c0_334 = arith.constant 0 : index
    %c0_335 = arith.constant 0 : index
    %798 = vector.load %arg16[%c3_333, %c0_334, %c0_335] : memref<4x1x32xf32, #tpu.memory_space<vmem>>, vector<1x1x32xf32>
    %799 = vector.shape_cast %798 : vector<1x1x32xf32> to vector<1x32xf32>
    %800 = vector.broadcast %799 : vector<1x32xf32> to vector<8x32xf32>
    %801 = arith.addf %797, %800 : vector<8x32xf32>
    %802 = arith.addf %721, %801 : vector<8x32xf32>
    %803 = vector.shape_cast %802 : vector<8x32xf32> to vector<1x8x32xf32>
    %804 = vector.extract_strided_slice %803 {offsets = [0, 0, 0], sizes = [1, 1, 32], strides = [1, 1, 1]} : vector<1x8x32xf32> to vector<1x1x32xf32>
    %cst_336 = arith.constant dense<0.000000e+00> : vector<1x1xf32>
    %805 = vector.multi_reduction <add>, %804, %cst_336 [2] : vector<1x1x32xf32> to vector<1x1xf32>
    %806 = vector.shape_cast %805 : vector<1x1xf32> to vector<1x1x1xf32>
    %cst_337 = arith.constant 3.200000e+01 : f32
    %807 = vector.broadcast %cst_337 : f32 to vector<1x1x1xf32>
    %808 = arith.divf %806, %807 : vector<1x1x1xf32>
    %809 = vector.broadcast %808 : vector<1x1x1xf32> to vector<1x1x32xf32>
    %810 = arith.subf %804, %809 : vector<1x1x32xf32>
    %811 = arith.mulf %810, %810 : vector<1x1x32xf32>
    %cst_338 = arith.constant dense<0.000000e+00> : vector<1x1xf32>
    %812 = vector.multi_reduction <add>, %811, %cst_338 [2] : vector<1x1x32xf32> to vector<1x1xf32>
    %813 = vector.shape_cast %812 : vector<1x1xf32> to vector<1x1x1xf32>
    %cst_339 = arith.constant 3.200000e+01 : f32
    %814 = vector.broadcast %cst_339 : f32 to vector<1x1x1xf32>
    %815 = arith.divf %813, %814 : vector<1x1x1xf32>
    %816 = vector.broadcast %808 : vector<1x1x1xf32> to vector<1x1x32xf32>
    %817 = arith.subf %804, %816 : vector<1x1x32xf32>
    %cst_340 = arith.constant 9.99999974E-6 : f32
    %818 = vector.broadcast %cst_340 : f32 to vector<1x1x1xf32>
    %819 = arith.addf %815, %818 : vector<1x1x1xf32>
    %820 = math.rsqrt %819 : vector<1x1x1xf32>
    %821 = vector.broadcast %820 : vector<1x1x1xf32> to vector<1x1x32xf32>
    %822 = arith.mulf %817, %821 : vector<1x1x32xf32>
    %823 = vector.shape_cast %3 : vector<1x32xf32> to vector<1x1x32xf32>
    %824 = arith.mulf %822, %823 : vector<1x1x32xf32>
    %825 = vector.shape_cast %4 : vector<1x32xf32> to vector<1x1x32xf32>
    %826 = arith.addf %824, %825 : vector<1x1x32xf32>
    %c0_i32_341 = arith.constant 0 : i32
    %827 = vector.broadcast %c0_i32_341 : i32 to vector<1x1x4xi32>
    %828 = vector.extract_strided_slice %711 {offsets = [0, 0, 0], sizes = [1, 1, 1], strides = [1, 1, 1]} : vector<1x1x4xf32> to vector<1x1x1xf32>
    %829 = vector.broadcast %828 : vector<1x1x1xf32> to vector<1x1x4xf32>
    %830 = arith.cmpf olt, %829, %711 : vector<1x1x4xf32>
    %831 = vector.broadcast %828 : vector<1x1x1xf32> to vector<1x1x4xf32>
    %832 = arith.cmpf oeq, %831, %711 : vector<1x1x4xf32>
    %c0_i32_342 = arith.constant 0 : i32
    %833 = vector.broadcast %c0_i32_342 : i32 to vector<1x1x4xi32>
    %834 = arith.cmpi sgt, %2, %833 : vector<1x1x4xi32>
    %835 = arith.andi %832, %834 : vector<1x1x4xi1>
    %836 = arith.ori %830, %835 : vector<1x1x4xi1>
    %837 = arith.extui %836 : vector<1x1x4xi1> to vector<1x1x4xi32>
    %838 = arith.addi %827, %837 : vector<1x1x4xi32>
    %839 = vector.extract_strided_slice %711 {offsets = [0, 0, 1], sizes = [1, 1, 1], strides = [1, 1, 1]} : vector<1x1x4xf32> to vector<1x1x1xf32>
    %840 = vector.broadcast %839 : vector<1x1x1xf32> to vector<1x1x4xf32>
    %841 = arith.cmpf olt, %840, %711 : vector<1x1x4xf32>
    %842 = vector.broadcast %839 : vector<1x1x1xf32> to vector<1x1x4xf32>
    %843 = arith.cmpf oeq, %842, %711 : vector<1x1x4xf32>
    %c1_i32 = arith.constant 1 : i32
    %844 = vector.broadcast %c1_i32 : i32 to vector<1x1x4xi32>
    %845 = arith.cmpi sgt, %2, %844 : vector<1x1x4xi32>
    %846 = arith.andi %843, %845 : vector<1x1x4xi1>
    %847 = arith.ori %841, %846 : vector<1x1x4xi1>
    %848 = arith.extui %847 : vector<1x1x4xi1> to vector<1x1x4xi32>
    %849 = arith.addi %838, %848 : vector<1x1x4xi32>
    %850 = vector.extract_strided_slice %711 {offsets = [0, 0, 2], sizes = [1, 1, 1], strides = [1, 1, 1]} : vector<1x1x4xf32> to vector<1x1x1xf32>
    %851 = vector.broadcast %850 : vector<1x1x1xf32> to vector<1x1x4xf32>
    %852 = arith.cmpf olt, %851, %711 : vector<1x1x4xf32>
    %853 = vector.broadcast %850 : vector<1x1x1xf32> to vector<1x1x4xf32>
    %854 = arith.cmpf oeq, %853, %711 : vector<1x1x4xf32>
    %c2_i32 = arith.constant 2 : i32
    %855 = vector.broadcast %c2_i32 : i32 to vector<1x1x4xi32>
    %856 = arith.cmpi sgt, %2, %855 : vector<1x1x4xi32>
    %857 = arith.andi %854, %856 : vector<1x1x4xi1>
    %858 = arith.ori %852, %857 : vector<1x1x4xi1>
    %859 = arith.extui %858 : vector<1x1x4xi1> to vector<1x1x4xi32>
    %860 = arith.addi %849, %859 : vector<1x1x4xi32>
    %861 = vector.extract_strided_slice %711 {offsets = [0, 0, 3], sizes = [1, 1, 1], strides = [1, 1, 1]} : vector<1x1x4xf32> to vector<1x1x1xf32>
    %862 = vector.broadcast %861 : vector<1x1x1xf32> to vector<1x1x4xf32>
    %863 = arith.cmpf olt, %862, %711 : vector<1x1x4xf32>
    %864 = vector.broadcast %861 : vector<1x1x1xf32> to vector<1x1x4xf32>
    %865 = arith.cmpf oeq, %864, %711 : vector<1x1x4xf32>
    %c3_i32 = arith.constant 3 : i32
    %866 = vector.broadcast %c3_i32 : i32 to vector<1x1x4xi32>
    %867 = arith.cmpi sgt, %2, %866 : vector<1x1x4xi32>
    %868 = arith.andi %865, %867 : vector<1x1x4xi1>
    %869 = arith.ori %863, %868 : vector<1x1x4xi1>
    %870 = arith.extui %869 : vector<1x1x4xi1> to vector<1x1x4xi32>
    %871 = arith.addi %860, %870 : vector<1x1x4xi32>
    %c0_i32_343 = arith.constant 0 : i32
    %872 = vector.broadcast %c0_i32_343 : i32 to vector<1x8x1xi32>
    %873 = arith.cmpi eq, %1, %872 : vector<1x8x1xi32>
    %cst_344 = arith.constant 0.000000e+00 : f32
    %874 = vector.shape_cast %873 : vector<1x8x1xi1> to vector<1x8x1xi1>
    %875 = vector.broadcast %874 : vector<1x8x1xi1> to vector<1x8x32xi1>
    %876 = vector.shape_cast %13 : vector<1x1x32xf32> to vector<1x1x32xf32>
    %877 = vector.broadcast %876 : vector<1x1x32xf32> to vector<1x8x32xf32>
    %878 = vector.broadcast %cst_344 : f32 to vector<1x8x32xf32>
    %879 = arith.select %875, %877, %878 : vector<1x8x32xi1>, vector<1x8x32xf32>
    %880 = vector.extract_strided_slice %871 {offsets = [0, 0, 0], sizes = [1, 1, 1], strides = [1, 1, 1]} : vector<1x1x4xi32> to vector<1x1x1xi32>
    %c1_i32_345 = arith.constant 1 : i32
    %881 = vector.broadcast %c1_i32_345 : i32 to vector<1x1x1xi32>
    %882 = arith.addi %881, %880 : vector<1x1x1xi32>
    %883 = vector.broadcast %882 : vector<1x1x1xi32> to vector<1x8x1xi32>
    %884 = arith.cmpi eq, %1, %883 : vector<1x8x1xi32>
    %c2_i32_346 = arith.constant 2 : i32
    %885 = vector.broadcast %c2_i32_346 : i32 to vector<1x1x1xi32>
    %886 = arith.cmpi slt, %880, %885 : vector<1x1x1xi32>
    %887 = vector.broadcast %886 : vector<1x1x1xi1> to vector<1x8x1xi1>
    %888 = arith.andi %884, %887 : vector<1x8x1xi1>
    %889 = vector.extract_strided_slice %22 {offsets = [0, 1, 0], sizes = [1, 1, 32], strides = [1, 1, 1]} : vector<1x8x32xf32> to vector<1x1x32xf32>
    %890 = vector.shape_cast %888 : vector<1x8x1xi1> to vector<1x8x1xi1>
    %891 = vector.broadcast %890 : vector<1x8x1xi1> to vector<1x8x32xi1>
    %892 = vector.shape_cast %889 : vector<1x1x32xf32> to vector<1x1x32xf32>
    %893 = vector.broadcast %892 : vector<1x1x32xf32> to vector<1x8x32xf32>
    %894 = arith.select %891, %893, %879 : vector<1x8x32xi1>, vector<1x8x32xf32>
    %895 = vector.extract_strided_slice %871 {offsets = [0, 0, 1], sizes = [1, 1, 1], strides = [1, 1, 1]} : vector<1x1x4xi32> to vector<1x1x1xi32>
    %c1_i32_347 = arith.constant 1 : i32
    %896 = vector.broadcast %c1_i32_347 : i32 to vector<1x1x1xi32>
    %897 = arith.addi %896, %895 : vector<1x1x1xi32>
    %898 = vector.broadcast %897 : vector<1x1x1xi32> to vector<1x8x1xi32>
    %899 = arith.cmpi eq, %1, %898 : vector<1x8x1xi32>
    %c2_i32_348 = arith.constant 2 : i32
    %900 = vector.broadcast %c2_i32_348 : i32 to vector<1x1x1xi32>
    %901 = arith.cmpi slt, %895, %900 : vector<1x1x1xi32>
    %902 = vector.broadcast %901 : vector<1x1x1xi1> to vector<1x8x1xi1>
    %903 = arith.andi %899, %902 : vector<1x8x1xi1>
    %904 = vector.extract_strided_slice %22 {offsets = [0, 2, 0], sizes = [1, 1, 32], strides = [1, 1, 1]} : vector<1x8x32xf32> to vector<1x1x32xf32>
    %905 = vector.shape_cast %903 : vector<1x8x1xi1> to vector<1x8x1xi1>
    %906 = vector.broadcast %905 : vector<1x8x1xi1> to vector<1x8x32xi1>
    %907 = vector.shape_cast %904 : vector<1x1x32xf32> to vector<1x1x32xf32>
    %908 = vector.broadcast %907 : vector<1x1x32xf32> to vector<1x8x32xf32>
    %909 = arith.select %906, %908, %894 : vector<1x8x32xi1>, vector<1x8x32xf32>
    %910 = vector.extract_strided_slice %871 {offsets = [0, 0, 2], sizes = [1, 1, 1], strides = [1, 1, 1]} : vector<1x1x4xi32> to vector<1x1x1xi32>
    %c1_i32_349 = arith.constant 1 : i32
    %911 = vector.broadcast %c1_i32_349 : i32 to vector<1x1x1xi32>
    %912 = arith.addi %911, %910 : vector<1x1x1xi32>
    %913 = vector.broadcast %912 : vector<1x1x1xi32> to vector<1x8x1xi32>
    %914 = arith.cmpi eq, %1, %913 : vector<1x8x1xi32>
    %c2_i32_350 = arith.constant 2 : i32
    %915 = vector.broadcast %c2_i32_350 : i32 to vector<1x1x1xi32>
    %916 = arith.cmpi slt, %910, %915 : vector<1x1x1xi32>
    %917 = vector.broadcast %916 : vector<1x1x1xi1> to vector<1x8x1xi1>
    %918 = arith.andi %914, %917 : vector<1x8x1xi1>
    %919 = vector.extract_strided_slice %22 {offsets = [0, 3, 0], sizes = [1, 1, 32], strides = [1, 1, 1]} : vector<1x8x32xf32> to vector<1x1x32xf32>
    %920 = vector.shape_cast %918 : vector<1x8x1xi1> to vector<1x8x1xi1>
    %921 = vector.broadcast %920 : vector<1x8x1xi1> to vector<1x8x32xi1>
    %922 = vector.shape_cast %919 : vector<1x1x32xf32> to vector<1x1x32xf32>
    %923 = vector.broadcast %922 : vector<1x1x32xf32> to vector<1x8x32xf32>
    %924 = arith.select %921, %923, %909 : vector<1x8x32xi1>, vector<1x8x32xf32>
    %925 = vector.extract_strided_slice %871 {offsets = [0, 0, 3], sizes = [1, 1, 1], strides = [1, 1, 1]} : vector<1x1x4xi32> to vector<1x1x1xi32>
    %c1_i32_351 = arith.constant 1 : i32
    %926 = vector.broadcast %c1_i32_351 : i32 to vector<1x1x1xi32>
    %927 = arith.addi %926, %925 : vector<1x1x1xi32>
    %928 = vector.broadcast %927 : vector<1x1x1xi32> to vector<1x8x1xi32>
    %929 = arith.cmpi eq, %1, %928 : vector<1x8x1xi32>
    %c2_i32_352 = arith.constant 2 : i32
    %930 = vector.broadcast %c2_i32_352 : i32 to vector<1x1x1xi32>
    %931 = arith.cmpi slt, %925, %930 : vector<1x1x1xi32>
    %932 = vector.broadcast %931 : vector<1x1x1xi1> to vector<1x8x1xi1>
    %933 = arith.andi %929, %932 : vector<1x8x1xi1>
    %934 = vector.extract_strided_slice %22 {offsets = [0, 4, 0], sizes = [1, 1, 32], strides = [1, 1, 1]} : vector<1x8x32xf32> to vector<1x1x32xf32>
    %935 = vector.shape_cast %933 : vector<1x8x1xi1> to vector<1x8x1xi1>
    %936 = vector.broadcast %935 : vector<1x8x1xi1> to vector<1x8x32xi1>
    %937 = vector.shape_cast %934 : vector<1x1x32xf32> to vector<1x1x32xf32>
    %938 = vector.broadcast %937 : vector<1x1x32xf32> to vector<1x8x32xf32>
    %939 = arith.select %936, %938, %924 : vector<1x8x32xi1>, vector<1x8x32xf32>
    %940 = vector.shape_cast %939 : vector<1x8x32xf32> to vector<8x32xf32>
    %c0_353 = arith.constant 0 : index
    %c0_354 = arith.constant 0 : index
    %c0_355 = arith.constant 0 : index
    %941 = vector.load %arg6[%c0_353, %c0_354, %c0_355] : memref<4x1x32xf32, #tpu.memory_space<vmem>>, vector<1x1x32xf32>
    %942 = vector.shape_cast %941 : vector<1x1x32xf32> to vector<1x32xf32>
    %c0_356 = arith.constant 0 : index
    %c0_357 = arith.constant 0 : index
    %c0_358 = arith.constant 0 : index
    %943 = vector.load %arg7[%c0_356, %c0_357, %c0_358] : memref<4x1x32xf32, #tpu.memory_space<vmem>>, vector<1x1x32xf32>
    %944 = vector.shape_cast %943 : vector<1x1x32xf32> to vector<1x32xf32>
    %cst_359 = arith.constant dense<0.000000e+00> : vector<8xf32>
    %945 = vector.multi_reduction <add>, %940, %cst_359 [1] : vector<8x32xf32> to vector<8xf32>
    %946 = vector.shape_cast %945 : vector<8xf32> to vector<8x1xf32>
    %cst_360 = arith.constant 3.200000e+01 : f32
    %947 = vector.broadcast %cst_360 : f32 to vector<8x1xf32>
    %948 = arith.divf %946, %947 : vector<8x1xf32>
    %949 = vector.broadcast %948 : vector<8x1xf32> to vector<8x32xf32>
    %950 = arith.subf %940, %949 : vector<8x32xf32>
    %951 = arith.mulf %950, %950 : vector<8x32xf32>
    %cst_361 = arith.constant dense<0.000000e+00> : vector<8xf32>
    %952 = vector.multi_reduction <add>, %951, %cst_361 [1] : vector<8x32xf32> to vector<8xf32>
    %953 = vector.shape_cast %952 : vector<8xf32> to vector<8x1xf32>
    %cst_362 = arith.constant 3.200000e+01 : f32
    %954 = vector.broadcast %cst_362 : f32 to vector<8x1xf32>
    %955 = arith.divf %953, %954 : vector<8x1xf32>
    %956 = vector.broadcast %948 : vector<8x1xf32> to vector<8x32xf32>
    %957 = arith.subf %940, %956 : vector<8x32xf32>
    %cst_363 = arith.constant 9.99999974E-6 : f32
    %958 = vector.broadcast %cst_363 : f32 to vector<8x1xf32>
    %959 = arith.addf %955, %958 : vector<8x1xf32>
    %960 = math.rsqrt %959 : vector<8x1xf32>
    %961 = vector.broadcast %960 : vector<8x1xf32> to vector<8x32xf32>
    %962 = arith.mulf %957, %961 : vector<8x32xf32>
    %963 = vector.broadcast %942 : vector<1x32xf32> to vector<8x32xf32>
    %964 = arith.mulf %962, %963 : vector<8x32xf32>
    %965 = vector.broadcast %944 : vector<1x32xf32> to vector<8x32xf32>
    %966 = arith.addf %964, %965 : vector<8x32xf32>
    %c0_364 = arith.constant 0 : index
    %c0_365 = arith.constant 0 : index
    %c0_366 = arith.constant 0 : index
    %967 = vector.load %arg8[%c0_364, %c0_365, %c0_366] : memref<4x32x96xf32, #tpu.memory_space<vmem>>, vector<1x32x96xf32>
    %968 = vector.shape_cast %967 : vector<1x32x96xf32> to vector<32x96xf32>
    %cst_367 = arith.constant dense<0.000000e+00> : vector<8x96xf32>
    %969 = tpu.matmul %966, %968, %cst_367 {dimension_numbers = #tpu.dot_dimension_numbers<[1], [0], [0], [1], [0, 0, 1, 1], [], []>} : vector<8x32xf32>, vector<32x96xf32>, vector<8x96xf32> -> vector<8x96xf32>
    %970 = vector.shape_cast %969 : vector<8x96xf32> to vector<1x8x96xf32>
    %c3_i32_368 = arith.constant 3 : i32
    %971 = vector.broadcast %c3_i32_368 : i32 to vector<1x1x8xi32>
    %972 = arith.cmpi slt, %0, %971 : vector<1x1x8xi32>
    %cst_369 = arith.constant 0.000000e+00 : f32
    %cst_370 = arith.constant -1.000000e+30 : f32
    %973 = vector.broadcast %cst_369 : f32 to vector<1x1x8xf32>
    %974 = vector.broadcast %cst_370 : f32 to vector<1x1x8xf32>
    %975 = arith.select %972, %973, %974 : vector<1x1x8xi1>, vector<1x1x8xf32>
    %976 = vector.extract_strided_slice %970 {offsets = [0, 0, 0], sizes = [1, 8, 8], strides = [1, 1, 1]} : vector<1x8x96xf32> to vector<1x8x8xf32>
    %977 = vector.extract_strided_slice %970 {offsets = [0, 0, 32], sizes = [1, 8, 8], strides = [1, 1, 1]} : vector<1x8x96xf32> to vector<1x8x8xf32>
    %978 = vector.extract_strided_slice %970 {offsets = [0, 0, 64], sizes = [1, 8, 8], strides = [1, 1, 1]} : vector<1x8x96xf32> to vector<1x8x8xf32>
    "tpu.trace_start"() <{level = 10 : i32, message = "bnd,bmd->bnm"}> : () -> ()
    %cst_371 = arith.constant dense<0.000000e+00> : vector<1x8x8xf32>
    %979 = tpu.matmul %976, %977, %cst_371 {dimension_numbers = #tpu.dot_dimension_numbers<[2], [2], [1], [1], [0, 0, 0, 1, 1, 1], [0], [0]>} : vector<1x8x8xf32>, vector<1x8x8xf32>, vector<1x8x8xf32> -> vector<1x8x8xf32>
    "tpu.trace_stop"() : () -> ()
    %980 = vector.broadcast %975 : vector<1x1x8xf32> to vector<1x8x8xf32>
    %981 = arith.addf %979, %980 : vector<1x8x8xf32>
    %cst_372 = arith.constant dense<0xFF800000> : vector<1x8xf32>
    %982 = vector.multi_reduction <maximumf>, %981, %cst_372 [2] : vector<1x8x8xf32> to vector<1x8xf32>
    %983 = vector.shape_cast %982 : vector<1x8xf32> to vector<1x8x1xf32>
    %984 = vector.broadcast %983 : vector<1x8x1xf32> to vector<1x8x8xf32>
    %985 = arith.subf %981, %984 : vector<1x8x8xf32>
    %986 = math.exp %985 : vector<1x8x8xf32>
    %cst_373 = arith.constant dense<0.000000e+00> : vector<1x8xf32>
    %987 = vector.multi_reduction <add>, %986, %cst_373 [2] : vector<1x8x8xf32> to vector<1x8xf32>
    %988 = vector.shape_cast %987 : vector<1x8xf32> to vector<1x8x1xf32>
    %989 = tpu.reciprocal %988 {approx = true} : vector<1x8x1xf32> -> vector<1x8x1xf32>
    %990 = vector.broadcast %989 : vector<1x8x1xf32> to vector<1x8x8xf32>
    %991 = arith.mulf %986, %990 : vector<1x8x8xf32>
    "tpu.trace_start"() <{level = 10 : i32, message = "bnm,bmd->bnd"}> : () -> ()
    %cst_374 = arith.constant dense<0.000000e+00> : vector<1x8x8xf32>
    %992 = tpu.matmul %991, %978, %cst_374 {dimension_numbers = #tpu.dot_dimension_numbers<[2], [1], [1], [2], [0, 0, 0, 1, 1, 2], [0], [0]>} : vector<1x8x8xf32>, vector<1x8x8xf32>, vector<1x8x8xf32> -> vector<1x8x8xf32>
    "tpu.trace_stop"() : () -> ()
    %993 = vector.extract_strided_slice %970 {offsets = [0, 0, 8], sizes = [1, 8, 8], strides = [1, 1, 1]} : vector<1x8x96xf32> to vector<1x8x8xf32>
    %994 = vector.extract_strided_slice %970 {offsets = [0, 0, 40], sizes = [1, 8, 8], strides = [1, 1, 1]} : vector<1x8x96xf32> to vector<1x8x8xf32>
    %995 = vector.extract_strided_slice %970 {offsets = [0, 0, 72], sizes = [1, 8, 8], strides = [1, 1, 1]} : vector<1x8x96xf32> to vector<1x8x8xf32>
    "tpu.trace_start"() <{level = 10 : i32, message = "bnd,bmd->bnm"}> : () -> ()
    %cst_375 = arith.constant dense<0.000000e+00> : vector<1x8x8xf32>
    %996 = tpu.matmul %993, %994, %cst_375 {dimension_numbers = #tpu.dot_dimension_numbers<[2], [2], [1], [1], [0, 0, 0, 1, 1, 1], [0], [0]>} : vector<1x8x8xf32>, vector<1x8x8xf32>, vector<1x8x8xf32> -> vector<1x8x8xf32>
    "tpu.trace_stop"() : () -> ()
    %997 = vector.broadcast %975 : vector<1x1x8xf32> to vector<1x8x8xf32>
    %998 = arith.addf %996, %997 : vector<1x8x8xf32>
    %cst_376 = arith.constant dense<0xFF800000> : vector<1x8xf32>
    %999 = vector.multi_reduction <maximumf>, %998, %cst_376 [2] : vector<1x8x8xf32> to vector<1x8xf32>
    %1000 = vector.shape_cast %999 : vector<1x8xf32> to vector<1x8x1xf32>
    %1001 = vector.broadcast %1000 : vector<1x8x1xf32> to vector<1x8x8xf32>
    %1002 = arith.subf %998, %1001 : vector<1x8x8xf32>
    %1003 = math.exp %1002 : vector<1x8x8xf32>
    %cst_377 = arith.constant dense<0.000000e+00> : vector<1x8xf32>
    %1004 = vector.multi_reduction <add>, %1003, %cst_377 [2] : vector<1x8x8xf32> to vector<1x8xf32>
    %1005 = vector.shape_cast %1004 : vector<1x8xf32> to vector<1x8x1xf32>
    %1006 = tpu.reciprocal %1005 {approx = true} : vector<1x8x1xf32> -> vector<1x8x1xf32>
    %1007 = vector.broadcast %1006 : vector<1x8x1xf32> to vector<1x8x8xf32>
    %1008 = arith.mulf %1003, %1007 : vector<1x8x8xf32>
    "tpu.trace_start"() <{level = 10 : i32, message = "bnm,bmd->bnd"}> : () -> ()
    %cst_378 = arith.constant dense<0.000000e+00> : vector<1x8x8xf32>
    %1009 = tpu.matmul %1008, %995, %cst_378 {dimension_numbers = #tpu.dot_dimension_numbers<[2], [1], [1], [2], [0, 0, 0, 1, 1, 2], [0], [0]>} : vector<1x8x8xf32>, vector<1x8x8xf32>, vector<1x8x8xf32> -> vector<1x8x8xf32>
    "tpu.trace_stop"() : () -> ()
    %1010 = vector.extract_strided_slice %970 {offsets = [0, 0, 16], sizes = [1, 8, 8], strides = [1, 1, 1]} : vector<1x8x96xf32> to vector<1x8x8xf32>
    %1011 = vector.extract_strided_slice %970 {offsets = [0, 0, 48], sizes = [1, 8, 8], strides = [1, 1, 1]} : vector<1x8x96xf32> to vector<1x8x8xf32>
    %1012 = vector.extract_strided_slice %970 {offsets = [0, 0, 80], sizes = [1, 8, 8], strides = [1, 1, 1]} : vector<1x8x96xf32> to vector<1x8x8xf32>
    "tpu.trace_start"() <{level = 10 : i32, message = "bnd,bmd->bnm"}> : () -> ()
    %cst_379 = arith.constant dense<0.000000e+00> : vector<1x8x8xf32>
    %1013 = tpu.matmul %1010, %1011, %cst_379 {dimension_numbers = #tpu.dot_dimension_numbers<[2], [2], [1], [1], [0, 0, 0, 1, 1, 1], [0], [0]>} : vector<1x8x8xf32>, vector<1x8x8xf32>, vector<1x8x8xf32> -> vector<1x8x8xf32>
    "tpu.trace_stop"() : () -> ()
    %1014 = vector.broadcast %975 : vector<1x1x8xf32> to vector<1x8x8xf32>
    %1015 = arith.addf %1013, %1014 : vector<1x8x8xf32>
    %cst_380 = arith.constant dense<0xFF800000> : vector<1x8xf32>
    %1016 = vector.multi_reduction <maximumf>, %1015, %cst_380 [2] : vector<1x8x8xf32> to vector<1x8xf32>
    %1017 = vector.shape_cast %1016 : vector<1x8xf32> to vector<1x8x1xf32>
    %1018 = vector.broadcast %1017 : vector<1x8x1xf32> to vector<1x8x8xf32>
    %1019 = arith.subf %1015, %1018 : vector<1x8x8xf32>
    %1020 = math.exp %1019 : vector<1x8x8xf32>
    %cst_381 = arith.constant dense<0.000000e+00> : vector<1x8xf32>
    %1021 = vector.multi_reduction <add>, %1020, %cst_381 [2] : vector<1x8x8xf32> to vector<1x8xf32>
    %1022 = vector.shape_cast %1021 : vector<1x8xf32> to vector<1x8x1xf32>
    %1023 = tpu.reciprocal %1022 {approx = true} : vector<1x8x1xf32> -> vector<1x8x1xf32>
    %1024 = vector.broadcast %1023 : vector<1x8x1xf32> to vector<1x8x8xf32>
    %1025 = arith.mulf %1020, %1024 : vector<1x8x8xf32>
    "tpu.trace_start"() <{level = 10 : i32, message = "bnm,bmd->bnd"}> : () -> ()
    %cst_382 = arith.constant dense<0.000000e+00> : vector<1x8x8xf32>
    %1026 = tpu.matmul %1025, %1012, %cst_382 {dimension_numbers = #tpu.dot_dimension_numbers<[2], [1], [1], [2], [0, 0, 0, 1, 1, 2], [0], [0]>} : vector<1x8x8xf32>, vector<1x8x8xf32>, vector<1x8x8xf32> -> vector<1x8x8xf32>
    "tpu.trace_stop"() : () -> ()
    %1027 = vector.extract_strided_slice %970 {offsets = [0, 0, 24], sizes = [1, 8, 8], strides = [1, 1, 1]} : vector<1x8x96xf32> to vector<1x8x8xf32>
    %1028 = vector.extract_strided_slice %970 {offsets = [0, 0, 56], sizes = [1, 8, 8], strides = [1, 1, 1]} : vector<1x8x96xf32> to vector<1x8x8xf32>
    %1029 = vector.extract_strided_slice %970 {offsets = [0, 0, 88], sizes = [1, 8, 8], strides = [1, 1, 1]} : vector<1x8x96xf32> to vector<1x8x8xf32>
    "tpu.trace_start"() <{level = 10 : i32, message = "bnd,bmd->bnm"}> : () -> ()
    %cst_383 = arith.constant dense<0.000000e+00> : vector<1x8x8xf32>
    %1030 = tpu.matmul %1027, %1028, %cst_383 {dimension_numbers = #tpu.dot_dimension_numbers<[2], [2], [1], [1], [0, 0, 0, 1, 1, 1], [0], [0]>} : vector<1x8x8xf32>, vector<1x8x8xf32>, vector<1x8x8xf32> -> vector<1x8x8xf32>
    "tpu.trace_stop"() : () -> ()
    %1031 = vector.broadcast %975 : vector<1x1x8xf32> to vector<1x8x8xf32>
    %1032 = arith.addf %1030, %1031 : vector<1x8x8xf32>
    %cst_384 = arith.constant dense<0xFF800000> : vector<1x8xf32>
    %1033 = vector.multi_reduction <maximumf>, %1032, %cst_384 [2] : vector<1x8x8xf32> to vector<1x8xf32>
    %1034 = vector.shape_cast %1033 : vector<1x8xf32> to vector<1x8x1xf32>
    %1035 = vector.broadcast %1034 : vector<1x8x1xf32> to vector<1x8x8xf32>
    %1036 = arith.subf %1032, %1035 : vector<1x8x8xf32>
    %1037 = math.exp %1036 : vector<1x8x8xf32>
    %cst_385 = arith.constant dense<0.000000e+00> : vector<1x8xf32>
    %1038 = vector.multi_reduction <add>, %1037, %cst_385 [2] : vector<1x8x8xf32> to vector<1x8xf32>
    %1039 = vector.shape_cast %1038 : vector<1x8xf32> to vector<1x8x1xf32>
    %1040 = tpu.reciprocal %1039 {approx = true} : vector<1x8x1xf32> -> vector<1x8x1xf32>
    %1041 = vector.broadcast %1040 : vector<1x8x1xf32> to vector<1x8x8xf32>
    %1042 = arith.mulf %1037, %1041 : vector<1x8x8xf32>
    "tpu.trace_start"() <{level = 10 : i32, message = "bnm,bmd->bnd"}> : () -> ()
    %cst_386 = arith.constant dense<0.000000e+00> : vector<1x8x8xf32>
    %1043 = tpu.matmul %1042, %1029, %cst_386 {dimension_numbers = #tpu.dot_dimension_numbers<[2], [1], [1], [2], [0, 0, 0, 1, 1, 2], [0], [0]>} : vector<1x8x8xf32>, vector<1x8x8xf32>, vector<1x8x8xf32> -> vector<1x8x8xf32>
    "tpu.trace_stop"() : () -> ()
    %1044 = tpu.concatenate %992, %1009, %1026, %1043 in 2 : vector<1x8x8xf32>, vector<1x8x8xf32>, vector<1x8x8xf32>, vector<1x8x8xf32> -> vector<1x8x32xf32>
    %1045 = vector.shape_cast %1044 : vector<1x8x32xf32> to vector<8x32xf32>
    %c0_387 = arith.constant 0 : index
    %c0_388 = arith.constant 0 : index
    %c0_389 = arith.constant 0 : index
    %1046 = vector.load %arg9[%c0_387, %c0_388, %c0_389] : memref<4x32x32xf32, #tpu.memory_space<vmem>>, vector<1x32x32xf32>
    %1047 = vector.shape_cast %1046 : vector<1x32x32xf32> to vector<32x32xf32>
    %cst_390 = arith.constant dense<0.000000e+00> : vector<8x32xf32>
    %1048 = tpu.matmul %1045, %1047, %cst_390 {dimension_numbers = #tpu.dot_dimension_numbers<[1], [0], [0], [1], [0, 0, 1, 1], [], []>} : vector<8x32xf32>, vector<32x32xf32>, vector<8x32xf32> -> vector<8x32xf32>
    %c0_391 = arith.constant 0 : index
    %c0_392 = arith.constant 0 : index
    %c0_393 = arith.constant 0 : index
    %1049 = vector.load %arg10[%c0_391, %c0_392, %c0_393] : memref<4x1x32xf32, #tpu.memory_space<vmem>>, vector<1x1x32xf32>
    %1050 = vector.shape_cast %1049 : vector<1x1x32xf32> to vector<1x32xf32>
    %1051 = vector.broadcast %1050 : vector<1x32xf32> to vector<8x32xf32>
    %1052 = arith.addf %1048, %1051 : vector<8x32xf32>
    %1053 = arith.addf %940, %1052 : vector<8x32xf32>
    %c0_394 = arith.constant 0 : index
    %c0_395 = arith.constant 0 : index
    %c0_396 = arith.constant 0 : index
    %1054 = vector.load %arg11[%c0_394, %c0_395, %c0_396] : memref<4x1x32xf32, #tpu.memory_space<vmem>>, vector<1x1x32xf32>
    %1055 = vector.shape_cast %1054 : vector<1x1x32xf32> to vector<1x32xf32>
    %c0_397 = arith.constant 0 : index
    %c0_398 = arith.constant 0 : index
    %c0_399 = arith.constant 0 : index
    %1056 = vector.load %arg12[%c0_397, %c0_398, %c0_399] : memref<4x1x32xf32, #tpu.memory_space<vmem>>, vector<1x1x32xf32>
    %1057 = vector.shape_cast %1056 : vector<1x1x32xf32> to vector<1x32xf32>
    %cst_400 = arith.constant dense<0.000000e+00> : vector<8xf32>
    %1058 = vector.multi_reduction <add>, %1053, %cst_400 [1] : vector<8x32xf32> to vector<8xf32>
    %1059 = vector.shape_cast %1058 : vector<8xf32> to vector<8x1xf32>
    %cst_401 = arith.constant 3.200000e+01 : f32
    %1060 = vector.broadcast %cst_401 : f32 to vector<8x1xf32>
    %1061 = arith.divf %1059, %1060 : vector<8x1xf32>
    %1062 = vector.broadcast %1061 : vector<8x1xf32> to vector<8x32xf32>
    %1063 = arith.subf %1053, %1062 : vector<8x32xf32>
    %1064 = arith.mulf %1063, %1063 : vector<8x32xf32>
    %cst_402 = arith.constant dense<0.000000e+00> : vector<8xf32>
    %1065 = vector.multi_reduction <add>, %1064, %cst_402 [1] : vector<8x32xf32> to vector<8xf32>
    %1066 = vector.shape_cast %1065 : vector<8xf32> to vector<8x1xf32>
    %cst_403 = arith.constant 3.200000e+01 : f32
    %1067 = vector.broadcast %cst_403 : f32 to vector<8x1xf32>
    %1068 = arith.divf %1066, %1067 : vector<8x1xf32>
    %1069 = vector.broadcast %1061 : vector<8x1xf32> to vector<8x32xf32>
    %1070 = arith.subf %1053, %1069 : vector<8x32xf32>
    %cst_404 = arith.constant 9.99999974E-6 : f32
    %1071 = vector.broadcast %cst_404 : f32 to vector<8x1xf32>
    %1072 = arith.addf %1068, %1071 : vector<8x1xf32>
    %1073 = math.rsqrt %1072 : vector<8x1xf32>
    %1074 = vector.broadcast %1073 : vector<8x1xf32> to vector<8x32xf32>
    %1075 = arith.mulf %1070, %1074 : vector<8x32xf32>
    %1076 = vector.broadcast %1055 : vector<1x32xf32> to vector<8x32xf32>
    %1077 = arith.mulf %1075, %1076 : vector<8x32xf32>
    %1078 = vector.broadcast %1057 : vector<1x32xf32> to vector<8x32xf32>
    %1079 = arith.addf %1077, %1078 : vector<8x32xf32>
    %c0_405 = arith.constant 0 : index
    %c0_406 = arith.constant 0 : index
    %c0_407 = arith.constant 0 : index
    %1080 = vector.load %arg13[%c0_405, %c0_406, %c0_407] : memref<4x32x128xf32, #tpu.memory_space<vmem>>, vector<1x32x128xf32>
    %1081 = vector.shape_cast %1080 : vector<1x32x128xf32> to vector<32x128xf32>
    %cst_408 = arith.constant dense<0.000000e+00> : vector<8x128xf32>
    %1082 = tpu.matmul %1079, %1081, %cst_408 {dimension_numbers = #tpu.dot_dimension_numbers<[1], [0], [0], [1], [0, 0, 1, 1], [], []>} : vector<8x32xf32>, vector<32x128xf32>, vector<8x128xf32> -> vector<8x128xf32>
    %c0_409 = arith.constant 0 : index
    %c0_410 = arith.constant 0 : index
    %c0_411 = arith.constant 0 : index
    %1083 = vector.load %arg14[%c0_409, %c0_410, %c0_411] : memref<4x1x128xf32, #tpu.memory_space<vmem>>, vector<1x1x128xf32>
    %1084 = vector.shape_cast %1083 : vector<1x1x128xf32> to vector<1x128xf32>
    %1085 = vector.broadcast %1084 : vector<1x128xf32> to vector<8x128xf32>
    %1086 = arith.addf %1082, %1085 : vector<8x128xf32>
    %cst_412 = arith.constant 5.000000e-01 : f32
    %1087 = vector.broadcast %cst_412 : f32 to vector<8x128xf32>
    %1088 = arith.mulf %1087, %1086 : vector<8x128xf32>
    %cst_413 = arith.constant 0.707106769 : f32
    %1089 = vector.broadcast %cst_413 : f32 to vector<8x128xf32>
    %1090 = arith.mulf %1086, %1089 : vector<8x128xf32>
    %1091 = math.absf %1090 : vector<8x128xf32>
    %cst_414 = arith.constant 0.327591091 : f32
    %1092 = vector.broadcast %cst_414 : f32 to vector<8x128xf32>
    %1093 = arith.mulf %1092, %1091 : vector<8x128xf32>
    %cst_415 = arith.constant 1.000000e+00 : f32
    %1094 = vector.broadcast %cst_415 : f32 to vector<8x128xf32>
    %1095 = arith.addf %1094, %1093 : vector<8x128xf32>
    %cst_416 = arith.constant 1.000000e+00 : f32
    %1096 = vector.broadcast %cst_416 : f32 to vector<8x128xf32>
    %1097 = arith.divf %1096, %1095 : vector<8x128xf32>
    %cst_417 = arith.constant 1.06140542 : f32
    %1098 = vector.broadcast %cst_417 : f32 to vector<8x128xf32>
    %1099 = arith.mulf %1098, %1097 : vector<8x128xf32>
    %cst_418 = arith.constant -1.45315206 : f32
    %1100 = vector.broadcast %cst_418 : f32 to vector<8x128xf32>
    %1101 = arith.addf %1099, %1100 : vector<8x128xf32>
    %1102 = arith.mulf %1101, %1097 : vector<8x128xf32>
    %cst_419 = arith.constant 1.42141378 : f32
    %1103 = vector.broadcast %cst_419 : f32 to vector<8x128xf32>
    %1104 = arith.addf %1102, %1103 : vector<8x128xf32>
    %1105 = arith.mulf %1104, %1097 : vector<8x128xf32>
    %cst_420 = arith.constant -0.284496725 : f32
    %1106 = vector.broadcast %cst_420 : f32 to vector<8x128xf32>
    %1107 = arith.addf %1105, %1106 : vector<8x128xf32>
    %1108 = arith.mulf %1107, %1097 : vector<8x128xf32>
    %cst_421 = arith.constant 0.254829586 : f32
    %1109 = vector.broadcast %cst_421 : f32 to vector<8x128xf32>
    %1110 = arith.addf %1108, %1109 : vector<8x128xf32>
    %1111 = arith.mulf %1110, %1097 : vector<8x128xf32>
    %cst_422 = arith.constant 0.000000e+00 : f32
    %1112 = vector.broadcast %cst_422 : f32 to vector<8x128xf32>
    %1113 = arith.subf %1112, %1091 : vector<8x128xf32>
    %1114 = arith.mulf %1113, %1091 : vector<8x128xf32>
    %1115 = math.exp %1114 : vector<8x128xf32>
    %1116 = arith.mulf %1111, %1115 : vector<8x128xf32>
    %cst_423 = arith.constant 1.000000e+00 : f32
    %1117 = vector.broadcast %cst_423 : f32 to vector<8x128xf32>
    %1118 = arith.subf %1117, %1116 : vector<8x128xf32>
    %cst_424 = arith.constant 0.000000e+00 : f32
    %1119 = vector.broadcast %cst_424 : f32 to vector<8x128xf32>
    %1120 = arith.cmpf oge, %1090, %1119 : vector<8x128xf32>
    %cst_425 = arith.constant 0.000000e+00 : f32
    %1121 = vector.broadcast %cst_425 : f32 to vector<8x128xf32>
    %1122 = arith.subf %1121, %1118 : vector<8x128xf32>
    %1123 = arith.select %1120, %1118, %1122 : vector<8x128xi1>, vector<8x128xf32>
    %cst_426 = arith.constant 1.000000e+00 : f32
    %1124 = vector.broadcast %cst_426 : f32 to vector<8x128xf32>
    %1125 = arith.addf %1124, %1123 : vector<8x128xf32>
    %1126 = arith.mulf %1088, %1125 : vector<8x128xf32>
    %c0_427 = arith.constant 0 : index
    %c0_428 = arith.constant 0 : index
    %c0_429 = arith.constant 0 : index
    %1127 = vector.load %arg15[%c0_427, %c0_428, %c0_429] : memref<4x128x32xf32, #tpu.memory_space<vmem>>, vector<1x128x32xf32>
    %1128 = vector.shape_cast %1127 : vector<1x128x32xf32> to vector<128x32xf32>
    %cst_430 = arith.constant dense<0.000000e+00> : vector<8x32xf32>
    %1129 = tpu.matmul %1126, %1128, %cst_430 {dimension_numbers = #tpu.dot_dimension_numbers<[1], [0], [0], [1], [0, 0, 1, 1], [], []>} : vector<8x128xf32>, vector<128x32xf32>, vector<8x32xf32> -> vector<8x32xf32>
    %c0_431 = arith.constant 0 : index
    %c0_432 = arith.constant 0 : index
    %c0_433 = arith.constant 0 : index
    %1130 = vector.load %arg16[%c0_431, %c0_432, %c0_433] : memref<4x1x32xf32, #tpu.memory_space<vmem>>, vector<1x1x32xf32>
    %1131 = vector.shape_cast %1130 : vector<1x1x32xf32> to vector<1x32xf32>
    %1132 = vector.broadcast %1131 : vector<1x32xf32> to vector<8x32xf32>
    %1133 = arith.addf %1129, %1132 : vector<8x32xf32>
    %1134 = arith.addf %1053, %1133 : vector<8x32xf32>
    %c1_434 = arith.constant 1 : index
    %c0_435 = arith.constant 0 : index
    %c0_436 = arith.constant 0 : index
    %1135 = vector.load %arg6[%c1_434, %c0_435, %c0_436] : memref<4x1x32xf32, #tpu.memory_space<vmem>>, vector<1x1x32xf32>
    %1136 = vector.shape_cast %1135 : vector<1x1x32xf32> to vector<1x32xf32>
    %c1_437 = arith.constant 1 : index
    %c0_438 = arith.constant 0 : index
    %c0_439 = arith.constant 0 : index
    %1137 = vector.load %arg7[%c1_437, %c0_438, %c0_439] : memref<4x1x32xf32, #tpu.memory_space<vmem>>, vector<1x1x32xf32>
    %1138 = vector.shape_cast %1137 : vector<1x1x32xf32> to vector<1x32xf32>
    %cst_440 = arith.constant dense<0.000000e+00> : vector<8xf32>
    %1139 = vector.multi_reduction <add>, %1134, %cst_440 [1] : vector<8x32xf32> to vector<8xf32>
    %1140 = vector.shape_cast %1139 : vector<8xf32> to vector<8x1xf32>
    %cst_441 = arith.constant 3.200000e+01 : f32
    %1141 = vector.broadcast %cst_441 : f32 to vector<8x1xf32>
    %1142 = arith.divf %1140, %1141 : vector<8x1xf32>
    %1143 = vector.broadcast %1142 : vector<8x1xf32> to vector<8x32xf32>
    %1144 = arith.subf %1134, %1143 : vector<8x32xf32>
    %1145 = arith.mulf %1144, %1144 : vector<8x32xf32>
    %cst_442 = arith.constant dense<0.000000e+00> : vector<8xf32>
    %1146 = vector.multi_reduction <add>, %1145, %cst_442 [1] : vector<8x32xf32> to vector<8xf32>
    %1147 = vector.shape_cast %1146 : vector<8xf32> to vector<8x1xf32>
    %cst_443 = arith.constant 3.200000e+01 : f32
    %1148 = vector.broadcast %cst_443 : f32 to vector<8x1xf32>
    %1149 = arith.divf %1147, %1148 : vector<8x1xf32>
    %1150 = vector.broadcast %1142 : vector<8x1xf32> to vector<8x32xf32>
    %1151 = arith.subf %1134, %1150 : vector<8x32xf32>
    %cst_444 = arith.constant 9.99999974E-6 : f32
    %1152 = vector.broadcast %cst_444 : f32 to vector<8x1xf32>
    %1153 = arith.addf %1149, %1152 : vector<8x1xf32>
    %1154 = math.rsqrt %1153 : vector<8x1xf32>
    %1155 = vector.broadcast %1154 : vector<8x1xf32> to vector<8x32xf32>
    %1156 = arith.mulf %1151, %1155 : vector<8x32xf32>
    %1157 = vector.broadcast %1136 : vector<1x32xf32> to vector<8x32xf32>
    %1158 = arith.mulf %1156, %1157 : vector<8x32xf32>
    %1159 = vector.broadcast %1138 : vector<1x32xf32> to vector<8x32xf32>
    %1160 = arith.addf %1158, %1159 : vector<8x32xf32>
    %c1_445 = arith.constant 1 : index
    %c0_446 = arith.constant 0 : index
    %c0_447 = arith.constant 0 : index
    %1161 = vector.load %arg8[%c1_445, %c0_446, %c0_447] : memref<4x32x96xf32, #tpu.memory_space<vmem>>, vector<1x32x96xf32>
    %1162 = vector.shape_cast %1161 : vector<1x32x96xf32> to vector<32x96xf32>
    %cst_448 = arith.constant dense<0.000000e+00> : vector<8x96xf32>
    %1163 = tpu.matmul %1160, %1162, %cst_448 {dimension_numbers = #tpu.dot_dimension_numbers<[1], [0], [0], [1], [0, 0, 1, 1], [], []>} : vector<8x32xf32>, vector<32x96xf32>, vector<8x96xf32> -> vector<8x96xf32>
    %1164 = vector.shape_cast %1163 : vector<8x96xf32> to vector<1x8x96xf32>
    %c3_i32_449 = arith.constant 3 : i32
    %1165 = vector.broadcast %c3_i32_449 : i32 to vector<1x1x8xi32>
    %1166 = arith.cmpi slt, %0, %1165 : vector<1x1x8xi32>
    %cst_450 = arith.constant 0.000000e+00 : f32
    %cst_451 = arith.constant -1.000000e+30 : f32
    %1167 = vector.broadcast %cst_450 : f32 to vector<1x1x8xf32>
    %1168 = vector.broadcast %cst_451 : f32 to vector<1x1x8xf32>
    %1169 = arith.select %1166, %1167, %1168 : vector<1x1x8xi1>, vector<1x1x8xf32>
    %1170 = vector.extract_strided_slice %1164 {offsets = [0, 0, 0], sizes = [1, 8, 8], strides = [1, 1, 1]} : vector<1x8x96xf32> to vector<1x8x8xf32>
    %1171 = vector.extract_strided_slice %1164 {offsets = [0, 0, 32], sizes = [1, 8, 8], strides = [1, 1, 1]} : vector<1x8x96xf32> to vector<1x8x8xf32>
    %1172 = vector.extract_strided_slice %1164 {offsets = [0, 0, 64], sizes = [1, 8, 8], strides = [1, 1, 1]} : vector<1x8x96xf32> to vector<1x8x8xf32>
    "tpu.trace_start"() <{level = 10 : i32, message = "bnd,bmd->bnm"}> : () -> ()
    %cst_452 = arith.constant dense<0.000000e+00> : vector<1x8x8xf32>
    %1173 = tpu.matmul %1170, %1171, %cst_452 {dimension_numbers = #tpu.dot_dimension_numbers<[2], [2], [1], [1], [0, 0, 0, 1, 1, 1], [0], [0]>} : vector<1x8x8xf32>, vector<1x8x8xf32>, vector<1x8x8xf32> -> vector<1x8x8xf32>
    "tpu.trace_stop"() : () -> ()
    %1174 = vector.broadcast %1169 : vector<1x1x8xf32> to vector<1x8x8xf32>
    %1175 = arith.addf %1173, %1174 : vector<1x8x8xf32>
    %cst_453 = arith.constant dense<0xFF800000> : vector<1x8xf32>
    %1176 = vector.multi_reduction <maximumf>, %1175, %cst_453 [2] : vector<1x8x8xf32> to vector<1x8xf32>
    %1177 = vector.shape_cast %1176 : vector<1x8xf32> to vector<1x8x1xf32>
    %1178 = vector.broadcast %1177 : vector<1x8x1xf32> to vector<1x8x8xf32>
    %1179 = arith.subf %1175, %1178 : vector<1x8x8xf32>
    %1180 = math.exp %1179 : vector<1x8x8xf32>
    %cst_454 = arith.constant dense<0.000000e+00> : vector<1x8xf32>
    %1181 = vector.multi_reduction <add>, %1180, %cst_454 [2] : vector<1x8x8xf32> to vector<1x8xf32>
    %1182 = vector.shape_cast %1181 : vector<1x8xf32> to vector<1x8x1xf32>
    %1183 = tpu.reciprocal %1182 {approx = true} : vector<1x8x1xf32> -> vector<1x8x1xf32>
    %1184 = vector.broadcast %1183 : vector<1x8x1xf32> to vector<1x8x8xf32>
    %1185 = arith.mulf %1180, %1184 : vector<1x8x8xf32>
    "tpu.trace_start"() <{level = 10 : i32, message = "bnm,bmd->bnd"}> : () -> ()
    %cst_455 = arith.constant dense<0.000000e+00> : vector<1x8x8xf32>
    %1186 = tpu.matmul %1185, %1172, %cst_455 {dimension_numbers = #tpu.dot_dimension_numbers<[2], [1], [1], [2], [0, 0, 0, 1, 1, 2], [0], [0]>} : vector<1x8x8xf32>, vector<1x8x8xf32>, vector<1x8x8xf32> -> vector<1x8x8xf32>
    "tpu.trace_stop"() : () -> ()
    %1187 = vector.extract_strided_slice %1164 {offsets = [0, 0, 8], sizes = [1, 8, 8], strides = [1, 1, 1]} : vector<1x8x96xf32> to vector<1x8x8xf32>
    %1188 = vector.extract_strided_slice %1164 {offsets = [0, 0, 40], sizes = [1, 8, 8], strides = [1, 1, 1]} : vector<1x8x96xf32> to vector<1x8x8xf32>
    %1189 = vector.extract_strided_slice %1164 {offsets = [0, 0, 72], sizes = [1, 8, 8], strides = [1, 1, 1]} : vector<1x8x96xf32> to vector<1x8x8xf32>
    "tpu.trace_start"() <{level = 10 : i32, message = "bnd,bmd->bnm"}> : () -> ()
    %cst_456 = arith.constant dense<0.000000e+00> : vector<1x8x8xf32>
    %1190 = tpu.matmul %1187, %1188, %cst_456 {dimension_numbers = #tpu.dot_dimension_numbers<[2], [2], [1], [1], [0, 0, 0, 1, 1, 1], [0], [0]>} : vector<1x8x8xf32>, vector<1x8x8xf32>, vector<1x8x8xf32> -> vector<1x8x8xf32>
    "tpu.trace_stop"() : () -> ()
    %1191 = vector.broadcast %1169 : vector<1x1x8xf32> to vector<1x8x8xf32>
    %1192 = arith.addf %1190, %1191 : vector<1x8x8xf32>
    %cst_457 = arith.constant dense<0xFF800000> : vector<1x8xf32>
    %1193 = vector.multi_reduction <maximumf>, %1192, %cst_457 [2] : vector<1x8x8xf32> to vector<1x8xf32>
    %1194 = vector.shape_cast %1193 : vector<1x8xf32> to vector<1x8x1xf32>
    %1195 = vector.broadcast %1194 : vector<1x8x1xf32> to vector<1x8x8xf32>
    %1196 = arith.subf %1192, %1195 : vector<1x8x8xf32>
    %1197 = math.exp %1196 : vector<1x8x8xf32>
    %cst_458 = arith.constant dense<0.000000e+00> : vector<1x8xf32>
    %1198 = vector.multi_reduction <add>, %1197, %cst_458 [2] : vector<1x8x8xf32> to vector<1x8xf32>
    %1199 = vector.shape_cast %1198 : vector<1x8xf32> to vector<1x8x1xf32>
    %1200 = tpu.reciprocal %1199 {approx = true} : vector<1x8x1xf32> -> vector<1x8x1xf32>
    %1201 = vector.broadcast %1200 : vector<1x8x1xf32> to vector<1x8x8xf32>
    %1202 = arith.mulf %1197, %1201 : vector<1x8x8xf32>
    "tpu.trace_start"() <{level = 10 : i32, message = "bnm,bmd->bnd"}> : () -> ()
    %cst_459 = arith.constant dense<0.000000e+00> : vector<1x8x8xf32>
    %1203 = tpu.matmul %1202, %1189, %cst_459 {dimension_numbers = #tpu.dot_dimension_numbers<[2], [1], [1], [2], [0, 0, 0, 1, 1, 2], [0], [0]>} : vector<1x8x8xf32>, vector<1x8x8xf32>, vector<1x8x8xf32> -> vector<1x8x8xf32>
    "tpu.trace_stop"() : () -> ()
    %1204 = vector.extract_strided_slice %1164 {offsets = [0, 0, 16], sizes = [1, 8, 8], strides = [1, 1, 1]} : vector<1x8x96xf32> to vector<1x8x8xf32>
    %1205 = vector.extract_strided_slice %1164 {offsets = [0, 0, 48], sizes = [1, 8, 8], strides = [1, 1, 1]} : vector<1x8x96xf32> to vector<1x8x8xf32>
    %1206 = vector.extract_strided_slice %1164 {offsets = [0, 0, 80], sizes = [1, 8, 8], strides = [1, 1, 1]} : vector<1x8x96xf32> to vector<1x8x8xf32>
    "tpu.trace_start"() <{level = 10 : i32, message = "bnd,bmd->bnm"}> : () -> ()
    %cst_460 = arith.constant dense<0.000000e+00> : vector<1x8x8xf32>
    %1207 = tpu.matmul %1204, %1205, %cst_460 {dimension_numbers = #tpu.dot_dimension_numbers<[2], [2], [1], [1], [0, 0, 0, 1, 1, 1], [0], [0]>} : vector<1x8x8xf32>, vector<1x8x8xf32>, vector<1x8x8xf32> -> vector<1x8x8xf32>
    "tpu.trace_stop"() : () -> ()
    %1208 = vector.broadcast %1169 : vector<1x1x8xf32> to vector<1x8x8xf32>
    %1209 = arith.addf %1207, %1208 : vector<1x8x8xf32>
    %cst_461 = arith.constant dense<0xFF800000> : vector<1x8xf32>
    %1210 = vector.multi_reduction <maximumf>, %1209, %cst_461 [2] : vector<1x8x8xf32> to vector<1x8xf32>
    %1211 = vector.shape_cast %1210 : vector<1x8xf32> to vector<1x8x1xf32>
    %1212 = vector.broadcast %1211 : vector<1x8x1xf32> to vector<1x8x8xf32>
    %1213 = arith.subf %1209, %1212 : vector<1x8x8xf32>
    %1214 = math.exp %1213 : vector<1x8x8xf32>
    %cst_462 = arith.constant dense<0.000000e+00> : vector<1x8xf32>
    %1215 = vector.multi_reduction <add>, %1214, %cst_462 [2] : vector<1x8x8xf32> to vector<1x8xf32>
    %1216 = vector.shape_cast %1215 : vector<1x8xf32> to vector<1x8x1xf32>
    %1217 = tpu.reciprocal %1216 {approx = true} : vector<1x8x1xf32> -> vector<1x8x1xf32>
    %1218 = vector.broadcast %1217 : vector<1x8x1xf32> to vector<1x8x8xf32>
    %1219 = arith.mulf %1214, %1218 : vector<1x8x8xf32>
    "tpu.trace_start"() <{level = 10 : i32, message = "bnm,bmd->bnd"}> : () -> ()
    %cst_463 = arith.constant dense<0.000000e+00> : vector<1x8x8xf32>
    %1220 = tpu.matmul %1219, %1206, %cst_463 {dimension_numbers = #tpu.dot_dimension_numbers<[2], [1], [1], [2], [0, 0, 0, 1, 1, 2], [0], [0]>} : vector<1x8x8xf32>, vector<1x8x8xf32>, vector<1x8x8xf32> -> vector<1x8x8xf32>
    "tpu.trace_stop"() : () -> ()
    %1221 = vector.extract_strided_slice %1164 {offsets = [0, 0, 24], sizes = [1, 8, 8], strides = [1, 1, 1]} : vector<1x8x96xf32> to vector<1x8x8xf32>
    %1222 = vector.extract_strided_slice %1164 {offsets = [0, 0, 56], sizes = [1, 8, 8], strides = [1, 1, 1]} : vector<1x8x96xf32> to vector<1x8x8xf32>
    %1223 = vector.extract_strided_slice %1164 {offsets = [0, 0, 88], sizes = [1, 8, 8], strides = [1, 1, 1]} : vector<1x8x96xf32> to vector<1x8x8xf32>
    "tpu.trace_start"() <{level = 10 : i32, message = "bnd,bmd->bnm"}> : () -> ()
    %cst_464 = arith.constant dense<0.000000e+00> : vector<1x8x8xf32>
    %1224 = tpu.matmul %1221, %1222, %cst_464 {dimension_numbers = #tpu.dot_dimension_numbers<[2], [2], [1], [1], [0, 0, 0, 1, 1, 1], [0], [0]>} : vector<1x8x8xf32>, vector<1x8x8xf32>, vector<1x8x8xf32> -> vector<1x8x8xf32>
    "tpu.trace_stop"() : () -> ()
    %1225 = vector.broadcast %1169 : vector<1x1x8xf32> to vector<1x8x8xf32>
    %1226 = arith.addf %1224, %1225 : vector<1x8x8xf32>
    %cst_465 = arith.constant dense<0xFF800000> : vector<1x8xf32>
    %1227 = vector.multi_reduction <maximumf>, %1226, %cst_465 [2] : vector<1x8x8xf32> to vector<1x8xf32>
    %1228 = vector.shape_cast %1227 : vector<1x8xf32> to vector<1x8x1xf32>
    %1229 = vector.broadcast %1228 : vector<1x8x1xf32> to vector<1x8x8xf32>
    %1230 = arith.subf %1226, %1229 : vector<1x8x8xf32>
    %1231 = math.exp %1230 : vector<1x8x8xf32>
    %cst_466 = arith.constant dense<0.000000e+00> : vector<1x8xf32>
    %1232 = vector.multi_reduction <add>, %1231, %cst_466 [2] : vector<1x8x8xf32> to vector<1x8xf32>
    %1233 = vector.shape_cast %1232 : vector<1x8xf32> to vector<1x8x1xf32>
    %1234 = tpu.reciprocal %1233 {approx = true} : vector<1x8x1xf32> -> vector<1x8x1xf32>
    %1235 = vector.broadcast %1234 : vector<1x8x1xf32> to vector<1x8x8xf32>
    %1236 = arith.mulf %1231, %1235 : vector<1x8x8xf32>
    "tpu.trace_start"() <{level = 10 : i32, message = "bnm,bmd->bnd"}> : () -> ()
    %cst_467 = arith.constant dense<0.000000e+00> : vector<1x8x8xf32>
    %1237 = tpu.matmul %1236, %1223, %cst_467 {dimension_numbers = #tpu.dot_dimension_numbers<[2], [1], [1], [2], [0, 0, 0, 1, 1, 2], [0], [0]>} : vector<1x8x8xf32>, vector<1x8x8xf32>, vector<1x8x8xf32> -> vector<1x8x8xf32>
    "tpu.trace_stop"() : () -> ()
    %1238 = tpu.concatenate %1186, %1203, %1220, %1237 in 2 : vector<1x8x8xf32>, vector<1x8x8xf32>, vector<1x8x8xf32>, vector<1x8x8xf32> -> vector<1x8x32xf32>
    %1239 = vector.shape_cast %1238 : vector<1x8x32xf32> to vector<8x32xf32>
    %c1_468 = arith.constant 1 : index
    %c0_469 = arith.constant 0 : index
    %c0_470 = arith.constant 0 : index
    %1240 = vector.load %arg9[%c1_468, %c0_469, %c0_470] : memref<4x32x32xf32, #tpu.memory_space<vmem>>, vector<1x32x32xf32>
    %1241 = vector.shape_cast %1240 : vector<1x32x32xf32> to vector<32x32xf32>
    %cst_471 = arith.constant dense<0.000000e+00> : vector<8x32xf32>
    %1242 = tpu.matmul %1239, %1241, %cst_471 {dimension_numbers = #tpu.dot_dimension_numbers<[1], [0], [0], [1], [0, 0, 1, 1], [], []>} : vector<8x32xf32>, vector<32x32xf32>, vector<8x32xf32> -> vector<8x32xf32>
    %c1_472 = arith.constant 1 : index
    %c0_473 = arith.constant 0 : index
    %c0_474 = arith.constant 0 : index
    %1243 = vector.load %arg10[%c1_472, %c0_473, %c0_474] : memref<4x1x32xf32, #tpu.memory_space<vmem>>, vector<1x1x32xf32>
    %1244 = vector.shape_cast %1243 : vector<1x1x32xf32> to vector<1x32xf32>
    %1245 = vector.broadcast %1244 : vector<1x32xf32> to vector<8x32xf32>
    %1246 = arith.addf %1242, %1245 : vector<8x32xf32>
    %1247 = arith.addf %1134, %1246 : vector<8x32xf32>
    %c1_475 = arith.constant 1 : index
    %c0_476 = arith.constant 0 : index
    %c0_477 = arith.constant 0 : index
    %1248 = vector.load %arg11[%c1_475, %c0_476, %c0_477] : memref<4x1x32xf32, #tpu.memory_space<vmem>>, vector<1x1x32xf32>
    %1249 = vector.shape_cast %1248 : vector<1x1x32xf32> to vector<1x32xf32>
    %c1_478 = arith.constant 1 : index
    %c0_479 = arith.constant 0 : index
    %c0_480 = arith.constant 0 : index
    %1250 = vector.load %arg12[%c1_478, %c0_479, %c0_480] : memref<4x1x32xf32, #tpu.memory_space<vmem>>, vector<1x1x32xf32>
    %1251 = vector.shape_cast %1250 : vector<1x1x32xf32> to vector<1x32xf32>
    %cst_481 = arith.constant dense<0.000000e+00> : vector<8xf32>
    %1252 = vector.multi_reduction <add>, %1247, %cst_481 [1] : vector<8x32xf32> to vector<8xf32>
    %1253 = vector.shape_cast %1252 : vector<8xf32> to vector<8x1xf32>
    %cst_482 = arith.constant 3.200000e+01 : f32
    %1254 = vector.broadcast %cst_482 : f32 to vector<8x1xf32>
    %1255 = arith.divf %1253, %1254 : vector<8x1xf32>
    %1256 = vector.broadcast %1255 : vector<8x1xf32> to vector<8x32xf32>
    %1257 = arith.subf %1247, %1256 : vector<8x32xf32>
    %1258 = arith.mulf %1257, %1257 : vector<8x32xf32>
    %cst_483 = arith.constant dense<0.000000e+00> : vector<8xf32>
    %1259 = vector.multi_reduction <add>, %1258, %cst_483 [1] : vector<8x32xf32> to vector<8xf32>
    %1260 = vector.shape_cast %1259 : vector<8xf32> to vector<8x1xf32>
    %cst_484 = arith.constant 3.200000e+01 : f32
    %1261 = vector.broadcast %cst_484 : f32 to vector<8x1xf32>
    %1262 = arith.divf %1260, %1261 : vector<8x1xf32>
    %1263 = vector.broadcast %1255 : vector<8x1xf32> to vector<8x32xf32>
    %1264 = arith.subf %1247, %1263 : vector<8x32xf32>
    %cst_485 = arith.constant 9.99999974E-6 : f32
    %1265 = vector.broadcast %cst_485 : f32 to vector<8x1xf32>
    %1266 = arith.addf %1262, %1265 : vector<8x1xf32>
    %1267 = math.rsqrt %1266 : vector<8x1xf32>
    %1268 = vector.broadcast %1267 : vector<8x1xf32> to vector<8x32xf32>
    %1269 = arith.mulf %1264, %1268 : vector<8x32xf32>
    %1270 = vector.broadcast %1249 : vector<1x32xf32> to vector<8x32xf32>
    %1271 = arith.mulf %1269, %1270 : vector<8x32xf32>
    %1272 = vector.broadcast %1251 : vector<1x32xf32> to vector<8x32xf32>
    %1273 = arith.addf %1271, %1272 : vector<8x32xf32>
    %c1_486 = arith.constant 1 : index
    %c0_487 = arith.constant 0 : index
    %c0_488 = arith.constant 0 : index
    %1274 = vector.load %arg13[%c1_486, %c0_487, %c0_488] : memref<4x32x128xf32, #tpu.memory_space<vmem>>, vector<1x32x128xf32>
    %1275 = vector.shape_cast %1274 : vector<1x32x128xf32> to vector<32x128xf32>
    %cst_489 = arith.constant dense<0.000000e+00> : vector<8x128xf32>
    %1276 = tpu.matmul %1273, %1275, %cst_489 {dimension_numbers = #tpu.dot_dimension_numbers<[1], [0], [0], [1], [0, 0, 1, 1], [], []>} : vector<8x32xf32>, vector<32x128xf32>, vector<8x128xf32> -> vector<8x128xf32>
    %c1_490 = arith.constant 1 : index
    %c0_491 = arith.constant 0 : index
    %c0_492 = arith.constant 0 : index
    %1277 = vector.load %arg14[%c1_490, %c0_491, %c0_492] : memref<4x1x128xf32, #tpu.memory_space<vmem>>, vector<1x1x128xf32>
    %1278 = vector.shape_cast %1277 : vector<1x1x128xf32> to vector<1x128xf32>
    %1279 = vector.broadcast %1278 : vector<1x128xf32> to vector<8x128xf32>
    %1280 = arith.addf %1276, %1279 : vector<8x128xf32>
    %cst_493 = arith.constant 5.000000e-01 : f32
    %1281 = vector.broadcast %cst_493 : f32 to vector<8x128xf32>
    %1282 = arith.mulf %1281, %1280 : vector<8x128xf32>
    %cst_494 = arith.constant 0.707106769 : f32
    %1283 = vector.broadcast %cst_494 : f32 to vector<8x128xf32>
    %1284 = arith.mulf %1280, %1283 : vector<8x128xf32>
    %1285 = math.absf %1284 : vector<8x128xf32>
    %cst_495 = arith.constant 0.327591091 : f32
    %1286 = vector.broadcast %cst_495 : f32 to vector<8x128xf32>
    %1287 = arith.mulf %1286, %1285 : vector<8x128xf32>
    %cst_496 = arith.constant 1.000000e+00 : f32
    %1288 = vector.broadcast %cst_496 : f32 to vector<8x128xf32>
    %1289 = arith.addf %1288, %1287 : vector<8x128xf32>
    %cst_497 = arith.constant 1.000000e+00 : f32
    %1290 = vector.broadcast %cst_497 : f32 to vector<8x128xf32>
    %1291 = arith.divf %1290, %1289 : vector<8x128xf32>
    %cst_498 = arith.constant 1.06140542 : f32
    %1292 = vector.broadcast %cst_498 : f32 to vector<8x128xf32>
    %1293 = arith.mulf %1292, %1291 : vector<8x128xf32>
    %cst_499 = arith.constant -1.45315206 : f32
    %1294 = vector.broadcast %cst_499 : f32 to vector<8x128xf32>
    %1295 = arith.addf %1293, %1294 : vector<8x128xf32>
    %1296 = arith.mulf %1295, %1291 : vector<8x128xf32>
    %cst_500 = arith.constant 1.42141378 : f32
    %1297 = vector.broadcast %cst_500 : f32 to vector<8x128xf32>
    %1298 = arith.addf %1296, %1297 : vector<8x128xf32>
    %1299 = arith.mulf %1298, %1291 : vector<8x128xf32>
    %cst_501 = arith.constant -0.284496725 : f32
    %1300 = vector.broadcast %cst_501 : f32 to vector<8x128xf32>
    %1301 = arith.addf %1299, %1300 : vector<8x128xf32>
    %1302 = arith.mulf %1301, %1291 : vector<8x128xf32>
    %cst_502 = arith.constant 0.254829586 : f32
    %1303 = vector.broadcast %cst_502 : f32 to vector<8x128xf32>
    %1304 = arith.addf %1302, %1303 : vector<8x128xf32>
    %1305 = arith.mulf %1304, %1291 : vector<8x128xf32>
    %cst_503 = arith.constant 0.000000e+00 : f32
    %1306 = vector.broadcast %cst_503 : f32 to vector<8x128xf32>
    %1307 = arith.subf %1306, %1285 : vector<8x128xf32>
    %1308 = arith.mulf %1307, %1285 : vector<8x128xf32>
    %1309 = math.exp %1308 : vector<8x128xf32>
    %1310 = arith.mulf %1305, %1309 : vector<8x128xf32>
    %cst_504 = arith.constant 1.000000e+00 : f32
    %1311 = vector.broadcast %cst_504 : f32 to vector<8x128xf32>
    %1312 = arith.subf %1311, %1310 : vector<8x128xf32>
    %cst_505 = arith.constant 0.000000e+00 : f32
    %1313 = vector.broadcast %cst_505 : f32 to vector<8x128xf32>
    %1314 = arith.cmpf oge, %1284, %1313 : vector<8x128xf32>
    %cst_506 = arith.constant 0.000000e+00 : f32
    %1315 = vector.broadcast %cst_506 : f32 to vector<8x128xf32>
    %1316 = arith.subf %1315, %1312 : vector<8x128xf32>
    %1317 = arith.select %1314, %1312, %1316 : vector<8x128xi1>, vector<8x128xf32>
    %cst_507 = arith.constant 1.000000e+00 : f32
    %1318 = vector.broadcast %cst_507 : f32 to vector<8x128xf32>
    %1319 = arith.addf %1318, %1317 : vector<8x128xf32>
    %1320 = arith.mulf %1282, %1319 : vector<8x128xf32>
    %c1_508 = arith.constant 1 : index
    %c0_509 = arith.constant 0 : index
    %c0_510 = arith.constant 0 : index
    %1321 = vector.load %arg15[%c1_508, %c0_509, %c0_510] : memref<4x128x32xf32, #tpu.memory_space<vmem>>, vector<1x128x32xf32>
    %1322 = vector.shape_cast %1321 : vector<1x128x32xf32> to vector<128x32xf32>
    %cst_511 = arith.constant dense<0.000000e+00> : vector<8x32xf32>
    %1323 = tpu.matmul %1320, %1322, %cst_511 {dimension_numbers = #tpu.dot_dimension_numbers<[1], [0], [0], [1], [0, 0, 1, 1], [], []>} : vector<8x128xf32>, vector<128x32xf32>, vector<8x32xf32> -> vector<8x32xf32>
    %c1_512 = arith.constant 1 : index
    %c0_513 = arith.constant 0 : index
    %c0_514 = arith.constant 0 : index
    %1324 = vector.load %arg16[%c1_512, %c0_513, %c0_514] : memref<4x1x32xf32, #tpu.memory_space<vmem>>, vector<1x1x32xf32>
    %1325 = vector.shape_cast %1324 : vector<1x1x32xf32> to vector<1x32xf32>
    %1326 = vector.broadcast %1325 : vector<1x32xf32> to vector<8x32xf32>
    %1327 = arith.addf %1323, %1326 : vector<8x32xf32>
    %1328 = arith.addf %1247, %1327 : vector<8x32xf32>
    %1329 = vector.shape_cast %1328 : vector<8x32xf32> to vector<1x8x32xf32>
    %1330 = vector.extract_strided_slice %1329 {offsets = [0, 0, 0], sizes = [1, 1, 32], strides = [1, 1, 1]} : vector<1x8x32xf32> to vector<1x1x32xf32>
    %1331 = vector.extract_strided_slice %1329 {offsets = [0, 1, 0], sizes = [1, 2, 32], strides = [1, 1, 1]} : vector<1x8x32xf32> to vector<1x2x32xf32>
    %1332 = vector.extract_strided_slice %939 {offsets = [0, 1, 0], sizes = [1, 2, 32], strides = [1, 1, 1]} : vector<1x8x32xf32> to vector<1x2x32xf32>
    %1333 = arith.addf %1331, %1332 : vector<1x2x32xf32>
    %c0_i32_515 = arith.constant 0 : i32
    %1334 = vector.broadcast %c0_i32_515 : i32 to vector<1x8x1xi32>
    %1335 = arith.cmpi eq, %1, %1334 : vector<1x8x1xi32>
    %cst_516 = arith.constant 0.000000e+00 : f32
    %1336 = vector.shape_cast %1335 : vector<1x8x1xi1> to vector<1x8x1xi1>
    %1337 = vector.broadcast %1336 : vector<1x8x1xi1> to vector<1x8x32xi1>
    %1338 = vector.shape_cast %1330 : vector<1x1x32xf32> to vector<1x1x32xf32>
    %1339 = vector.broadcast %1338 : vector<1x1x32xf32> to vector<1x8x32xf32>
    %1340 = vector.broadcast %cst_516 : f32 to vector<1x8x32xf32>
    %1341 = arith.select %1337, %1339, %1340 : vector<1x8x32xi1>, vector<1x8x32xf32>
    %1342 = vector.extract_strided_slice %871 {offsets = [0, 0, 0], sizes = [1, 1, 1], strides = [1, 1, 1]} : vector<1x1x4xi32> to vector<1x1x1xi32>
    %1343 = vector.extract_strided_slice %22 {offsets = [0, 1, 0], sizes = [1, 1, 32], strides = [1, 1, 1]} : vector<1x8x32xf32> to vector<1x1x32xf32>
    %c0_i32_517 = arith.constant 0 : i32
    %1344 = vector.broadcast %c0_i32_517 : i32 to vector<1x1x1xi32>
    %1345 = arith.cmpi eq, %1342, %1344 : vector<1x1x1xi32>
    %1346 = vector.extract_strided_slice %1333 {offsets = [0, 0, 0], sizes = [1, 1, 32], strides = [1, 1, 1]} : vector<1x2x32xf32> to vector<1x1x32xf32>
    %1347 = vector.shape_cast %1345 : vector<1x1x1xi1> to vector<1x1x1xi1>
    %1348 = vector.broadcast %1347 : vector<1x1x1xi1> to vector<1x1x32xi1>
    %1349 = arith.select %1348, %1346, %1343 : vector<1x1x32xi1>, vector<1x1x32xf32>
    %c1_i32_518 = arith.constant 1 : i32
    %1350 = vector.broadcast %c1_i32_518 : i32 to vector<1x1x1xi32>
    %1351 = arith.cmpi eq, %1342, %1350 : vector<1x1x1xi32>
    %1352 = vector.extract_strided_slice %1333 {offsets = [0, 1, 0], sizes = [1, 1, 32], strides = [1, 1, 1]} : vector<1x2x32xf32> to vector<1x1x32xf32>
    %1353 = vector.shape_cast %1351 : vector<1x1x1xi1> to vector<1x1x1xi1>
    %1354 = vector.broadcast %1353 : vector<1x1x1xi1> to vector<1x1x32xi1>
    %1355 = arith.select %1354, %1352, %1349 : vector<1x1x32xi1>, vector<1x1x32xf32>
    %c1_i32_519 = arith.constant 1 : i32
    %1356 = vector.broadcast %c1_i32_519 : i32 to vector<1x8x1xi32>
    %1357 = arith.cmpi eq, %1, %1356 : vector<1x8x1xi32>
    %1358 = vector.shape_cast %1357 : vector<1x8x1xi1> to vector<1x8x1xi1>
    %1359 = vector.broadcast %1358 : vector<1x8x1xi1> to vector<1x8x32xi1>
    %1360 = vector.shape_cast %1355 : vector<1x1x32xf32> to vector<1x1x32xf32>
    %1361 = vector.broadcast %1360 : vector<1x1x32xf32> to vector<1x8x32xf32>
    %1362 = arith.select %1359, %1361, %1341 : vector<1x8x32xi1>, vector<1x8x32xf32>
    %1363 = vector.extract_strided_slice %871 {offsets = [0, 0, 1], sizes = [1, 1, 1], strides = [1, 1, 1]} : vector<1x1x4xi32> to vector<1x1x1xi32>
    %1364 = vector.extract_strided_slice %22 {offsets = [0, 2, 0], sizes = [1, 1, 32], strides = [1, 1, 1]} : vector<1x8x32xf32> to vector<1x1x32xf32>
    %c0_i32_520 = arith.constant 0 : i32
    %1365 = vector.broadcast %c0_i32_520 : i32 to vector<1x1x1xi32>
    %1366 = arith.cmpi eq, %1363, %1365 : vector<1x1x1xi32>
    %1367 = vector.extract_strided_slice %1333 {offsets = [0, 0, 0], sizes = [1, 1, 32], strides = [1, 1, 1]} : vector<1x2x32xf32> to vector<1x1x32xf32>
    %1368 = vector.shape_cast %1366 : vector<1x1x1xi1> to vector<1x1x1xi1>
    %1369 = vector.broadcast %1368 : vector<1x1x1xi1> to vector<1x1x32xi1>
    %1370 = arith.select %1369, %1367, %1364 : vector<1x1x32xi1>, vector<1x1x32xf32>
    %c1_i32_521 = arith.constant 1 : i32
    %1371 = vector.broadcast %c1_i32_521 : i32 to vector<1x1x1xi32>
    %1372 = arith.cmpi eq, %1363, %1371 : vector<1x1x1xi32>
    %1373 = vector.extract_strided_slice %1333 {offsets = [0, 1, 0], sizes = [1, 1, 32], strides = [1, 1, 1]} : vector<1x2x32xf32> to vector<1x1x32xf32>
    %1374 = vector.shape_cast %1372 : vector<1x1x1xi1> to vector<1x1x1xi1>
    %1375 = vector.broadcast %1374 : vector<1x1x1xi1> to vector<1x1x32xi1>
    %1376 = arith.select %1375, %1373, %1370 : vector<1x1x32xi1>, vector<1x1x32xf32>
    %c2_i32_522 = arith.constant 2 : i32
    %1377 = vector.broadcast %c2_i32_522 : i32 to vector<1x8x1xi32>
    %1378 = arith.cmpi eq, %1, %1377 : vector<1x8x1xi32>
    %1379 = vector.shape_cast %1378 : vector<1x8x1xi1> to vector<1x8x1xi1>
    %1380 = vector.broadcast %1379 : vector<1x8x1xi1> to vector<1x8x32xi1>
    %1381 = vector.shape_cast %1376 : vector<1x1x32xf32> to vector<1x1x32xf32>
    %1382 = vector.broadcast %1381 : vector<1x1x32xf32> to vector<1x8x32xf32>
    %1383 = arith.select %1380, %1382, %1362 : vector<1x8x32xi1>, vector<1x8x32xf32>
    %1384 = vector.extract_strided_slice %871 {offsets = [0, 0, 2], sizes = [1, 1, 1], strides = [1, 1, 1]} : vector<1x1x4xi32> to vector<1x1x1xi32>
    %1385 = vector.extract_strided_slice %22 {offsets = [0, 3, 0], sizes = [1, 1, 32], strides = [1, 1, 1]} : vector<1x8x32xf32> to vector<1x1x32xf32>
    %c0_i32_523 = arith.constant 0 : i32
    %1386 = vector.broadcast %c0_i32_523 : i32 to vector<1x1x1xi32>
    %1387 = arith.cmpi eq, %1384, %1386 : vector<1x1x1xi32>
    %1388 = vector.extract_strided_slice %1333 {offsets = [0, 0, 0], sizes = [1, 1, 32], strides = [1, 1, 1]} : vector<1x2x32xf32> to vector<1x1x32xf32>
    %1389 = vector.shape_cast %1387 : vector<1x1x1xi1> to vector<1x1x1xi1>
    %1390 = vector.broadcast %1389 : vector<1x1x1xi1> to vector<1x1x32xi1>
    %1391 = arith.select %1390, %1388, %1385 : vector<1x1x32xi1>, vector<1x1x32xf32>
    %c1_i32_524 = arith.constant 1 : i32
    %1392 = vector.broadcast %c1_i32_524 : i32 to vector<1x1x1xi32>
    %1393 = arith.cmpi eq, %1384, %1392 : vector<1x1x1xi32>
    %1394 = vector.extract_strided_slice %1333 {offsets = [0, 1, 0], sizes = [1, 1, 32], strides = [1, 1, 1]} : vector<1x2x32xf32> to vector<1x1x32xf32>
    %1395 = vector.shape_cast %1393 : vector<1x1x1xi1> to vector<1x1x1xi1>
    %1396 = vector.broadcast %1395 : vector<1x1x1xi1> to vector<1x1x32xi1>
    %1397 = arith.select %1396, %1394, %1391 : vector<1x1x32xi1>, vector<1x1x32xf32>
    %c3_i32_525 = arith.constant 3 : i32
    %1398 = vector.broadcast %c3_i32_525 : i32 to vector<1x8x1xi32>
    %1399 = arith.cmpi eq, %1, %1398 : vector<1x8x1xi32>
    %1400 = vector.shape_cast %1399 : vector<1x8x1xi1> to vector<1x8x1xi1>
    %1401 = vector.broadcast %1400 : vector<1x8x1xi1> to vector<1x8x32xi1>
    %1402 = vector.shape_cast %1397 : vector<1x1x32xf32> to vector<1x1x32xf32>
    %1403 = vector.broadcast %1402 : vector<1x1x32xf32> to vector<1x8x32xf32>
    %1404 = arith.select %1401, %1403, %1383 : vector<1x8x32xi1>, vector<1x8x32xf32>
    %1405 = vector.extract_strided_slice %871 {offsets = [0, 0, 3], sizes = [1, 1, 1], strides = [1, 1, 1]} : vector<1x1x4xi32> to vector<1x1x1xi32>
    %1406 = vector.extract_strided_slice %22 {offsets = [0, 4, 0], sizes = [1, 1, 32], strides = [1, 1, 1]} : vector<1x8x32xf32> to vector<1x1x32xf32>
    %c0_i32_526 = arith.constant 0 : i32
    %1407 = vector.broadcast %c0_i32_526 : i32 to vector<1x1x1xi32>
    %1408 = arith.cmpi eq, %1405, %1407 : vector<1x1x1xi32>
    %1409 = vector.extract_strided_slice %1333 {offsets = [0, 0, 0], sizes = [1, 1, 32], strides = [1, 1, 1]} : vector<1x2x32xf32> to vector<1x1x32xf32>
    %1410 = vector.shape_cast %1408 : vector<1x1x1xi1> to vector<1x1x1xi1>
    %1411 = vector.broadcast %1410 : vector<1x1x1xi1> to vector<1x1x32xi1>
    %1412 = arith.select %1411, %1409, %1406 : vector<1x1x32xi1>, vector<1x1x32xf32>
    %c1_i32_527 = arith.constant 1 : i32
    %1413 = vector.broadcast %c1_i32_527 : i32 to vector<1x1x1xi32>
    %1414 = arith.cmpi eq, %1405, %1413 : vector<1x1x1xi32>
    %1415 = vector.extract_strided_slice %1333 {offsets = [0, 1, 0], sizes = [1, 1, 32], strides = [1, 1, 1]} : vector<1x2x32xf32> to vector<1x1x32xf32>
    %1416 = vector.shape_cast %1414 : vector<1x1x1xi1> to vector<1x1x1xi1>
    %1417 = vector.broadcast %1416 : vector<1x1x1xi1> to vector<1x1x32xi1>
    %1418 = arith.select %1417, %1415, %1412 : vector<1x1x32xi1>, vector<1x1x32xf32>
    %c4_i32 = arith.constant 4 : i32
    %1419 = vector.broadcast %c4_i32 : i32 to vector<1x8x1xi32>
    %1420 = arith.cmpi eq, %1, %1419 : vector<1x8x1xi32>
    %1421 = vector.shape_cast %1420 : vector<1x8x1xi1> to vector<1x8x1xi1>
    %1422 = vector.broadcast %1421 : vector<1x8x1xi1> to vector<1x8x32xi1>
    %1423 = vector.shape_cast %1418 : vector<1x1x32xf32> to vector<1x1x32xf32>
    %1424 = vector.broadcast %1423 : vector<1x1x32xf32> to vector<1x8x32xf32>
    %1425 = arith.select %1422, %1424, %1404 : vector<1x8x32xi1>, vector<1x8x32xf32>
    %1426 = vector.shape_cast %1425 : vector<1x8x32xf32> to vector<8x32xf32>
    %c2_528 = arith.constant 2 : index
    %c0_529 = arith.constant 0 : index
    %c0_530 = arith.constant 0 : index
    %1427 = vector.load %arg6[%c2_528, %c0_529, %c0_530] : memref<4x1x32xf32, #tpu.memory_space<vmem>>, vector<1x1x32xf32>
    %1428 = vector.shape_cast %1427 : vector<1x1x32xf32> to vector<1x32xf32>
    %c2_531 = arith.constant 2 : index
    %c0_532 = arith.constant 0 : index
    %c0_533 = arith.constant 0 : index
    %1429 = vector.load %arg7[%c2_531, %c0_532, %c0_533] : memref<4x1x32xf32, #tpu.memory_space<vmem>>, vector<1x1x32xf32>
    %1430 = vector.shape_cast %1429 : vector<1x1x32xf32> to vector<1x32xf32>
    %cst_534 = arith.constant dense<0.000000e+00> : vector<8xf32>
    %1431 = vector.multi_reduction <add>, %1426, %cst_534 [1] : vector<8x32xf32> to vector<8xf32>
    %1432 = vector.shape_cast %1431 : vector<8xf32> to vector<8x1xf32>
    %cst_535 = arith.constant 3.200000e+01 : f32
    %1433 = vector.broadcast %cst_535 : f32 to vector<8x1xf32>
    %1434 = arith.divf %1432, %1433 : vector<8x1xf32>
    %1435 = vector.broadcast %1434 : vector<8x1xf32> to vector<8x32xf32>
    %1436 = arith.subf %1426, %1435 : vector<8x32xf32>
    %1437 = arith.mulf %1436, %1436 : vector<8x32xf32>
    %cst_536 = arith.constant dense<0.000000e+00> : vector<8xf32>
    %1438 = vector.multi_reduction <add>, %1437, %cst_536 [1] : vector<8x32xf32> to vector<8xf32>
    %1439 = vector.shape_cast %1438 : vector<8xf32> to vector<8x1xf32>
    %cst_537 = arith.constant 3.200000e+01 : f32
    %1440 = vector.broadcast %cst_537 : f32 to vector<8x1xf32>
    %1441 = arith.divf %1439, %1440 : vector<8x1xf32>
    %1442 = vector.broadcast %1434 : vector<8x1xf32> to vector<8x32xf32>
    %1443 = arith.subf %1426, %1442 : vector<8x32xf32>
    %cst_538 = arith.constant 9.99999974E-6 : f32
    %1444 = vector.broadcast %cst_538 : f32 to vector<8x1xf32>
    %1445 = arith.addf %1441, %1444 : vector<8x1xf32>
    %1446 = math.rsqrt %1445 : vector<8x1xf32>
    %1447 = vector.broadcast %1446 : vector<8x1xf32> to vector<8x32xf32>
    %1448 = arith.mulf %1443, %1447 : vector<8x32xf32>
    %1449 = vector.broadcast %1428 : vector<1x32xf32> to vector<8x32xf32>
    %1450 = arith.mulf %1448, %1449 : vector<8x32xf32>
    %1451 = vector.broadcast %1430 : vector<1x32xf32> to vector<8x32xf32>
    %1452 = arith.addf %1450, %1451 : vector<8x32xf32>
    %c2_539 = arith.constant 2 : index
    %c0_540 = arith.constant 0 : index
    %c0_541 = arith.constant 0 : index
    %1453 = vector.load %arg8[%c2_539, %c0_540, %c0_541] : memref<4x32x96xf32, #tpu.memory_space<vmem>>, vector<1x32x96xf32>
    %1454 = vector.shape_cast %1453 : vector<1x32x96xf32> to vector<32x96xf32>
    %cst_542 = arith.constant dense<0.000000e+00> : vector<8x96xf32>
    %1455 = tpu.matmul %1452, %1454, %cst_542 {dimension_numbers = #tpu.dot_dimension_numbers<[1], [0], [0], [1], [0, 0, 1, 1], [], []>} : vector<8x32xf32>, vector<32x96xf32>, vector<8x96xf32> -> vector<8x96xf32>
    %1456 = vector.shape_cast %1455 : vector<8x96xf32> to vector<1x8x96xf32>
    %c5_i32_543 = arith.constant 5 : i32
    %1457 = vector.broadcast %c5_i32_543 : i32 to vector<1x1x8xi32>
    %1458 = arith.cmpi slt, %0, %1457 : vector<1x1x8xi32>
    %cst_544 = arith.constant 0.000000e+00 : f32
    %cst_545 = arith.constant -1.000000e+30 : f32
    %1459 = vector.broadcast %cst_544 : f32 to vector<1x1x8xf32>
    %1460 = vector.broadcast %cst_545 : f32 to vector<1x1x8xf32>
    %1461 = arith.select %1458, %1459, %1460 : vector<1x1x8xi1>, vector<1x1x8xf32>
    %1462 = vector.extract_strided_slice %1456 {offsets = [0, 0, 0], sizes = [1, 8, 8], strides = [1, 1, 1]} : vector<1x8x96xf32> to vector<1x8x8xf32>
    %1463 = vector.extract_strided_slice %1456 {offsets = [0, 0, 32], sizes = [1, 8, 8], strides = [1, 1, 1]} : vector<1x8x96xf32> to vector<1x8x8xf32>
    %1464 = vector.extract_strided_slice %1456 {offsets = [0, 0, 64], sizes = [1, 8, 8], strides = [1, 1, 1]} : vector<1x8x96xf32> to vector<1x8x8xf32>
    "tpu.trace_start"() <{level = 10 : i32, message = "bnd,bmd->bnm"}> : () -> ()
    %cst_546 = arith.constant dense<0.000000e+00> : vector<1x8x8xf32>
    %1465 = tpu.matmul %1462, %1463, %cst_546 {dimension_numbers = #tpu.dot_dimension_numbers<[2], [2], [1], [1], [0, 0, 0, 1, 1, 1], [0], [0]>} : vector<1x8x8xf32>, vector<1x8x8xf32>, vector<1x8x8xf32> -> vector<1x8x8xf32>
    "tpu.trace_stop"() : () -> ()
    %1466 = vector.broadcast %1461 : vector<1x1x8xf32> to vector<1x8x8xf32>
    %1467 = arith.addf %1465, %1466 : vector<1x8x8xf32>
    %cst_547 = arith.constant dense<0xFF800000> : vector<1x8xf32>
    %1468 = vector.multi_reduction <maximumf>, %1467, %cst_547 [2] : vector<1x8x8xf32> to vector<1x8xf32>
    %1469 = vector.shape_cast %1468 : vector<1x8xf32> to vector<1x8x1xf32>
    %1470 = vector.broadcast %1469 : vector<1x8x1xf32> to vector<1x8x8xf32>
    %1471 = arith.subf %1467, %1470 : vector<1x8x8xf32>
    %1472 = math.exp %1471 : vector<1x8x8xf32>
    %cst_548 = arith.constant dense<0.000000e+00> : vector<1x8xf32>
    %1473 = vector.multi_reduction <add>, %1472, %cst_548 [2] : vector<1x8x8xf32> to vector<1x8xf32>
    %1474 = vector.shape_cast %1473 : vector<1x8xf32> to vector<1x8x1xf32>
    %1475 = tpu.reciprocal %1474 {approx = true} : vector<1x8x1xf32> -> vector<1x8x1xf32>
    %1476 = vector.broadcast %1475 : vector<1x8x1xf32> to vector<1x8x8xf32>
    %1477 = arith.mulf %1472, %1476 : vector<1x8x8xf32>
    "tpu.trace_start"() <{level = 10 : i32, message = "bnm,bmd->bnd"}> : () -> ()
    %cst_549 = arith.constant dense<0.000000e+00> : vector<1x8x8xf32>
    %1478 = tpu.matmul %1477, %1464, %cst_549 {dimension_numbers = #tpu.dot_dimension_numbers<[2], [1], [1], [2], [0, 0, 0, 1, 1, 2], [0], [0]>} : vector<1x8x8xf32>, vector<1x8x8xf32>, vector<1x8x8xf32> -> vector<1x8x8xf32>
    "tpu.trace_stop"() : () -> ()
    %1479 = vector.extract_strided_slice %1456 {offsets = [0, 0, 8], sizes = [1, 8, 8], strides = [1, 1, 1]} : vector<1x8x96xf32> to vector<1x8x8xf32>
    %1480 = vector.extract_strided_slice %1456 {offsets = [0, 0, 40], sizes = [1, 8, 8], strides = [1, 1, 1]} : vector<1x8x96xf32> to vector<1x8x8xf32>
    %1481 = vector.extract_strided_slice %1456 {offsets = [0, 0, 72], sizes = [1, 8, 8], strides = [1, 1, 1]} : vector<1x8x96xf32> to vector<1x8x8xf32>
    "tpu.trace_start"() <{level = 10 : i32, message = "bnd,bmd->bnm"}> : () -> ()
    %cst_550 = arith.constant dense<0.000000e+00> : vector<1x8x8xf32>
    %1482 = tpu.matmul %1479, %1480, %cst_550 {dimension_numbers = #tpu.dot_dimension_numbers<[2], [2], [1], [1], [0, 0, 0, 1, 1, 1], [0], [0]>} : vector<1x8x8xf32>, vector<1x8x8xf32>, vector<1x8x8xf32> -> vector<1x8x8xf32>
    "tpu.trace_stop"() : () -> ()
    %1483 = vector.broadcast %1461 : vector<1x1x8xf32> to vector<1x8x8xf32>
    %1484 = arith.addf %1482, %1483 : vector<1x8x8xf32>
    %cst_551 = arith.constant dense<0xFF800000> : vector<1x8xf32>
    %1485 = vector.multi_reduction <maximumf>, %1484, %cst_551 [2] : vector<1x8x8xf32> to vector<1x8xf32>
    %1486 = vector.shape_cast %1485 : vector<1x8xf32> to vector<1x8x1xf32>
    %1487 = vector.broadcast %1486 : vector<1x8x1xf32> to vector<1x8x8xf32>
    %1488 = arith.subf %1484, %1487 : vector<1x8x8xf32>
    %1489 = math.exp %1488 : vector<1x8x8xf32>
    %cst_552 = arith.constant dense<0.000000e+00> : vector<1x8xf32>
    %1490 = vector.multi_reduction <add>, %1489, %cst_552 [2] : vector<1x8x8xf32> to vector<1x8xf32>
    %1491 = vector.shape_cast %1490 : vector<1x8xf32> to vector<1x8x1xf32>
    %1492 = tpu.reciprocal %1491 {approx = true} : vector<1x8x1xf32> -> vector<1x8x1xf32>
    %1493 = vector.broadcast %1492 : vector<1x8x1xf32> to vector<1x8x8xf32>
    %1494 = arith.mulf %1489, %1493 : vector<1x8x8xf32>
    "tpu.trace_start"() <{level = 10 : i32, message = "bnm,bmd->bnd"}> : () -> ()
    %cst_553 = arith.constant dense<0.000000e+00> : vector<1x8x8xf32>
    %1495 = tpu.matmul %1494, %1481, %cst_553 {dimension_numbers = #tpu.dot_dimension_numbers<[2], [1], [1], [2], [0, 0, 0, 1, 1, 2], [0], [0]>} : vector<1x8x8xf32>, vector<1x8x8xf32>, vector<1x8x8xf32> -> vector<1x8x8xf32>
    "tpu.trace_stop"() : () -> ()
    %1496 = vector.extract_strided_slice %1456 {offsets = [0, 0, 16], sizes = [1, 8, 8], strides = [1, 1, 1]} : vector<1x8x96xf32> to vector<1x8x8xf32>
    %1497 = vector.extract_strided_slice %1456 {offsets = [0, 0, 48], sizes = [1, 8, 8], strides = [1, 1, 1]} : vector<1x8x96xf32> to vector<1x8x8xf32>
    %1498 = vector.extract_strided_slice %1456 {offsets = [0, 0, 80], sizes = [1, 8, 8], strides = [1, 1, 1]} : vector<1x8x96xf32> to vector<1x8x8xf32>
    "tpu.trace_start"() <{level = 10 : i32, message = "bnd,bmd->bnm"}> : () -> ()
    %cst_554 = arith.constant dense<0.000000e+00> : vector<1x8x8xf32>
    %1499 = tpu.matmul %1496, %1497, %cst_554 {dimension_numbers = #tpu.dot_dimension_numbers<[2], [2], [1], [1], [0, 0, 0, 1, 1, 1], [0], [0]>} : vector<1x8x8xf32>, vector<1x8x8xf32>, vector<1x8x8xf32> -> vector<1x8x8xf32>
    "tpu.trace_stop"() : () -> ()
    %1500 = vector.broadcast %1461 : vector<1x1x8xf32> to vector<1x8x8xf32>
    %1501 = arith.addf %1499, %1500 : vector<1x8x8xf32>
    %cst_555 = arith.constant dense<0xFF800000> : vector<1x8xf32>
    %1502 = vector.multi_reduction <maximumf>, %1501, %cst_555 [2] : vector<1x8x8xf32> to vector<1x8xf32>
    %1503 = vector.shape_cast %1502 : vector<1x8xf32> to vector<1x8x1xf32>
    %1504 = vector.broadcast %1503 : vector<1x8x1xf32> to vector<1x8x8xf32>
    %1505 = arith.subf %1501, %1504 : vector<1x8x8xf32>
    %1506 = math.exp %1505 : vector<1x8x8xf32>
    %cst_556 = arith.constant dense<0.000000e+00> : vector<1x8xf32>
    %1507 = vector.multi_reduction <add>, %1506, %cst_556 [2] : vector<1x8x8xf32> to vector<1x8xf32>
    %1508 = vector.shape_cast %1507 : vector<1x8xf32> to vector<1x8x1xf32>
    %1509 = tpu.reciprocal %1508 {approx = true} : vector<1x8x1xf32> -> vector<1x8x1xf32>
    %1510 = vector.broadcast %1509 : vector<1x8x1xf32> to vector<1x8x8xf32>
    %1511 = arith.mulf %1506, %1510 : vector<1x8x8xf32>
    "tpu.trace_start"() <{level = 10 : i32, message = "bnm,bmd->bnd"}> : () -> ()
    %cst_557 = arith.constant dense<0.000000e+00> : vector<1x8x8xf32>
    %1512 = tpu.matmul %1511, %1498, %cst_557 {dimension_numbers = #tpu.dot_dimension_numbers<[2], [1], [1], [2], [0, 0, 0, 1, 1, 2], [0], [0]>} : vector<1x8x8xf32>, vector<1x8x8xf32>, vector<1x8x8xf32> -> vector<1x8x8xf32>
    "tpu.trace_stop"() : () -> ()
    %1513 = vector.extract_strided_slice %1456 {offsets = [0, 0, 24], sizes = [1, 8, 8], strides = [1, 1, 1]} : vector<1x8x96xf32> to vector<1x8x8xf32>
    %1514 = vector.extract_strided_slice %1456 {offsets = [0, 0, 56], sizes = [1, 8, 8], strides = [1, 1, 1]} : vector<1x8x96xf32> to vector<1x8x8xf32>
    %1515 = vector.extract_strided_slice %1456 {offsets = [0, 0, 88], sizes = [1, 8, 8], strides = [1, 1, 1]} : vector<1x8x96xf32> to vector<1x8x8xf32>
    "tpu.trace_start"() <{level = 10 : i32, message = "bnd,bmd->bnm"}> : () -> ()
    %cst_558 = arith.constant dense<0.000000e+00> : vector<1x8x8xf32>
    %1516 = tpu.matmul %1513, %1514, %cst_558 {dimension_numbers = #tpu.dot_dimension_numbers<[2], [2], [1], [1], [0, 0, 0, 1, 1, 1], [0], [0]>} : vector<1x8x8xf32>, vector<1x8x8xf32>, vector<1x8x8xf32> -> vector<1x8x8xf32>
    "tpu.trace_stop"() : () -> ()
    %1517 = vector.broadcast %1461 : vector<1x1x8xf32> to vector<1x8x8xf32>
    %1518 = arith.addf %1516, %1517 : vector<1x8x8xf32>
    %cst_559 = arith.constant dense<0xFF800000> : vector<1x8xf32>
    %1519 = vector.multi_reduction <maximumf>, %1518, %cst_559 [2] : vector<1x8x8xf32> to vector<1x8xf32>
    %1520 = vector.shape_cast %1519 : vector<1x8xf32> to vector<1x8x1xf32>
    %1521 = vector.broadcast %1520 : vector<1x8x1xf32> to vector<1x8x8xf32>
    %1522 = arith.subf %1518, %1521 : vector<1x8x8xf32>
    %1523 = math.exp %1522 : vector<1x8x8xf32>
    %cst_560 = arith.constant dense<0.000000e+00> : vector<1x8xf32>
    %1524 = vector.multi_reduction <add>, %1523, %cst_560 [2] : vector<1x8x8xf32> to vector<1x8xf32>
    %1525 = vector.shape_cast %1524 : vector<1x8xf32> to vector<1x8x1xf32>
    %1526 = tpu.reciprocal %1525 {approx = true} : vector<1x8x1xf32> -> vector<1x8x1xf32>
    %1527 = vector.broadcast %1526 : vector<1x8x1xf32> to vector<1x8x8xf32>
    %1528 = arith.mulf %1523, %1527 : vector<1x8x8xf32>
    "tpu.trace_start"() <{level = 10 : i32, message = "bnm,bmd->bnd"}> : () -> ()
    %cst_561 = arith.constant dense<0.000000e+00> : vector<1x8x8xf32>
    %1529 = tpu.matmul %1528, %1515, %cst_561 {dimension_numbers = #tpu.dot_dimension_numbers<[2], [1], [1], [2], [0, 0, 0, 1, 1, 2], [0], [0]>} : vector<1x8x8xf32>, vector<1x8x8xf32>, vector<1x8x8xf32> -> vector<1x8x8xf32>
    "tpu.trace_stop"() : () -> ()
    %1530 = tpu.concatenate %1478, %1495, %1512, %1529 in 2 : vector<1x8x8xf32>, vector<1x8x8xf32>, vector<1x8x8xf32>, vector<1x8x8xf32> -> vector<1x8x32xf32>
    %1531 = vector.shape_cast %1530 : vector<1x8x32xf32> to vector<8x32xf32>
    %c2_562 = arith.constant 2 : index
    %c0_563 = arith.constant 0 : index
    %c0_564 = arith.constant 0 : index
    %1532 = vector.load %arg9[%c2_562, %c0_563, %c0_564] : memref<4x32x32xf32, #tpu.memory_space<vmem>>, vector<1x32x32xf32>
    %1533 = vector.shape_cast %1532 : vector<1x32x32xf32> to vector<32x32xf32>
    %cst_565 = arith.constant dense<0.000000e+00> : vector<8x32xf32>
    %1534 = tpu.matmul %1531, %1533, %cst_565 {dimension_numbers = #tpu.dot_dimension_numbers<[1], [0], [0], [1], [0, 0, 1, 1], [], []>} : vector<8x32xf32>, vector<32x32xf32>, vector<8x32xf32> -> vector<8x32xf32>
    %c2_566 = arith.constant 2 : index
    %c0_567 = arith.constant 0 : index
    %c0_568 = arith.constant 0 : index
    %1535 = vector.load %arg10[%c2_566, %c0_567, %c0_568] : memref<4x1x32xf32, #tpu.memory_space<vmem>>, vector<1x1x32xf32>
    %1536 = vector.shape_cast %1535 : vector<1x1x32xf32> to vector<1x32xf32>
    %1537 = vector.broadcast %1536 : vector<1x32xf32> to vector<8x32xf32>
    %1538 = arith.addf %1534, %1537 : vector<8x32xf32>
    %1539 = arith.addf %1426, %1538 : vector<8x32xf32>
    %c2_569 = arith.constant 2 : index
    %c0_570 = arith.constant 0 : index
    %c0_571 = arith.constant 0 : index
    %1540 = vector.load %arg11[%c2_569, %c0_570, %c0_571] : memref<4x1x32xf32, #tpu.memory_space<vmem>>, vector<1x1x32xf32>
    %1541 = vector.shape_cast %1540 : vector<1x1x32xf32> to vector<1x32xf32>
    %c2_572 = arith.constant 2 : index
    %c0_573 = arith.constant 0 : index
    %c0_574 = arith.constant 0 : index
    %1542 = vector.load %arg12[%c2_572, %c0_573, %c0_574] : memref<4x1x32xf32, #tpu.memory_space<vmem>>, vector<1x1x32xf32>
    %1543 = vector.shape_cast %1542 : vector<1x1x32xf32> to vector<1x32xf32>
    %cst_575 = arith.constant dense<0.000000e+00> : vector<8xf32>
    %1544 = vector.multi_reduction <add>, %1539, %cst_575 [1] : vector<8x32xf32> to vector<8xf32>
    %1545 = vector.shape_cast %1544 : vector<8xf32> to vector<8x1xf32>
    %cst_576 = arith.constant 3.200000e+01 : f32
    %1546 = vector.broadcast %cst_576 : f32 to vector<8x1xf32>
    %1547 = arith.divf %1545, %1546 : vector<8x1xf32>
    %1548 = vector.broadcast %1547 : vector<8x1xf32> to vector<8x32xf32>
    %1549 = arith.subf %1539, %1548 : vector<8x32xf32>
    %1550 = arith.mulf %1549, %1549 : vector<8x32xf32>
    %cst_577 = arith.constant dense<0.000000e+00> : vector<8xf32>
    %1551 = vector.multi_reduction <add>, %1550, %cst_577 [1] : vector<8x32xf32> to vector<8xf32>
    %1552 = vector.shape_cast %1551 : vector<8xf32> to vector<8x1xf32>
    %cst_578 = arith.constant 3.200000e+01 : f32
    %1553 = vector.broadcast %cst_578 : f32 to vector<8x1xf32>
    %1554 = arith.divf %1552, %1553 : vector<8x1xf32>
    %1555 = vector.broadcast %1547 : vector<8x1xf32> to vector<8x32xf32>
    %1556 = arith.subf %1539, %1555 : vector<8x32xf32>
    %cst_579 = arith.constant 9.99999974E-6 : f32
    %1557 = vector.broadcast %cst_579 : f32 to vector<8x1xf32>
    %1558 = arith.addf %1554, %1557 : vector<8x1xf32>
    %1559 = math.rsqrt %1558 : vector<8x1xf32>
    %1560 = vector.broadcast %1559 : vector<8x1xf32> to vector<8x32xf32>
    %1561 = arith.mulf %1556, %1560 : vector<8x32xf32>
    %1562 = vector.broadcast %1541 : vector<1x32xf32> to vector<8x32xf32>
    %1563 = arith.mulf %1561, %1562 : vector<8x32xf32>
    %1564 = vector.broadcast %1543 : vector<1x32xf32> to vector<8x32xf32>
    %1565 = arith.addf %1563, %1564 : vector<8x32xf32>
    %c2_580 = arith.constant 2 : index
    %c0_581 = arith.constant 0 : index
    %c0_582 = arith.constant 0 : index
    %1566 = vector.load %arg13[%c2_580, %c0_581, %c0_582] : memref<4x32x128xf32, #tpu.memory_space<vmem>>, vector<1x32x128xf32>
    %1567 = vector.shape_cast %1566 : vector<1x32x128xf32> to vector<32x128xf32>
    %cst_583 = arith.constant dense<0.000000e+00> : vector<8x128xf32>
    %1568 = tpu.matmul %1565, %1567, %cst_583 {dimension_numbers = #tpu.dot_dimension_numbers<[1], [0], [0], [1], [0, 0, 1, 1], [], []>} : vector<8x32xf32>, vector<32x128xf32>, vector<8x128xf32> -> vector<8x128xf32>
    %c2_584 = arith.constant 2 : index
    %c0_585 = arith.constant 0 : index
    %c0_586 = arith.constant 0 : index
    %1569 = vector.load %arg14[%c2_584, %c0_585, %c0_586] : memref<4x1x128xf32, #tpu.memory_space<vmem>>, vector<1x1x128xf32>
    %1570 = vector.shape_cast %1569 : vector<1x1x128xf32> to vector<1x128xf32>
    %1571 = vector.broadcast %1570 : vector<1x128xf32> to vector<8x128xf32>
    %1572 = arith.addf %1568, %1571 : vector<8x128xf32>
    %cst_587 = arith.constant 5.000000e-01 : f32
    %1573 = vector.broadcast %cst_587 : f32 to vector<8x128xf32>
    %1574 = arith.mulf %1573, %1572 : vector<8x128xf32>
    %cst_588 = arith.constant 0.707106769 : f32
    %1575 = vector.broadcast %cst_588 : f32 to vector<8x128xf32>
    %1576 = arith.mulf %1572, %1575 : vector<8x128xf32>
    %1577 = math.absf %1576 : vector<8x128xf32>
    %cst_589 = arith.constant 0.327591091 : f32
    %1578 = vector.broadcast %cst_589 : f32 to vector<8x128xf32>
    %1579 = arith.mulf %1578, %1577 : vector<8x128xf32>
    %cst_590 = arith.constant 1.000000e+00 : f32
    %1580 = vector.broadcast %cst_590 : f32 to vector<8x128xf32>
    %1581 = arith.addf %1580, %1579 : vector<8x128xf32>
    %cst_591 = arith.constant 1.000000e+00 : f32
    %1582 = vector.broadcast %cst_591 : f32 to vector<8x128xf32>
    %1583 = arith.divf %1582, %1581 : vector<8x128xf32>
    %cst_592 = arith.constant 1.06140542 : f32
    %1584 = vector.broadcast %cst_592 : f32 to vector<8x128xf32>
    %1585 = arith.mulf %1584, %1583 : vector<8x128xf32>
    %cst_593 = arith.constant -1.45315206 : f32
    %1586 = vector.broadcast %cst_593 : f32 to vector<8x128xf32>
    %1587 = arith.addf %1585, %1586 : vector<8x128xf32>
    %1588 = arith.mulf %1587, %1583 : vector<8x128xf32>
    %cst_594 = arith.constant 1.42141378 : f32
    %1589 = vector.broadcast %cst_594 : f32 to vector<8x128xf32>
    %1590 = arith.addf %1588, %1589 : vector<8x128xf32>
    %1591 = arith.mulf %1590, %1583 : vector<8x128xf32>
    %cst_595 = arith.constant -0.284496725 : f32
    %1592 = vector.broadcast %cst_595 : f32 to vector<8x128xf32>
    %1593 = arith.addf %1591, %1592 : vector<8x128xf32>
    %1594 = arith.mulf %1593, %1583 : vector<8x128xf32>
    %cst_596 = arith.constant 0.254829586 : f32
    %1595 = vector.broadcast %cst_596 : f32 to vector<8x128xf32>
    %1596 = arith.addf %1594, %1595 : vector<8x128xf32>
    %1597 = arith.mulf %1596, %1583 : vector<8x128xf32>
    %cst_597 = arith.constant 0.000000e+00 : f32
    %1598 = vector.broadcast %cst_597 : f32 to vector<8x128xf32>
    %1599 = arith.subf %1598, %1577 : vector<8x128xf32>
    %1600 = arith.mulf %1599, %1577 : vector<8x128xf32>
    %1601 = math.exp %1600 : vector<8x128xf32>
    %1602 = arith.mulf %1597, %1601 : vector<8x128xf32>
    %cst_598 = arith.constant 1.000000e+00 : f32
    %1603 = vector.broadcast %cst_598 : f32 to vector<8x128xf32>
    %1604 = arith.subf %1603, %1602 : vector<8x128xf32>
    %cst_599 = arith.constant 0.000000e+00 : f32
    %1605 = vector.broadcast %cst_599 : f32 to vector<8x128xf32>
    %1606 = arith.cmpf oge, %1576, %1605 : vector<8x128xf32>
    %cst_600 = arith.constant 0.000000e+00 : f32
    %1607 = vector.broadcast %cst_600 : f32 to vector<8x128xf32>
    %1608 = arith.subf %1607, %1604 : vector<8x128xf32>
    %1609 = arith.select %1606, %1604, %1608 : vector<8x128xi1>, vector<8x128xf32>
    %cst_601 = arith.constant 1.000000e+00 : f32
    %1610 = vector.broadcast %cst_601 : f32 to vector<8x128xf32>
    %1611 = arith.addf %1610, %1609 : vector<8x128xf32>
    %1612 = arith.mulf %1574, %1611 : vector<8x128xf32>
    %c2_602 = arith.constant 2 : index
    %c0_603 = arith.constant 0 : index
    %c0_604 = arith.constant 0 : index
    %1613 = vector.load %arg15[%c2_602, %c0_603, %c0_604] : memref<4x128x32xf32, #tpu.memory_space<vmem>>, vector<1x128x32xf32>
    %1614 = vector.shape_cast %1613 : vector<1x128x32xf32> to vector<128x32xf32>
    %cst_605 = arith.constant dense<0.000000e+00> : vector<8x32xf32>
    %1615 = tpu.matmul %1612, %1614, %cst_605 {dimension_numbers = #tpu.dot_dimension_numbers<[1], [0], [0], [1], [0, 0, 1, 1], [], []>} : vector<8x128xf32>, vector<128x32xf32>, vector<8x32xf32> -> vector<8x32xf32>
    %c2_606 = arith.constant 2 : index
    %c0_607 = arith.constant 0 : index
    %c0_608 = arith.constant 0 : index
    %1616 = vector.load %arg16[%c2_606, %c0_607, %c0_608] : memref<4x1x32xf32, #tpu.memory_space<vmem>>, vector<1x1x32xf32>
    %1617 = vector.shape_cast %1616 : vector<1x1x32xf32> to vector<1x32xf32>
    %1618 = vector.broadcast %1617 : vector<1x32xf32> to vector<8x32xf32>
    %1619 = arith.addf %1615, %1618 : vector<8x32xf32>
    %1620 = arith.addf %1539, %1619 : vector<8x32xf32>
    %c3_609 = arith.constant 3 : index
    %c0_610 = arith.constant 0 : index
    %c0_611 = arith.constant 0 : index
    %1621 = vector.load %arg6[%c3_609, %c0_610, %c0_611] : memref<4x1x32xf32, #tpu.memory_space<vmem>>, vector<1x1x32xf32>
    %1622 = vector.shape_cast %1621 : vector<1x1x32xf32> to vector<1x32xf32>
    %c3_612 = arith.constant 3 : index
    %c0_613 = arith.constant 0 : index
    %c0_614 = arith.constant 0 : index
    %1623 = vector.load %arg7[%c3_612, %c0_613, %c0_614] : memref<4x1x32xf32, #tpu.memory_space<vmem>>, vector<1x1x32xf32>
    %1624 = vector.shape_cast %1623 : vector<1x1x32xf32> to vector<1x32xf32>
    %cst_615 = arith.constant dense<0.000000e+00> : vector<8xf32>
    %1625 = vector.multi_reduction <add>, %1620, %cst_615 [1] : vector<8x32xf32> to vector<8xf32>
    %1626 = vector.shape_cast %1625 : vector<8xf32> to vector<8x1xf32>
    %cst_616 = arith.constant 3.200000e+01 : f32
    %1627 = vector.broadcast %cst_616 : f32 to vector<8x1xf32>
    %1628 = arith.divf %1626, %1627 : vector<8x1xf32>
    %1629 = vector.broadcast %1628 : vector<8x1xf32> to vector<8x32xf32>
    %1630 = arith.subf %1620, %1629 : vector<8x32xf32>
    %1631 = arith.mulf %1630, %1630 : vector<8x32xf32>
    %cst_617 = arith.constant dense<0.000000e+00> : vector<8xf32>
    %1632 = vector.multi_reduction <add>, %1631, %cst_617 [1] : vector<8x32xf32> to vector<8xf32>
    %1633 = vector.shape_cast %1632 : vector<8xf32> to vector<8x1xf32>
    %cst_618 = arith.constant 3.200000e+01 : f32
    %1634 = vector.broadcast %cst_618 : f32 to vector<8x1xf32>
    %1635 = arith.divf %1633, %1634 : vector<8x1xf32>
    %1636 = vector.broadcast %1628 : vector<8x1xf32> to vector<8x32xf32>
    %1637 = arith.subf %1620, %1636 : vector<8x32xf32>
    %cst_619 = arith.constant 9.99999974E-6 : f32
    %1638 = vector.broadcast %cst_619 : f32 to vector<8x1xf32>
    %1639 = arith.addf %1635, %1638 : vector<8x1xf32>
    %1640 = math.rsqrt %1639 : vector<8x1xf32>
    %1641 = vector.broadcast %1640 : vector<8x1xf32> to vector<8x32xf32>
    %1642 = arith.mulf %1637, %1641 : vector<8x32xf32>
    %1643 = vector.broadcast %1622 : vector<1x32xf32> to vector<8x32xf32>
    %1644 = arith.mulf %1642, %1643 : vector<8x32xf32>
    %1645 = vector.broadcast %1624 : vector<1x32xf32> to vector<8x32xf32>
    %1646 = arith.addf %1644, %1645 : vector<8x32xf32>
    %c3_620 = arith.constant 3 : index
    %c0_621 = arith.constant 0 : index
    %c0_622 = arith.constant 0 : index
    %1647 = vector.load %arg8[%c3_620, %c0_621, %c0_622] : memref<4x32x96xf32, #tpu.memory_space<vmem>>, vector<1x32x96xf32>
    %1648 = vector.shape_cast %1647 : vector<1x32x96xf32> to vector<32x96xf32>
    %cst_623 = arith.constant dense<0.000000e+00> : vector<8x96xf32>
    %1649 = tpu.matmul %1646, %1648, %cst_623 {dimension_numbers = #tpu.dot_dimension_numbers<[1], [0], [0], [1], [0, 0, 1, 1], [], []>} : vector<8x32xf32>, vector<32x96xf32>, vector<8x96xf32> -> vector<8x96xf32>
    %1650 = vector.shape_cast %1649 : vector<8x96xf32> to vector<1x8x96xf32>
    %c5_i32_624 = arith.constant 5 : i32
    %1651 = vector.broadcast %c5_i32_624 : i32 to vector<1x1x8xi32>
    %1652 = arith.cmpi slt, %0, %1651 : vector<1x1x8xi32>
    %cst_625 = arith.constant 0.000000e+00 : f32
    %cst_626 = arith.constant -1.000000e+30 : f32
    %1653 = vector.broadcast %cst_625 : f32 to vector<1x1x8xf32>
    %1654 = vector.broadcast %cst_626 : f32 to vector<1x1x8xf32>
    %1655 = arith.select %1652, %1653, %1654 : vector<1x1x8xi1>, vector<1x1x8xf32>
    %1656 = vector.extract_strided_slice %1650 {offsets = [0, 0, 0], sizes = [1, 8, 8], strides = [1, 1, 1]} : vector<1x8x96xf32> to vector<1x8x8xf32>
    %1657 = vector.extract_strided_slice %1650 {offsets = [0, 0, 32], sizes = [1, 8, 8], strides = [1, 1, 1]} : vector<1x8x96xf32> to vector<1x8x8xf32>
    %1658 = vector.extract_strided_slice %1650 {offsets = [0, 0, 64], sizes = [1, 8, 8], strides = [1, 1, 1]} : vector<1x8x96xf32> to vector<1x8x8xf32>
    "tpu.trace_start"() <{level = 10 : i32, message = "bnd,bmd->bnm"}> : () -> ()
    %cst_627 = arith.constant dense<0.000000e+00> : vector<1x8x8xf32>
    %1659 = tpu.matmul %1656, %1657, %cst_627 {dimension_numbers = #tpu.dot_dimension_numbers<[2], [2], [1], [1], [0, 0, 0, 1, 1, 1], [0], [0]>} : vector<1x8x8xf32>, vector<1x8x8xf32>, vector<1x8x8xf32> -> vector<1x8x8xf32>
    "tpu.trace_stop"() : () -> ()
    %1660 = vector.broadcast %1655 : vector<1x1x8xf32> to vector<1x8x8xf32>
    %1661 = arith.addf %1659, %1660 : vector<1x8x8xf32>
    %cst_628 = arith.constant dense<0xFF800000> : vector<1x8xf32>
    %1662 = vector.multi_reduction <maximumf>, %1661, %cst_628 [2] : vector<1x8x8xf32> to vector<1x8xf32>
    %1663 = vector.shape_cast %1662 : vector<1x8xf32> to vector<1x8x1xf32>
    %1664 = vector.broadcast %1663 : vector<1x8x1xf32> to vector<1x8x8xf32>
    %1665 = arith.subf %1661, %1664 : vector<1x8x8xf32>
    %1666 = math.exp %1665 : vector<1x8x8xf32>
    %cst_629 = arith.constant dense<0.000000e+00> : vector<1x8xf32>
    %1667 = vector.multi_reduction <add>, %1666, %cst_629 [2] : vector<1x8x8xf32> to vector<1x8xf32>
    %1668 = vector.shape_cast %1667 : vector<1x8xf32> to vector<1x8x1xf32>
    %1669 = tpu.reciprocal %1668 {approx = true} : vector<1x8x1xf32> -> vector<1x8x1xf32>
    %1670 = vector.broadcast %1669 : vector<1x8x1xf32> to vector<1x8x8xf32>
    %1671 = arith.mulf %1666, %1670 : vector<1x8x8xf32>
    "tpu.trace_start"() <{level = 10 : i32, message = "bnm,bmd->bnd"}> : () -> ()
    %cst_630 = arith.constant dense<0.000000e+00> : vector<1x8x8xf32>
    %1672 = tpu.matmul %1671, %1658, %cst_630 {dimension_numbers = #tpu.dot_dimension_numbers<[2], [1], [1], [2], [0, 0, 0, 1, 1, 2], [0], [0]>} : vector<1x8x8xf32>, vector<1x8x8xf32>, vector<1x8x8xf32> -> vector<1x8x8xf32>
    "tpu.trace_stop"() : () -> ()
    %1673 = vector.extract_strided_slice %1650 {offsets = [0, 0, 8], sizes = [1, 8, 8], strides = [1, 1, 1]} : vector<1x8x96xf32> to vector<1x8x8xf32>
    %1674 = vector.extract_strided_slice %1650 {offsets = [0, 0, 40], sizes = [1, 8, 8], strides = [1, 1, 1]} : vector<1x8x96xf32> to vector<1x8x8xf32>
    %1675 = vector.extract_strided_slice %1650 {offsets = [0, 0, 72], sizes = [1, 8, 8], strides = [1, 1, 1]} : vector<1x8x96xf32> to vector<1x8x8xf32>
    "tpu.trace_start"() <{level = 10 : i32, message = "bnd,bmd->bnm"}> : () -> ()
    %cst_631 = arith.constant dense<0.000000e+00> : vector<1x8x8xf32>
    %1676 = tpu.matmul %1673, %1674, %cst_631 {dimension_numbers = #tpu.dot_dimension_numbers<[2], [2], [1], [1], [0, 0, 0, 1, 1, 1], [0], [0]>} : vector<1x8x8xf32>, vector<1x8x8xf32>, vector<1x8x8xf32> -> vector<1x8x8xf32>
    "tpu.trace_stop"() : () -> ()
    %1677 = vector.broadcast %1655 : vector<1x1x8xf32> to vector<1x8x8xf32>
    %1678 = arith.addf %1676, %1677 : vector<1x8x8xf32>
    %cst_632 = arith.constant dense<0xFF800000> : vector<1x8xf32>
    %1679 = vector.multi_reduction <maximumf>, %1678, %cst_632 [2] : vector<1x8x8xf32> to vector<1x8xf32>
    %1680 = vector.shape_cast %1679 : vector<1x8xf32> to vector<1x8x1xf32>
    %1681 = vector.broadcast %1680 : vector<1x8x1xf32> to vector<1x8x8xf32>
    %1682 = arith.subf %1678, %1681 : vector<1x8x8xf32>
    %1683 = math.exp %1682 : vector<1x8x8xf32>
    %cst_633 = arith.constant dense<0.000000e+00> : vector<1x8xf32>
    %1684 = vector.multi_reduction <add>, %1683, %cst_633 [2] : vector<1x8x8xf32> to vector<1x8xf32>
    %1685 = vector.shape_cast %1684 : vector<1x8xf32> to vector<1x8x1xf32>
    %1686 = tpu.reciprocal %1685 {approx = true} : vector<1x8x1xf32> -> vector<1x8x1xf32>
    %1687 = vector.broadcast %1686 : vector<1x8x1xf32> to vector<1x8x8xf32>
    %1688 = arith.mulf %1683, %1687 : vector<1x8x8xf32>
    "tpu.trace_start"() <{level = 10 : i32, message = "bnm,bmd->bnd"}> : () -> ()
    %cst_634 = arith.constant dense<0.000000e+00> : vector<1x8x8xf32>
    %1689 = tpu.matmul %1688, %1675, %cst_634 {dimension_numbers = #tpu.dot_dimension_numbers<[2], [1], [1], [2], [0, 0, 0, 1, 1, 2], [0], [0]>} : vector<1x8x8xf32>, vector<1x8x8xf32>, vector<1x8x8xf32> -> vector<1x8x8xf32>
    "tpu.trace_stop"() : () -> ()
    %1690 = vector.extract_strided_slice %1650 {offsets = [0, 0, 16], sizes = [1, 8, 8], strides = [1, 1, 1]} : vector<1x8x96xf32> to vector<1x8x8xf32>
    %1691 = vector.extract_strided_slice %1650 {offsets = [0, 0, 48], sizes = [1, 8, 8], strides = [1, 1, 1]} : vector<1x8x96xf32> to vector<1x8x8xf32>
    %1692 = vector.extract_strided_slice %1650 {offsets = [0, 0, 80], sizes = [1, 8, 8], strides = [1, 1, 1]} : vector<1x8x96xf32> to vector<1x8x8xf32>
    "tpu.trace_start"() <{level = 10 : i32, message = "bnd,bmd->bnm"}> : () -> ()
    %cst_635 = arith.constant dense<0.000000e+00> : vector<1x8x8xf32>
    %1693 = tpu.matmul %1690, %1691, %cst_635 {dimension_numbers = #tpu.dot_dimension_numbers<[2], [2], [1], [1], [0, 0, 0, 1, 1, 1], [0], [0]>} : vector<1x8x8xf32>, vector<1x8x8xf32>, vector<1x8x8xf32> -> vector<1x8x8xf32>
    "tpu.trace_stop"() : () -> ()
    %1694 = vector.broadcast %1655 : vector<1x1x8xf32> to vector<1x8x8xf32>
    %1695 = arith.addf %1693, %1694 : vector<1x8x8xf32>
    %cst_636 = arith.constant dense<0xFF800000> : vector<1x8xf32>
    %1696 = vector.multi_reduction <maximumf>, %1695, %cst_636 [2] : vector<1x8x8xf32> to vector<1x8xf32>
    %1697 = vector.shape_cast %1696 : vector<1x8xf32> to vector<1x8x1xf32>
    %1698 = vector.broadcast %1697 : vector<1x8x1xf32> to vector<1x8x8xf32>
    %1699 = arith.subf %1695, %1698 : vector<1x8x8xf32>
    %1700 = math.exp %1699 : vector<1x8x8xf32>
    %cst_637 = arith.constant dense<0.000000e+00> : vector<1x8xf32>
    %1701 = vector.multi_reduction <add>, %1700, %cst_637 [2] : vector<1x8x8xf32> to vector<1x8xf32>
    %1702 = vector.shape_cast %1701 : vector<1x8xf32> to vector<1x8x1xf32>
    %1703 = tpu.reciprocal %1702 {approx = true} : vector<1x8x1xf32> -> vector<1x8x1xf32>
    %1704 = vector.broadcast %1703 : vector<1x8x1xf32> to vector<1x8x8xf32>
    %1705 = arith.mulf %1700, %1704 : vector<1x8x8xf32>
    "tpu.trace_start"() <{level = 10 : i32, message = "bnm,bmd->bnd"}> : () -> ()
    %cst_638 = arith.constant dense<0.000000e+00> : vector<1x8x8xf32>
    %1706 = tpu.matmul %1705, %1692, %cst_638 {dimension_numbers = #tpu.dot_dimension_numbers<[2], [1], [1], [2], [0, 0, 0, 1, 1, 2], [0], [0]>} : vector<1x8x8xf32>, vector<1x8x8xf32>, vector<1x8x8xf32> -> vector<1x8x8xf32>
    "tpu.trace_stop"() : () -> ()
    %1707 = vector.extract_strided_slice %1650 {offsets = [0, 0, 24], sizes = [1, 8, 8], strides = [1, 1, 1]} : vector<1x8x96xf32> to vector<1x8x8xf32>
    %1708 = vector.extract_strided_slice %1650 {offsets = [0, 0, 56], sizes = [1, 8, 8], strides = [1, 1, 1]} : vector<1x8x96xf32> to vector<1x8x8xf32>
    %1709 = vector.extract_strided_slice %1650 {offsets = [0, 0, 88], sizes = [1, 8, 8], strides = [1, 1, 1]} : vector<1x8x96xf32> to vector<1x8x8xf32>
    "tpu.trace_start"() <{level = 10 : i32, message = "bnd,bmd->bnm"}> : () -> ()
    %cst_639 = arith.constant dense<0.000000e+00> : vector<1x8x8xf32>
    %1710 = tpu.matmul %1707, %1708, %cst_639 {dimension_numbers = #tpu.dot_dimension_numbers<[2], [2], [1], [1], [0, 0, 0, 1, 1, 1], [0], [0]>} : vector<1x8x8xf32>, vector<1x8x8xf32>, vector<1x8x8xf32> -> vector<1x8x8xf32>
    "tpu.trace_stop"() : () -> ()
    %1711 = vector.broadcast %1655 : vector<1x1x8xf32> to vector<1x8x8xf32>
    %1712 = arith.addf %1710, %1711 : vector<1x8x8xf32>
    %cst_640 = arith.constant dense<0xFF800000> : vector<1x8xf32>
    %1713 = vector.multi_reduction <maximumf>, %1712, %cst_640 [2] : vector<1x8x8xf32> to vector<1x8xf32>
    %1714 = vector.shape_cast %1713 : vector<1x8xf32> to vector<1x8x1xf32>
    %1715 = vector.broadcast %1714 : vector<1x8x1xf32> to vector<1x8x8xf32>
    %1716 = arith.subf %1712, %1715 : vector<1x8x8xf32>
    %1717 = math.exp %1716 : vector<1x8x8xf32>
    %cst_641 = arith.constant dense<0.000000e+00> : vector<1x8xf32>
    %1718 = vector.multi_reduction <add>, %1717, %cst_641 [2] : vector<1x8x8xf32> to vector<1x8xf32>
    %1719 = vector.shape_cast %1718 : vector<1x8xf32> to vector<1x8x1xf32>
    %1720 = tpu.reciprocal %1719 {approx = true} : vector<1x8x1xf32> -> vector<1x8x1xf32>
    %1721 = vector.broadcast %1720 : vector<1x8x1xf32> to vector<1x8x8xf32>
    %1722 = arith.mulf %1717, %1721 : vector<1x8x8xf32>
    "tpu.trace_start"() <{level = 10 : i32, message = "bnm,bmd->bnd"}> : () -> ()
    %cst_642 = arith.constant dense<0.000000e+00> : vector<1x8x8xf32>
    %1723 = tpu.matmul %1722, %1709, %cst_642 {dimension_numbers = #tpu.dot_dimension_numbers<[2], [1], [1], [2], [0, 0, 0, 1, 1, 2], [0], [0]>} : vector<1x8x8xf32>, vector<1x8x8xf32>, vector<1x8x8xf32> -> vector<1x8x8xf32>
    "tpu.trace_stop"() : () -> ()
    %1724 = tpu.concatenate %1672, %1689, %1706, %1723 in 2 : vector<1x8x8xf32>, vector<1x8x8xf32>, vector<1x8x8xf32>, vector<1x8x8xf32> -> vector<1x8x32xf32>
    %1725 = vector.shape_cast %1724 : vector<1x8x32xf32> to vector<8x32xf32>
    %c3_643 = arith.constant 3 : index
    %c0_644 = arith.constant 0 : index
    %c0_645 = arith.constant 0 : index
    %1726 = vector.load %arg9[%c3_643, %c0_644, %c0_645] : memref<4x32x32xf32, #tpu.memory_space<vmem>>, vector<1x32x32xf32>
    %1727 = vector.shape_cast %1726 : vector<1x32x32xf32> to vector<32x32xf32>
    %cst_646 = arith.constant dense<0.000000e+00> : vector<8x32xf32>
    %1728 = tpu.matmul %1725, %1727, %cst_646 {dimension_numbers = #tpu.dot_dimension_numbers<[1], [0], [0], [1], [0, 0, 1, 1], [], []>} : vector<8x32xf32>, vector<32x32xf32>, vector<8x32xf32> -> vector<8x32xf32>
    %c3_647 = arith.constant 3 : index
    %c0_648 = arith.constant 0 : index
    %c0_649 = arith.constant 0 : index
    %1729 = vector.load %arg10[%c3_647, %c0_648, %c0_649] : memref<4x1x32xf32, #tpu.memory_space<vmem>>, vector<1x1x32xf32>
    %1730 = vector.shape_cast %1729 : vector<1x1x32xf32> to vector<1x32xf32>
    %1731 = vector.broadcast %1730 : vector<1x32xf32> to vector<8x32xf32>
    %1732 = arith.addf %1728, %1731 : vector<8x32xf32>
    %1733 = arith.addf %1620, %1732 : vector<8x32xf32>
    %c3_650 = arith.constant 3 : index
    %c0_651 = arith.constant 0 : index
    %c0_652 = arith.constant 0 : index
    %1734 = vector.load %arg11[%c3_650, %c0_651, %c0_652] : memref<4x1x32xf32, #tpu.memory_space<vmem>>, vector<1x1x32xf32>
    %1735 = vector.shape_cast %1734 : vector<1x1x32xf32> to vector<1x32xf32>
    %c3_653 = arith.constant 3 : index
    %c0_654 = arith.constant 0 : index
    %c0_655 = arith.constant 0 : index
    %1736 = vector.load %arg12[%c3_653, %c0_654, %c0_655] : memref<4x1x32xf32, #tpu.memory_space<vmem>>, vector<1x1x32xf32>
    %1737 = vector.shape_cast %1736 : vector<1x1x32xf32> to vector<1x32xf32>
    %cst_656 = arith.constant dense<0.000000e+00> : vector<8xf32>
    %1738 = vector.multi_reduction <add>, %1733, %cst_656 [1] : vector<8x32xf32> to vector<8xf32>
    %1739 = vector.shape_cast %1738 : vector<8xf32> to vector<8x1xf32>
    %cst_657 = arith.constant 3.200000e+01 : f32
    %1740 = vector.broadcast %cst_657 : f32 to vector<8x1xf32>
    %1741 = arith.divf %1739, %1740 : vector<8x1xf32>
    %1742 = vector.broadcast %1741 : vector<8x1xf32> to vector<8x32xf32>
    %1743 = arith.subf %1733, %1742 : vector<8x32xf32>
    %1744 = arith.mulf %1743, %1743 : vector<8x32xf32>
    %cst_658 = arith.constant dense<0.000000e+00> : vector<8xf32>
    %1745 = vector.multi_reduction <add>, %1744, %cst_658 [1] : vector<8x32xf32> to vector<8xf32>
    %1746 = vector.shape_cast %1745 : vector<8xf32> to vector<8x1xf32>
    %cst_659 = arith.constant 3.200000e+01 : f32
    %1747 = vector.broadcast %cst_659 : f32 to vector<8x1xf32>
    %1748 = arith.divf %1746, %1747 : vector<8x1xf32>
    %1749 = vector.broadcast %1741 : vector<8x1xf32> to vector<8x32xf32>
    %1750 = arith.subf %1733, %1749 : vector<8x32xf32>
    %cst_660 = arith.constant 9.99999974E-6 : f32
    %1751 = vector.broadcast %cst_660 : f32 to vector<8x1xf32>
    %1752 = arith.addf %1748, %1751 : vector<8x1xf32>
    %1753 = math.rsqrt %1752 : vector<8x1xf32>
    %1754 = vector.broadcast %1753 : vector<8x1xf32> to vector<8x32xf32>
    %1755 = arith.mulf %1750, %1754 : vector<8x32xf32>
    %1756 = vector.broadcast %1735 : vector<1x32xf32> to vector<8x32xf32>
    %1757 = arith.mulf %1755, %1756 : vector<8x32xf32>
    %1758 = vector.broadcast %1737 : vector<1x32xf32> to vector<8x32xf32>
    %1759 = arith.addf %1757, %1758 : vector<8x32xf32>
    %c3_661 = arith.constant 3 : index
    %c0_662 = arith.constant 0 : index
    %c0_663 = arith.constant 0 : index
    %1760 = vector.load %arg13[%c3_661, %c0_662, %c0_663] : memref<4x32x128xf32, #tpu.memory_space<vmem>>, vector<1x32x128xf32>
    %1761 = vector.shape_cast %1760 : vector<1x32x128xf32> to vector<32x128xf32>
    %cst_664 = arith.constant dense<0.000000e+00> : vector<8x128xf32>
    %1762 = tpu.matmul %1759, %1761, %cst_664 {dimension_numbers = #tpu.dot_dimension_numbers<[1], [0], [0], [1], [0, 0, 1, 1], [], []>} : vector<8x32xf32>, vector<32x128xf32>, vector<8x128xf32> -> vector<8x128xf32>
    %c3_665 = arith.constant 3 : index
    %c0_666 = arith.constant 0 : index
    %c0_667 = arith.constant 0 : index
    %1763 = vector.load %arg14[%c3_665, %c0_666, %c0_667] : memref<4x1x128xf32, #tpu.memory_space<vmem>>, vector<1x1x128xf32>
    %1764 = vector.shape_cast %1763 : vector<1x1x128xf32> to vector<1x128xf32>
    %1765 = vector.broadcast %1764 : vector<1x128xf32> to vector<8x128xf32>
    %1766 = arith.addf %1762, %1765 : vector<8x128xf32>
    %cst_668 = arith.constant 5.000000e-01 : f32
    %1767 = vector.broadcast %cst_668 : f32 to vector<8x128xf32>
    %1768 = arith.mulf %1767, %1766 : vector<8x128xf32>
    %cst_669 = arith.constant 0.707106769 : f32
    %1769 = vector.broadcast %cst_669 : f32 to vector<8x128xf32>
    %1770 = arith.mulf %1766, %1769 : vector<8x128xf32>
    %1771 = math.absf %1770 : vector<8x128xf32>
    %cst_670 = arith.constant 0.327591091 : f32
    %1772 = vector.broadcast %cst_670 : f32 to vector<8x128xf32>
    %1773 = arith.mulf %1772, %1771 : vector<8x128xf32>
    %cst_671 = arith.constant 1.000000e+00 : f32
    %1774 = vector.broadcast %cst_671 : f32 to vector<8x128xf32>
    %1775 = arith.addf %1774, %1773 : vector<8x128xf32>
    %cst_672 = arith.constant 1.000000e+00 : f32
    %1776 = vector.broadcast %cst_672 : f32 to vector<8x128xf32>
    %1777 = arith.divf %1776, %1775 : vector<8x128xf32>
    %cst_673 = arith.constant 1.06140542 : f32
    %1778 = vector.broadcast %cst_673 : f32 to vector<8x128xf32>
    %1779 = arith.mulf %1778, %1777 : vector<8x128xf32>
    %cst_674 = arith.constant -1.45315206 : f32
    %1780 = vector.broadcast %cst_674 : f32 to vector<8x128xf32>
    %1781 = arith.addf %1779, %1780 : vector<8x128xf32>
    %1782 = arith.mulf %1781, %1777 : vector<8x128xf32>
    %cst_675 = arith.constant 1.42141378 : f32
    %1783 = vector.broadcast %cst_675 : f32 to vector<8x128xf32>
    %1784 = arith.addf %1782, %1783 : vector<8x128xf32>
    %1785 = arith.mulf %1784, %1777 : vector<8x128xf32>
    %cst_676 = arith.constant -0.284496725 : f32
    %1786 = vector.broadcast %cst_676 : f32 to vector<8x128xf32>
    %1787 = arith.addf %1785, %1786 : vector<8x128xf32>
    %1788 = arith.mulf %1787, %1777 : vector<8x128xf32>
    %cst_677 = arith.constant 0.254829586 : f32
    %1789 = vector.broadcast %cst_677 : f32 to vector<8x128xf32>
    %1790 = arith.addf %1788, %1789 : vector<8x128xf32>
    %1791 = arith.mulf %1790, %1777 : vector<8x128xf32>
    %cst_678 = arith.constant 0.000000e+00 : f32
    %1792 = vector.broadcast %cst_678 : f32 to vector<8x128xf32>
    %1793 = arith.subf %1792, %1771 : vector<8x128xf32>
    %1794 = arith.mulf %1793, %1771 : vector<8x128xf32>
    %1795 = math.exp %1794 : vector<8x128xf32>
    %1796 = arith.mulf %1791, %1795 : vector<8x128xf32>
    %cst_679 = arith.constant 1.000000e+00 : f32
    %1797 = vector.broadcast %cst_679 : f32 to vector<8x128xf32>
    %1798 = arith.subf %1797, %1796 : vector<8x128xf32>
    %cst_680 = arith.constant 0.000000e+00 : f32
    %1799 = vector.broadcast %cst_680 : f32 to vector<8x128xf32>
    %1800 = arith.cmpf oge, %1770, %1799 : vector<8x128xf32>
    %cst_681 = arith.constant 0.000000e+00 : f32
    %1801 = vector.broadcast %cst_681 : f32 to vector<8x128xf32>
    %1802 = arith.subf %1801, %1798 : vector<8x128xf32>
    %1803 = arith.select %1800, %1798, %1802 : vector<8x128xi1>, vector<8x128xf32>
    %cst_682 = arith.constant 1.000000e+00 : f32
    %1804 = vector.broadcast %cst_682 : f32 to vector<8x128xf32>
    %1805 = arith.addf %1804, %1803 : vector<8x128xf32>
    %1806 = arith.mulf %1768, %1805 : vector<8x128xf32>
    %c3_683 = arith.constant 3 : index
    %c0_684 = arith.constant 0 : index
    %c0_685 = arith.constant 0 : index
    %1807 = vector.load %arg15[%c3_683, %c0_684, %c0_685] : memref<4x128x32xf32, #tpu.memory_space<vmem>>, vector<1x128x32xf32>
    %1808 = vector.shape_cast %1807 : vector<1x128x32xf32> to vector<128x32xf32>
    %cst_686 = arith.constant dense<0.000000e+00> : vector<8x32xf32>
    %1809 = tpu.matmul %1806, %1808, %cst_686 {dimension_numbers = #tpu.dot_dimension_numbers<[1], [0], [0], [1], [0, 0, 1, 1], [], []>} : vector<8x128xf32>, vector<128x32xf32>, vector<8x32xf32> -> vector<8x32xf32>
    %c3_687 = arith.constant 3 : index
    %c0_688 = arith.constant 0 : index
    %c0_689 = arith.constant 0 : index
    %1810 = vector.load %arg16[%c3_687, %c0_688, %c0_689] : memref<4x1x32xf32, #tpu.memory_space<vmem>>, vector<1x1x32xf32>
    %1811 = vector.shape_cast %1810 : vector<1x1x32xf32> to vector<1x32xf32>
    %1812 = vector.broadcast %1811 : vector<1x32xf32> to vector<8x32xf32>
    %1813 = arith.addf %1809, %1812 : vector<8x32xf32>
    %1814 = arith.addf %1733, %1813 : vector<8x32xf32>
    %1815 = vector.shape_cast %1814 : vector<8x32xf32> to vector<1x8x32xf32>
    %1816 = vector.extract_strided_slice %1815 {offsets = [0, 0, 0], sizes = [1, 1, 32], strides = [1, 1, 1]} : vector<1x8x32xf32> to vector<1x1x32xf32>
    %cst_690 = arith.constant dense<0.000000e+00> : vector<1x1xf32>
    %1817 = vector.multi_reduction <add>, %1816, %cst_690 [2] : vector<1x1x32xf32> to vector<1x1xf32>
    %1818 = vector.shape_cast %1817 : vector<1x1xf32> to vector<1x1x1xf32>
    %cst_691 = arith.constant 3.200000e+01 : f32
    %1819 = vector.broadcast %cst_691 : f32 to vector<1x1x1xf32>
    %1820 = arith.divf %1818, %1819 : vector<1x1x1xf32>
    %1821 = vector.broadcast %1820 : vector<1x1x1xf32> to vector<1x1x32xf32>
    %1822 = arith.subf %1816, %1821 : vector<1x1x32xf32>
    %1823 = arith.mulf %1822, %1822 : vector<1x1x32xf32>
    %cst_692 = arith.constant dense<0.000000e+00> : vector<1x1xf32>
    %1824 = vector.multi_reduction <add>, %1823, %cst_692 [2] : vector<1x1x32xf32> to vector<1x1xf32>
    %1825 = vector.shape_cast %1824 : vector<1x1xf32> to vector<1x1x1xf32>
    %cst_693 = arith.constant 3.200000e+01 : f32
    %1826 = vector.broadcast %cst_693 : f32 to vector<1x1x1xf32>
    %1827 = arith.divf %1825, %1826 : vector<1x1x1xf32>
    %1828 = vector.broadcast %1820 : vector<1x1x1xf32> to vector<1x1x32xf32>
    %1829 = arith.subf %1816, %1828 : vector<1x1x32xf32>
    %cst_694 = arith.constant 9.99999974E-6 : f32
    %1830 = vector.broadcast %cst_694 : f32 to vector<1x1x1xf32>
    %1831 = arith.addf %1827, %1830 : vector<1x1x1xf32>
    %1832 = math.rsqrt %1831 : vector<1x1x1xf32>
    %1833 = vector.broadcast %1832 : vector<1x1x1xf32> to vector<1x1x32xf32>
    %1834 = arith.mulf %1829, %1833 : vector<1x1x32xf32>
    %1835 = vector.shape_cast %3 : vector<1x32xf32> to vector<1x1x32xf32>
    %1836 = arith.mulf %1834, %1835 : vector<1x1x32xf32>
    %1837 = vector.shape_cast %4 : vector<1x32xf32> to vector<1x1x32xf32>
    %1838 = arith.addf %1836, %1837 : vector<1x1x32xf32>
    %1839 = arith.addf %826, %1838 : vector<1x1x32xf32>
    %cst_695 = arith.constant 5.000000e-01 : f32
    %1840 = vector.broadcast %cst_695 : f32 to vector<1x1x32xf32>
    %1841 = arith.mulf %1840, %1839 : vector<1x1x32xf32>
    %1842 = vector.shape_cast %1841 : vector<1x1x32xf32> to vector<1x32xf32>
    %c0_696 = arith.constant 0 : index
    %c0_697 = arith.constant 0 : index
    %1843 = vector.load %arg19[%c0_696, %c0_697] : memref<32x128xf32, #tpu.memory_space<vmem>>, vector<32x128xf32>
    %cst_698 = arith.constant dense<0.000000e+00> : vector<1x128xf32>
    %1844 = tpu.matmul %1842, %1843, %cst_698 {dimension_numbers = #tpu.dot_dimension_numbers<[1], [0], [0], [1], [0, 0, 1, 1], [], []>} : vector<1x32xf32>, vector<32x128xf32>, vector<1x128xf32> -> vector<1x128xf32>
    %c0_699 = arith.constant 0 : index
    %c0_700 = arith.constant 0 : index
    %1845 = vector.load %arg20[%c0_699, %c0_700] : memref<1x128xf32, #tpu.memory_space<vmem>>, vector<1x128xf32>
    %1846 = arith.addf %1844, %1845 : vector<1x128xf32>
    %c0_701 = arith.constant 0 : index
    %c0_702 = arith.constant 0 : index
    %c0_703 = arith.constant 0 : index
    %1847 = vector.load %arg21[%c0_701, %c0_702, %c0_703] : memref<1x1x128xf32, #tpu.memory_space<vmem>>, vector<1x1x128xf32>
    %1848 = vector.shape_cast %1847 : vector<1x1x128xf32> to vector<1x128xf32>
    %1849 = vector.shape_cast %1846 : vector<1x128xf32> to vector<1x1x128xf32>
    tpu.vector_store %arg21[%c0_701, %c0_702, %c0_703], %1849 {strides = array<i32>} : memref<1x1x128xf32, #tpu.memory_space<vmem>>, vector<1x1x128xf32>,
    return
  }
  func.func @transform_0(%arg0: i32) -> (i32, i32, i32) {
    %c0_i32 = arith.constant 0 : i32
    %c0_i32_0 = arith.constant 0 : i32
    %c0_i32_1 = arith.constant 0 : i32
    return %arg0, %c0_i32, %c0_i32_0 : i32, i32, i32
  }
  func.func @transform_1(%arg0: i32) -> (i32, i32) {
    %c0_i32 = arith.constant 0 : i32
    %c0_i32_0 = arith.constant 0 : i32
    %c0_i32_1 = arith.constant 0 : i32
    return %c0_i32, %c0_i32_0 : i32, i32
  }
  func.func @transform_2(%arg0: i32) -> (i32, i32) {
    %c0_i32 = arith.constant 0 : i32
    %c0_i32_0 = arith.constant 0 : i32
    %c0_i32_1 = arith.constant 0 : i32
    return %c0_i32, %c0_i32_0 : i32, i32
  }
  func.func @transform_3(%arg0: i32) -> (i32, i32, i32) {
    %c0_i32 = arith.constant 0 : i32
    %c0_i32_0 = arith.constant 0 : i32
    %c0_i32_1 = arith.constant 0 : i32
    %c0_i32_2 = arith.constant 0 : i32
    return %c0_i32, %c0_i32_0, %c0_i32_1 : i32, i32, i32
  }
  func.func @transform_4(%arg0: i32) -> (i32, i32, i32) {
    %c0_i32 = arith.constant 0 : i32
    %c0_i32_0 = arith.constant 0 : i32
    %c0_i32_1 = arith.constant 0 : i32
    %c0_i32_2 = arith.constant 0 : i32
    return %c0_i32, %c0_i32_0, %c0_i32_1 : i32, i32, i32
  }
  func.func @transform_5(%arg0: i32) -> (i32, i32, i32) {
    %c0_i32 = arith.constant 0 : i32
    %c0_i32_0 = arith.constant 0 : i32
    %c0_i32_1 = arith.constant 0 : i32
    %c0_i32_2 = arith.constant 0 : i32
    return %c0_i32, %c0_i32_0, %c0_i32_1 : i32, i32, i32
  }
  func.func @transform_6(%arg0: i32) -> (i32, i32, i32) {
    %c0_i32 = arith.constant 0 : i32
    %c0_i32_0 = arith.constant 0 : i32
    %c0_i32_1 = arith.constant 0 : i32
    %c0_i32_2 = arith.constant 0 : i32
    return %c0_i32, %c0_i32_0, %c0_i32_1 : i32, i32, i32
  }
  func.func @transform_7(%arg0: i32) -> (i32, i32, i32) {
    %c0_i32 = arith.constant 0 : i32
    %c0_i32_0 = arith.constant 0 : i32
    %c0_i32_1 = arith.constant 0 : i32
    %c0_i32_2 = arith.constant 0 : i32
    return %c0_i32, %c0_i32_0, %c0_i32_1 : i32, i32, i32
  }
  func.func @transform_8(%arg0: i32) -> (i32, i32, i32) {
    %c0_i32 = arith.constant 0 : i32
    %c0_i32_0 = arith.constant 0 : i32
    %c0_i32_1 = arith.constant 0 : i32
    %c0_i32_2 = arith.constant 0 : i32
    return %c0_i32, %c0_i32_0, %c0_i32_1 : i32, i32, i32
  }
  func.func @transform_9(%arg0: i32) -> (i32, i32, i32) {
    %c0_i32 = arith.constant 0 : i32
    %c0_i32_0 = arith.constant 0 : i32
    %c0_i32_1 = arith.constant 0 : i32
    %c0_i32_2 = arith.constant 0 : i32
    return %c0_i32, %c0_i32_0, %c0_i32_1 : i32, i32, i32
  }
  func.func @transform_10(%arg0: i32) -> (i32, i32, i32) {
    %c0_i32 = arith.constant 0 : i32
    %c0_i32_0 = arith.constant 0 : i32
    %c0_i32_1 = arith.constant 0 : i32
    %c0_i32_2 = arith.constant 0 : i32
    return %c0_i32, %c0_i32_0, %c0_i32_1 : i32, i32, i32
  }
  func.func @transform_11(%arg0: i32) -> (i32, i32, i32) {
    %c0_i32 = arith.constant 0 : i32
    %c0_i32_0 = arith.constant 0 : i32
    %c0_i32_1 = arith.constant 0 : i32
    %c0_i32_2 = arith.constant 0 : i32
    return %c0_i32, %c0_i32_0, %c0_i32_1 : i32, i32, i32
  }
  func.func @transform_12(%arg0: i32) -> (i32, i32, i32) {
    %c0_i32 = arith.constant 0 : i32
    %c0_i32_0 = arith.constant 0 : i32
    %c0_i32_1 = arith.constant 0 : i32
    %c0_i32_2 = arith.constant 0 : i32
    return %c0_i32, %c0_i32_0, %c0_i32_1 : i32, i32, i32
  }
  func.func @transform_13(%arg0: i32) -> (i32, i32, i32) {
    %c0_i32 = arith.constant 0 : i32
    %c0_i32_0 = arith.constant 0 : i32
    %c0_i32_1 = arith.constant 0 : i32
    %c0_i32_2 = arith.constant 0 : i32
    return %c0_i32, %c0_i32_0, %c0_i32_1 : i32, i32, i32
  }
  func.func @transform_14(%arg0: i32) -> (i32, i32, i32) {
    %c0_i32 = arith.constant 0 : i32
    %c0_i32_0 = arith.constant 0 : i32
    %c0_i32_1 = arith.constant 0 : i32
    %c0_i32_2 = arith.constant 0 : i32
    return %c0_i32, %c0_i32_0, %c0_i32_1 : i32, i32, i32
  }
  func.func @transform_15(%arg0: i32) -> (i32, i32, i32) {
    %c0_i32 = arith.constant 0 : i32
    %c0_i32_0 = arith.constant 0 : i32
    %c0_i32_1 = arith.constant 0 : i32
    %c0_i32_2 = arith.constant 0 : i32
    return %c0_i32, %c0_i32_0, %c0_i32_1 : i32, i32, i32
  }
  func.func @transform_16(%arg0: i32) -> (i32, i32) {
    %c0_i32 = arith.constant 0 : i32
    %c0_i32_0 = arith.constant 0 : i32
    %c0_i32_1 = arith.constant 0 : i32
    return %c0_i32, %c0_i32_0 : i32, i32
  }
  func.func @transform_17(%arg0: i32) -> (i32, i32) {
    %c0_i32 = arith.constant 0 : i32
    %c0_i32_0 = arith.constant 0 : i32
    %c0_i32_1 = arith.constant 0 : i32
    return %c0_i32, %c0_i32_0 : i32, i32
  }
  func.func @transform_18(%arg0: i32) -> (i32, i32) {
    %c0_i32 = arith.constant 0 : i32
    %c0_i32_0 = arith.constant 0 : i32
    %c0_i32_1 = arith.constant 0 : i32
    return %c0_i32, %c0_i32_0 : i32, i32
  }
  func.func @transform_19(%arg0: i32) -> (i32, i32) {
    %c0_i32 = arith.constant 0 : i32
    %c0_i32_0 = arith.constant 0 : i32
    %c0_i32_1 = arith.constant 0 : i32
    return %c0_i32, %c0_i32_0 : i32, i32
  }
  func.func @transform_20(%arg0: i32) -> (i32, i32, i32) {
    %c0_i32 = arith.constant 0 : i32
    %c0_i32_0 = arith.constant 0 : i32
    %c0_i32_1 = arith.constant 0 : i32
    return %arg0, %c0_i32, %c0_i32_0 : i32, i32, i32
  }
}

</mosaic_0001>

<bundles_post_ra>
// kernel: mask_vit_forward.1
= control target key start
LH: loop header
LB: loop body
LE: loop exit
PB: predicated region body
PF: predicated region fallthrough
CT: control target
= control target key end

     0   :  { %s14377_s0 = inlined_call_operand.vmem [shape: f32[2,8,192], index: 0, kind: input, shape index: {}]   ;;  %s14378_s1 = inlined_call_operand.vmem [shape: f32[192,32], index: 1, kind: input, shape index: {}]   ;;  %s14379_s2 = inlined_call_operand.vmem [shape: f32[1,32], index: 2, kind: input, shape index: {}]   ;;  %s14380_s3 = inlined_call_operand.vmem [shape: f32[1,1,32], index: 3, kind: input, shape index: {}]   ;;  %s14381_s4 = inlined_call_operand.vmem [shape: f32[1,8,32], index: 4, kind: input, shape index: {}]   ;;  %s14382_s5 = inlined_call_operand.vmem [shape: f32[4,1,32], index: 5, kind: input, shape index: {}]   ;;  %s14383_s6 = inlined_call_operand.vmem [shape: f32[4,1,32], index: 6, kind: input, shape index: {}]   ;;  %s14384_s7 = inlined_call_operand.vmem [shape: f32[4,32,96], index: 7, kind: input, shape index: {}]   ;;  %s14385_s8 = inlined_call_operand.vmem [shape: f32[4,32,32], index: 8, kind: input, shape index: {}]   ;;  %s14386_s9 = inlined_call_operand.vmem [shape: f32[4,1,32], index: 9, kind: input, shape index: {}]   ;;  %s14387_s10 = inlined_call_operand.vmem [shape: f32[4,1,32], index: 10, kind: input, shape index: {}]   ;;  %s14388_s11 = inlined_call_operand.vmem [shape: f32[4,1,32], index: 11, kind: input, shape index: {}]   ;;  %s14389_s12 = inlined_call_operand.vmem [shape: f32[4,32,128], index: 12, kind: input, shape index: {}]   ;;  %s14390_s13 = inlined_call_operand.vmem [shape: f32[4,1,128], index: 13, kind: input, shape index: {}]   ;;  %s14391_s14 = inlined_call_operand.vmem [shape: f32[4,128,32], index: 14, kind: input, shape index: {}]   ;;  %s14392_s15 = inlined_call_operand.vmem [shape: f32[4,1,32], index: 15, kind: input, shape index: {}]   ;;  %s14393_s16 = inlined_call_operand.vmem [shape: f32[1,32], index: 16, kind: input, shape index: {}]   ;;  %s14394_s17 = inlined_call_operand.vmem [shape: f32[1,32], index: 17, kind: input, shape index: {}]   ;;  %s14395_s18 = inlined_call_operand.vmem [shape: f32[32,128], index: 18, kind: input, shape index: {}]   ;;  %s14396_s19 = inlined_call_operand.vmem [shape: f32[1,128], index: 19, kind: input, shape index: {}]   ;;  %s14397_s20 = inlined_call_operand.hbm [shape: f32[2,1,128], index: 20, kind: output, shape index: {}]  }
   0x1   :  { %14451 = sst [smem:[#allocation14_spill]] %s14377_s0 }
   0x2   :  { %14452 = sst [smem:[#allocation15_spill]] %s14378_s1 }
   0x3   :  { %14453 = sst [smem:[#allocation16_spill]] %s14379_s2 }
   0x4   :  { %14454 = sst [smem:[#allocation17_spill]] %s14380_s3 }
   0x5   :  { %14455 = sst [smem:[#allocation18_spill]] %s14381_s4 }
   0x6   :  { %14456 = sst [smem:[#allocation19_spill]] %s14386_s9 }
   0x7   :  { %14457 = sst [smem:[#allocation20_spill]] %s14388_s11 }
   0x8   :  { %14458 = sst [smem:[#allocation21_spill]] %s14390_s13 }
   0x9   :  { %14459 = sst [smem:[#allocation22_spill]] %s14392_s15 }
   0xa   :  { %14460 = sst [smem:[#allocation23_spill]] %s14393_s16 }
   0xb   :  { %14461 = sst [smem:[#allocation24_spill]] %s14394_s17 }
   0xc   :  { %14462 = sst [smem:[#allocation25_spill]] %s14395_s18 }
   0xd   :  { %14463 = sst [smem:[#allocation26_spill]] %s14396_s19 }
   0xe   :  { %14464 = sst [smem:[#allocation27_spill]] %s14397_s20 }
   0xf   :  { %25 = vsyncpa [#allocation3], 0 }
  0x10   :  { %27 = vsyncpa [#allocation3 + $0x1], 0  ;;  %s12106_s1 = smov 0   ;;  %s12108_s22 = smov 0  }
  0x11   :  { %s12110_s23 = smov 0   ;;  %s12112_s24 = smov 0  }
  0x12 LB: > { %14465 = sst [smem:[#allocation5_spill]] %s11963_s1  ;;  %s12127_s2 = sadd.s32 4294967295, %s11975_s24   ;;  %s11975_s24 = sphi %s12112_s24, %s14641_s24   ;;  %s11971_s23 = sphi %s12110_s23, %s14644_s23   ;;  %s11967_s22 = sphi %s12108_s22, %s14643_s22   ;;  %s11963_s1 = sphi %s12106_s1, %s14642_s1  }
  0x13   : > { %14466 = sst [smem:[#allocation6_spill]] %s11967_s22  ;;  %s9978_s25 = sadd.s32 4294967294, %s11975_s24  }
  0x14   : > { %14467 = sst [smem:[#allocation7_spill]] %s11971_s23  ;;  %s12131_s3 = sadd.s32 1, %s11975_s24  }
  0x15   : > { %14468 = sst [smem:[#allocation8_spill]] %s11975_s24  ;;  %s465_s26 = sadd.s32 1, %s11971_s23 }
  0x16   : > { %14469 = sst [smem:[#allocation9_spill]] %s12127_s2  ;;  %s462_s27 = ssub.s32 %s11975_s24, %s12131_s3 }
  0x17   : > { %14470 = sst [smem:[#allocation10_spill]] %s12131_s3  ;;  %p475_p0 = scmp.ne.s32.totalorder %s11971_s23, %s11967_s22 }
  0x18   : > { %p463_p1 = scmp.eq.s32.totalorder %s462_s27, 0  ;;  %p476_p2 = scmp.eq.s32.totalorder %s12127_s2, 1 }
  0x19   : > { %p481_p3 = scmp.ne.s32.totalorder %s11967_s22, %s11963_s1  ;;  %p482_p4 = scmp.eq.s32.totalorder %s9978_s25, 1 }
  0x1a   : > { %s12142_s28 = scalar_select %p463_p1, %s11971_s23, %s465_s26  }
  0x1b   : > { %p12144_p5 = por %p476_p2, %p475_p0  ;;  %p12148_p6 = por %p482_p4, %p481_p3 }
  0x1c   : > { %14471 = sst [smem:[#allocation11_spill]] %s12142_s28  ;;  %p9981_p7 = scmp.ge.s32.totalorder %s11975_s24, 1 }
  0x1d   : > { %s14472_s4 = scalar_select %p12144_p5, 1, 0 }
  0x1e   : > { %s14474_s29 = scalar_select %p12148_p6, 1, 0 }
  0x1f   : > { %14473 = sst [smem:[#allocation12_spill]] %s14472_s4  ;;  %p565_p8 = scmp.lt.s32.totalorder %s11975_s24, 3 }
  0x20   : > { %14475 = sst [smem:[#allocation13_spill]] %s14474_s29 }
  0x21   : > { %p566_p9 = pnand %p9981_p7, %p565_p8 }
  0x22   : > { %s14476_s21 = sld [smem:[#allocation15_spill]] (!%p566_p9)  ;;  %p622_p10 = scmp.lt.s32.totalorder (!%p566_p9), %s12127_s2, 1 }
  0x23   : > { %569 = sbr.rel (%p566_p9) target bundleno = 27855 (0x6ccf), region = 100  ;;  %s14477_s29 = sld [smem:[#allocation14_spill]] (!%p566_p9) }
  0x24   : > { %s14478_s0 = sld [smem:[#allocation16_spill]] (!%p566_p9)  ;;  %s14431_s25 = smov (!%p566_p9), 64  }
  0x25   : > { %s14479_s23 = sld [smem:[#allocation17_spill]] (!%p566_p9)  ;;  %s14429_s26 = smov (!%p566_p9), 96  }
  0x26   : > { %s14421_s3 = smov (!%p566_p9), 56   ;;  %s14481_s9 = sld [smem:[#allocation19_spill]] (!%p566_p9) }
  0x27   : > { %s14482_s11 = sld [smem:[#allocation20_spill]] (!%p566_p9)  ;;  %s14495_s24 = smov (!%p566_p9), 8  }
  0x28   : > { %v650_v0 = vld [vmem:[%s14476_s21 + $0x78] sm:$0xff]  ;;  %v11977_v1 = vmov 0.0   ;;  %v649_v2 = vld [vmem:[%s14476_s21 + $0x70] sm:$0xff]  ;;  %s623_s27 = scalar_select %p622_p10, %s12127_s2, 1  ;;  %v648_v3 = vld [vmem:[%s14476_s21 + $0x68] sm:$0xff]  ;;  %vm666_vm0 = vcmask 523264   ;;  %v627_v27 = vlaneseq }
  0x29   : > { %670 = vmatprep.subr.mxu0 %v11977_v1  ;;  %10767 = vmatprep.subr.mxu1 %v11977_v1  ;;  %v647_v4 = vld [vmem:[%s14476_s21 + $0x60] sm:$0xff]  ;;  %v646_v5 = vld [vmem:[%s14476_s21 + $0x58] sm:$0xff]  ;;  %v645_v7 = vld [vmem:[%s14476_s21 + $0x50] sm:$0xff]  ;;  %vm14448_vm2 = vcmask 261120   ;;  %vm14446_vm3 = vmmov 0   ;;  %vm14445_vm4 = vcmask 64512  }
  0x2a   : > { %671 = vmatpush1.msra.mxu0 %v650_v0  ;;  %s10377_s30 = sshll.u32 %s623_s27, 4  ;;  %v644_v8 = vld [vmem:[%s14476_s21 + $0x48] sm:$0xff]  ;;  %v643_v9 = vld [vmem:[%s14476_s21 + $0x40] sm:$0xff]  ;;  %v642_v10 = vld [vmem:[%s14476_s21 + $0x38] sm:$0xff]  ;;  %v12261_v28 = vshrl.u32 %v627_v27, 7  ;;  %s14480_s27 = sld [smem:[#allocation18_spill]]  ;;  %10775 = vmatprep.mubr.msk.f32.mxu1 %vm14446_vm3, %v11977_v1 }
  0x2b   : > { %672 = vmatprep.subr.mxu0 %v11977_v1  ;;  %s12175_s1 = scalar_lea.vmem %s14477_s29, %s10377_s30  ;;  %v641_v11 = vld [vmem:[%s14476_s21 + $0x30] sm:$0xff]  ;;  %v640_v12 = vld [vmem:[%s14476_s21 + $0x28] sm:$0xff]  ;;  %v639_v13 = vld [vmem:[%s14476_s21 + $0x20] sm:$0xff]  ;;  %v12323_v60 = vand.u32 127, %v627_v27  ;;  %v11981_v61 = vmov -1e+30  }
  0x2c   : > { %673 = vmatpush1.msra.mxu0 %v649_v2  ;;  %v634_v6 = vld [vmem:[%s12175_s1 + $0x8] sm:$0xff]  ;;  %v638_v14 = vld [vmem:[%s14476_s21 + $0x18] sm:$0xff]  ;;  %v637_v15 = vld [vmem:[%s14476_s21 + $0x10] sm:$0xff]  ;;  %vm742_vm1 = vcmp.eq.s32.totalorder %v12261_v28, 0  ;;  %s14411_s29 = smov 112   ;;  %s14405_s30 = smov 48  }
  0x2d   : > { %674 = vmatprep.subr.mxu0 %v11977_v1  ;;  %9985 = vmatprep.mubr.msk.f32.mxu0 %vm666_vm0, %v634_v6  ;;  %v636_v16 = vld [vmem:[%s14476_s21 + $0x8] sm:$0xff]  ;;  %v635_v17 = vld [vmem:[%s14476_s21] sm:$0xff]  ;;  %v658_v18 = vld [vmem:[%s14476_s21 + $0xb8] sm:$0xff]  ;;  %vm861_vm5 = vcmp.lt.s32.totalorder %v12323_v60, 5  ;;  %vm14444_vm6 = vcmask 130048   ;;  %vm14443_vm7 = vcmask 195584  }
  0x2e   : > { %675 = vmatpush1.msra.mxu0 %v648_v3  ;;  %v657_v19 = vld [vmem:[%s14476_s21 + $0xb0] sm:$0xff]  ;;  %v656_v20 = vld [vmem:[%s14476_s21 + $0xa8] sm:$0xff]  ;;  %v655_v21 = vld [vmem:[%s14476_s21 + $0xa0] sm:$0xff]  ;;  %v12327_v62 = vsel %vm861_vm5, 0.0, %v11981_v61  ;;  %s14483_s13 = sld [smem:[#allocation21_spill]]  ;;  %s14496_s17 = smov 16  }
  0x2f   : > { %676 = vmatprep.subr.mxu0 %v11977_v1  ;;  %v654_v22 = vld [vmem:[%s14476_s21 + $0x98] sm:$0xff]  ;;  %v653_v23 = vld [vmem:[%s14476_s21 + $0x90] sm:$0xff]  ;;  %v652_v24 = vld [vmem:[%s14476_s21 + $0x88] sm:$0xff]  ;;  %s14484_s15 = sld [smem:[#allocation22_spill]]  ;;  %s14497_s16 = smov 24   ;;  %vm5244_vm11 = vcmp.gt.s32.totalorder %v12323_v60, 2 }
  0x30   : > { %677 = vmatpush1.msra.mxu0 %v647_v4  ;;  %v651_v25 = vld [vmem:[%s14476_s21 + $0x80] sm:$0xff]  ;;  %v787_v43 = vld [vmem:[%s14384_s7 + $0x18] sm:$0xff]  ;;  %v786_v44 = vld [vmem:[%s14384_s7 + $0x10] sm:$0xff]  ;;  %s14494_s21 = smov 48   ;;  %s14499_s18 = sld [smem:[#allocation19_spill]]  ;;  %vm5215_vm12 = vcmp.gt.s32.totalorder %v12323_v60, 0 }
  0x31   : > { %678 = vmatprep.subr.mxu0 %v11977_v1  ;;  %v633_v26 = vld [vmem:[%s12175_s1] sm:$0xff]  ;;  %10768 = vmatpush3.msra.mxu1 %v787_v43  ;;  %v785_v45 = vld [vmem:[%s14384_s7 + $0x8] sm:$0xff]  ;;  %s14423_s1 = smov 120   ;;  %s14500_s20 = smov 24   ;;  %vm5229_vm13 = vcmp.gt.s32.totalorder %v12323_v60, 1  ;;  %vm5259_vm14 = vcmp.gt.s32.totalorder %v12323_v60, 3 }
  0x32   : > { %679 = vmatpush1.msra.mxu0 %v646_v5  ;;  %v9984_v29 = vld [vmem:[%s14478_s0] ss:$0 sm:$0xff]  ;;  %10769 = vmatprep.subr.mxu1 %v11977_v1  ;;  %s14409_s0 = smov 72   ;;  %s14501_s2 = sld [smem:[#allocation17_spill]] }
  0x33   : > { %680 = vmatprep.subr.mxu0 %v11977_v1  ;;  %v9986_v31 = vld [vmem:[%s14479_s23] ss:$0 sm:$0xff]  ;;  %10770 = vmatpush3.msra.mxu1 %v786_v44  ;;  %s14425_s23 = smov 88   ;;  %s14503_s28 = sld [smem:[#allocation19_spill]] }
  0x34   : > { %681 = vmatpush1.msra.mxu0 %v645_v7  ;;  %v741_v33 = vld [vmem:[%s14480_s27] sm:$0xff]  ;;  %10771 = vmatprep.subr.mxu1 %v11977_v1  ;;  %s14419_s27 = smov 80   ;;  %s14534_s22 = sld [smem:[#allocation19_spill]] }
  0x35   : > { %682 = vmatprep.subr.mxu0 %v11977_v1  ;;  %v784_v46 = vld [vmem:[%s14384_s7] sm:$0xff]  ;;  %10772 = vmatpush3.msra.mxu1 %v785_v45  ;;  %s14637_s4 = sld [smem:[#allocation27_spill]] }
  0x36   : > { %683 = vmatpush1.msra.mxu0 %v644_v8  ;;  %10773 = vmatprep.subr.mxu1 %v11977_v1  ;;  %v9987_v51 = vld [vmem:[%s14382_s5] ss:$0 sm:$0xff] }
  0x37   : > { %684 = vmatprep.subr.mxu0 %v11977_v1  ;;  %10774 = vmatpush3.msra.mxu1 %v784_v46  ;;  %v9988_v53 = vld [vmem:[%s14383_s6] ss:$0 sm:$0xff] }
  0x38   : > { %685 = vmatpush1.msra.mxu0 %v643_v9  ;;  %10778 = vmatprep.subr.mxu1 %v11977_v1 }
  0x39   : > { %686 = vmatprep.subr.mxu0 %v11977_v1 }
  0x3a   : > { %687 = vmatpush1.msra.mxu0 %v642_v10 }
  0x3b   : > { %688 = vmatprep.subr.mxu0 %v11977_v1 }
  0x3c   : > { %689 = vmatpush1.msra.mxu0 %v641_v11 }
  0x3d   : > { %690 = vmatprep.subr.mxu0 %v11977_v1 }
  0x3e   : > { %691 = vmatpush1.msra.mxu0 %v640_v12 }
  0x3f   : > { %692 = vmatprep.subr.mxu0 %v11977_v1 }
  0x40   : > { %693 = vmatpush1.msra.mxu0 %v639_v13 }
  0x41   : > { %694 = vmatprep.subr.mxu0 %v11977_v1 }
  0x42   : > { %695 = vmatpush1.msra.mxu0 %v638_v14 }
  0x43   : > { %696 = vmatprep.subr.mxu0 %v11977_v1 }
  0x44   : > { %697 = vmatpush1.msra.mxu0 %v637_v15 }
  0x45   : > { %698 = vmatprep.subr.mxu0 %v11977_v1 }
  0x46   : > { %699 = vmatpush1.msra.mxu0 %v636_v16 }
  0x47   : > { %700 = vmatprep.subr.mxu0 %v11977_v1 }
  0x48   : > { %701 = vmatpush1.msra.mxu0 %v635_v17 }
  0x49   : > { %718 = vmatprep.subr.mxu0 %v11977_v1 }
  0x4a   : > { %719 = vmatpush2.msra.mxu0 %v658_v18 }
  0x4b   : > { %720 = vmatprep.subr.mxu0 %v11977_v1 }
  0x4c   : > { %721 = vmatpush2.msra.mxu0 %v657_v19 }
  0x4d   : > { %722 = vmatprep.subr.mxu0 %v11977_v1 }
  0x4e   : > { %723 = vmatpush2.msra.mxu0 %v656_v20 }
  0x4f   : > { %724 = vmatprep.subr.mxu0 %v11977_v1 }
  0x50   : > { %725 = vmatpush2.msra.mxu0 %v655_v21 }
  0x51   : > { %726 = vmatprep.subr.mxu0 %v11977_v1 }
  0x52   : > { %727 = vmatpush2.msra.mxu0 %v654_v22 }
  0x53   : > { %728 = vmatprep.subr.mxu0 %v11977_v1 }
  0x54   : > { %729 = vmatpush2.msra.mxu0 %v653_v23 }
  0x55   : > { %730 = vmatprep.subr.mxu0 %v11977_v1 }
  0x56   : > { %731 = vmatpush2.msra.mxu0 %v652_v24 }
  0x57   : > { %732 = vmatprep.subr.mxu0 %v11977_v1 }
  0x58   : > { %733 = vmatpush2.msra.mxu0 %v651_v25 }
  0x59   : > { %735 = vmatmul.mubr.f32.vlgmr.msra.gmra.mxu0 %v633_v26  ;;  %10875 = vmatprep.subr.mxu0 %v11977_v1 }
  0x5a   : > { %10883 = vmatprep.mubr.msk.f32.mxu0 %vm14446_vm3, %v11977_v1 }
 0x119   : > { %v736_v30 = vpop.f32.mrf.mxu0 }
 0x11a   : > { %v737_v32 = vadd.f32 %v9984_v29, %v736_v30 }
 0x11b   : > { %v738_v34 = vpop.f32.mrf.mxu0 }
 0x11c   : > { %v751_v35 = vsel %vm742_vm1, %v9986_v31, %v737_v32 }
 0x11d   : > { %v12275_v36 = vadd.f32 %v751_v35, %v741_v33 }
 0x11f   : > { %v756_v37 = vsel %vm14448_vm2, %v12275_v36, 0.0 }
 0x120   : > { %757 = vadd.xlane.f32.xlu0 %v756_v37 }
 0x1a9   : > { %v758_v38 = vpop.xlane.xlu0 %757 }
 0x1aa   : > { %v760_v39 = vmul.f32 0.03125, %v758_v38 }
 0x1ac   : > { %v761_v40 = vsub.f32 %v12275_v36, %v760_v39 }
 0x1ae   : > { %v762_v41 = vmul.f32 %v761_v40, %v761_v40 }
 0x1b0   : > { %v763_v42 = vsel %vm14448_vm2, %v762_v41, 0.0 }
 0x1b1   : > { %764 = vadd.xlane.f32.xlu0 %v763_v42 }
 0x23a   : > { %v765_v47 = vpop.xlane.xlu0 %764 }
 0x23b   : > { %v766_v48 = vmul.f32 0.03125, %v765_v47 }
 0x23d   : > { %v767_v49 = vadd.f32 1e-05, %v766_v48 }
 0x23f   : > { %11718 = vrsqrt.f32 %v767_v49 }
 0x24c   : > { %v11719_v50 = vpop.eup %11718 }
 0x24d   : > { %v769_v52 = vmul.f32 %v11719_v50, %v761_v40 }
 0x24f   : > { %v776_v54 = vmul.f32 %v9987_v51, %v769_v52 }
 0x251   : > { %v783_v55 = vadd.f32 %v9988_v53, %v776_v54 }
 0x253   : > { %10776 = vmatmul.mubr.msk.f32.vlgmr.msra.gmra.mxu1 %vm14448_vm2, %v783_v55 }
 0x254   : > { %10780 = vmatprep.mubr.msk.f32.mxu1 %vm14446_vm3, %v11977_v1 }
 0x313   : > { %v12310_v56 = vpop.f32.mrf.mxu1 }
 0x314   : > { %952 = vrot.lane.b32.xlu0 %v12310_v56, %s14431_s25  ;;  %864 = vrot.lane.b32.xlu1 %v12310_v56, %s14429_s26  ;;  %s14485_s26 = smov 96  }
 0x315   : > { %v10777_v57 = vpop.f32.mrf.mxu1 }
 0x386   : > { %v865_v58 = vpop.permute.xlu1 %864  ;;  %v953_v59 = vpop.permute.xlu0 %952 }
 0x387   : > { %10779 = vmatpush3.xpose.msk.msra.mxu1 %vm14445_vm4, %v865_v58 }
 0x388   : > { %10783 = vmatprep.subr.mxu1 %v11977_v1 }
 0x38a   : > { %10781 = vmatmul.mubr.msk.f32.vlgmr.msra.gmra.mxu1 %vm14445_vm4, %v12310_v56 }
 0x38b   : > { %10784 = vmatpush3.msra.mxu1 %v953_v59  ;;  %10785 = vmatprep.mubr.msk.f32.mxu1 %vm14446_vm3, %v11977_v1 }
 0x38c   : > { %10788 = vmatprep.subr.mxu1 %v11977_v1 }
 0x44a   : > { %v937_v63 = vpop.f32.mrf.mxu1 }
 0x44b   : > { %v938_v0 = vadd.f32 %v937_v63, %v12327_v62 }
 0x44c   : > { %v10782_v2 = vpop.f32.mrf.mxu1 }
 0x44d   : > { %v941_v3 = vsel %vm14445_vm4, %v938_v0, -inf }
 0x44e   : > { %942 = vmax.xlane.f32.xlu1 %v941_v3 }
 0x4d7   : > { %v943_v4 = vpop.xlane.xlu1 %942 }
 0x4d8   : > { %v944_v5 = vsub.f32 %v938_v0, %v943_v4 }
 0x4da   : > { %v945_v6 = vmul.f32 1.442695, %v944_v5  ;;  %v1543_v5 = vld [vmem:[%s14385_s8 + $0x18] sm:$0xff] }
 0x4dc   : > { %11720 = vpow2.f32 %v945_v6  ;;  %v1542_v6 = vld [vmem:[%s14385_s8 + $0x10] sm:$0xff] }
 0x4e9   : > { %v11721_v7 = vpop.eup %11720 }
 0x4ea   : > { %v947_v8 = vsel %vm14445_vm4, %v11721_v7, 0.0 }
 0x4eb   : > { %948 = vadd.xlane.f32.xlu0 %v947_v8  ;;  %v1540_v8 = vld [vmem:[%s14385_s8] sm:$0xff] }
 0x501   : > { %1030 = vrot.lane.b32.xlu0 %v12310_v56, %s14425_s23  ;;  %s14487_s23 = smov 120  }
 0x505   : > { %1028 = vrot.lane.b32.xlu0 %v12310_v56, %s14423_s1  ;;  %s14488_s1 = smov 56  }
 0x574   : > { %v949_v9 = vpop.xlane.xlu0 %948 }
 0x575   : > { %11722 = vrcp.f32 %v949_v9 }
 0x578   : > { %v1031_v11 = vpop.permute.xlu0 %1030 }
 0x57c   : > { %v1029_v13 = vpop.permute.xlu0 %1028 }
 0x582   : > { %v11723_v10 = vpop.eup %11722 }
 0x583   : > { %v951_v12 = vmul.f32 %v11723_v10, %v11721_v7  ;;  %v1541_v7 = vld [vmem:[%s14385_s8 + $0x8] sm:$0xff] }
 0x585   : > { %10786 = vmatmul.mubr.msk.f32.vlgmr.msra.gmra.mxu1 %vm14445_vm4, %v951_v12 }
 0x586   : > { %10789 = vmatpush3.xpose.msk.msra.mxu1 %vm14445_vm4, %v1031_v11  ;;  %10790 = vmatprep.mubr.msk.f32.mxu1 %vm14446_vm3, %v11977_v1 }
 0x587   : > { %10793 = vmatprep.subr.mxu1 %v11977_v1 }
 0x589   : > { %10791 = vmatmul.mubr.msk.f32.vlgmr.msra.gmra.mxu1 %vm14445_vm4, %v1029_v13 }
 0x58a   : > { %10795 = vmatprep.mubr.msk.f32.mxu1 %vm14446_vm3, %v11977_v1 }
 0x645   : > { %v12344_v14 = vpop.f32.mrf.mxu1 }
 0x647   : > { %v10787_v15 = vpop.f32.mrf.mxu1 }
 0x649   : > { %v1102_v16 = vpop.f32.mrf.mxu1 }
 0x64a   : > { %v1103_v17 = vadd.f32 %v1102_v16, %v12327_v62 }
 0x64b   : > { %v10792_v18 = vpop.f32.mrf.mxu1 }
 0x64c   : > { %v1106_v19 = vsel %vm14445_vm4, %v1103_v17, -inf  ;;  %v10002_v18 = vld [vmem:[%s14481_s9] ss:$0 sm:$0xff] }
 0x64d   : > { %1107 = vmax.xlane.f32.xlu1 %v1106_v19 }
 0x65e   : > { %1117 = vrot.lane.b32.xlu1 %v12310_v56, %s14421_s3  ;;  %s14489_s3 = smov 80  }
 0x662   : > { %1195 = vrot.lane.b32.xlu1 %v12310_v56, %s14419_s27  ;;  %s14427_s27 = smov 24  }
 0x666   : > { %1193 = vrot.lane.b32.xlu1 %v12310_v56, %s14411_s29  ;;  %s14413_s29 = smov 16  }
 0x6d6   : > { %v1108_v20 = vpop.xlane.xlu1 %1107 }
 0x6d7   : > { %v1109_v21 = vsub.f32 %v1103_v17, %v1108_v20 }
 0x6d9   : > { %v1110_v22 = vmul.f32 1.442695, %v1109_v21 }
 0x6da   : > { %v1118_v23 = vpop.permute.xlu1 %1117 }
 0x6db   : > { %11724 = vpow2.f32 %v1110_v22  ;;  %10794 = vmatpush3.msra.mxu1 %v1118_v23 }
 0x6dc   : > { %10798 = vmatprep.subr.mxu1 %v11977_v1 }
 0x6de   : > { %v1196_v29 = vpop.permute.xlu1 %1195 }
 0x6e2   : > { %v1194_v31 = vpop.permute.xlu1 %1193 }
 0x6e8   : > { %v11725_v24 = vpop.eup %11724 }
 0x6e9   : > { %v1112_v25 = vsel %vm14445_vm4, %v11725_v24, 0.0 }
 0x6ea   : > { %1113 = vadd.xlane.f32.xlu0 %v1112_v25 }
 0x700   : > { %1282 = vrot.lane.b32.xlu0 %v12310_v56, %s14405_s30  ;;  %s14407_s30 = smov 104  }
 0x773   : > { %v1114_v26 = vpop.xlane.xlu0 %1113 }
 0x774   : > { %11726 = vrcp.f32 %v1114_v26 }
 0x777   : > { %v1283_v32 = vpop.permute.xlu0 %1282 }
 0x781   : > { %v11727_v27 = vpop.eup %11726 }
 0x782   : > { %v1116_v30 = vmul.f32 %v11727_v27, %v11725_v24 }
 0x784   : > { %10796 = vmatmul.mubr.msk.f32.vlgmr.msra.gmra.mxu1 %vm14445_vm4, %v1116_v30  ;;  %v1656_v30 = vld [vmem:[%s14389_s12 + $0x10] sm:$0xff] }
 0x785   : > { %10799 = vmatpush3.xpose.msk.msra.mxu1 %vm14445_vm4, %v1196_v29  ;;  %10800 = vmatprep.mubr.msk.f32.mxu1 %vm14446_vm3, %v11977_v1  ;;  %v1657_v29 = vld [vmem:[%s14389_s12 + $0x18] sm:$0xff] }
 0x786   : > { %10803 = vmatprep.subr.mxu1 %v11977_v1 }
 0x788   : > { %10801 = vmatmul.mubr.msk.f32.vlgmr.msra.gmra.mxu1 %vm14445_vm4, %v1194_v31  ;;  %v1655_v31 = vld [vmem:[%s14389_s12 + $0x8] sm:$0xff] }
 0x789   : > { %10804 = vmatpush3.msra.mxu1 %v1283_v32  ;;  %10805 = vmatprep.mubr.msk.f32.mxu1 %vm14446_vm3, %v11977_v1  ;;  %v1654_v32 = vld [vmem:[%s14389_s12] sm:$0xff] }
 0x78a   : > { %10808 = vmatprep.subr.mxu1 %v11977_v1 }
 0x844   : > { %v1189_v33 = vpop.f32.mrf.mxu1 }
 0x846   : > { %v10797_v34 = vpop.f32.mrf.mxu1 }
 0x848   : > { %v1267_v35 = vpop.f32.mrf.mxu1 }
 0x849   : > { %v1268_v37 = vadd.f32 %v1267_v35, %v12327_v62 }
 0x84a   : > { %v10802_v38 = vpop.f32.mrf.mxu1 }
 0x84b   : > { %v1271_v39 = vsel %vm14445_vm4, %v1268_v37, -inf  ;;  %v10004_v38 = vld [vmem:[%s14387_s10] ss:$0 sm:$0xff] }
 0x84c   : > { %1272 = vmax.xlane.f32.xlu1 %v1271_v39 }
 0x8d5   : > { %v1273_v40 = vpop.xlane.xlu1 %1272 }
 0x8d6   : > { %v1274_v41 = vsub.f32 %v1268_v37, %v1273_v40  ;;  %v10005_v40 = vld [vmem:[%s14482_s11] ss:$0 sm:$0xff] }
 0x8d8   : > { %v1275_v42 = vmul.f32 1.442695, %v1274_v41 }
 0x8da   : > { %11728 = vpow2.f32 %v1275_v42 }
 0x8e7   : > { %v11729_v43 = vpop.eup %11728 }
 0x8e8   : > { %v1277_v44 = vsel %vm14445_vm4, %v11729_v43, 0.0 }
 0x8e9   : > { %1278 = vadd.xlane.f32.xlu0 %v1277_v44  ;;  %v1779_v44 = vld [vmem:[%s14391_s14 + $0x70] sm:$0xff] }
 0x8ff   : > { %1360 = vrot.lane.b32.xlu0 %v12310_v56, %s14409_s0  ;;  %s14415_s0 = smov 8  }
 0x903   : > { %1358 = vrot.lane.b32.xlu0 %v12310_v56, %s14407_s30  ;;  %s14417_s30 = smov 40  }
 0x972   : > { %v1279_v45 = vpop.xlane.xlu0 %1278 }
 0x973   : > { %11730 = vrcp.f32 %v1279_v45  ;;  %v1778_v45 = vld [vmem:[%s14391_s14 + $0x68] sm:$0xff] }
 0x976   : > { %v1361_v47 = vpop.permute.xlu0 %1360 }
 0x97a   : > { %v1359_v49 = vpop.permute.xlu0 %1358 }
 0x980   : > { %v11731_v46 = vpop.eup %11730 }
 0x981   : > { %v1281_v48 = vmul.f32 %v11731_v46, %v11729_v43  ;;  %v1780_v43 = vld [vmem:[%s14391_s14 + $0x78] sm:$0xff]  ;;  %v1777_v46 = vld [vmem:[%s14391_s14 + $0x60] sm:$0xff] }
 0x983   : > { %10806 = vmatmul.mubr.msk.f32.vlgmr.msra.gmra.mxu1 %vm14445_vm4, %v1281_v48  ;;  %v1775_v48 = vld [vmem:[%s14391_s14 + $0x50] sm:$0xff] }
 0x984   : > { %10809 = vmatpush3.xpose.msk.msra.mxu1 %vm14445_vm4, %v1361_v47  ;;  %10810 = vmatprep.mubr.msk.f32.mxu1 %vm14446_vm3, %v11977_v1  ;;  %v1776_v47 = vld [vmem:[%s14391_s14 + $0x58] sm:$0xff] }
 0x985   : > { %10813 = vmatprep.subr.mxu1 %v11977_v1 }
 0x987   : > { %10811 = vmatmul.mubr.msk.f32.vlgmr.msra.gmra.mxu1 %vm14445_vm4, %v1359_v49  ;;  %v1774_v49 = vld [vmem:[%s14391_s14 + $0x48] sm:$0xff] }
 0x988   : > { %10815 = vmatprep.mubr.msk.f32.mxu1 %vm14446_vm3, %v11977_v1 }
 0xa43   : > { %v1354_v50 = vpop.f32.mrf.mxu1 }
 0xa45   : > { %v10807_v51 = vpop.f32.mrf.mxu1 }
 0xa46   : > { %v1772_v51 = vld [vmem:[%s14391_s14 + $0x38] sm:$0xff] }
 0xa47   : > { %v1432_v52 = vpop.f32.mrf.mxu1 }
 0xa48   : > { %v1433_v53 = vadd.f32 %v1432_v52, %v12327_v62  ;;  %v1771_v52 = vld [vmem:[%s14391_s14 + $0x30] sm:$0xff] }
 0xa49   : > { %v10812_v54 = vpop.f32.mrf.mxu1 }
 0xa4a   : > { %v1436_v55 = vsel %vm14445_vm4, %v1433_v53, -inf  ;;  %v1769_v54 = vld [vmem:[%s14391_s14 + $0x20] sm:$0xff] }
 0xa4b   : > { %1437 = vmax.xlane.f32.xlu1 %v1436_v55  ;;  %v1768_v55 = vld [vmem:[%s14391_s14 + $0x18] sm:$0xff] }
 0xa5c   : > { %1447 = vrot.lane.b32.xlu1 %v12310_v56, %s14417_s30  ;;  %s14490_s30 = smov 112  }
 0xa60   : > { %1524 = vrot.lane.b32.xlu1 %v1189_v33, %s14415_s0  ;;  %s14491_s0 = smov 72  }
 0xa64   : > { %1528 = vrot.lane.b32.xlu1 %v1354_v50, %s14413_s29  ;;  %v1773_v50 = vld [vmem:[%s14391_s14 + $0x40] sm:$0xff]  ;;  %s14492_s29 = smov 104  }
 0xad4   : > { %v1438_v57 = vpop.xlane.xlu1 %1437 }
 0xad5   : > { %v1439_v58 = vsub.f32 %v1433_v53, %v1438_v57  ;;  %v1770_v53 = vld [vmem:[%s14391_s14 + $0x28] sm:$0xff]  ;;  %v1767_v57 = vld [vmem:[%s14391_s14 + $0x10] sm:$0xff] }
 0xad7   : > { %v1440_v59 = vmul.f32 1.442695, %v1439_v58  ;;  %v1766_v58 = vld [vmem:[%s14391_s14 + $0x8] sm:$0xff] }
 0xad8   : > { %v1448_v63 = vpop.permute.xlu1 %1447 }
 0xad9   : > { %11732 = vpow2.f32 %v1440_v59  ;;  %10814 = vmatpush3.msra.mxu1 %v1448_v63  ;;  %v1765_v59 = vld [vmem:[%s14391_s14] sm:$0xff] }
 0xada   : > { %10818 = vmatprep.subr.mxu1 %v11977_v1  ;;  %v10006_v63 = vld [vmem:[%s14483_s13] ss:$0 sm:$0xff] }
 0xadc   : > { %v1525_v11 = vpop.permute.xlu1 %1524 }
 0xadd   : > { %v1535_v13 = vsel %vm14445_vm4, %v12344_v14, %v1525_v11 }
 0xae0   : > { %v1529_v12 = vpop.permute.xlu1 %1528 }
 0xae1   : > { %v1537_v15 = vsel %vm14444_vm6, %v1535_v13, %v1529_v12 }
 0xae6   : > { %v11733_v0 = vpop.eup %11732 }
 0xae7   : > { %v1442_v2 = vsel %vm14445_vm4, %v11733_v0, 0.0 }
 0xae8   : > { %1443 = vadd.xlane.f32.xlu0 %v1442_v2 }
 0xb71   : > { %v1444_v3 = vpop.xlane.xlu0 %1443 }
 0xb72   : > { %11734 = vrcp.f32 %v1444_v3 }
 0xb7f   : > { %v11735_v56 = vpop.eup %11734 }
 0xb80   : > { %v1446_v4 = vmul.f32 %v11735_v56, %v11733_v0 }
 0xb82   : > { %10816 = vmatmul.mubr.msk.f32.vlgmr.msra.gmra.mxu1 %vm14445_vm4, %v1446_v4 }
 0xb83   : > { %10826 = vmatprep.mubr.msk.f32.mxu1 %vm14446_vm3, %v11977_v1  ;;  %10819 = vmatpush3.msra.mxu1 %v1543_v5 }
 0xb84   : > { %10820 = vmatprep.subr.mxu1 %v11977_v1 }
 0xb85   : > { %10821 = vmatpush3.msra.mxu1 %v1542_v6 }
 0xb86   : > { %10822 = vmatprep.subr.mxu1 %v11977_v1 }
 0xb87   : > { %10823 = vmatpush3.msra.mxu1 %v1541_v7 }
 0xb88   : > { %10824 = vmatprep.subr.mxu1 %v11977_v1 }
 0xb89   : > { %10825 = vmatpush3.msra.mxu1 %v1540_v8 }
 0xb8a   : > { %10829 = vmatprep.subr.mxu1 %v11977_v1 }
 0xc42   : > { %v1519_v9 = vpop.f32.mrf.mxu1 }
 0xc43   : > { %1532 = vrot.lane.b32.xlu1 %v1519_v9, %s14427_s27  ;;  %s14486_s27 = smov 88  }
 0xc44   : > { %v10817_v10 = vpop.f32.mrf.mxu1 }
 0xcb5   : > { %v1533_v16 = vpop.permute.xlu1 %1532 }
 0xcb6   : > { %v1539_v17 = vsel %vm14443_vm7, %v1537_v15, %v1533_v16 }
 0xcb7   : > { %10827 = vmatmul.mubr.msk.f32.vlgmr.msra.gmra.mxu1 %vm14448_vm2, %v1539_v17 }
 0xcb8   : > { %10837 = vmatprep.mubr.msk.f32.mxu1 %vm14446_vm3, %v11977_v1  ;;  %10830 = vmatpush3.msra.mxu1 %v1657_v29 }
 0xcb9   : > { %10831 = vmatprep.subr.mxu1 %v11977_v1 }
 0xcba   : > { %10832 = vmatpush3.msra.mxu1 %v1656_v30  ;;  %v10008_v30 = vld [vmem:[%s14484_s15] ss:$0 sm:$0xff] }
 0xcbb   : > { %10833 = vmatprep.subr.mxu1 %v11977_v1 }
 0xcbc   : > { %10834 = vmatpush3.msra.mxu1 %v1655_v31 }
 0xcbd   : > { %10835 = vmatprep.subr.mxu1 %v11977_v1 }
 0xcbe   : > { %10836 = vmatpush3.msra.mxu1 %v1654_v32 }
 0xcbf   : > { %10840 = vmatprep.subr.mxu1 %v11977_v1 }
 0xd77   : > { %v1620_v19 = vpop.f32.mrf.mxu1 }
 0xd78   : > { %v1621_v20 = vadd.f32 %v10002_v18, %v1620_v19 }
 0xd79   : > { %v10828_v21 = vpop.f32.mrf.mxu1 }
 0xd7a   : > { %v12421_v22 = vadd.f32 %v1621_v20, %v12275_v36 }
 0xd7c   : > { %v1627_v14 = vsel %vm14448_vm2, %v12421_v22, 0.0 }
 0xd7d   : > { %1628 = vadd.xlane.f32.xlu0 %v1627_v14 }
 0xe06   : > { %v1629_v23 = vpop.xlane.xlu0 %1628 }
 0xe07   : > { %v1630_v24 = vmul.f32 0.03125, %v1629_v23 }
 0xe09   : > { %v1631_v25 = vsub.f32 %v12421_v22, %v1630_v24 }
 0xe0b   : > { %v1632_v26 = vmul.f32 %v1631_v25, %v1631_v25 }
 0xe0d   : > { %v1633_v27 = vsel %vm14448_vm2, %v1632_v26, 0.0 }
 0xe0e   : > { %1634 = vadd.xlane.f32.xlu1 %v1633_v27 }
 0xe97   : > { %v1635_v33 = vpop.xlane.xlu1 %1634 }
 0xe98   : > { %v1636_v34 = vmul.f32 0.03125, %v1635_v33 }
 0xe9a   : > { %v1637_v35 = vadd.f32 1e-05, %v1636_v34 }
 0xe9c   : > { %11736 = vrsqrt.f32 %v1637_v35 }
 0xea9   : > { %v11737_v37 = vpop.eup %11736 }
 0xeaa   : > { %v1639_v39 = vmul.f32 %v11737_v37, %v1631_v25 }
 0xeac   : > { %v1646_v41 = vmul.f32 %v10004_v38, %v1639_v39 }
 0xeae   : > { %v1653_v42 = vadd.f32 %v10005_v40, %v1646_v41 }
 0xeb0   : > { %10838 = vmatmul.mubr.msk.f32.vlgmr.msra.gmra.mxu1 %vm14448_vm2, %v1653_v42  ;;  %v10016_v42 = vld [vmem:[%s14384_s7 + $0x38] sm:$0xff] }
 0xeb1   : > { %10872 = vmatprep.mubr.msk.f32.mxu1 %vm14446_vm3, %v11977_v1  ;;  %10841 = vmatpush3.msra.mxu1 %v1780_v43  ;;  %v10014_v43 = vld [vmem:[%s14384_s7 + $0x28] sm:$0xff] }
 0xeb2   : > { %10842 = vmatprep.subr.mxu1 %v11977_v1  ;;  %10876 = vmatpush3.msra.mxu0 %v10016_v42 }
 0xeb3   : > { %10843 = vmatpush3.msra.mxu1 %v1779_v44  ;;  %10877 = vmatprep.subr.mxu0 %v11977_v1  ;;  %v10013_v44 = vld [vmem:[%s14384_s7 + $0x20] sm:$0xff] }
 0xeb4   : > { %10844 = vmatprep.subr.mxu1 %v11977_v1 }
 0xeb5   : > { %10845 = vmatpush3.msra.mxu1 %v1778_v45 }
 0xeb6   : > { %10846 = vmatprep.subr.mxu1 %v11977_v1 }
 0xeb7   : > { %10847 = vmatpush3.msra.mxu1 %v1777_v46 }
 0xeb8   : > { %10848 = vmatprep.subr.mxu1 %v11977_v1 }
 0xeb9   : > { %10849 = vmatpush3.msra.mxu1 %v1776_v47 }
 0xeba   : > { %10850 = vmatprep.subr.mxu1 %v11977_v1 }
 0xebb   : > { %10851 = vmatpush3.msra.mxu1 %v1775_v48 }
 0xebc   : > { %10852 = vmatprep.subr.mxu1 %v11977_v1 }
 0xebd   : > { %10853 = vmatpush3.msra.mxu1 %v1774_v49  ;;  %v10011_v49 = vld [vmem:[%s14382_s5 + $0x1] ss:$0 sm:$0xff] }
 0xebe   : > { %10854 = vmatprep.subr.mxu1 %v11977_v1 }
 0xebf   : > { %10855 = vmatpush3.msra.mxu1 %v1773_v50 }
 0xec0   : > { %10856 = vmatprep.subr.mxu1 %v11977_v1 }
 0xec1   : > { %10857 = vmatpush3.msra.mxu1 %v1772_v51  ;;  %v10012_v51 = vld [vmem:[%s14383_s6 + $0x1] ss:$0 sm:$0xff] }
 0xec2   : > { %10858 = vmatprep.subr.mxu1 %v11977_v1 }
 0xec3   : > { %10859 = vmatpush3.msra.mxu1 %v1771_v52 }
 0xec4   : > { %10860 = vmatprep.subr.mxu1 %v11977_v1 }
 0xec5   : > { %10861 = vmatpush3.msra.mxu1 %v1770_v53 }
 0xec6   : > { %10862 = vmatprep.subr.mxu1 %v11977_v1 }
 0xec7   : > { %10863 = vmatpush3.msra.mxu1 %v1769_v54 }
 0xec8   : > { %10864 = vmatprep.subr.mxu1 %v11977_v1 }
 0xec9   : > { %10865 = vmatpush3.msra.mxu1 %v1768_v55 }
 0xeca   : > { %10866 = vmatprep.subr.mxu1 %v11977_v1 }
 0xecb   : > { %10867 = vmatpush3.msra.mxu1 %v1767_v57 }
 0xecc   : > { %10868 = vmatprep.subr.mxu1 %v11977_v1 }
 0xecd   : > { %10869 = vmatpush3.msra.mxu1 %v1766_v58 }
 0xece   : > { %10870 = vmatprep.subr.mxu1 %v11977_v1 }
 0xecf   : > { %10871 = vmatpush3.msra.mxu1 %v1765_v59 }
 0xed0   : > { %10886 = vmatprep.subr.mxu1 %v11977_v1 }
 0xf70   : > { %v1734_v0 = vpop.f32.mrf.mxu1 }
 0xf71   : > { %v1735_v2 = vadd.f32 %v10006_v63, %v1734_v0 }
 0xf72   : > { %v10839_v3 = vpop.f32.mrf.mxu1 }
 0xf73   : > { %v1739_v56 = vmul.f32 0.70710677, %v1735_v2  ;;  %v1738_v26 = vmul.f32 0.5, %v1735_v2 }
 0xf75   : > { %v1740_v4 = vand.u32 2147483647, %v1739_v56  ;;  %vm1760_vm8 = vcmp.ge.f32.partialorder %v1739_v56, 0.0 }
 0xf77   : > { %v1741_v5 = vmul.f32 0.3275911, %v1740_v4  ;;  %v1754_v7 = vsub.f32 0.0, %v1740_v4 }
 0xf79   : > { %v1742_v6 = vadd.f32 1.0, %v1741_v5  ;;  %v1755_v8 = vmul.f32 %v1754_v7, %v1740_v4 }
 0xf7b   : > { %11738 = vrcp.f32 %v1742_v6  ;;  %v1756_v11 = vmul.f32 1.442695, %v1755_v8 }
 0xf7d   : > { %11740 = vpow2.f32 %v1756_v11 }
 0xf88   : > { %v11739_v9 = vpop.eup %11738 }
 0xf89   : > { %v1745_v10 = vmul.f32 1.0614054, %v11739_v9 }
 0xf8a   : > { %v11741_v21 = vpop.eup %11740 }
 0xf8b   : > { %v1746_v12 = vadd.f32 -1.4531521, %v1745_v10 }
 0xf8d   : > { %v1747_v13 = vmul.f32 %v11739_v9, %v1746_v12 }
 0xf8f   : > { %v1748_v15 = vadd.f32 1.4214138, %v1747_v13 }
 0xf91   : > { %v1749_v16 = vmul.f32 %v11739_v9, %v1748_v15 }
 0xf93   : > { %v1750_v17 = vadd.f32 -0.28449672, %v1749_v16 }
 0xf95   : > { %v1751_v18 = vmul.f32 %v11739_v9, %v1750_v17 }
 0xf97   : > { %v1752_v19 = vadd.f32 0.2548296, %v1751_v18 }
 0xf99   : > { %v1753_v20 = vmul.f32 %v11739_v9, %v1752_v19 }
 0xf9b   : > { %v1758_v14 = vmul.f32 %v11741_v21, %v1753_v20 }
 0xf9d   : > { %v1759_v23 = vsub.f32 1.0, %v1758_v14 }
 0xf9f   : > { %v1761_v24 = vsub.f32 0.0, %v1759_v23 }
 0xfa1   : > { %v1762_v25 = vsel %vm1760_vm8, %v1759_v23, %v1761_v24 }
 0xfa2   : > { %v1763_v27 = vadd.f32 1.0, %v1762_v25 }
 0xfa4   : > { %v1764_v29 = vmul.f32 %v1763_v27, %v1738_v26 }
 0xfa6   : > { %10873 = vmatmul.mubr.f32.vlgmr.msra.gmra.mxu1 %v1764_v29 }
 0xfa7   : > { %10888 = vmatprep.mubr.msk.f32.mxu1 %vm14446_vm3, %v11977_v1 }
0x1066   : > { %v1854_v31 = vpop.f32.mrf.mxu1 }
0x1067   : > { %v1855_v32 = vadd.f32 %v10008_v30, %v1854_v31 }
0x1068   : > { %v10874_v33 = vpop.f32.mrf.mxu1 }
0x1069   : > { %v12525_v34 = vadd.f32 %v1855_v32, %v12421_v22  ;;  %v10015_v22 = vld [vmem:[%s14384_s7 + $0x30] sm:$0xff] }
0x106a   : > { %10878 = vmatpush3.msra.mxu0 %v10015_v22 }
0x106b   : > { %v1863_v35 = vsel %vm14448_vm2, %v12525_v34, 0.0  ;;  %10879 = vmatprep.subr.mxu0 %v11977_v1 }
0x106c   : > { %1864 = vadd.xlane.f32.xlu0 %v1863_v35  ;;  %10880 = vmatpush3.msra.mxu0 %v10014_v43 }
0x106d   : > { %10881 = vmatprep.subr.mxu0 %v11977_v1 }
0x106e   : > { %10882 = vmatpush3.msra.mxu0 %v10013_v44 }
0x106f   : > { %10891 = vmatprep.subr.mxu0 %v11977_v1 }
0x10f5   : > { %v1865_v37 = vpop.xlane.xlu0 %1864 }
0x10f6   : > { %v1866_v38 = vmul.f32 0.03125, %v1865_v37 }
0x10f8   : > { %v1867_v39 = vsub.f32 %v12525_v34, %v1866_v38 }
0x10fa   : > { %v1868_v40 = vmul.f32 %v1867_v39, %v1867_v39 }
0x10fc   : > { %v1869_v41 = vsel %vm14448_vm2, %v1868_v40, 0.0 }
0x10fd   : > { %1870 = vadd.xlane.f32.xlu0 %v1869_v41 }
0x1186   : > { %v1871_v45 = vpop.xlane.xlu0 %1870 }
0x1187   : > { %v1872_v46 = vmul.f32 0.03125, %v1871_v45 }
0x1189   : > { %v1873_v47 = vadd.f32 1e-05, %v1872_v46 }
0x118b   : > { %11742 = vrsqrt.f32 %v1873_v47 }
0x1198   : > { %v11743_v48 = vpop.eup %11742 }
0x1199   : > { %v1875_v50 = vmul.f32 %v11743_v48, %v1867_v39 }
0x119b   : > { %v1882_v52 = vmul.f32 %v10011_v49, %v1875_v50 }
0x119d   : > { %v1889_v53 = vadd.f32 %v10012_v51, %v1882_v52 }
0x119f   : > { %10884 = vmatmul.mubr.msk.f32.vlgmr.msra.gmra.mxu0 %vm14448_vm2, %v1889_v53 }
0x11a0   : > { %10893 = vmatprep.mubr.msk.f32.mxu0 %vm14446_vm3, %v11977_v1 }
0x125f   : > { %v12556_v54 = vpop.f32.mrf.mxu0 }
0x1260   : > { %2056 = vrot.lane.b32.xlu1 %v12556_v54, %s14431_s25  ;;  %1969 = vrot.lane.b32.xlu0 %v12556_v54, %s14485_s26  ;;  %s14493_s25 = smov 40  }
0x1261   : > { %v10885_v55 = vpop.f32.mrf.mxu0 }
0x1264   : > { %2134 = vrot.lane.b32.xlu1 %v12556_v54, %s14486_s27 }
0x12d2   : > { %v2057_v57 = vpop.permute.xlu1 %2056  ;;  %v1970_v58 = vpop.permute.xlu0 %1969 }
0x12d3   : > { %10887 = vmatpush3.xpose.msk.msra.mxu1 %vm14445_vm4, %v1970_v58  ;;  %10892 = vmatpush3.msra.mxu0 %v2057_v57 }
0x12d4   : > { %10896 = vmatprep.subr.mxu0 %v11977_v1  ;;  %10911 = vmatprep.subr.mxu1 %v11977_v1 }
0x12d6   : > { %10889 = vmatmul.mubr.msk.f32.vlgmr.msra.gmra.mxu1 %vm14445_vm4, %v12556_v54  ;;  %v2135_v7 = vpop.permute.xlu1 %2134 }
0x12d7   : > { %10913 = vmatprep.mubr.msk.f32.mxu1 %vm14446_vm3, %v11977_v1 }
0x1396   : > { %v2041_v59 = vpop.f32.mrf.mxu1 }
0x1397   : > { %v2042_v63 = vadd.f32 %v2041_v59, %v12327_v62 }
0x1398   : > { %v10890_v0 = vpop.f32.mrf.mxu1 }
0x1399   : > { %v2045_v2 = vsel %vm14445_vm4, %v2042_v63, -inf }
0x139a   : > { %2046 = vmax.xlane.f32.xlu0 %v2045_v2 }
0x1423   : > { %v2047_v3 = vpop.xlane.xlu0 %2046 }
0x1424   : > { %v2048_v56 = vsub.f32 %v2042_v63, %v2047_v3  ;;  %v10033_v3 = vld [vmem:[%s14385_s8 + $0x38] sm:$0xff] }
0x1426   : > { %v2049_v4 = vmul.f32 1.442695, %v2048_v56  ;;  %v10032_v56 = vld [vmem:[%s14385_s8 + $0x30] sm:$0xff] }
0x1428   : > { %11744 = vpow2.f32 %v2049_v4  ;;  %v10031_v4 = vld [vmem:[%s14385_s8 + $0x28] sm:$0xff] }
0x1435   : > { %v11745_v5 = vpop.eup %11744 }
0x1436   : > { %v2051_v6 = vsel %vm14445_vm4, %v11745_v5, 0.0 }
0x1437   : > { %2052 = vadd.xlane.f32.xlu1 %v2051_v6 }
0x1448   : > { %2132 = vrot.lane.b32.xlu1 %v12556_v54, %s14487_s23 }
0x14c0   : > { %v2053_v8 = vpop.xlane.xlu1 %2052 }
0x14c1   : > { %11746 = vrcp.f32 %v2053_v8 }
0x14c4   : > { %v2133_v11 = vpop.permute.xlu1 %2132 }
0x14ce   : > { %v11747_v9 = vpop.eup %11746 }
0x14cf   : > { %v2055_v10 = vmul.f32 %v11747_v9, %v11745_v5  ;;  %v10030_v5 = vld [vmem:[%s14385_s8 + $0x20] sm:$0xff] }
0x14d1   : > { %10894 = vmatmul.mubr.msk.f32.vlgmr.msra.gmra.mxu0 %vm14445_vm4, %v2055_v10 }
0x14d2   : > { %10897 = vmatpush3.xpose.msk.msra.mxu0 %vm14445_vm4, %v2135_v7  ;;  %10898 = vmatprep.mubr.msk.f32.mxu0 %vm14446_vm3, %v11977_v1 }
0x14d3   : > { %10901 = vmatprep.subr.mxu0 %v11977_v1 }
0x14d5   : > { %10899 = vmatmul.mubr.msk.f32.vlgmr.msra.gmra.mxu0 %vm14445_vm4, %v2133_v11 }
0x14d6   : > { %10903 = vmatprep.mubr.msk.f32.mxu0 %vm14446_vm3, %v11977_v1 }
0x1591   : > { %v12584_v12 = vpop.f32.mrf.mxu0 }
0x1593   : > { %v10895_v13 = vpop.f32.mrf.mxu0 }
0x1595   : > { %v2206_v15 = vpop.f32.mrf.mxu0 }
0x1596   : > { %v2207_v16 = vadd.f32 %v2206_v15, %v12327_v62 }
0x1597   : > { %v10900_v17 = vpop.f32.mrf.mxu0 }
0x1598   : > { %v2210_v18 = vsel %vm14445_vm4, %v2207_v16, -inf }
0x1599   : > { %2211 = vmax.xlane.f32.xlu0 %v2210_v18  ;;  %v10035_v18 = vld [vmem:[%s14481_s9 + $0x1] ss:$0 sm:$0xff]  ;;  %s14498_s9 = smov 64  }
0x15af   : > { %2221 = vrot.lane.b32.xlu0 %v12556_v54, %s14488_s1 }
0x15b3   : > { %2299 = vrot.lane.b32.xlu0 %v12556_v54, %s14489_s3 }
0x15b7   : > { %2297 = vrot.lane.b32.xlu0 %v12556_v54, %s14490_s30 }
0x15bb   : > { %2464 = vrot.lane.b32.xlu0 %v12556_v54, %s14491_s0 }
0x1622   : > { %v2212_v19 = vpop.xlane.xlu0 %2211 }
0x1623   : > { %v2213_v20 = vsub.f32 %v2207_v16, %v2212_v19 }
0x1625   : > { %v2214_v21 = vmul.f32 1.442695, %v2213_v20 }
0x1626   : > { %v2222_v14 = vpop.permute.xlu0 %2221 }
0x1627   : > { %11748 = vpow2.f32 %v2214_v21  ;;  %10902 = vmatpush3.msra.mxu0 %v2222_v14 }
0x1628   : > { %10906 = vmatprep.subr.mxu0 %v11977_v1 }
0x162a   : > { %v2300_v26 = vpop.permute.xlu0 %2299 }
0x162e   : > { %v2298_v29 = vpop.permute.xlu0 %2297 }
0x1632   : > { %v2465_v31 = vpop.permute.xlu0 %2464 }
0x1634   : > { %v11749_v23 = vpop.eup %11748 }
0x1635   : > { %v2216_v24 = vsel %vm14445_vm4, %v11749_v23, 0.0 }
0x1636   : > { %2217 = vadd.xlane.f32.xlu1 %v2216_v24 }
0x1647   : > { %2462 = vrot.lane.b32.xlu1 %v12556_v54, %s14492_s29 }
0x16bf   : > { %v2218_v25 = vpop.xlane.xlu1 %2217 }
0x16c0   : > { %11750 = vrcp.f32 %v2218_v25 }
0x16c3   : > { %v2463_v32 = vpop.permute.xlu1 %2462 }
0x16cd   : > { %v11751_v27 = vpop.eup %11750 }
0x16ce   : > { %v2220_v30 = vmul.f32 %v11751_v27, %v11749_v23 }
0x16d0   : > { %10904 = vmatmul.mubr.msk.f32.vlgmr.msra.gmra.mxu0 %vm14445_vm4, %v2220_v30  ;;  %v10042_v30 = vld [vmem:[%s14389_s12 + $0x28] sm:$0xff] }
0x16d1   : > { %10907 = vmatpush3.xpose.msk.msra.mxu0 %vm14445_vm4, %v2300_v26  ;;  %10908 = vmatprep.mubr.msk.f32.mxu0 %vm14446_vm3, %v11977_v1 }
0x16d2   : > { %10916 = vmatprep.subr.mxu0 %v11977_v1 }
0x16d4   : > { %10909 = vmatmul.mubr.msk.f32.vlgmr.msra.gmra.mxu0 %vm14445_vm4, %v2298_v29  ;;  %v10044_v29 = vld [vmem:[%s14389_s12 + $0x38] sm:$0xff] }
0x16d5   : > { %10917 = vmatpush3.xpose.msk.msra.mxu0 %vm14445_vm4, %v2465_v31  ;;  %10918 = vmatprep.mubr.msk.f32.mxu0 %vm14446_vm3, %v11977_v1  ;;  %v10041_v31 = vld [vmem:[%s14389_s12 + $0x20] sm:$0xff] }
0x16d6   : > { %10926 = vmatprep.subr.mxu0 %v11977_v1 }
0x16d8   : > { %10919 = vmatmul.mubr.msk.f32.vlgmr.msra.gmra.mxu0 %vm14445_vm4, %v2463_v32 }
0x16d9   : > { %10934 = vmatprep.mubr.msk.f32.mxu0 %vm14446_vm3, %v11977_v1  ;;  %10927 = vmatpush3.msra.mxu0 %v10033_v3 }
0x16da   : > { %10928 = vmatprep.subr.mxu0 %v11977_v1 }
0x16db   : > { %10929 = vmatpush3.msra.mxu0 %v10032_v56 }
0x16dc   : > { %10930 = vmatprep.subr.mxu0 %v11977_v1 }
0x16dd   : > { %10931 = vmatpush3.msra.mxu0 %v10031_v4 }
0x16de   : > { %10932 = vmatprep.subr.mxu0 %v11977_v1 }
0x16df   : > { %10933 = vmatpush3.msra.mxu0 %v10030_v5 }
0x16e0   : > { %10948 = vmatprep.subr.mxu0 %v11977_v1 }
0x1790   : > { %v2293_v33 = vpop.f32.mrf.mxu0 }
0x1792   : > { %v10905_v35 = vpop.f32.mrf.mxu0 }
0x1794   : > { %v2371_v37 = vpop.f32.mrf.mxu0 }
0x1795   : > { %v2372_v38 = vadd.f32 %v2371_v37, %v12327_v62 }
0x1796   : > { %v10910_v39 = vpop.f32.mrf.mxu0 }
0x1797   : > { %v2375_v40 = vsel %vm14445_vm4, %v2372_v38, -inf }
0x1798   : > { %2376 = vmax.xlane.f32.xlu0 %v2375_v40  ;;  %v2536_v41 = vpop.f32.mrf.mxu0  ;;  %v10040_v40 = vld [vmem:[%s14482_s11 + $0x1] ss:$0 sm:$0xff] }
0x1799   : > { %v2537_v42 = vadd.f32 %v2536_v41, %v12327_v62 }
0x179a   : > { %v10920_v22 = vpop.f32.mrf.mxu0 }
0x179b   : > { %v2540_v43 = vsel %vm14445_vm4, %v2537_v42, -inf  ;;  %v10063_v22 = vld [vmem:[%s14391_s14 + $0xf8] sm:$0xff] }
0x179c   : > { %2541 = vmax.xlane.f32.xlu1 %v2540_v43  ;;  %v10062_v43 = vld [vmem:[%s14391_s14 + $0xf0] sm:$0xff] }
0x17ad   : > { %2551 = vrot.lane.b32.xlu1 %v12556_v54, %s14493_s25 }
0x1821   : > { %v2377_v44 = vpop.xlane.xlu0 %2376 }
0x1822   : > { %v2378_v45 = vsub.f32 %v2372_v38, %v2377_v44  ;;  %v10039_v38 = vld [vmem:[%s14387_s10 + $0x1] ss:$0 sm:$0xff]  ;;  %v10061_v44 = vld [vmem:[%s14391_s14 + $0xe8] sm:$0xff] }
0x1824   : > { %v2379_v46 = vmul.f32 1.442695, %v2378_v45  ;;  %v10060_v45 = vld [vmem:[%s14391_s14 + $0xe0] sm:$0xff] }
0x1825   : > { %v2542_v47 = vpop.xlane.xlu1 %2541 }
0x1826   : > { %11752 = vpow2.f32 %v2379_v46  ;;  %v2543_v48 = vsub.f32 %v2537_v42, %v2542_v47  ;;  %v10059_v46 = vld [vmem:[%s14391_s14 + $0xd8] sm:$0xff]  ;;  %v10058_v47 = vld [vmem:[%s14391_s14 + $0xd0] sm:$0xff] }
0x1828   : > { %v2544_v49 = vmul.f32 1.442695, %v2543_v48  ;;  %v10057_v48 = vld [vmem:[%s14391_s14 + $0xc8] sm:$0xff] }
0x1829   : > { %v2552_v0 = vpop.permute.xlu1 %2551 }
0x182a   : > { %11754 = vpow2.f32 %v2544_v49  ;;  %v10056_v49 = vld [vmem:[%s14391_s14 + $0xc0] sm:$0xff] }
0x1833   : > { %v11753_v50 = vpop.eup %11752 }
0x1834   : > { %v2381_v51 = vsel %vm14445_vm4, %v11753_v50, 0.0 }
0x1835   : > { %2382 = vadd.xlane.f32.xlu0 %v2381_v51  ;;  %v10054_v51 = vld [vmem:[%s14391_s14 + $0xb0] sm:$0xff] }
0x1837   : > { %v11755_v52 = vpop.eup %11754 }
0x1838   : > { %v2546_v53 = vsel %vm14445_vm4, %v11755_v52, 0.0 }
0x1839   : > { %2547 = vadd.xlane.f32.xlu0 %v2546_v53  ;;  %v10052_v53 = vld [vmem:[%s14391_s14 + $0xa0] sm:$0xff] }
0x184f   : > { %2386 = vrot.lane.b32.xlu0 %v12556_v54, %s14494_s21 }
0x1853   : > { %2628 = vrot.lane.b32.xlu0 %v2293_v33, %s14495_s24 }
0x18be   : > { %v2383_v55 = vpop.xlane.xlu0 %2382 }
0x18bf   : > { %11756 = vrcp.f32 %v2383_v55  ;;  %v10051_v55 = vld [vmem:[%s14391_s14 + $0x98] sm:$0xff] }
0x18c2   : > { %v2548_v57 = vpop.xlane.xlu0 %2547 }
0x18c3   : > { %11758 = vrcp.f32 %v2548_v57  ;;  %v10050_v57 = vld [vmem:[%s14391_s14 + $0x90] sm:$0xff] }
0x18c6   : > { %v2387_v58 = vpop.permute.xlu0 %2386 }
0x18c7   : > { %10912 = vmatpush3.msra.mxu1 %v2387_v58  ;;  %v10049_v58 = vld [vmem:[%s14391_s14 + $0x88] sm:$0xff] }
0x18c8   : > { %10921 = vmatprep.subr.mxu1 %v11977_v1 }
0x18ca   : > { %v2629_v10 = vpop.permute.xlu0 %2628 }
0x18cb   : > { %v2639_v13 = vsel %vm14445_vm4, %v12584_v12, %v2629_v10 }
0x18cc   : > { %v11757_v59 = vpop.eup %11756 }
0x18cd   : > { %v2385_v63 = vmul.f32 %v11757_v59, %v11753_v50  ;;  %v10055_v50 = vld [vmem:[%s14391_s14 + $0xb8] sm:$0xff]  ;;  %v10048_v59 = vld [vmem:[%s14391_s14 + $0x80] sm:$0xff] }
0x18cf   : > { %10914 = vmatmul.mubr.msk.f32.vlgmr.msra.gmra.mxu1 %vm14445_vm4, %v2385_v63  ;;  %v10046_v63 = vld [vmem:[%s14483_s13 + $0x1] ss:$0 sm:$0xff] }
0x18d0   : > { %v11759_v2 = vpop.eup %11758  ;;  %10922 = vmatpush3.msra.mxu1 %v2552_v0  ;;  %10923 = vmatprep.mubr.msk.f32.mxu1 %vm14446_vm3, %v11977_v1 }
0x18d1   : > { %v2550_v54 = vmul.f32 %v11759_v2, %v11755_v52  ;;  %10937 = vmatprep.subr.mxu1 %v11977_v1  ;;  %v10053_v52 = vld [vmem:[%s14391_s14 + $0xa8] sm:$0xff] }
0x18d3   : > { %10924 = vmatmul.mubr.msk.f32.vlgmr.msra.gmra.mxu1 %vm14445_vm4, %v2550_v54 }
0x18d4   : > { %10945 = vmatprep.mubr.msk.f32.mxu1 %vm14446_vm3, %v11977_v1  ;;  %10938 = vmatpush3.msra.mxu1 %v10044_v29 }
0x18d5   : > { %10939 = vmatprep.subr.mxu1 %v11977_v1 }
0x198f   : > { %v2458_v6 = vpop.f32.mrf.mxu1 }
0x1990   : > { %2632 = vrot.lane.b32.xlu0 %v2458_v6, %s14496_s17 }
0x1991   : > { %v10915_v7 = vpop.f32.mrf.mxu1 }
0x1993   : > { %v2623_v8 = vpop.f32.mrf.mxu1 }
0x1994   : > { %2636 = vrot.lane.b32.xlu1 %v2623_v8, %s14497_s16 }
0x1995   : > { %v10925_v9 = vpop.f32.mrf.mxu1 }
0x1a02   : > { %v2633_v11 = vpop.permute.xlu0 %2632 }
0x1a03   : > { %v2640_v15 = vsel %vm14444_vm6, %v2639_v13, %v2633_v11 }
0x1a06   : > { %v2637_v16 = vpop.permute.xlu1 %2636 }
0x1a07   : > { %v2641_v17 = vsel %vm14443_vm7, %v2640_v15, %v2637_v16 }
0x1a08   : > { %10935 = vmatmul.mubr.msk.f32.vlgmr.msra.gmra.mxu0 %vm14448_vm2, %v2641_v17 }
0x1a09   : > { %10980 = vmatprep.mubr.msk.f32.mxu0 %vm14446_vm3, %v11977_v1  ;;  %10949 = vmatpush3.msra.mxu0 %v10063_v22  ;;  %v10071_v22 = vld [vmem:[%s14384_s7 + $0x48] sm:$0xff] }
0x1a0a   : > { %10950 = vmatprep.subr.mxu0 %v11977_v1 }
0x1a0b   : > { %10951 = vmatpush3.msra.mxu0 %v10062_v43  ;;  %v10070_v43 = vld [vmem:[%s14384_s7 + $0x40] sm:$0xff] }
0x1a0c   : > { %10952 = vmatprep.subr.mxu0 %v11977_v1 }
0x1a0d   : > { %10953 = vmatpush3.msra.mxu0 %v10061_v44 }
0x1a0e   : > { %10954 = vmatprep.subr.mxu0 %v11977_v1 }
0x1a0f   : > { %10955 = vmatpush3.msra.mxu0 %v10060_v45 }
0x1a10   : > { %10956 = vmatprep.subr.mxu0 %v11977_v1 }
0x1a11   : > { %10957 = vmatpush3.msra.mxu0 %v10059_v46 }
0x1a12   : > { %10958 = vmatprep.subr.mxu0 %v11977_v1 }
0x1a13   : > { %10959 = vmatpush3.msra.mxu0 %v10058_v47 }
0x1a14   : > { %10960 = vmatprep.subr.mxu0 %v11977_v1 }
0x1a15   : > { %10961 = vmatpush3.msra.mxu0 %v10057_v48  ;;  %v10068_v48 = vld [vmem:[%s14382_s5 + $0x2] ss:$0 sm:$0xff] }
0x1a16   : > { %10962 = vmatprep.subr.mxu0 %v11977_v1 }
0x1a17   : > { %10963 = vmatpush3.msra.mxu0 %v10056_v49 }
0x1a18   : > { %10964 = vmatprep.subr.mxu0 %v11977_v1 }
0x1a19   : > { %10965 = vmatpush3.msra.mxu0 %v10055_v50  ;;  %v10069_v50 = vld [vmem:[%s14383_s6 + $0x2] ss:$0 sm:$0xff] }
0x1a1a   : > { %10966 = vmatprep.subr.mxu0 %v11977_v1 }
0x1a1b   : > { %10967 = vmatpush3.msra.mxu0 %v10054_v51 }
0x1a1c   : > { %10968 = vmatprep.subr.mxu0 %v11977_v1 }
0x1a1d   : > { %10969 = vmatpush3.msra.mxu0 %v10053_v52 }
0x1a1e   : > { %10970 = vmatprep.subr.mxu0 %v11977_v1 }
0x1a1f   : > { %10971 = vmatpush3.msra.mxu0 %v10052_v53 }
0x1a20   : > { %10972 = vmatprep.subr.mxu0 %v11977_v1 }
0x1a21   : > { %10973 = vmatpush3.msra.mxu0 %v10051_v55 }
0x1a22   : > { %10974 = vmatprep.subr.mxu0 %v11977_v1 }
0x1a23   : > { %10975 = vmatpush3.msra.mxu0 %v10050_v57 }
0x1a24   : > { %10976 = vmatprep.subr.mxu0 %v11977_v1 }
0x1a25   : > { %10977 = vmatpush3.msra.mxu0 %v10049_v58 }
0x1a26   : > { %10978 = vmatprep.subr.mxu0 %v11977_v1 }
0x1a27   : > { %10979 = vmatpush3.msra.mxu0 %v10048_v59 }
0x1a28   : > { %11024 = vmatprep.subr.mxu0 %v11977_v1 }
0x1ac8   : > { %v2724_v19 = vpop.f32.mrf.mxu0 }
0x1ac9   : > { %v2725_v20 = vadd.f32 %v10035_v18, %v2724_v19 }
0x1aca   : > { %v10936_v21 = vpop.f32.mrf.mxu0 }
0x1acb   : > { %v12661_v14 = vadd.f32 %v2725_v20, %v12525_v34  ;;  %v10043_v34 = vld [vmem:[%s14389_s12 + $0x30] sm:$0xff] }
0x1acc   : > { %10940 = vmatpush3.msra.mxu1 %v10043_v34  ;;  %v10065_v34 = vld [vmem:[%s14484_s15 + $0x1] ss:$0 sm:$0xff] }
0x1acd   : > { %v2733_v12 = vsel %vm14448_vm2, %v12661_v14, 0.0  ;;  %10941 = vmatprep.subr.mxu1 %v11977_v1 }
0x1ace   : > { %2734 = vadd.xlane.f32.xlu0 %v2733_v12  ;;  %10942 = vmatpush3.msra.mxu1 %v10042_v30 }
0x1acf   : > { %10943 = vmatprep.subr.mxu1 %v11977_v1 }
0x1ad0   : > { %10944 = vmatpush3.msra.mxu1 %v10041_v31 }
0x1ad1   : > { %10983 = vmatprep.subr.mxu1 %v11977_v1 }
0x1b57   : > { %v2735_v23 = vpop.xlane.xlu0 %2734 }
0x1b58   : > { %v2736_v24 = vmul.f32 0.03125, %v2735_v23 }
0x1b5a   : > { %v2737_v25 = vsub.f32 %v12661_v14, %v2736_v24 }
0x1b5c   : > { %v2738_v26 = vmul.f32 %v2737_v25, %v2737_v25 }
0x1b5e   : > { %v2739_v27 = vsel %vm14448_vm2, %v2738_v26, 0.0 }
0x1b5f   : > { %2740 = vadd.xlane.f32.xlu1 %v2739_v27 }
0x1be8   : > { %v2741_v32 = vpop.xlane.xlu1 %2740 }
0x1be9   : > { %v2742_v33 = vmul.f32 0.03125, %v2741_v32 }
0x1beb   : > { %v2743_v35 = vadd.f32 1e-05, %v2742_v33 }
0x1bed   : > { %11760 = vrsqrt.f32 %v2743_v35 }
0x1bfa   : > { %v11761_v37 = vpop.eup %11760 }
0x1bfb   : > { %v2745_v39 = vmul.f32 %v11761_v37, %v2737_v25 }
0x1bfd   : > { %v2752_v41 = vmul.f32 %v10039_v38, %v2745_v39 }
0x1bff   : > { %v2759_v42 = vadd.f32 %v10040_v40, %v2752_v41 }
0x1c01   : > { %10946 = vmatmul.mubr.msk.f32.vlgmr.msra.gmra.mxu1 %vm14448_vm2, %v2759_v42  ;;  %v10073_v42 = vld [vmem:[%s14384_s7 + $0x58] sm:$0xff] }
0x1c02   : > { %10991 = vmatprep.mubr.msk.f32.mxu1 %vm14446_vm3, %v11977_v1  ;;  %10984 = vmatpush3.msra.mxu1 %v10073_v42 }
0x1c03   : > { %10985 = vmatprep.subr.mxu1 %v11977_v1 }
0x1cc1   : > { %v2842_v0 = vpop.f32.mrf.mxu1 }
0x1cc2   : > { %v2843_v2 = vadd.f32 %v10046_v63, %v2842_v0 }
0x1cc3   : > { %v10947_v54 = vpop.f32.mrf.mxu1 }
0x1cc4   : > { %v2847_v3 = vmul.f32 0.70710677, %v2843_v2  ;;  %v2846_v26 = vmul.f32 0.5, %v2843_v2 }
0x1cc6   : > { %v2848_v56 = vand.u32 2147483647, %v2847_v3  ;;  %vm2868_vm9 = vcmp.ge.f32.partialorder %v2847_v3, 0.0 }
0x1cc8   : > { %v2849_v4 = vmul.f32 0.3275911, %v2848_v56  ;;  %v2862_v6 = vsub.f32 0.0, %v2848_v56 }
0x1cca   : > { %v2850_v5 = vadd.f32 1.0, %v2849_v4  ;;  %v2863_v7 = vmul.f32 %v2862_v6, %v2848_v56 }
0x1ccc   : > { %11762 = vrcp.f32 %v2850_v5  ;;  %v2864_v10 = vmul.f32 1.442695, %v2863_v7 }
0x1cce   : > { %11764 = vpow2.f32 %v2864_v10 }
0x1cd9   : > { %v11763_v8 = vpop.eup %11762 }
0x1cda   : > { %v2853_v9 = vmul.f32 1.0614054, %v11763_v8 }
0x1cdb   : > { %v11765_v21 = vpop.eup %11764 }
0x1cdc   : > { %v2854_v11 = vadd.f32 -1.4531521, %v2853_v9 }
0x1cde   : > { %v2855_v13 = vmul.f32 %v11763_v8, %v2854_v11 }
0x1ce0   : > { %v2856_v15 = vadd.f32 1.4214138, %v2855_v13 }
0x1ce2   : > { %v2857_v16 = vmul.f32 %v11763_v8, %v2856_v15 }
0x1ce4   : > { %v2858_v17 = vadd.f32 -0.28449672, %v2857_v16 }
0x1ce6   : > { %v2859_v18 = vmul.f32 %v11763_v8, %v2858_v17 }
0x1ce8   : > { %v2860_v19 = vadd.f32 0.2548296, %v2859_v18 }
0x1cea   : > { %v2861_v20 = vmul.f32 %v11763_v8, %v2860_v19 }
0x1cec   : > { %v2866_v12 = vmul.f32 %v11765_v21, %v2861_v20 }
0x1cee   : > { %v2867_v23 = vsub.f32 1.0, %v2866_v12 }
0x1cf0   : > { %v2869_v24 = vsub.f32 0.0, %v2867_v23 }
0x1cf2   : > { %v2870_v25 = vsel %vm2868_vm9, %v2867_v23, %v2869_v24 }
0x1cf3   : > { %v2871_v27 = vadd.f32 1.0, %v2870_v25 }
0x1cf5   : > { %v2872_v29 = vmul.f32 %v2871_v27, %v2846_v26 }
0x1cf7   : > { %10981 = vmatmul.mubr.f32.vlgmr.msra.gmra.mxu0 %v2872_v29 }
0x1cf8   : > { %11026 = vmatprep.mubr.msk.f32.mxu0 %vm14446_vm3, %v11977_v1 }
0x1db7   : > { %v2964_v30 = vpop.f32.mrf.mxu0 }
0x1db8   : > { %v2965_v31 = vadd.f32 %v10065_v34, %v2964_v30 }
0x1db9   : > { %v10982_v32 = vpop.f32.mrf.mxu0 }
0x1dba   : > { %v12765_v33 = vadd.f32 %v2965_v31, %v12661_v14  ;;  %v10072_v14 = vld [vmem:[%s14384_s7 + $0x50] sm:$0xff] }
0x1dbb   : > { %10986 = vmatpush3.msra.mxu1 %v10072_v14 }
0x1dbc   : > { %v2973_v35 = vsel %vm14448_vm2, %v12765_v33, 0.0  ;;  %10987 = vmatprep.subr.mxu1 %v11977_v1 }
0x1dbd   : > { %2974 = vadd.xlane.f32.xlu0 %v2973_v35  ;;  %10988 = vmatpush3.msra.mxu1 %v10071_v22 }
0x1dbe   : > { %10989 = vmatprep.subr.mxu1 %v11977_v1 }
0x1dbf   : > { %10990 = vmatpush3.msra.mxu1 %v10070_v43 }
0x1dc0   : > { %10994 = vmatprep.subr.mxu1 %v11977_v1 }
0x1e46   : > { %v2975_v37 = vpop.xlane.xlu0 %2974 }
0x1e47   : > { %v2976_v38 = vmul.f32 0.03125, %v2975_v37 }
0x1e49   : > { %v2977_v39 = vsub.f32 %v12765_v33, %v2976_v38 }
0x1e4b   : > { %v2978_v40 = vmul.f32 %v2977_v39, %v2977_v39 }
0x1e4d   : > { %v2979_v41 = vsel %vm14448_vm2, %v2978_v40, 0.0 }
0x1e4e   : > { %2980 = vadd.xlane.f32.xlu0 %v2979_v41 }
0x1ed7   : > { %v2981_v44 = vpop.xlane.xlu0 %2980 }
0x1ed8   : > { %v2982_v45 = vmul.f32 0.03125, %v2981_v44 }
0x1eda   : > { %v2983_v46 = vadd.f32 1e-05, %v2982_v45 }
0x1edc   : > { %11766 = vrsqrt.f32 %v2983_v46 }
0x1ee9   : > { %v11767_v47 = vpop.eup %11766 }
0x1eea   : > { %v2985_v49 = vmul.f32 %v11767_v47, %v2977_v39 }
0x1eec   : > { %v2992_v51 = vmul.f32 %v10068_v48, %v2985_v49 }
0x1eee   : > { %v2999_v52 = vadd.f32 %v10069_v50, %v2992_v51 }
0x1ef0   : > { %10992 = vmatmul.mubr.msk.f32.vlgmr.msra.gmra.mxu1 %vm14448_vm2, %v2999_v52 }
0x1ef1   : > { %10996 = vmatprep.mubr.msk.f32.mxu1 %vm14446_vm3, %v11977_v1 }
0x1fb0   : > { %v12796_v53 = vpop.f32.mrf.mxu1 }
0x1fb1   : > { %3079 = vrot.lane.b32.xlu0 %v12796_v53, %s14485_s26 }
0x1fb2   : > { %v10993_v55 = vpop.f32.mrf.mxu1 }
0x1fb5   : > { %3244 = vrot.lane.b32.xlu0 %v12796_v53, %s14486_s27 }
0x2023   : > { %v3080_v57 = vpop.permute.xlu0 %3079 }
0x2024   : > { %10995 = vmatpush3.xpose.msk.msra.mxu1 %vm14445_vm4, %v3080_v57 }
0x2025   : > { %10999 = vmatprep.subr.mxu1 %v11977_v1 }
0x2027   : > { %10997 = vmatmul.mubr.msk.f32.vlgmr.msra.gmra.mxu1 %vm14445_vm4, %v12796_v53  ;;  %v3245_v9 = vpop.permute.xlu0 %3244 }
0x2028   : > { %11001 = vmatprep.mubr.msk.f32.mxu1 %vm14446_vm3, %v11977_v1 }
0x20e7   : > { %v3151_v58 = vpop.f32.mrf.mxu1 }
0x20e8   : > { %v3152_v59 = vadd.f32 %v3151_v58, %v12327_v62 }
0x20e9   : > { %v10998_v63 = vpop.f32.mrf.mxu1 }
0x20ea   : > { %v3155_v0 = vsel %vm14445_vm4, %v3152_v59, -inf }
0x20eb   : > { %3156 = vmax.xlane.f32.xlu1 %v3155_v0 }
0x20fc   : > { %3166 = vrot.lane.b32.xlu1 %v12796_v53, %s14498_s9 }
0x2174   : > { %v3157_v2 = vpop.xlane.xlu1 %3156 }
0x2175   : > { %v3158_v54 = vsub.f32 %v3152_v59, %v3157_v2 }
0x2177   : > { %v3159_v3 = vmul.f32 1.442695, %v3158_v54 }
0x2178   : > { %v3167_v56 = vpop.permute.xlu1 %3166 }
0x2179   : > { %11768 = vpow2.f32 %v3159_v3  ;;  %11000 = vmatpush3.msra.mxu1 %v3167_v56  ;;  %v10089_v3 = vld [vmem:[%s14385_s8 + $0x50] sm:$0xff]  ;;  %v10088_v56 = vld [vmem:[%s14385_s8 + $0x48] sm:$0xff] }
0x217a   : > { %11004 = vmatprep.subr.mxu1 %v11977_v1 }
0x2186   : > { %v11769_v4 = vpop.eup %11768 }
0x2187   : > { %v3161_v5 = vsel %vm14445_vm4, %v11769_v4, 0.0 }
0x2188   : > { %3162 = vadd.xlane.f32.xlu1 %v3161_v5 }
0x2199   : > { %3242 = vrot.lane.b32.xlu1 %v12796_v53, %s14487_s23 }
0x219d   : > { %3409 = vrot.lane.b32.xlu1 %v12796_v53, %s14489_s3 }
0x2211   : > { %v3163_v6 = vpop.xlane.xlu1 %3162 }
0x2212   : > { %11770 = vrcp.f32 %v3163_v6 }
0x2215   : > { %v3243_v10 = vpop.permute.xlu1 %3242 }
0x2219   : > { %v3410_v25 = vpop.permute.xlu1 %3409 }
0x221f   : > { %v11771_v7 = vpop.eup %11770 }
0x2220   : > { %v3165_v8 = vmul.f32 %v11771_v7, %v11769_v4  ;;  %v10087_v4 = vld [vmem:[%s14385_s8 + $0x40] sm:$0xff] }
0x2222   : > { %11002 = vmatmul.mubr.msk.f32.vlgmr.msra.gmra.mxu1 %vm14445_vm4, %v3165_v8 }
0x2223   : > { %11005 = vmatpush3.xpose.msk.msra.mxu1 %vm14445_vm4, %v3245_v9  ;;  %11006 = vmatprep.mubr.msk.f32.mxu1 %vm14446_vm3, %v11977_v1 }
0x2224   : > { %11009 = vmatprep.subr.mxu1 %v11977_v1 }
0x2226   : > { %11007 = vmatmul.mubr.msk.f32.vlgmr.msra.gmra.mxu1 %vm14445_vm4, %v3243_v10 }
0x2227   : > { %11011 = vmatprep.mubr.msk.f32.mxu1 %vm14446_vm3, %v11977_v1 }
0x22e2   : > { %v12826_v11 = vpop.f32.mrf.mxu1 }
0x22e4   : > { %v11003_v13 = vpop.f32.mrf.mxu1 }
0x22e6   : > { %v3316_v15 = vpop.f32.mrf.mxu1 }
0x22e7   : > { %v3317_v16 = vadd.f32 %v3316_v15, %v12327_v62 }
0x22e8   : > { %v11008_v17 = vpop.f32.mrf.mxu1 }
0x22e9   : > { %v3320_v18 = vsel %vm14445_vm4, %v3317_v16, -inf }
0x22ea   : > { %3321 = vmax.xlane.f32.xlu0 %v3320_v18  ;;  %v10092_v18 = vld [vmem:[%s14499_s18 + $0x2] ss:$0 sm:$0xff] }
0x2300   : > { %3331 = vrot.lane.b32.xlu0 %v12796_v53, %s14488_s1 }
0x2304   : > { %3407 = vrot.lane.b32.xlu0 %v12796_v53, %s14490_s30 }
0x2308   : > { %3572 = vrot.lane.b32.xlu0 %v12796_v53, %s14492_s29 }
0x2373   : > { %v3322_v19 = vpop.xlane.xlu0 %3321 }
0x2374   : > { %v3323_v20 = vsub.f32 %v3317_v16, %v3322_v19 }
0x2376   : > { %v3324_v21 = vmul.f32 1.442695, %v3323_v20 }
0x2377   : > { %v3332_v12 = vpop.permute.xlu0 %3331 }
0x2378   : > { %11772 = vpow2.f32 %v3324_v21  ;;  %11010 = vmatpush3.msra.mxu1 %v3332_v12 }
0x2379   : > { %11014 = vmatprep.subr.mxu1 %v11977_v1 }
0x237b   : > { %v3408_v27 = vpop.permute.xlu0 %3407 }
0x237f   : > { %v3573_v34 = vpop.permute.xlu0 %3572 }
0x2385   : > { %v11773_v23 = vpop.eup %11772 }
0x2386   : > { %v3326_v24 = vsel %vm14445_vm4, %v11773_v23, 0.0 }
0x2387   : > { %3327 = vadd.xlane.f32.xlu1 %v3326_v24 }
0x2398   : > { %3574 = vrot.lane.b32.xlu1 %v12796_v53, %s14491_s0 }
0x2410   : > { %v3328_v26 = vpop.xlane.xlu1 %3327 }
0x2411   : > { %11774 = vrcp.f32 %v3328_v26 }
0x2414   : > { %v3575_v29 = vpop.permute.xlu1 %3574 }
0x2415   : > { %11025 = vmatpush3.xpose.msk.msra.mxu0 %vm14445_vm4, %v3575_v29  ;;  %v10101_v29 = vld [vmem:[%s14389_s12 + $0x58] sm:$0xff] }
0x2416   : > { %11034 = vmatprep.subr.mxu0 %v11977_v1 }
0x2418   : > { %11027 = vmatmul.mubr.msk.f32.vlgmr.msra.gmra.mxu0 %vm14445_vm4, %v3573_v34  ;;  %v10099_v34 = vld [vmem:[%s14389_s12 + $0x48] sm:$0xff] }
0x2419   : > { %11042 = vmatprep.mubr.msk.f32.mxu0 %vm14446_vm3, %v11977_v1 }
0x241e   : > { %v11775_v30 = vpop.eup %11774 }
0x241f   : > { %v3330_v31 = vmul.f32 %v11775_v30, %v11773_v23  ;;  %v10098_v30 = vld [vmem:[%s14389_s12 + $0x40] sm:$0xff] }
0x2421   : > { %11012 = vmatmul.mubr.msk.f32.vlgmr.msra.gmra.mxu1 %vm14445_vm4, %v3330_v31 }
0x2422   : > { %11015 = vmatpush3.xpose.msk.msra.mxu1 %vm14445_vm4, %v3410_v25  ;;  %11016 = vmatprep.mubr.msk.f32.mxu1 %vm14446_vm3, %v11977_v1 }
0x2423   : > { %11019 = vmatprep.subr.mxu1 %v11977_v1 }
0x2425   : > { %11017 = vmatmul.mubr.msk.f32.vlgmr.msra.gmra.mxu1 %vm14445_vm4, %v3408_v27 }
0x2426   : > { %11021 = vmatprep.mubr.msk.f32.mxu1 %vm14446_vm3, %v11977_v1 }
0x24d8   : > { %v3646_v32 = vpop.f32.mrf.mxu0 }
0x24d9   : > { %v3647_v35 = vadd.f32 %v3646_v32, %v12327_v62 }
0x24da   : > { %v11028_v37 = vpop.f32.mrf.mxu0 }
0x24db   : > { %v3650_v38 = vsel %vm14445_vm4, %v3647_v35, -inf }
0x24dc   : > { %3651 = vmax.xlane.f32.xlu0 %v3650_v38  ;;  %v10096_v38 = vld [vmem:[%s14387_s10 + $0x2] ss:$0 sm:$0xff] }
0x24e1   : > { %v3403_v39 = vpop.f32.mrf.mxu1 }
0x24e3   : > { %v11013_v40 = vpop.f32.mrf.mxu1 }
0x24e4   : > { %v10097_v40 = vld [vmem:[%s14482_s11 + $0x2] ss:$0 sm:$0xff] }
0x24e5   : > { %v3481_v41 = vpop.f32.mrf.mxu1 }
0x24e6   : > { %v3482_v42 = vadd.f32 %v3481_v41, %v12327_v62 }
0x24e7   : > { %v11018_v14 = vpop.f32.mrf.mxu1 }
0x24e8   : > { %v3485_v22 = vsel %vm14445_vm4, %v3482_v42, -inf  ;;  %v10120_v14 = vld [vmem:[%s14391_s14 + $0x178] sm:$0xff] }
0x24e9   : > { %3486 = vmax.xlane.f32.xlu1 %v3485_v22  ;;  %v10119_v22 = vld [vmem:[%s14391_s14 + $0x170] sm:$0xff] }
0x24fa   : > { %3496 = vrot.lane.b32.xlu1 %v12796_v53, %s14494_s21 }
0x24fe   : > { %3738 = vrot.lane.b32.xlu1 %v3403_v39, %s14495_s24 }
0x2565   : > { %v3652_v43 = vpop.xlane.xlu0 %3651 }
0x2566   : > { %v3653_v44 = vsub.f32 %v3647_v35, %v3652_v43  ;;  %v10118_v43 = vld [vmem:[%s14391_s14 + $0x168] sm:$0xff] }
0x2568   : > { %v3654_v45 = vmul.f32 1.442695, %v3653_v44  ;;  %v10117_v44 = vld [vmem:[%s14391_s14 + $0x160] sm:$0xff] }
0x256a   : > { %11776 = vpow2.f32 %v3654_v45  ;;  %v10116_v45 = vld [vmem:[%s14391_s14 + $0x158] sm:$0xff] }
0x2572   : > { %v3487_v46 = vpop.xlane.xlu1 %3486 }
0x2573   : > { %v3488_v47 = vsub.f32 %v3482_v42, %v3487_v46  ;;  %v10115_v46 = vld [vmem:[%s14391_s14 + $0x150] sm:$0xff] }
0x2575   : > { %v3489_v48 = vmul.f32 1.442695, %v3488_v47  ;;  %v10114_v47 = vld [vmem:[%s14391_s14 + $0x148] sm:$0xff] }
0x2576   : > { %v3497_v49 = vpop.permute.xlu1 %3496 }
0x2577   : > { %v11777_v50 = vpop.eup %11776  ;;  %11778 = vpow2.f32 %v3489_v48  ;;  %11020 = vmatpush3.msra.mxu1 %v3497_v49  ;;  %v10113_v48 = vld [vmem:[%s14391_s14 + $0x140] sm:$0xff]  ;;  %v10112_v49 = vld [vmem:[%s14391_s14 + $0x138] sm:$0xff] }
0x2578   : > { %v3656_v51 = vsel %vm14445_vm4, %v11777_v50, 0.0  ;;  %11029 = vmatprep.subr.mxu1 %v11977_v1 }
0x2579   : > { %3657 = vadd.xlane.f32.xlu0 %v3656_v51  ;;  %v10110_v51 = vld [vmem:[%s14391_s14 + $0x128] sm:$0xff] }
0x257a   : > { %v3739_v9 = vpop.permute.xlu1 %3738 }
0x257b   : > { %v3749_v13 = vsel %vm14445_vm4, %v12826_v11, %v3739_v9 }
0x2584   : > { %v11779_v52 = vpop.eup %11778 }
0x2585   : > { %v3491_v55 = vsel %vm14445_vm4, %v11779_v52, 0.0 }
0x2586   : > { %3492 = vadd.xlane.f32.xlu0 %v3491_v55  ;;  %v10108_v55 = vld [vmem:[%s14391_s14 + $0x118] sm:$0xff] }
0x259c   : > { %3661 = vrot.lane.b32.xlu0 %v12796_v53, %s14493_s25  ;;  %v10090_v53 = vld [vmem:[%s14385_s8 + $0x58] sm:$0xff] }
0x259d   : > { %11035 = vmatpush3.msra.mxu0 %v10090_v53 }
0x259e   : > { %11036 = vmatprep.subr.mxu0 %v11977_v1 }
0x259f   : > { %11037 = vmatpush3.msra.mxu0 %v10089_v3 }
0x25a0   : > { %11038 = vmatprep.subr.mxu0 %v11977_v1 }
0x25a1   : > { %11039 = vmatpush3.msra.mxu0 %v10088_v56 }
0x25a2   : > { %11040 = vmatprep.subr.mxu0 %v11977_v1 }
0x25a3   : > { %11041 = vmatpush3.msra.mxu0 %v10087_v4 }
0x25a4   : > { %11056 = vmatprep.subr.mxu0 %v11977_v1 }
0x2602   : > { %v3658_v57 = vpop.xlane.xlu0 %3657 }
0x260f   : > { %v3493_v58 = vpop.xlane.xlu0 %3492 }
0x2610   : > { %11780 = vrcp.f32 %v3493_v58  ;;  %v10106_v58 = vld [vmem:[%s14391_s14 + $0x108] sm:$0xff] }
0x2611   : > { %11782 = vrcp.f32 %v3658_v57  ;;  %v10107_v57 = vld [vmem:[%s14391_s14 + $0x110] sm:$0xff] }
0x2613   : > { %v3662_v2 = vpop.permute.xlu0 %3661 }
0x261d   : > { %v11781_v59 = vpop.eup %11780 }
0x261e   : > { %v3495_v63 = vmul.f32 %v11781_v59, %v11779_v52  ;;  %v11783_v0 = vpop.eup %11782  ;;  %v10109_v52 = vld [vmem:[%s14391_s14 + $0x120] sm:$0xff] }
0x261f   : > { %v3660_v54 = vmul.f32 %v11783_v0, %v11777_v50  ;;  %v10111_v50 = vld [vmem:[%s14391_s14 + $0x130] sm:$0xff]  ;;  %v10105_v59 = vld [vmem:[%s14391_s14 + $0x100] sm:$0xff] }
0x2620   : > { %11022 = vmatmul.mubr.msk.f32.vlgmr.msra.gmra.mxu1 %vm14445_vm4, %v3495_v63  ;;  %v10103_v63 = vld [vmem:[%s14483_s13 + $0x2] ss:$0 sm:$0xff] }
0x2621   : > { %11030 = vmatpush3.msra.mxu1 %v3662_v2  ;;  %11031 = vmatprep.mubr.msk.f32.mxu1 %vm14446_vm3, %v11977_v1 }
0x2622   : > { %11045 = vmatprep.subr.mxu1 %v11977_v1 }
0x2624   : > { %11032 = vmatmul.mubr.msk.f32.vlgmr.msra.gmra.mxu1 %vm14445_vm4, %v3660_v54 }
0x2625   : > { %11053 = vmatprep.mubr.msk.f32.mxu1 %vm14446_vm3, %v11977_v1  ;;  %11046 = vmatpush3.msra.mxu1 %v10101_v29 }
0x2626   : > { %11047 = vmatprep.subr.mxu1 %v11977_v1 }
0x26e0   : > { %v3568_v5 = vpop.f32.mrf.mxu1 }
0x26e1   : > { %3742 = vrot.lane.b32.xlu1 %v3568_v5, %s14496_s17 }
0x26e2   : > { %v11023_v6 = vpop.f32.mrf.mxu1 }
0x26e4   : > { %v3733_v7 = vpop.f32.mrf.mxu1 }
0x26e5   : > { %3746 = vrot.lane.b32.xlu1 %v3733_v7, %s14497_s16  ;;  %s11998_s16 = smov 1  }
0x26e6   : > { %v11033_v8 = vpop.f32.mrf.mxu1 }
0x2753   : > { %v3743_v10 = vpop.permute.xlu1 %3742 }
0x2754   : > { %v3750_v15 = vsel %vm14444_vm6, %v3749_v13, %v3743_v10 }
0x2757   : > { %v3747_v16 = vpop.permute.xlu1 %3746 }
0x2758   : > { %v3751_v17 = vsel %vm14443_vm7, %v3750_v15, %v3747_v16 }
0x2759   : > { %11043 = vmatmul.mubr.msk.f32.vlgmr.msra.gmra.mxu0 %vm14448_vm2, %v3751_v17 }
0x275a   : > { %11088 = vmatprep.mubr.msk.f32.mxu0 %vm14446_vm3, %v11977_v1  ;;  %11057 = vmatpush3.msra.mxu0 %v10120_v14  ;;  %v10128_v14 = vld [vmem:[%s14384_s7 + $0x68] sm:$0xff] }
0x275b   : > { %11058 = vmatprep.subr.mxu0 %v11977_v1 }
0x275c   : > { %11059 = vmatpush3.msra.mxu0 %v10119_v22  ;;  %v10127_v22 = vld [vmem:[%s14384_s7 + $0x60] sm:$0xff] }
0x275d   : > { %11060 = vmatprep.subr.mxu0 %v11977_v1 }
0x275e   : > { %11061 = vmatpush3.msra.mxu0 %v10118_v43 }
0x275f   : > { %11062 = vmatprep.subr.mxu0 %v11977_v1 }
0x2760   : > { %11063 = vmatpush3.msra.mxu0 %v10117_v44 }
0x2761   : > { %11064 = vmatprep.subr.mxu0 %v11977_v1 }
0x2762   : > { %11065 = vmatpush3.msra.mxu0 %v10116_v45 }
0x2763   : > { %11066 = vmatprep.subr.mxu0 %v11977_v1 }
0x2764   : > { %11067 = vmatpush3.msra.mxu0 %v10115_v46 }
0x2765   : > { %11068 = vmatprep.subr.mxu0 %v11977_v1 }
0x2766   : > { %11069 = vmatpush3.msra.mxu0 %v10114_v47  ;;  %v10125_v47 = vld [vmem:[%s14382_s5 + $0x3] ss:$0 sm:$0xff] }
0x2767   : > { %11070 = vmatprep.subr.mxu0 %v11977_v1 }
0x2768   : > { %11071 = vmatpush3.msra.mxu0 %v10113_v48 }
0x2769   : > { %11072 = vmatprep.subr.mxu0 %v11977_v1 }
0x276a   : > { %11073 = vmatpush3.msra.mxu0 %v10112_v49  ;;  %v10126_v49 = vld [vmem:[%s14383_s6 + $0x3] ss:$0 sm:$0xff] }
0x276b   : > { %11074 = vmatprep.subr.mxu0 %v11977_v1 }
0x276c   : > { %11075 = vmatpush3.msra.mxu0 %v10111_v50 }
0x276d   : > { %11076 = vmatprep.subr.mxu0 %v11977_v1 }
0x276e   : > { %11077 = vmatpush3.msra.mxu0 %v10110_v51 }
0x276f   : > { %11078 = vmatprep.subr.mxu0 %v11977_v1 }
0x2770   : > { %11079 = vmatpush3.msra.mxu0 %v10109_v52 }
0x2771   : > { %11080 = vmatprep.subr.mxu0 %v11977_v1 }
0x2772   : > { %11081 = vmatpush3.msra.mxu0 %v10108_v55 }
0x2773   : > { %11082 = vmatprep.subr.mxu0 %v11977_v1 }
0x2774   : > { %11083 = vmatpush3.msra.mxu0 %v10107_v57 }
0x2775   : > { %11084 = vmatprep.subr.mxu0 %v11977_v1 }
0x2776   : > { %11085 = vmatpush3.msra.mxu0 %v10106_v58 }
0x2777   : > { %11086 = vmatprep.subr.mxu0 %v11977_v1 }
0x2778   : > { %11087 = vmatpush3.msra.mxu0 %v10105_v59 }
0x2779   : > { %11132 = vmatprep.subr.mxu0 %v11977_v1 }
0x2819   : > { %v3834_v19 = vpop.f32.mrf.mxu0 }
0x281a   : > { %v3835_v20 = vadd.f32 %v10092_v18, %v3834_v19 }
0x281b   : > { %v11044_v21 = vpop.f32.mrf.mxu0 }
0x281c   : > { %v12901_v12 = vadd.f32 %v3835_v20, %v12765_v33  ;;  %v10100_v33 = vld [vmem:[%s14389_s12 + $0x50] sm:$0xff] }
0x281d   : > { %11048 = vmatpush3.msra.mxu1 %v10100_v33  ;;  %v10122_v33 = vld [vmem:[%s14484_s15 + $0x2] ss:$0 sm:$0xff]  ;;  %s14564_s15 = sld [smem:[#allocation19_spill]] }
0x281e   : > { %v3843_v11 = vsel %vm14448_vm2, %v12901_v12, 0.0  ;;  %11049 = vmatprep.subr.mxu1 %v11977_v1 }
0x281f   : > { %3844 = vadd.xlane.f32.xlu0 %v3843_v11  ;;  %11050 = vmatpush3.msra.mxu1 %v10099_v34 }
0x2820   : > { %11051 = vmatprep.subr.mxu1 %v11977_v1 }
0x2821   : > { %11052 = vmatpush3.msra.mxu1 %v10098_v30 }
0x2822   : > { %11091 = vmatprep.subr.mxu1 %v11977_v1 }
0x28a8   : > { %v3845_v23 = vpop.xlane.xlu0 %3844 }
0x28a9   : > { %v3846_v24 = vmul.f32 0.03125, %v3845_v23 }
0x28ab   : > { %v3847_v25 = vsub.f32 %v12901_v12, %v3846_v24 }
0x28ad   : > { %v3848_v26 = vmul.f32 %v3847_v25, %v3847_v25 }
0x28af   : > { %v3849_v27 = vsel %vm14448_vm2, %v3848_v26, 0.0 }
0x28b0   : > { %3850 = vadd.xlane.f32.xlu1 %v3849_v27 }
0x2939   : > { %v3851_v31 = vpop.xlane.xlu1 %3850 }
0x293a   : > { %v3852_v32 = vmul.f32 0.03125, %v3851_v31 }
0x293c   : > { %v3853_v35 = vadd.f32 1e-05, %v3852_v32 }
0x293e   : > { %11784 = vrsqrt.f32 %v3853_v35 }
0x294b   : > { %v11785_v37 = vpop.eup %11784 }
0x294c   : > { %v3855_v39 = vmul.f32 %v11785_v37, %v3847_v25 }
0x294e   : > { %v3862_v41 = vmul.f32 %v10096_v38, %v3855_v39 }
0x2950   : > { %v3869_v42 = vadd.f32 %v10097_v40, %v3862_v41 }
0x2952   : > { %11054 = vmatmul.mubr.msk.f32.vlgmr.msra.gmra.mxu1 %vm14448_vm2, %v3869_v42  ;;  %v10130_v42 = vld [vmem:[%s14384_s7 + $0x78] sm:$0xff] }
0x2953   : > { %11099 = vmatprep.mubr.msk.f32.mxu1 %vm14446_vm3, %v11977_v1  ;;  %11092 = vmatpush3.msra.mxu1 %v10130_v42 }
0x2954   : > { %11093 = vmatprep.subr.mxu1 %v11977_v1 }
0x2a12   : > { %v3952_v0 = vpop.f32.mrf.mxu1 }
0x2a13   : > { %v3953_v2 = vadd.f32 %v10103_v63, %v3952_v0 }
0x2a14   : > { %v11055_v54 = vpop.f32.mrf.mxu1 }
0x2a15   : > { %v3957_v53 = vmul.f32 0.70710677, %v3953_v2  ;;  %v3956_v26 = vmul.f32 0.5, %v3953_v2 }
0x2a17   : > { %v3958_v3 = vand.u32 2147483647, %v3957_v53  ;;  %vm3978_vm10 = vcmp.ge.f32.partialorder %v3957_v53, 0.0 }
0x2a19   : > { %v3959_v56 = vmul.f32 0.3275911, %v3958_v3  ;;  %v3972_v5 = vsub.f32 0.0, %v3958_v3 }
0x2a1b   : > { %v3960_v4 = vadd.f32 1.0, %v3959_v56  ;;  %v3973_v6 = vmul.f32 %v3972_v5, %v3958_v3 }
0x2a1d   : > { %11786 = vrcp.f32 %v3960_v4  ;;  %v3974_v9 = vmul.f32 1.442695, %v3973_v6 }
0x2a1f   : > { %11788 = vpow2.f32 %v3974_v9 }
0x2a2a   : > { %v11787_v7 = vpop.eup %11786 }
0x2a2b   : > { %v3963_v8 = vmul.f32 1.0614054, %v11787_v7 }
0x2a2c   : > { %v11789_v21 = vpop.eup %11788 }
0x2a2d   : > { %v3964_v10 = vadd.f32 -1.4531521, %v3963_v8 }
0x2a2f   : > { %v3965_v13 = vmul.f32 %v11787_v7, %v3964_v10 }
0x2a31   : > { %v3966_v15 = vadd.f32 1.4214138, %v3965_v13 }
0x2a33   : > { %v3967_v16 = vmul.f32 %v11787_v7, %v3966_v15 }
0x2a35   : > { %v3968_v17 = vadd.f32 -0.28449672, %v3967_v16 }
0x2a37   : > { %v3969_v18 = vmul.f32 %v11787_v7, %v3968_v17 }
0x2a39   : > { %v3970_v19 = vadd.f32 0.2548296, %v3969_v18 }
0x2a3b   : > { %v3971_v20 = vmul.f32 %v11787_v7, %v3970_v19 }
0x2a3d   : > { %v3976_v11 = vmul.f32 %v11789_v21, %v3971_v20 }
0x2a3f   : > { %v3977_v23 = vsub.f32 1.0, %v3976_v11 }
0x2a41   : > { %v3979_v24 = vsub.f32 0.0, %v3977_v23 }
0x2a43   : > { %v3980_v25 = vsel %vm3978_vm10, %v3977_v23, %v3979_v24 }
0x2a44   : > { %v3981_v27 = vadd.f32 1.0, %v3980_v25 }
0x2a46   : > { %v3982_v29 = vmul.f32 %v3981_v27, %v3956_v26 }
0x2a48   : > { %11089 = vmatmul.mubr.f32.vlgmr.msra.gmra.mxu0 %v3982_v29 }
0x2a49   : > { %11134 = vmatprep.mubr.msk.f32.mxu0 %vm14446_vm3, %v11977_v1 }
0x2b08   : > { %v4074_v34 = vpop.f32.mrf.mxu0 }
0x2b09   : > { %v4075_v30 = vadd.f32 %v10122_v33, %v4074_v34 }
0x2b0a   : > { %v11090_v31 = vpop.f32.mrf.mxu0 }
0x2b0b   : > { %v13005_v32 = vadd.f32 %v4075_v30, %v12901_v12  ;;  %v10129_v12 = vld [vmem:[%s14384_s7 + $0x70] sm:$0xff] }
0x2b0c   : > { %11094 = vmatpush3.msra.mxu1 %v10129_v12 }
0x2b0d   : > { %v4083_v35 = vsel %vm14448_vm2, %v13005_v32, 0.0  ;;  %11095 = vmatprep.subr.mxu1 %v11977_v1 }
0x2b0e   : > { %4084 = vadd.xlane.f32.xlu0 %v4083_v35  ;;  %11096 = vmatpush3.msra.mxu1 %v10128_v14 }
0x2b0f   : > { %11097 = vmatprep.subr.mxu1 %v11977_v1 }
0x2b10   : > { %11098 = vmatpush3.msra.mxu1 %v10127_v22 }
0x2b11   : > { %11102 = vmatprep.subr.mxu1 %v11977_v1 }
0x2b97   : > { %v4085_v37 = vpop.xlane.xlu0 %4084 }
0x2b98   : > { %v4086_v38 = vmul.f32 0.03125, %v4085_v37 }
0x2b9a   : > { %v4087_v39 = vsub.f32 %v13005_v32, %v4086_v38 }
0x2b9c   : > { %v4088_v40 = vmul.f32 %v4087_v39, %v4087_v39 }
0x2b9e   : > { %v4089_v41 = vsel %vm14448_vm2, %v4088_v40, 0.0 }
0x2b9f   : > { %4090 = vadd.xlane.f32.xlu0 %v4089_v41 }
0x2c28   : > { %v4091_v43 = vpop.xlane.xlu0 %4090 }
0x2c29   : > { %v4092_v44 = vmul.f32 0.03125, %v4091_v43 }
0x2c2b   : > { %v4093_v45 = vadd.f32 1e-05, %v4092_v44 }
0x2c2d   : > { %11790 = vrsqrt.f32 %v4093_v45 }
0x2c3a   : > { %v11791_v46 = vpop.eup %11790 }
0x2c3b   : > { %v4095_v48 = vmul.f32 %v11791_v46, %v4087_v39 }
0x2c3d   : > { %v4102_v50 = vmul.f32 %v10125_v47, %v4095_v48 }
0x2c3f   : > { %v4109_v51 = vadd.f32 %v10126_v49, %v4102_v50 }
0x2c41   : > { %11100 = vmatmul.mubr.msk.f32.vlgmr.msra.gmra.mxu1 %vm14448_vm2, %v4109_v51 }
0x2c42   : > { %11104 = vmatprep.mubr.msk.f32.mxu1 %vm14446_vm3, %v11977_v1 }
0x2d01   : > { %v13036_v52 = vpop.f32.mrf.mxu1 }
0x2d02   : > { %4189 = vrot.lane.b32.xlu0 %v13036_v52, %s14485_s26 }
0x2d03   : > { %v11101_v55 = vpop.f32.mrf.mxu1 }
0x2d06   : > { %4354 = vrot.lane.b32.xlu0 %v13036_v52, %s14486_s27 }
0x2d74   : > { %v4190_v57 = vpop.permute.xlu0 %4189 }
0x2d75   : > { %11103 = vmatpush3.xpose.msk.msra.mxu1 %vm14445_vm4, %v4190_v57  ;;  %v11994_v57 = vmov 1  }
0x2d76   : > { %11107 = vmatprep.subr.mxu1 %v11977_v1  ;;  %11704 = vset.pattern.permute.xlu0 %v11994_v57 }
0x2d78   : > { %11105 = vmatmul.mubr.msk.f32.vlgmr.msra.gmra.mxu1 %vm14445_vm4, %v13036_v52  ;;  %v4355_v8 = vpop.permute.xlu0 %4354 }
0x2d79   : > { %11109 = vmatprep.mubr.msk.f32.mxu1 %vm14446_vm3, %v11977_v1 }
0x2e38   : > { %v4261_v58 = vpop.f32.mrf.mxu1 }
0x2e39   : > { %v4262_v59 = vadd.f32 %v4261_v58, %v12327_v62 }
0x2e3a   : > { %v11106_v63 = vpop.f32.mrf.mxu1 }
0x2e3b   : > { %v4265_v0 = vsel %vm14445_vm4, %v4262_v59, -inf }
0x2e3c   : > { %4266 = vmax.xlane.f32.xlu1 %v4265_v0 }
0x2e4d   : > { %4276 = vrot.lane.b32.xlu1 %v13036_v52, %s14498_s9 }
0x2ec5   : > { %v4267_v2 = vpop.xlane.xlu1 %4266 }
0x2ec6   : > { %v4268_v54 = vsub.f32 %v4262_v59, %v4267_v2 }
0x2ec8   : > { %v4269_v53 = vmul.f32 1.442695, %v4268_v54 }
0x2ec9   : > { %v4277_v3 = vpop.permute.xlu1 %4276 }
0x2eca   : > { %11792 = vpow2.f32 %v4269_v53  ;;  %11108 = vmatpush3.msra.mxu1 %v4277_v3 }
0x2ecb   : > { %11112 = vmatprep.subr.mxu1 %v11977_v1 }
0x2ed7   : > { %v11793_v56 = vpop.eup %11792 }
0x2ed8   : > { %v4271_v4 = vsel %vm14445_vm4, %v11793_v56, 0.0 }
0x2ed9   : > { %4272 = vadd.xlane.f32.xlu1 %v4271_v4  ;;  %v11995_v4 = vmov 4  }
0x2eea   : > { %4352 = vrot.lane.b32.xlu1 %v13036_v52, %s14487_s23 }
0x2eee   : > { %4520 = vrot.lane.b32.xlu1 %v13036_v52, %s14489_s3 }
0x2f62   : > { %v4273_v5 = vpop.xlane.xlu1 %4272 }
0x2f63   : > { %11794 = vrcp.f32 %v4273_v5  ;;  %v11996_v5 = vmov 2  }
0x2f64   : > { %11705 = vset.pattern.permute.xlu1 %v11996_v5 }
0x2f66   : > { %v4353_v9 = vpop.permute.xlu1 %4352 }
0x2f6a   : > { %v4521_v25 = vpop.permute.xlu1 %4520 }
0x2f70   : > { %v11795_v6 = vpop.eup %11794 }
0x2f71   : > { %v13058_v7 = vmul.f32 %v11795_v6, %v11793_v56  ;;  %v11997_v6 = vmov 0  }
0x2f73   : > { %11110 = vmatmul.mubr.msk.f32.vlgmr.msra.gmra.mxu1 %vm14445_vm4, %v13058_v7 }
0x2f74   : > { %11113 = vmatpush3.xpose.msk.msra.mxu1 %vm14445_vm4, %v4355_v8  ;;  %11114 = vmatprep.mubr.msk.f32.mxu1 %vm14446_vm3, %v11977_v1  ;;  %v10147_v8 = vld [vmem:[%s14385_s8 + $0x78] sm:$0xff] }
0x2f75   : > { %11117 = vmatprep.subr.mxu1 %v11977_v1 }
0x2f77   : > { %11115 = vmatmul.mubr.msk.f32.vlgmr.msra.gmra.mxu1 %vm14445_vm4, %v4353_v9  ;;  %v10146_v9 = vld [vmem:[%s14385_s8 + $0x70] sm:$0xff] }
0x2f78   : > { %11119 = vmatprep.mubr.msk.f32.mxu1 %vm14446_vm3, %v11977_v1 }
0x3033   : > { %v13069_v10 = vpop.f32.mrf.mxu1 }
0x3035   : > { %v11111_v13 = vpop.f32.mrf.mxu1 }
0x3036   : > { %v10145_v13 = vld [vmem:[%s14385_s8 + $0x68] sm:$0xff] }
0x3037   : > { %v4426_v15 = vpop.f32.mrf.mxu1 }
0x3038   : > { %v4427_v16 = vadd.f32 %v4426_v15, %v12327_v62  ;;  %v10144_v15 = vld [vmem:[%s14385_s8 + $0x60] sm:$0xff] }
0x3039   : > { %v11116_v17 = vpop.f32.mrf.mxu1 }
0x303a   : > { %v4430_v18 = vsel %vm14445_vm4, %v4427_v16, -inf }
0x303b   : > { %4431 = vmax.xlane.f32.xlu0 %v4430_v18 }
0x3051   : > { %4441 = vrot.lane.b32.xlu0 %v13036_v52, %s14488_s1 }
0x3055   : > { %4518 = vrot.lane.b32.xlu0 %v13036_v52, %s14490_s30 }
0x3059   : > { %4684 = vrot.lane.b32.xlu0 %v13036_v52, %s14492_s29 }
0x30c4   : > { %v4432_v19 = vpop.xlane.xlu0 %4431 }
0x30c5   : > { %v4433_v20 = vsub.f32 %v4427_v16, %v4432_v19 }
0x30c7   : > { %v4434_v21 = vmul.f32 1.442695, %v4433_v20  ;;  %v11999_v20 = vmov 3  }
0x30c8   : > { %v4442_v11 = vpop.permute.xlu0 %4441 }
0x30c9   : > { %11796 = vpow2.f32 %v4434_v21  ;;  %11118 = vmatpush3.msra.mxu1 %v4442_v11  ;;  %v5216_v21 = vsel %vm5215_vm12, 1, %v11997_v6  ;;  %v5230_v11 = vsel %vm5229_vm13, 1, %v11997_v6 }
0x30ca   : > { %11122 = vmatprep.subr.mxu1 %v11977_v1 }
0x30cc   : > { %v4519_v27 = vpop.permute.xlu0 %4518 }
0x30d0   : > { %v4685_v33 = vpop.permute.xlu0 %4684 }
0x30d6   : > { %v11797_v23 = vpop.eup %11796 }
0x30d7   : > { %v4436_v24 = vsel %vm14445_vm4, %v11797_v23, 0.0 }
0x30d8   : > { %4437 = vadd.xlane.f32.xlu1 %v4436_v24 }
0x30e9   : > { %4686 = vrot.lane.b32.xlu1 %v13036_v52, %s14491_s0 }
0x3161   : > { %v4438_v26 = vpop.xlane.xlu1 %4437 }
0x3162   : > { %11798 = vrcp.f32 %v4438_v26 }
0x3165   : > { %v4687_v29 = vpop.permute.xlu1 %4686 }
0x3166   : > { %11133 = vmatpush3.xpose.msk.msra.mxu0 %vm14445_vm4, %v4687_v29 }
0x3167   : > { %11142 = vmatprep.subr.mxu0 %v11977_v1 }
0x3169   : > { %11135 = vmatmul.mubr.msk.f32.vlgmr.msra.gmra.mxu0 %vm14445_vm4, %v4685_v33 }
0x316a   : > { %11150 = vmatprep.mubr.msk.f32.mxu0 %vm14446_vm3, %v11977_v1  ;;  %11143 = vmatpush3.msra.mxu0 %v10147_v8 }
0x316b   : > { %11144 = vmatprep.subr.mxu0 %v11977_v1 }
0x316c   : > { %11145 = vmatpush3.msra.mxu0 %v10146_v9 }
0x316d   : > { %11146 = vmatprep.subr.mxu0 %v11977_v1 }
0x316e   : > { %11147 = vmatpush3.msra.mxu0 %v10145_v13 }
0x316f   : > { %v11799_v34 = vpop.eup %11798  ;;  %11148 = vmatprep.subr.mxu0 %v11977_v1 }
0x3170   : > { %v4440_v30 = vmul.f32 %v11799_v34, %v11797_v23  ;;  %11149 = vmatpush3.msra.mxu0 %v10144_v15  ;;  %v5260_v23 = vsel %vm5259_vm14, 1, %v11997_v6 }
0x3171   : > { %11164 = vmatprep.subr.mxu0 %v11977_v1 }
0x3172   : > { %11120 = vmatmul.mubr.msk.f32.vlgmr.msra.gmra.mxu1 %vm14445_vm4, %v4440_v30  ;;  %v4517_v2 = vadd.f32 %v4440_v30, %v13058_v7  ;;  %v5245_v7 = vsel %vm5244_vm11, 1, %v11997_v6 }
0x3173   : > { %11123 = vmatpush3.xpose.msk.msra.mxu1 %vm14445_vm4, %v4521_v25  ;;  %11124 = vmatprep.mubr.msk.f32.mxu1 %vm14446_vm3, %v11977_v1 }
0x3174   : > { %11127 = vmatprep.subr.mxu1 %v11977_v1 }
0x3176   : > { %11125 = vmatmul.mubr.msk.f32.vlgmr.msra.gmra.mxu1 %vm14445_vm4, %v4519_v27 }
0x3177   : > { %11129 = vmatprep.mubr.msk.f32.mxu1 %vm14446_vm3, %v11977_v1 }
0x3229   : > { %v4758_v31 = vpop.f32.mrf.mxu0 }
0x322a   : > { %v4759_v35 = vadd.f32 %v4758_v31, %v12327_v62 }
0x322b   : > { %v11136_v37 = vpop.f32.mrf.mxu0 }
0x322c   : > { %v4762_v38 = vsel %vm14445_vm4, %v4759_v35, -inf }
0x322d   : > { %4763 = vmax.xlane.f32.xlu0 %v4762_v38 }
0x3232   : > { %v4513_v39 = vpop.f32.mrf.mxu1 }
0x3234   : > { %v11121_v40 = vpop.f32.mrf.mxu1 }
0x3236   : > { %v4592_v41 = vpop.f32.mrf.mxu1 }
0x3237   : > { %v4593_v42 = vadd.f32 %v4592_v41, %v12327_v62 }
0x3238   : > { %v11126_v12 = vpop.f32.mrf.mxu1 }
0x3239   : > { %v4596_v14 = vsel %vm14445_vm4, %v4593_v42, -inf }
0x323a   : > { %4597 = vmax.xlane.f32.xlu1 %v4596_v14 }
0x324b   : > { %4607 = vrot.lane.b32.xlu1 %v13036_v52, %s14494_s21 }
0x324f   : > { %4851 = vrot.lane.b32.xlu1 %v4513_v39, %s14495_s24 }
0x32b6   : > { %v4764_v22 = vpop.xlane.xlu0 %4763 }
0x32b7   : > { %v4765_v43 = vsub.f32 %v4759_v35, %v4764_v22 }
0x32b9   : > { %v4766_v44 = vmul.f32 1.442695, %v4765_v43 }
0x32bb   : > { %11800 = vpow2.f32 %v4766_v44  ;;  %v13180_v44 = vsub.s32 0, %v12261_v28 }
0x32c3   : > { %v4598_v45 = vpop.xlane.xlu1 %4597 }
0x32c4   : > { %v4599_v46 = vsub.f32 %v4593_v42, %v4598_v45 }
0x32c6   : > { %v4600_v47 = vmul.f32 1.442695, %v4599_v46 }
0x32c7   : > { %v4608_v48 = vpop.permute.xlu1 %4607 }
0x32c8   : > { %v11801_v49 = vpop.eup %11800  ;;  %11802 = vpow2.f32 %v4600_v47  ;;  %11128 = vmatpush3.msra.mxu1 %v4608_v48 }
0x32c9   : > { %v4768_v50 = vsel %vm14445_vm4, %v11801_v49, 0.0  ;;  %11137 = vmatprep.subr.mxu1 %v11977_v1 }
0x32ca   : > { %4769 = vadd.xlane.f32.xlu0 %v4768_v50  ;;  %v5290_v50 = vsub.s32 1, %v12261_v28 }
0x32cb   : > { %v4852_v24 = vpop.permute.xlu1 %4851 }
0x32cc   : > { %v4862_v26 = vsel %vm14445_vm4, %v13069_v10, %v4852_v24 }
0x32d5   : > { %v11803_v51 = vpop.eup %11802 }
0x32d6   : > { %v4602_v55 = vsel %vm14445_vm4, %v11803_v51, 0.0 }
0x32d7   : > { %4603 = vadd.xlane.f32.xlu0 %v4602_v55  ;;  %v11914_v55 = vld [vmem:[%s14501_s2] ss:$0 sm:$0xff]  ;;  %s14538_s2 = sld [smem:[#allocation22_spill]] }
0x32ed   : > { %4773 = vrot.lane.b32.xlu0 %v13036_v52, %s14493_s25 }
0x3353   : > { %v4770_v58 = vpop.xlane.xlu0 %4769 }
0x3354   : > { %11804 = vrcp.f32 %v4770_v58  ;;  %v5268_v58 = vsel %vm742_vm1, %v11914_v55, 0.0  ;;  %v10180_v55 = vld [vmem:[%s14382_s5] ss:$0 sm:$0xff] }
0x3360   : > { %v4604_v59 = vpop.xlane.xlu0 %4603 }
0x3361   : > { %11806 = vrcp.f32 %v4604_v59  ;;  %v11805_v63 = vpop.eup %11804 }
0x3362   : > { %v4772_v53 = vmul.f32 %v11805_v63, %v11801_v49  ;;  %v5299_v63 = vsub.s32 2, %v12261_v28 }
0x3364   : > { %v4774_v3 = vpop.permute.xlu0 %4773 }
0x336e   : > { %v11807_v0 = vpop.eup %11806 }
0x336f   : > { %v4606_v54 = vmul.f32 %v11807_v0, %v11803_v51  ;;  %v5291_v0 = vrot.slane %v12275_v36, %v5290_v50  ;;  %v5352_v50 = vld [vmem:[%s14384_s7 + $0x18] sm:$0xff] }
0x3371   : > { %11130 = vmatmul.mubr.msk.f32.vlgmr.msra.gmra.mxu1 %vm14445_vm4, %v4606_v54  ;;  %v4683_v56 = vadd.f32 %v4606_v54, %v4517_v2  ;;  %v5308_v2 = vsub.s32 3, %v12261_v28 }
0x3372   : > { %11138 = vmatpush3.msra.mxu1 %v4774_v3  ;;  %11139 = vmatprep.mubr.msk.f32.mxu1 %vm14446_vm3, %v11977_v1 }
0x3373   : > { %v13113_v52 = vadd.f32 %v4772_v53, %v4683_v56  ;;  %11153 = vmatprep.subr.mxu1 %v11977_v1  ;;  %v5309_v3 = vrot.slane %v12275_v36, %v5308_v2  ;;  %v5349_v2 = vld [vmem:[%s14384_s7] sm:$0xff] }
0x3375   : > { %5210 = vperm.xlu0 %11704, %v13113_v52   ;;  %11140 = vmatmul.mubr.msk.f32.vlgmr.msra.gmra.mxu1 %vm14445_vm4, %v4772_v53  ;;  %v5300_v53 = vrot.slane %v12275_v36, %v5299_v63 }
0x3376   : > { %11161 = vmatprep.mubr.msk.f32.mxu1 %vm14446_vm3, %v11977_v1 }
0x3379   : > { %11707 = vset.pattern.permute.xlu0 %v11995_v4 }
0x337a   : > { %5254 = vperm.xlu0 %11707, %v13113_v52  }
0x337e   : > { %11708 = vset.pattern.permute.xlu0 %v11994_v57 }
0x337f   : > { %5246 = vrot.lane.b32.xlu0 %v5245_v7, %s11998_s16 }
0x33f0   : > { %v5211_v34 = vpop.permute.xlu0 %5210 }
0x33f1   : > { %vm5214_vm5 = vcmp.eq.f32.partialorder %v5211_v34, %v13113_v52  ;;  %vm5213_vm12 = vcmp.lt.f32.partialorder %v5211_v34, %v13113_v52 }
0x33f5   : > { %v5255_v30 = vpop.permute.xlu0 %5254 }
0x33f9   : > { %v5247_v35 = vpop.permute.xlu0 %5246 }
0x33fa   : > { %vm5248_vm15 = vcmp.ne.s32.totalorder %v5247_v35, 0  ;;  %v10157_v35 = vld [vmem:[%s14389_s12 + $0x70] sm:$0xff] }
0x3431   : > { %v4679_v16 = vpop.f32.mrf.mxu1 }
0x3432   : > { %4855 = vrot.lane.b32.xlu1 %v4679_v16, %s14496_s17  ;;  %v10149_v16 = vld [vmem:[%s14503_s28 + $0x3] ss:$0 sm:$0xff]  ;;  %s14596_s28 = sld [smem:[#allocation20_spill]] }
0x3433   : > { %v11131_v17 = vpop.f32.mrf.mxu1 }
0x3435   : > { %v4845_v18 = vpop.f32.mrf.mxu1 }
0x3436   : > { %4859 = vrot.lane.b32.xlu1 %v4845_v18, %s14500_s20 }
0x3437   : > { %v11141_v19 = vpop.f32.mrf.mxu1 }
0x343a   : > { %5224 = vperm.xlu1 %11705, %v13113_v52  }
0x343e   : > { %11706 = vset.pattern.permute.xlu1 %v11999_v20 }
0x343f   : > { %5239 = vperm.xlu1 %11706, %v13113_v52  }
0x3443   : > { %5217 = vrot.lane.b32.xlu1 %v5216_v21, %s11998_s16 }
0x3444   : > { %11709 = vset.pattern.permute.xlu1 %v11996_v5 }
0x3447   : > { %5231 = vrot.lane.b32.xlu1 %v5230_v11, %s11998_s16 }
0x344b   : > { %5261 = vrot.lane.b32.xlu1 %v5260_v23, %s11998_s16  ;;  %s14598_s16 = sld [smem:[#allocation22_spill]] }
0x34a4   : > { %v4856_v25 = vpop.permute.xlu1 %4855 }
0x34a5   : > { %v4863_v27 = vsel %vm14444_vm6, %v4862_v26, %v4856_v25 }
0x34a8   : > { %v4860_v29 = vpop.permute.xlu1 %4859 }
0x34a9   : > { %v4864_v33 = vsel %vm14443_vm7, %v4863_v27, %v4860_v29 }
0x34aa   : > { %11151 = vmatmul.mubr.msk.f32.vlgmr.msra.gmra.mxu0 %vm14448_vm2, %v4864_v33 }
0x34ab   : > { %11196 = vmatprep.mubr.msk.f32.mxu0 %vm14446_vm3, %v11977_v1 }
0x34b5   : > { %v5225_v31 = vpop.permute.xlu1 %5224 }
0x34b6   : > { %vm5228_vm14 = vcmp.eq.f32.partialorder %v5225_v31, %v13113_v52  ;;  %vm5227_vm4 = vcmp.lt.f32.partialorder %v5225_v31, %v13113_v52  ;;  %v10158_v31 = vld [vmem:[%s14389_s12 + $0x78] sm:$0xff] }
0x34b7   : > { %11154 = vmatpush3.msra.mxu1 %v10158_v31 }
0x34b8   : > { %11155 = vmatprep.subr.mxu1 %v11977_v1 }
0x34b9   : > { %11156 = vmatpush3.msra.mxu1 %v10157_v35 }
0x34ba   : > { %v5240_v37 = vpop.permute.xlu1 %5239  ;;  %11157 = vmatprep.subr.mxu1 %v11977_v1 }
0x34bb   : > { %vm5243_vm0 = vcmp.eq.f32.partialorder %v5240_v37, %v13113_v52  ;;  %vm5242_vm8 = vcmp.lt.f32.partialorder %v5240_v37, %v13113_v52  ;;  %v10156_v37 = vld [vmem:[%s14389_s12 + $0x68] sm:$0xff] }
0x34bc   : > { %vm5249_vm9 = vmand %vm5243_vm0, %vm5248_vm15  ;;  %vm5258_vm15 = vcmp.eq.f32.partialorder %v5255_v30, %v13113_v52  ;;  %11158 = vmatpush3.msra.mxu1 %v10156_v37 }
0x34bd   : > { %vm5250_vm13 = vmor %vm5242_vm8, %vm5249_vm9  ;;  %11159 = vmatprep.subr.mxu1 %v11977_v1 }
0x34be   : > { %v5218_v38 = vpop.permute.xlu1 %5217  ;;  %v5251_v12 = vsel %vm5250_vm13, 1, %v11997_v6  ;;  %vm14502_vm13 = vcmask 261120  }
0x34bf   : > { %vm5219_vm10 = vcmp.ne.s32.totalorder %v5218_v38, 0  ;;  %v10155_v38 = vld [vmem:[%s14389_s12 + $0x60] sm:$0xff] }
0x34c0   : > { %vm5220_vm11 = vmand %vm5214_vm5, %vm5219_vm10  ;;  %vm5257_vm5 = vcmp.lt.f32.partialorder %v5255_v30, %v13113_v52  ;;  %11160 = vmatpush3.msra.mxu1 %v10155_v38 }
0x34c1   : > { %vm5221_vm7 = vmor %vm5213_vm12, %vm5220_vm11  ;;  %11199 = vmatprep.subr.mxu1 %v11977_v1 }
0x34c2   : > { %v5232_v10 = vpop.permute.xlu1 %5231  ;;  %v5222_v39 = vsel %vm5221_vm7, 1, %v11997_v6 }
0x34c3   : > { %vm5233_vm6 = vcmp.ne.s32.totalorder %v5232_v10, 0 }
0x34c4   : > { %vm5234_vm3 = vmand %vm5228_vm14, %vm5233_vm6 }
0x34c5   : > { %vm5235_vm2 = vmor %vm5227_vm4, %vm5234_vm3 }
0x34c6   : > { %v5236_v40 = vsel %vm5235_vm2, 1, %v11997_v6  ;;  %v5262_v41 = vpop.permute.xlu1 %5261  ;;  %vm14504_vm14 = vmmov %vm14502_vm13 }
0x34c7   : > { %v5237_v42 = vadd.s32 %v5236_v40, %v5222_v39  ;;  %vm5263_vm0 = vcmp.ne.s32.totalorder %v5262_v41, 0 }
0x34c8   : > { %vm5264_vm8 = vmand %vm5258_vm15, %vm5263_vm0 }
0x34c9   : > { %v5252_v14 = vadd.s32 %v5251_v12, %v5237_v42  ;;  %vm5265_vm9 = vmor %vm5257_vm5, %vm5264_vm8  ;;  %vm14508_vm8 = vmmov 0  }
0x34ca   : > { %v5266_v22 = vsel %vm5265_vm9, 1, %v11997_v6  ;;  %vm14505_vm15 = vmmov %vm14502_vm13 }
0x34cb   : > { %v13177_v43 = vadd.s32 %v5266_v22, %v5252_v14  ;;  %vm14506_vm0 = vmmov %vm14502_vm13  ;;  %v10153_v22 = vld [vmem:[%s14387_s10 + $0x3] ss:$0 sm:$0xff] }
0x34cc   : > { %vm14507_vm5 = vmmov %vm14506_vm0 }
0x34cd   : > { %v5269_v45 = vadd.s32 1, %v13177_v43  ;;  %vm5275_vm2 = vcmp.lt.s32.totalorder %v13177_v43, 2  ;;  %vm14509_vm9 = vmmov %vm14506_vm0 }
0x34ce   : > { %v5276_v46 = vsel %vm5275_vm2, 1, %v11997_v6 }
0x34cf   : > { %v5273_v47 = vrot.slane %v5269_v45, %v13180_v44  ;;  %v5280_v48 = vrot.slane %v5276_v46, %v13180_v44 }
0x34d1   : > { %vm5274_vm3 = vcmp.eq.s32.totalorder %v12261_v28, %v5273_v47  ;;  %vm5281_vm4 = vcmp.eq.s32.totalorder %v5280_v48, 1  ;;  %v10154_v47 = vld [vmem:[%s14482_s11 + $0x3] ss:$0 sm:$0xff] }
0x34d2   : > { %vm5282_vm6 = vmand %vm5274_vm3, %vm5281_vm4  ;;  %vm14510_vm3 = vcmask 64512  }
0x34d3   : > { %v5283_v49 = vsel %vm5282_vm6, 1, %v11997_v6  ;;  %vm14511_vm4 = vmmov %vm14510_vm3  ;;  %vm5426_vm6 = vcmp.lt.s32.totalorder %v12323_v60, 3 }
0x34d4   : > { %5294 = vperm.xlu1 %11709, %v5283_v49   ;;  %5285 = vperm.xlu0 %11708, %v5283_v49  }
0x34d8   : > { %11710 = vset.pattern.permute.xlu1 %v11999_v20  ;;  %11711 = vset.pattern.permute.xlu0 %v11995_v4 }
0x34d9   : > { %5303 = vperm.xlu1 %11710, %v5283_v49   ;;  %5312 = vperm.xlu0 %11711, %v5283_v49  }
0x34dd   : > { %11712 = vset.pattern.permute.xlu0 %v11994_v57  ;;  %11713 = vset.pattern.permute.xlu1 %v11994_v57  ;;  %v5317_v57 = vsub.s32 4, %v12261_v28 }
0x34df   : > { %v5318_v8 = vrot.slane %v12275_v36, %v5317_v57 }
0x354f   : > { %v5295_v51 = vpop.permute.xlu1 %5294  ;;  %v5286_v59 = vpop.permute.xlu0 %5285 }
0x3550   : > { %vm5287_vm7 = vcmp.eq.s32.totalorder %v5286_v59, 1  ;;  %vm5296_vm10 = vcmp.eq.s32.totalorder %v5295_v51, 1  ;;  %v5350_v59 = vld [vmem:[%s14384_s7 + $0x8] sm:$0xff] }
0x3551   : > { %v5292_v54 = vsel %vm5287_vm7, %v5291_v0, %v5268_v58  ;;  %v5351_v58 = vld [vmem:[%s14384_s7 + $0x10] sm:$0xff]  ;;  %v10181_v0 = vld [vmem:[%s14383_s6] ss:$0 sm:$0xff]  ;;  %vm14512_vm7 = vmmov %vm14510_vm3 }
0x3552   : > { %v5301_v7 = vsel %vm5296_vm10, %v5300_v53, %v5292_v54  ;;  %v10177_v54 = vld [vmem:[%s14391_s14 + $0x1f8] sm:$0xff]  ;;  %v10176_v53 = vld [vmem:[%s14391_s14 + $0x1f0] sm:$0xff]  ;;  %vm14513_vm10 = vmmov %vm14510_vm3 }
0x3553   : > { %11165 = vmatpush3.msra.mxu0 %v10177_v54  ;;  %v13357_v54 = vsel %vm5426_vm6, 0.0, %v11981_v61 }
0x3554   : > { %v5304_v56 = vpop.permute.xlu1 %5303  ;;  %v5313_v52 = vpop.permute.xlu0 %5312  ;;  %11166 = vmatprep.subr.mxu0 %v11977_v1 }
0x3555   : > { %vm5305_vm11 = vcmp.eq.s32.totalorder %v5304_v56, 1  ;;  %vm5314_vm12 = vcmp.eq.s32.totalorder %v5313_v52, 1  ;;  %11167 = vmatpush3.msra.mxu0 %v10176_v53  ;;  %v10174_v56 = vld [vmem:[%s14391_s14 + $0x1e0] sm:$0xff]  ;;  %v10173_v52 = vld [vmem:[%s14391_s14 + $0x1d8] sm:$0xff] }
0x3556   : > { %v5310_v9 = vsel %vm5305_vm11, %v5309_v3, %v5301_v7  ;;  %11168 = vmatprep.subr.mxu0 %v11977_v1  ;;  %v10175_v3 = vld [vmem:[%s14391_s14 + $0x1e8] sm:$0xff]  ;;  %v10172_v7 = vld [vmem:[%s14391_s14 + $0x1d0] sm:$0xff]  ;;  %vm14514_vm11 = vmmov %vm14510_vm3 }
0x3557   : > { %v13206_v13 = vsel %vm5314_vm12, %v5318_v8, %v5310_v9  ;;  %11169 = vmatpush3.msra.mxu0 %v10175_v3  ;;  %v10171_v8 = vld [vmem:[%s14391_s14 + $0x1c8] sm:$0xff]  ;;  %v10170_v9 = vld [vmem:[%s14391_s14 + $0x1c0] sm:$0xff]  ;;  %vm14515_vm12 = vmmov %vm14510_vm3 }
0x3558   : > { %v5322_v15 = vsel %vm14502_vm13, %v13206_v13, 0.0  ;;  %11170 = vmatprep.subr.mxu0 %v11977_v1  ;;  %vm14516_vm13 = vmmov %vm14510_vm3 }
0x3559   : > { %5323 = vadd.xlane.f32.xlu0 %v5322_v15  ;;  %11171 = vmatpush3.msra.mxu0 %v10174_v56  ;;  %v10169_v15 = vld [vmem:[%s14391_s14 + $0x1b8] sm:$0xff] }
0x355a   : > { %11172 = vmatprep.subr.mxu0 %v11977_v1 }
0x355b   : > { %11173 = vmatpush3.msra.mxu0 %v10173_v52 }
0x355c   : > { %11174 = vmatprep.subr.mxu0 %v11977_v1 }
0x355d   : > { %11175 = vmatpush3.msra.mxu0 %v10172_v7 }
0x355e   : > { %11176 = vmatprep.subr.mxu0 %v11977_v1 }
0x355f   : > { %11177 = vmatpush3.msra.mxu0 %v10171_v8 }
0x3560   : > { %11178 = vmatprep.subr.mxu0 %v11977_v1 }
0x3561   : > { %11179 = vmatpush3.msra.mxu0 %v10170_v9 }
0x3562   : > { %11180 = vmatprep.subr.mxu0 %v11977_v1 }
0x3563   : > { %11181 = vmatpush3.msra.mxu0 %v10169_v15 }
0x3564   : > { %11182 = vmatprep.subr.mxu0 %v11977_v1 }
0x356a   : > { %v4947_v17 = vpop.f32.mrf.mxu0 }
0x356b   : > { %v4948_v18 = vadd.f32 %v10149_v16, %v4947_v17  ;;  %v10168_v16 = vld [vmem:[%s14391_s14 + $0x1b0] sm:$0xff]  ;;  %v10167_v17 = vld [vmem:[%s14391_s14 + $0x1a8] sm:$0xff] }
0x356c   : > { %v11152_v19 = vpop.f32.mrf.mxu0  ;;  %11183 = vmatpush3.msra.mxu0 %v10168_v16 }
0x356d   : > { %v13214_v21 = vadd.f32 %v4948_v18, %v13005_v32  ;;  %11184 = vmatprep.subr.mxu0 %v11977_v1  ;;  %v10166_v18 = vld [vmem:[%s14391_s14 + $0x1a0] sm:$0xff]  ;;  %v10165_v19 = vld [vmem:[%s14391_s14 + $0x198] sm:$0xff] }
0x356e   : > { %11185 = vmatpush3.msra.mxu0 %v10167_v17 }
0x356f   : > { %v4956_v11 = vsel %vm14504_vm14, %v13214_v21, 0.0  ;;  %11186 = vmatprep.subr.mxu0 %v11977_v1  ;;  %vm14517_vm14 = vmmov %vm14510_vm3 }
0x3570   : > { %4957 = vadd.xlane.f32.xlu1 %v4956_v11  ;;  %11187 = vmatpush3.msra.mxu0 %v10166_v18  ;;  %v10164_v11 = vld [vmem:[%s14391_s14 + $0x190] sm:$0xff] }
0x3571   : > { %11188 = vmatprep.subr.mxu0 %v11977_v1 }
0x3572   : > { %11189 = vmatpush3.msra.mxu0 %v10165_v19 }
0x3573   : > { %11190 = vmatprep.subr.mxu0 %v11977_v1 }
0x3574   : > { %11191 = vmatpush3.msra.mxu0 %v10164_v11 }
0x3575   : > { %11192 = vmatprep.subr.mxu0 %v11977_v1 }
0x35e2   : > { %v5324_v23 = vpop.xlane.xlu0 %5323 }
0x35e3   : > { %v5325_v24 = vmul.f32 0.03125, %v5324_v23  ;;  %v10163_v23 = vld [vmem:[%s14391_s14 + $0x188] sm:$0xff] }
0x35e4   : > { %11193 = vmatpush3.msra.mxu0 %v10163_v23 }
0x35e5   : > { %v5326_v25 = vsub.f32 %v13206_v13, %v5325_v24  ;;  %v10162_v24 = vld [vmem:[%s14391_s14 + $0x180] sm:$0xff]  ;;  %11194 = vmatprep.subr.mxu0 %v11977_v1 }
0x35e6   : > { %11195 = vmatpush3.msra.mxu0 %v10162_v24 }
0x35e7   : > { %v5327_v26 = vmul.f32 %v5326_v25, %v5326_v25  ;;  %11240 = vmatprep.subr.mxu0 %v11977_v1 }
0x35e9   : > { %v5328_v27 = vsel %vm14505_vm15, %v5327_v26, 0.0  ;;  %vm14518_vm15 = vmmov %vm14510_vm3 }
0x35ea   : > { %5329 = vadd.xlane.f32.xlu1 %v5328_v27 }
0x35f9   : > { %v4958_v29 = vpop.xlane.xlu1 %4957 }
0x35fa   : > { %v4959_v33 = vmul.f32 0.03125, %v4958_v29 }
0x35fc   : > { %v4960_v34 = vsub.f32 %v13214_v21, %v4959_v33 }
0x35fe   : > { %v4961_v30 = vmul.f32 %v4960_v34, %v4960_v34 }
0x3600   : > { %v4962_v32 = vsel %vm14506_vm0, %v4961_v30, 0.0  ;;  %vm14519_vm0 = vmmov %vm14510_vm3 }
0x3601   : > { %4963 = vadd.xlane.f32.xlu0 %v4962_v32  ;;  %vm14525_vm6 = vmmov %vm14519_vm0 }
0x3673   : > { %v5330_v10 = vpop.xlane.xlu1 %5329 }
0x3674   : > { %v5331_v39 = vmul.f32 0.03125, %v5330_v10 }
0x3676   : > { %v5332_v42 = vadd.f32 1e-05, %v5331_v39 }
0x368a   : > { %v4964_v40 = vpop.xlane.xlu0 %4963 }
0x368b   : > { %v4965_v41 = vmul.f32 0.03125, %v4964_v40 }
0x368d   : > { %v4966_v12 = vadd.f32 1e-05, %v4965_v41 }
0x368f   : > { %11808 = vrsqrt.f32 %v4966_v12 }
0x3690   : > { %11810 = vrsqrt.f32 %v5332_v42 }
0x369c   : > { %v11809_v14 = vpop.eup %11808 }
0x369d   : > { %v4968_v45 = vmul.f32 %v11809_v14, %v4960_v34  ;;  %v11811_v46 = vpop.eup %11810 }
0x369e   : > { %v5334_v51 = vmul.f32 %v11811_v46, %v5326_v25  ;;  %v10160_v25 = vld [vmem:[%s14483_s13 + $0x3] ss:$0 sm:$0xff] }
0x369f   : > { %v4975_v48 = vmul.f32 %v10153_v22, %v4968_v45 }
0x36a0   : > { %v5341_v63 = vmul.f32 %v10180_v55, %v5334_v51 }
0x36a1   : > { %v4982_v49 = vadd.f32 %v10154_v47, %v4975_v48 }
0x36a2   : > { %v5348_v57 = vadd.f32 %v10181_v0, %v5341_v63 }
0x36a3   : > { %11162 = vmatmul.mubr.msk.f32.vlgmr.msra.gmra.mxu1 %vm14507_vm5, %v4982_v49  ;;  %vm14520_vm5 = vmmov %vm14519_vm0 }
0x36a4   : > { %11200 = vmatpush3.msra.mxu1 %v5352_v50  ;;  %11207 = vmatprep.mubr.msk.f32.mxu1 %vm14508_vm8, %v11977_v1 }
0x36a5   : > { %11201 = vmatprep.subr.mxu1 %v11977_v1 }
0x36a6   : > { %11202 = vmatpush3.msra.mxu1 %v5351_v58 }
0x36a7   : > { %11203 = vmatprep.subr.mxu1 %v11977_v1 }
0x36a8   : > { %11204 = vmatpush3.msra.mxu1 %v5350_v59 }
0x36a9   : > { %11205 = vmatprep.subr.mxu1 %v11977_v1 }
0x36aa   : > { %11206 = vmatpush3.msra.mxu1 %v5349_v2 }
0x36ab   : > { %11208 = vmatmul.mubr.msk.f32.vlgmr.msra.gmra.mxu1 %vm14509_vm9, %v5348_v57  ;;  %11210 = vmatprep.subr.mxu1 %v11977_v1  ;;  %vm14521_vm9 = vmmov %vm14519_vm0 }
0x36ac   : > { %11212 = vmatprep.mubr.msk.f32.mxu1 %vm14508_vm8, %v11977_v1 }
0x3763   : > { %v5065_v26 = vpop.f32.mrf.mxu1 }
0x3764   : > { %v5066_v27 = vadd.f32 %v10160_v25, %v5065_v26 }
0x3765   : > { %v11163_v29 = vpop.f32.mrf.mxu1 }
0x3766   : > { %v5070_v33 = vmul.f32 0.70710677, %v5066_v27  ;;  %v5069_v58 = vmul.f32 0.5, %v5066_v27 }
0x3768   : > { %v5071_v34 = vand.u32 2147483647, %v5070_v33  ;;  %vm5091_vm2 = vcmp.ge.f32.partialorder %v5070_v33, 0.0 }
0x376a   : > { %v5072_v30 = vmul.f32 0.3275911, %v5071_v34  ;;  %v5085_v37 = vsub.f32 0.0, %v5071_v34 }
0x376b   : > { %v13339_v32 = vpop.f32.mrf.mxu1 }
0x376c   : > { %v5073_v31 = vadd.f32 1.0, %v5072_v30  ;;  %5429 = vrot.lane.b32.xlu0 %v13339_v32, %s14485_s26  ;;  %v5086_v38 = vmul.f32 %v5085_v37, %v5071_v34 }
0x376d   : > { %v11209_v35 = vpop.f32.mrf.mxu1 }
0x376e   : > { %11812 = vrcp.f32 %v5073_v31  ;;  %v5087_v40 = vmul.f32 1.442695, %v5086_v38 }
0x3770   : > { %5594 = vrot.lane.b32.xlu0 %v13339_v32, %s14486_s27  ;;  %11814 = vpow2.f32 %v5087_v40 }
0x377b   : > { %v11813_v10 = vpop.eup %11812 }
0x377c   : > { %v5076_v39 = vmul.f32 1.0614054, %v11813_v10 }
0x377d   : > { %v11815_v48 = vpop.eup %11814 }
0x377e   : > { %v5077_v41 = vadd.f32 -1.4531521, %v5076_v39 }
0x3780   : > { %v5078_v42 = vmul.f32 %v11813_v10, %v5077_v41 }
0x3782   : > { %v5079_v12 = vadd.f32 1.4214138, %v5078_v42 }
0x3784   : > { %v5080_v14 = vmul.f32 %v11813_v10, %v5079_v12 }
0x3786   : > { %v5081_v22 = vadd.f32 -0.28449672, %v5080_v14 }
0x3788   : > { %v5082_v45 = vmul.f32 %v11813_v10, %v5081_v22 }
0x378a   : > { %v5083_v46 = vadd.f32 0.2548296, %v5082_v45 }
0x378c   : > { %v5084_v47 = vmul.f32 %v11813_v10, %v5083_v46 }
0x378e   : > { %v5089_v49 = vmul.f32 %v11815_v48, %v5084_v47 }
0x3790   : > { %v5090_v50 = vsub.f32 1.0, %v5089_v49 }
0x3792   : > { %v5092_v51 = vsub.f32 0.0, %v5090_v50 }
0x3794   : > { %v5093_v55 = vsel %vm5091_vm2, %v5090_v50, %v5092_v51  ;;  %vm14522_vm2 = vmmov %vm14519_vm0 }
0x3795   : > { %v5094_v59 = vadd.f32 1.0, %v5093_v55 }
0x3797   : > { %v5095_v63 = vmul.f32 %v5094_v59, %v5069_v58 }
0x3799   : > { %11197 = vmatmul.mubr.f32.vlgmr.msra.gmra.mxu0 %v5095_v63 }
0x379a   : > { %11242 = vmatprep.mubr.msk.f32.mxu0 %vm14508_vm8, %v11977_v1 }
0x37de   : > { %v5430_v0 = vpop.permute.xlu0 %5429 }
0x37df   : > { %11211 = vmatpush3.xpose.msk.msra.mxu1 %vm14510_vm3, %v5430_v0  ;;  %vm14523_vm3 = vmmov %vm14519_vm0 }
0x37e0   : > { %11215 = vmatprep.subr.mxu1 %v11977_v1 }
0x37e2   : > { %11213 = vmatmul.mubr.msk.f32.vlgmr.msra.gmra.mxu1 %vm14511_vm4, %v13339_v32  ;;  %v5595_v19 = vpop.permute.xlu0 %5594  ;;  %vm14524_vm4 = vmmov %vm14519_vm0 }
0x37e3   : > { %11217 = vmatprep.mubr.msk.f32.mxu1 %vm14508_vm8, %v11977_v1 }
0x3859   : > { %v13353_v2 = vpop.f32.mrf.mxu0 }
0x385b   : > { %v11198_v57 = vpop.f32.mrf.mxu0 }
0x38a2   : > { %v5501_v53 = vpop.f32.mrf.mxu1 }
0x38a3   : > { %v5502_v3 = vadd.f32 %v5501_v53, %v13357_v54 }
0x38a4   : > { %v11214_v56 = vpop.f32.mrf.mxu1 }
0x38a5   : > { %v5505_v52 = vsel %vm14512_vm7, %v5502_v3, -inf  ;;  %vm14526_vm7 = vmmov %vm14519_vm0 }
0x38a6   : > { %5506 = vmax.xlane.f32.xlu1 %v5505_v52 }
0x38b7   : > { %5516 = vrot.lane.b32.xlu1 %v13339_v32, %s14498_s9 }
0x392f   : > { %v5507_v7 = vpop.xlane.xlu1 %5506 }
0x3930   : > { %v5508_v8 = vsub.f32 %v5502_v3, %v5507_v7 }
0x3932   : > { %v5509_v9 = vmul.f32 1.442695, %v5508_v8 }
0x3933   : > { %v5517_v15 = vpop.permute.xlu1 %5516 }
0x3934   : > { %11816 = vpow2.f32 %v5509_v9  ;;  %11216 = vmatpush3.msra.mxu1 %v5517_v15 }
0x3935   : > { %11220 = vmatprep.subr.mxu1 %v11977_v1 }
0x3941   : > { %v11817_v60 = vpop.eup %11816 }
0x3942   : > { %v5511_v61 = vsel %vm14513_vm10, %v11817_v60, 0.0  ;;  %vm14527_vm10 = vmmov %vm14519_vm0 }
0x3943   : > { %5512 = vadd.xlane.f32.xlu1 %v5511_v61 }
0x3954   : > { %5592 = vrot.lane.b32.xlu1 %v13339_v32, %s14487_s23 }
0x3958   : > { %5759 = vrot.lane.b32.xlu1 %v13339_v32, %s14489_s3 }
0x39cc   : > { %v5513_v16 = vpop.xlane.xlu1 %5512 }
0x39cd   : > { %11818 = vrcp.f32 %v5513_v16 }
0x39d0   : > { %v5593_v11 = vpop.permute.xlu1 %5592 }
0x39d4   : > { %v5760_v38 = vpop.permute.xlu1 %5759 }
0x39da   : > { %v11819_v17 = vpop.eup %11818 }
0x39db   : > { %v5515_v18 = vmul.f32 %v11819_v17, %v11817_v60 }
0x39dd   : > { %11218 = vmatmul.mubr.msk.f32.vlgmr.msra.gmra.mxu1 %vm14514_vm11, %v5515_v18  ;;  %vm14528_vm11 = vmmov %vm14519_vm0 }
0x39de   : > { %11221 = vmatpush3.xpose.msk.msra.mxu1 %vm14515_vm12, %v5595_v19  ;;  %11222 = vmatprep.mubr.msk.f32.mxu1 %vm14508_vm8, %v11977_v1  ;;  %vm14529_vm12 = vmmov %vm14519_vm0  ;;  %v6104_v19 = vld [vmem:[%s14385_s8 + $0x10] sm:$0xff] }
0x39df   : > { %11225 = vmatprep.subr.mxu1 %v11977_v1 }
0x39e1   : > { %11223 = vmatmul.mubr.msk.f32.vlgmr.msra.gmra.mxu1 %vm14516_vm13, %v5593_v11  ;;  %v6103_v11 = vld [vmem:[%s14385_s8 + $0x8] sm:$0xff]  ;;  %vm14530_vm13 = vmmov %vm14519_vm0 }
0x39e2   : > { %11227 = vmatprep.mubr.msk.f32.mxu1 %vm14508_vm8, %v11977_v1 }
0x3a9d   : > { %v13377_v23 = vpop.f32.mrf.mxu1 }
0x3a9f   : > { %v11219_v24 = vpop.f32.mrf.mxu1 }
0x3aa0   : > { %v6102_v24 = vld [vmem:[%s14385_s8] sm:$0xff] }
0x3aa1   : > { %v5666_v25 = vpop.f32.mrf.mxu1 }
0x3aa2   : > { %v5667_v26 = vadd.f32 %v5666_v25, %v13357_v54 }
0x3aa3   : > { %v11224_v27 = vpop.f32.mrf.mxu1 }
0x3aa4   : > { %v5670_v29 = vsel %vm14517_vm14, %v5667_v26, -inf  ;;  %vm14531_vm14 = vcmask 130048  }
0x3aa5   : > { %5671 = vmax.xlane.f32.xlu0 %v5670_v29 }
0x3abb   : > { %5681 = vrot.lane.b32.xlu0 %v13339_v32, %s14488_s1 }
0x3abf   : > { %5757 = vrot.lane.b32.xlu0 %v13339_v32, %s14490_s30 }
0x3ac3   : > { %5922 = vrot.lane.b32.xlu0 %v13339_v32, %s14492_s29 }
0x3b2e   : > { %v5672_v33 = vpop.xlane.xlu0 %5671 }
0x3b2f   : > { %v5673_v34 = vsub.f32 %v5667_v26, %v5672_v33 }
0x3b31   : > { %v5674_v30 = vmul.f32 1.442695, %v5673_v34 }
0x3b32   : > { %v5682_v31 = vpop.permute.xlu0 %5681 }
0x3b33   : > { %11820 = vpow2.f32 %v5674_v30  ;;  %11226 = vmatpush3.msra.mxu1 %v5682_v31 }
0x3b34   : > { %11230 = vmatprep.subr.mxu1 %v11977_v1 }
0x3b36   : > { %v5758_v39 = vpop.permute.xlu0 %5757 }
0x3b3a   : > { %v5923_v41 = vpop.permute.xlu0 %5922 }
0x3b40   : > { %v11821_v35 = vpop.eup %11820 }
0x3b41   : > { %v5676_v37 = vsel %vm14518_vm15, %v11821_v35, 0.0  ;;  %vm14532_vm15 = vcmask 195584  }
0x3b42   : > { %5677 = vadd.xlane.f32.xlu1 %v5676_v37 }
0x3b53   : > { %5924 = vrot.lane.b32.xlu1 %v13339_v32, %s14491_s0 }
0x3bcb   : > { %v5678_v10 = vpop.xlane.xlu1 %5677 }
0x3bcc   : > { %11822 = vrcp.f32 %v5678_v10 }
0x3bcf   : > { %v5925_v40 = vpop.permute.xlu1 %5924 }
0x3bd0   : > { %11241 = vmatpush3.xpose.msk.msra.mxu0 %vm14519_vm0, %v5925_v40  ;;  %vm14533_vm0 = vcmask 261120  }
0x3bd1   : > { %11250 = vmatprep.subr.mxu0 %v11977_v1 }
0x3bd3   : > { %11243 = vmatmul.mubr.msk.f32.vlgmr.msra.gmra.mxu0 %vm14520_vm5, %v5923_v41  ;;  %vm14535_vm5 = vmmov %vm14533_vm0 }
0x3bd4   : > { %11258 = vmatprep.mubr.msk.f32.mxu0 %vm14508_vm8, %v11977_v1 }
0x3bd9   : > { %v11823_v42 = vpop.eup %11822 }
0x3bda   : > { %v5680_v12 = vmul.f32 %v11823_v42, %v11821_v35 }
0x3bdc   : > { %11228 = vmatmul.mubr.msk.f32.vlgmr.msra.gmra.mxu1 %vm14521_vm9, %v5680_v12  ;;  %vm14536_vm9 = vmmov %vm14533_vm0 }
0x3bdd   : > { %11231 = vmatpush3.xpose.msk.msra.mxu1 %vm14522_vm2, %v5760_v38  ;;  %11232 = vmatprep.mubr.msk.f32.mxu1 %vm14508_vm8, %v11977_v1  ;;  %v10195_v38 = vld [vmem:[%s14534_s22] ss:$0 sm:$0xff]  ;;  %vm14537_vm2 = vmmov %vm14533_vm0  ;;  %s14568_s22 = sld [smem:[#allocation22_spill]] }
0x3bde   : > { %11235 = vmatprep.subr.mxu1 %v11977_v1 }
0x3be0   : > { %11233 = vmatmul.mubr.msk.f32.vlgmr.msra.gmra.mxu1 %vm14523_vm3, %v5758_v39 }
0x3be1   : > { %11237 = vmatprep.mubr.msk.f32.mxu1 %vm14508_vm8, %v11977_v1 }
0x3c93   : > { %v5996_v14 = vpop.f32.mrf.mxu0 }
0x3c94   : > { %v5997_v22 = vadd.f32 %v5996_v14, %v13357_v54 }
0x3c95   : > { %v11244_v45 = vpop.f32.mrf.mxu0 }
0x3c96   : > { %v6000_v46 = vsel %vm14524_vm4, %v5997_v22, -inf  ;;  %vm14539_vm4 = vmmov %vm14533_vm0 }
0x3c97   : > { %6001 = vmax.xlane.f32.xlu0 %v6000_v46  ;;  %v6219_v46 = vld [vmem:[%s14389_s12 + $0x18] sm:$0xff] }
0x3c9c   : > { %v5753_v47 = vpop.f32.mrf.mxu1 }
0x3c9e   : > { %v11229_v48 = vpop.f32.mrf.mxu1 }
0x3c9f   : > { %v6217_v48 = vld [vmem:[%s14389_s12 + $0x8] sm:$0xff] }
0x3ca0   : > { %v5831_v49 = vpop.f32.mrf.mxu1 }
0x3ca1   : > { %v5832_v50 = vadd.f32 %v5831_v49, %v13357_v54  ;;  %v6216_v49 = vld [vmem:[%s14389_s12] sm:$0xff] }
0x3ca2   : > { %v11234_v51 = vpop.f32.mrf.mxu1 }
0x3ca3   : > { %v5835_v55 = vsel %vm14525_vm6, %v5832_v50, -inf  ;;  %vm14540_vm6 = vmmov %vm14533_vm0 }
0x3ca4   : > { %5836 = vmax.xlane.f32.xlu1 %v5835_v55 }
0x3cb5   : > { %5846 = vrot.lane.b32.xlu1 %v13339_v32, %s14494_s21 }
0x3cb9   : > { %6088 = vrot.lane.b32.xlu1 %v5753_v47, %s14495_s24  ;;  %v6218_v47 = vld [vmem:[%s14389_s12 + $0x10] sm:$0xff] }
0x3d20   : > { %v6002_v58 = vpop.xlane.xlu0 %6001 }
0x3d21   : > { %v6003_v59 = vsub.f32 %v5997_v22, %v6002_v58 }
0x3d23   : > { %v6004_v63 = vmul.f32 1.442695, %v6003_v59  ;;  %v10197_v59 = vld [vmem:[%s14387_s10] ss:$0 sm:$0xff] }
0x3d25   : > { %11824 = vpow2.f32 %v6004_v63 }
0x3d2d   : > { %v5837_v0 = vpop.xlane.xlu1 %5836 }
0x3d2e   : > { %v5838_v57 = vsub.f32 %v5832_v50, %v5837_v0  ;;  %v10198_v0 = vld [vmem:[%s14482_s11] ss:$0 sm:$0xff] }
0x3d30   : > { %v5839_v53 = vmul.f32 1.442695, %v5838_v57 }
0x3d31   : > { %v5847_v3 = vpop.permute.xlu1 %5846 }
0x3d32   : > { %v11825_v56 = vpop.eup %11824  ;;  %11826 = vpow2.f32 %v5839_v53  ;;  %11236 = vmatpush3.msra.mxu1 %v5847_v3  ;;  %v6342_v3 = vld [vmem:[%s14391_s14 + $0x78] sm:$0xff] }
0x3d33   : > { %v6006_v52 = vsel %vm14526_vm7, %v11825_v56, 0.0  ;;  %11245 = vmatprep.subr.mxu1 %v11977_v1  ;;  %vm14541_vm7 = vmmov %vm14533_vm0 }
0x3d34   : > { %6007 = vadd.xlane.f32.xlu0 %v6006_v52  ;;  %v6340_v52 = vld [vmem:[%s14391_s14 + $0x68] sm:$0xff] }
0x3d35   : > { %v6089_v33 = vpop.permute.xlu1 %6088 }
0x3d36   : > { %v6099_v30 = vsel %vm14530_vm13, %v13377_v23, %v6089_v33  ;;  %vm14544_vm13 = vmmov %vm14527_vm10 }
0x3d3f   : > { %v11827_v7 = vpop.eup %11826 }
0x3d40   : > { %v5841_v8 = vsel %vm14527_vm10, %v11827_v7, 0.0 }
0x3d41   : > { %5842 = vadd.xlane.f32.xlu0 %v5841_v8  ;;  %v6338_v8 = vld [vmem:[%s14391_s14 + $0x58] sm:$0xff] }
0x3d57   : > { %6011 = vrot.lane.b32.xlu0 %v13339_v32, %s14493_s25  ;;  %v6105_v32 = vld [vmem:[%s14385_s8 + $0x18] sm:$0xff] }
0x3d58   : > { %11251 = vmatpush3.msra.mxu0 %v6105_v32  ;;  %v6330_v32 = vld [vmem:[%s14391_s14 + $0x18] sm:$0xff] }
0x3d59   : > { %11252 = vmatprep.subr.mxu0 %v11977_v1 }
0x3d5a   : > { %11253 = vmatpush3.msra.mxu0 %v6104_v19  ;;  %v6329_v19 = vld [vmem:[%s14391_s14 + $0x10] sm:$0xff] }
0x3d5b   : > { %11254 = vmatprep.subr.mxu0 %v11977_v1 }
0x3d5c   : > { %11255 = vmatpush3.msra.mxu0 %v6103_v11  ;;  %v6328_v11 = vld [vmem:[%s14391_s14 + $0x8] sm:$0xff] }
0x3d5d   : > { %11256 = vmatprep.subr.mxu0 %v11977_v1 }
0x3d5e   : > { %11257 = vmatpush3.msra.mxu0 %v6102_v24  ;;  %v6327_v24 = vld [vmem:[%s14391_s14] sm:$0xff] }
0x3d5f   : > { %11272 = vmatprep.subr.mxu0 %v11977_v1 }
0x3dbd   : > { %v6008_v9 = vpop.xlane.xlu0 %6007 }
0x3dca   : > { %v5843_v15 = vpop.xlane.xlu0 %5842 }
0x3dcb   : > { %11828 = vrcp.f32 %v5843_v15  ;;  %v6336_v15 = vld [vmem:[%s14391_s14 + $0x48] sm:$0xff] }
0x3dcc   : > { %11830 = vrcp.f32 %v6008_v9  ;;  %v6337_v9 = vld [vmem:[%s14391_s14 + $0x50] sm:$0xff] }
0x3dce   : > { %v6012_v17 = vpop.permute.xlu0 %6011 }
0x3dd8   : > { %v11829_v60 = vpop.eup %11828 }
0x3dd9   : > { %v5845_v61 = vmul.f32 %v11829_v60, %v11827_v7  ;;  %v11831_v16 = vpop.eup %11830  ;;  %v6339_v7 = vld [vmem:[%s14391_s14 + $0x60] sm:$0xff] }
0x3dda   : > { %v6010_v18 = vmul.f32 %v11831_v16, %v11825_v56  ;;  %v6341_v56 = vld [vmem:[%s14391_s14 + $0x70] sm:$0xff]  ;;  %v6335_v60 = vld [vmem:[%s14391_s14 + $0x40] sm:$0xff] }
0x3ddb   : > { %11238 = vmatmul.mubr.msk.f32.vlgmr.msra.gmra.mxu1 %vm14528_vm11, %v5845_v61  ;;  %v6334_v61 = vld [vmem:[%s14391_s14 + $0x38] sm:$0xff]  ;;  %v6333_v16 = vld [vmem:[%s14391_s14 + $0x30] sm:$0xff]  ;;  %vm14542_vm11 = vmmov %vm14527_vm10 }
0x3ddc   : > { %11246 = vmatpush3.msra.mxu1 %v6012_v17  ;;  %11247 = vmatprep.mubr.msk.f32.mxu1 %vm14508_vm8, %v11977_v1  ;;  %v6332_v17 = vld [vmem:[%s14391_s14 + $0x28] sm:$0xff] }
0x3ddd   : > { %11261 = vmatprep.subr.mxu1 %v11977_v1 }
0x3ddf   : > { %11248 = vmatmul.mubr.msk.f32.vlgmr.msra.gmra.mxu1 %vm14529_vm12, %v6010_v18  ;;  %v6331_v18 = vld [vmem:[%s14391_s14 + $0x20] sm:$0xff]  ;;  %vm14543_vm12 = vmmov %vm14527_vm10 }
0x3de0   : > { %11269 = vmatprep.mubr.msk.f32.mxu1 %vm14508_vm8, %v11977_v1  ;;  %11262 = vmatpush3.msra.mxu1 %v6219_v46 }
0x3de1   : > { %11263 = vmatprep.subr.mxu1 %v11977_v1 }
0x3de2   : > { %11264 = vmatpush3.msra.mxu1 %v6218_v47 }
0x3de3   : > { %11265 = vmatprep.subr.mxu1 %v11977_v1 }
0x3de4   : > { %11266 = vmatpush3.msra.mxu1 %v6217_v48 }
0x3de5   : > { %11267 = vmatprep.subr.mxu1 %v11977_v1 }
0x3de6   : > { %11268 = vmatpush3.msra.mxu1 %v6216_v49 }
0x3de7   : > { %11307 = vmatprep.subr.mxu1 %v11977_v1 }
0x3e9b   : > { %v5918_v25 = vpop.f32.mrf.mxu1 }
0x3e9c   : > { %6092 = vrot.lane.b32.xlu1 %v5918_v25, %s14496_s17  ;;  %v10199_v25 = vld [vmem:[%s14483_s13] ss:$0 sm:$0xff] }
0x3e9d   : > { %v11239_v26 = vpop.f32.mrf.mxu1 }
0x3e9f   : > { %v6083_v27 = vpop.f32.mrf.mxu1 }
0x3ea0   : > { %6096 = vrot.lane.b32.xlu1 %v6083_v27, %s14500_s20 }
0x3ea1   : > { %v11249_v29 = vpop.f32.mrf.mxu1 }
0x3f0e   : > { %v6093_v34 = vpop.permute.xlu1 %6092 }
0x3f0f   : > { %v6100_v31 = vsel %vm14531_vm14, %v6099_v30, %v6093_v34  ;;  %vm14545_vm14 = vmmov %vm14527_vm10 }
0x3f12   : > { %v6097_v35 = vpop.permute.xlu1 %6096 }
0x3f13   : > { %v6101_v37 = vsel %vm14532_vm15, %v6100_v31, %v6097_v35  ;;  %vm14546_vm15 = vmmov %vm14527_vm10 }
0x3f14   : > { %11259 = vmatmul.mubr.msk.f32.vlgmr.msra.gmra.mxu0 %vm14533_vm0, %v6101_v37  ;;  %vm14547_vm0 = vmmov %vm14527_vm10 }
0x3f15   : > { %11304 = vmatprep.mubr.msk.f32.mxu0 %vm14508_vm8, %v11977_v1  ;;  %11273 = vmatpush3.msra.mxu0 %v6342_v3 }
0x3f16   : > { %11274 = vmatprep.subr.mxu0 %v11977_v1 }
0x3f17   : > { %11275 = vmatpush3.msra.mxu0 %v6341_v56 }
0x3f18   : > { %11276 = vmatprep.subr.mxu0 %v11977_v1 }
0x3f19   : > { %11277 = vmatpush3.msra.mxu0 %v6340_v52 }
0x3f1a   : > { %11278 = vmatprep.subr.mxu0 %v11977_v1 }
0x3f1b   : > { %11279 = vmatpush3.msra.mxu0 %v6339_v7 }
0x3f1c   : > { %11280 = vmatprep.subr.mxu0 %v11977_v1 }
0x3f1d   : > { %11281 = vmatpush3.msra.mxu0 %v6338_v8 }
0x3f1e   : > { %11282 = vmatprep.subr.mxu0 %v11977_v1 }
0x3f1f   : > { %11283 = vmatpush3.msra.mxu0 %v6337_v9 }
0x3f20   : > { %11284 = vmatprep.subr.mxu0 %v11977_v1 }
0x3f21   : > { %11285 = vmatpush3.msra.mxu0 %v6336_v15 }
0x3f22   : > { %11286 = vmatprep.subr.mxu0 %v11977_v1 }
0x3f23   : > { %11287 = vmatpush3.msra.mxu0 %v6335_v60  ;;  %v10209_v60 = vld [vmem:[%s14384_s7 + $0x38] sm:$0xff] }
0x3f24   : > { %11288 = vmatprep.subr.mxu0 %v11977_v1 }
0x3f25   : > { %11289 = vmatpush3.msra.mxu0 %v6334_v61  ;;  %v10207_v61 = vld [vmem:[%s14384_s7 + $0x28] sm:$0xff] }
0x3f26   : > { %11290 = vmatprep.subr.mxu0 %v11977_v1 }
0x3f27   : > { %11291 = vmatpush3.msra.mxu0 %v6333_v16  ;;  %v10206_v16 = vld [vmem:[%s14384_s7 + $0x20] sm:$0xff] }
0x3f28   : > { %11292 = vmatprep.subr.mxu0 %v11977_v1 }
0x3f29   : > { %11293 = vmatpush3.msra.mxu0 %v6332_v17 }
0x3f2a   : > { %11294 = vmatprep.subr.mxu0 %v11977_v1 }
0x3f2b   : > { %11295 = vmatpush3.msra.mxu0 %v6331_v18 }
0x3f2c   : > { %11296 = vmatprep.subr.mxu0 %v11977_v1 }
0x3f2d   : > { %11297 = vmatpush3.msra.mxu0 %v6330_v32 }
0x3f2e   : > { %11298 = vmatprep.subr.mxu0 %v11977_v1 }
0x3f2f   : > { %11299 = vmatpush3.msra.mxu0 %v6329_v19 }
0x3f30   : > { %11300 = vmatprep.subr.mxu0 %v11977_v1 }
0x3f31   : > { %11301 = vmatpush3.msra.mxu0 %v6328_v11  ;;  %v10204_v11 = vld [vmem:[%s14382_s5 + $0x1] ss:$0 sm:$0xff] }
0x3f32   : > { %11302 = vmatprep.subr.mxu0 %v11977_v1 }
0x3f33   : > { %11303 = vmatpush3.msra.mxu0 %v6327_v24 }
0x3f34   : > { %11348 = vmatprep.subr.mxu0 %v11977_v1 }
0x3fd4   : > { %v6182_v10 = vpop.f32.mrf.mxu0 }
0x3fd5   : > { %v6183_v39 = vadd.f32 %v10195_v38, %v6182_v10 }
0x3fd6   : > { %v11260_v40 = vpop.f32.mrf.mxu0 }
0x3fd7   : > { %v13452_v41 = vadd.f32 %v6183_v39, %v13206_v13 }
0x3fd9   : > { %v6189_v23 = vsel %vm14535_vm5, %v13452_v41, 0.0  ;;  %vm14548_vm5 = vmmov %vm14547_vm0 }
0x3fda   : > { %6190 = vadd.xlane.f32.xlu0 %v6189_v23 }
0x4063   : > { %v6191_v42 = vpop.xlane.xlu0 %6190 }
0x4064   : > { %v6192_v12 = vmul.f32 0.03125, %v6191_v42 }
0x4066   : > { %v6193_v14 = vsub.f32 %v13452_v41, %v6192_v12 }
0x4068   : > { %v6194_v22 = vmul.f32 %v6193_v14, %v6193_v14 }
0x406a   : > { %v6195_v45 = vsel %vm14536_vm9, %v6194_v22, 0.0  ;;  %vm14549_vm9 = vmmov %vm14547_vm0 }
0x406b   : > { %6196 = vadd.xlane.f32.xlu1 %v6195_v45 }
0x40f4   : > { %v6197_v50 = vpop.xlane.xlu1 %6196 }
0x40f5   : > { %v6198_v51 = vmul.f32 0.03125, %v6197_v50 }
0x40f7   : > { %v6199_v55 = vadd.f32 1e-05, %v6198_v51 }
0x40f9   : > { %11832 = vrsqrt.f32 %v6199_v55 }
0x4106   : > { %v11833_v58 = vpop.eup %11832 }
0x4107   : > { %v6201_v63 = vmul.f32 %v11833_v58, %v6193_v14 }
0x4109   : > { %v6208_v57 = vmul.f32 %v10197_v59, %v6201_v63  ;;  %v10201_v63 = vld [vmem:[%s14538_s2] ss:$0 sm:$0xff]  ;;  %s14629_s2 = sld [smem:[#allocation25_spill]] }
0x410b   : > { %v6215_v53 = vadd.f32 %v10198_v0, %v6208_v57 }
0x410d   : > { %11270 = vmatmul.mubr.msk.f32.vlgmr.msra.gmra.mxu1 %vm14537_vm2, %v6215_v53  ;;  %vm14550_vm2 = vmmov %vm14547_vm0 }
0x410e   : > { %11315 = vmatprep.mubr.msk.f32.mxu1 %vm14508_vm8, %v11977_v1  ;;  %11308 = vmatpush3.msra.mxu1 %v10209_v60 }
0x410f   : > { %11309 = vmatprep.subr.mxu1 %v11977_v1 }
0x41cd   : > { %v6296_v26 = vpop.f32.mrf.mxu1 }
0x41ce   : > { %v6297_v27 = vadd.f32 %v10199_v25, %v6296_v26  ;;  %v10205_v25 = vld [vmem:[%s14383_s6 + $0x1] ss:$0 sm:$0xff] }
0x41cf   : > { %v11271_v29 = vpop.f32.mrf.mxu1 }
0x41d0   : > { %v6301_v33 = vmul.f32 0.70710677, %v6297_v27  ;;  %v6300_v55 = vmul.f32 0.5, %v6297_v27 }
0x41d2   : > { %v6302_v34 = vand.u32 2147483647, %v6301_v33  ;;  %vm6322_vm3 = vcmp.ge.f32.partialorder %v6301_v33, 0.0 }
0x41d4   : > { %v6303_v30 = vmul.f32 0.3275911, %v6302_v34  ;;  %v6316_v35 = vsub.f32 0.0, %v6302_v34 }
0x41d6   : > { %v6304_v31 = vadd.f32 1.0, %v6303_v30  ;;  %v6317_v37 = vmul.f32 %v6316_v35, %v6302_v34 }
0x41d8   : > { %11834 = vrcp.f32 %v6304_v31  ;;  %v6318_v39 = vmul.f32 1.442695, %v6317_v37 }
0x41da   : > { %11836 = vpow2.f32 %v6318_v39 }
0x41e5   : > { %v11835_v38 = vpop.eup %11834 }
0x41e6   : > { %v6307_v10 = vmul.f32 1.0614054, %v11835_v38 }
0x41e7   : > { %v11837_v47 = vpop.eup %11836 }
0x41e8   : > { %v6308_v40 = vadd.f32 -1.4531521, %v6307_v10 }
0x41ea   : > { %v6309_v23 = vmul.f32 %v11835_v38, %v6308_v40 }
0x41ec   : > { %v6310_v42 = vadd.f32 1.4214138, %v6309_v23 }
0x41ee   : > { %v6311_v12 = vmul.f32 %v11835_v38, %v6310_v42 }
0x41f0   : > { %v6312_v14 = vadd.f32 -0.28449672, %v6311_v12 }
0x41f2   : > { %v6313_v22 = vmul.f32 %v11835_v38, %v6312_v14 }
0x41f4   : > { %v6314_v45 = vadd.f32 0.2548296, %v6313_v22 }
0x41f6   : > { %v6315_v46 = vmul.f32 %v11835_v38, %v6314_v45 }
0x41f8   : > { %v6320_v48 = vmul.f32 %v11837_v47, %v6315_v46 }
0x41fa   : > { %v6321_v49 = vsub.f32 1.0, %v6320_v48 }
0x41fc   : > { %v6323_v50 = vsub.f32 0.0, %v6321_v49 }
0x41fe   : > { %v6324_v51 = vsel %vm6322_vm3, %v6321_v49, %v6323_v50  ;;  %vm14551_vm3 = vmmov %vm14547_vm0 }
0x41ff   : > { %v6325_v58 = vadd.f32 1.0, %v6324_v51 }
0x4201   : > { %v6326_v59 = vmul.f32 %v6325_v58, %v6300_v55 }
0x4203   : > { %11305 = vmatmul.mubr.f32.vlgmr.msra.gmra.mxu0 %v6326_v59 }
0x4204   : > { %11350 = vmatprep.mubr.msk.f32.mxu0 %vm14508_vm8, %v11977_v1 }
0x42c3   : > { %v6416_v0 = vpop.f32.mrf.mxu0 }
0x42c4   : > { %v6417_v57 = vadd.f32 %v10201_v63, %v6416_v0 }
0x42c5   : > { %v11306_v53 = vpop.f32.mrf.mxu0 }
0x42c6   : > { %v13556_v3 = vadd.f32 %v6417_v57, %v13452_v41  ;;  %v10208_v41 = vld [vmem:[%s14384_s7 + $0x30] sm:$0xff] }
0x42c7   : > { %11310 = vmatpush3.msra.mxu1 %v10208_v41 }
0x42c8   : > { %v6423_v56 = vsel %vm14539_vm4, %v13556_v3, 0.0  ;;  %11311 = vmatprep.subr.mxu1 %v11977_v1  ;;  %vm14552_vm4 = vmmov %vm14547_vm0 }
0x42c9   : > { %6424 = vadd.xlane.f32.xlu0 %v6423_v56  ;;  %11312 = vmatpush3.msra.mxu1 %v10207_v61 }
0x42ca   : > { %11313 = vmatprep.subr.mxu1 %v11977_v1 }
0x42cb   : > { %11314 = vmatpush3.msra.mxu1 %v10206_v16 }
0x42cc   : > { %11318 = vmatprep.subr.mxu1 %v11977_v1 }
0x4352   : > { %v6425_v52 = vpop.xlane.xlu0 %6424 }
0x4353   : > { %v6426_v7 = vmul.f32 0.03125, %v6425_v52 }
0x4355   : > { %v6427_v8 = vsub.f32 %v13556_v3, %v6426_v7 }
0x4357   : > { %v6428_v9 = vmul.f32 %v6427_v8, %v6427_v8 }
0x4359   : > { %v6429_v15 = vsel %vm14540_vm6, %v6428_v9, 0.0  ;;  %vm14553_vm6 = vmmov %vm14547_vm0 }
0x435a   : > { %6430 = vadd.xlane.f32.xlu0 %v6429_v15 }
0x43e3   : > { %v6431_v17 = vpop.xlane.xlu0 %6430 }
0x43e4   : > { %v6432_v18 = vmul.f32 0.03125, %v6431_v17 }
0x43e6   : > { %v6433_v32 = vadd.f32 1e-05, %v6432_v18 }
0x43e8   : > { %11838 = vrsqrt.f32 %v6433_v32 }
0x43f5   : > { %v11839_v19 = vpop.eup %11838 }
0x43f6   : > { %v6435_v24 = vmul.f32 %v11839_v19, %v6427_v8 }
0x43f8   : > { %v6442_v26 = vmul.f32 %v10204_v11, %v6435_v24 }
0x43fa   : > { %v6449_v27 = vadd.f32 %v10205_v25, %v6442_v26 }
0x43fc   : > { %11316 = vmatmul.mubr.msk.f32.vlgmr.msra.gmra.mxu1 %vm14541_vm7, %v6449_v27  ;;  %vm14554_vm7 = vmmov %vm14547_vm0 }
0x43fd   : > { %11320 = vmatprep.mubr.msk.f32.mxu1 %vm14508_vm8, %v11977_v1 }
0x44bc   : > { %v13587_v29 = vpop.f32.mrf.mxu1 }
0x44bd   : > { %6528 = vrot.lane.b32.xlu0 %v13587_v29, %s14485_s26 }
0x44be   : > { %v11317_v33 = vpop.f32.mrf.mxu1 }
0x44c1   : > { %6693 = vrot.lane.b32.xlu0 %v13587_v29, %s14486_s27 }
0x452f   : > { %v6529_v34 = vpop.permute.xlu0 %6528 }
0x4530   : > { %11319 = vmatpush3.xpose.msk.msra.mxu1 %vm14527_vm10, %v6529_v34  ;;  %vm14555_vm10 = vmmov %vm14547_vm0 }
0x4531   : > { %11323 = vmatprep.subr.mxu1 %v11977_v1 }
0x4533   : > { %11321 = vmatmul.mubr.msk.f32.vlgmr.msra.gmra.mxu1 %vm14542_vm11, %v13587_v29  ;;  %v6694_v45 = vpop.permute.xlu0 %6693  ;;  %vm14556_vm11 = vmmov %vm14547_vm0 }
0x4534   : > { %11325 = vmatprep.mubr.msk.f32.mxu1 %vm14508_vm8, %v11977_v1 }
0x45f3   : > { %v6600_v30 = vpop.f32.mrf.mxu1 }
0x45f4   : > { %v6601_v31 = vadd.f32 %v6600_v30, %v13357_v54 }
0x45f5   : > { %v11322_v35 = vpop.f32.mrf.mxu1 }
0x45f6   : > { %v6604_v37 = vsel %vm14543_vm12, %v6601_v31, -inf  ;;  %vm14557_vm12 = vmmov %vm14547_vm0 }
0x45f7   : > { %6605 = vmax.xlane.f32.xlu1 %v6604_v37 }
0x4608   : > { %6615 = vrot.lane.b32.xlu1 %v13587_v29, %s14498_s9 }
0x4680   : > { %v6606_v38 = vpop.xlane.xlu1 %6605 }
0x4681   : > { %v6607_v10 = vsub.f32 %v6601_v31, %v6606_v38 }
0x4683   : > { %v6608_v39 = vmul.f32 1.442695, %v6607_v10 }
0x4684   : > { %v6616_v40 = vpop.permute.xlu1 %6615 }
0x4685   : > { %11840 = vpow2.f32 %v6608_v39  ;;  %11324 = vmatpush3.msra.mxu1 %v6616_v40 }
0x4686   : > { %11328 = vmatprep.subr.mxu1 %v11977_v1 }
0x4692   : > { %v11841_v23 = vpop.eup %11840 }
0x4693   : > { %v6610_v42 = vsel %vm14544_vm13, %v11841_v23, 0.0  ;;  %vm14558_vm13 = vmmov %vm14547_vm0 }
0x4694   : > { %6611 = vadd.xlane.f32.xlu1 %v6610_v42 }
0x46a5   : > { %6691 = vrot.lane.b32.xlu1 %v13587_v29, %s14487_s23 }
0x46a9   : > { %6858 = vrot.lane.b32.xlu1 %v13587_v29, %s14489_s3 }
0x471d   : > { %v6612_v12 = vpop.xlane.xlu1 %6611 }
0x471e   : > { %11842 = vrcp.f32 %v6612_v12 }
0x4721   : > { %v6692_v46 = vpop.permute.xlu1 %6691 }
0x4725   : > { %v6859_v56 = vpop.permute.xlu1 %6858 }
0x472b   : > { %v11843_v14 = vpop.eup %11842 }
0x472c   : > { %v6614_v22 = vmul.f32 %v11843_v14, %v11841_v23 }
0x472e   : > { %11326 = vmatmul.mubr.msk.f32.vlgmr.msra.gmra.mxu1 %vm14545_vm14, %v6614_v22  ;;  %vm14559_vm14 = vmmov %vm14547_vm0 }
0x472f   : > { %11329 = vmatpush3.xpose.msk.msra.mxu1 %vm14546_vm15, %v6694_v45  ;;  %11330 = vmatprep.mubr.msk.f32.mxu1 %vm14508_vm8, %v11977_v1  ;;  %vm14560_vm15 = vmmov %vm14547_vm0  ;;  %v10225_v45 = vld [vmem:[%s14385_s8 + $0x30] sm:$0xff] }
0x4730   : > { %11333 = vmatprep.subr.mxu1 %v11977_v1 }
0x4732   : > { %11331 = vmatmul.mubr.msk.f32.vlgmr.msra.gmra.mxu1 %vm14547_vm0, %v6692_v46  ;;  %v10224_v46 = vld [vmem:[%s14385_s8 + $0x28] sm:$0xff] }
0x4733   : > { %11335 = vmatprep.mubr.msk.f32.mxu1 %vm14508_vm8, %v11977_v1 }
0x47ee   : > { %v13617_v47 = vpop.f32.mrf.mxu1 }
0x47f0   : > { %v11327_v48 = vpop.f32.mrf.mxu1 }
0x47f1   : > { %v10223_v48 = vld [vmem:[%s14385_s8 + $0x20] sm:$0xff] }
0x47f2   : > { %v6765_v49 = vpop.f32.mrf.mxu1 }
0x47f3   : > { %v6766_v50 = vadd.f32 %v6765_v49, %v13357_v54 }
0x47f4   : > { %v11332_v51 = vpop.f32.mrf.mxu1 }
0x47f5   : > { %v6769_v55 = vsel %vm14548_vm5, %v6766_v50, -inf  ;;  %vm14561_vm5 = vcmask 130048  }
0x47f6   : > { %6770 = vmax.xlane.f32.xlu0 %v6769_v55 }
0x480c   : > { %6780 = vrot.lane.b32.xlu0 %v13587_v29, %s14488_s1 }
0x4810   : > { %6856 = vrot.lane.b32.xlu0 %v13587_v29, %s14490_s30 }
0x4814   : > { %7021 = vrot.lane.b32.xlu0 %v13587_v29, %s14492_s29 }
0x487f   : > { %v6771_v58 = vpop.xlane.xlu0 %6770 }
0x4880   : > { %v6772_v59 = vsub.f32 %v6766_v50, %v6771_v58 }
0x4882   : > { %v6773_v63 = vmul.f32 1.442695, %v6772_v59 }
0x4883   : > { %v6781_v0 = vpop.permute.xlu0 %6780 }
0x4884   : > { %11844 = vpow2.f32 %v6773_v63  ;;  %11334 = vmatpush3.msra.mxu1 %v6781_v0 }
0x4885   : > { %11338 = vmatprep.subr.mxu1 %v11977_v1 }
0x4887   : > { %v6857_v7 = vpop.permute.xlu0 %6856 }
0x488b   : > { %v7022_v9 = vpop.permute.xlu0 %7021 }
0x4891   : > { %v11845_v57 = vpop.eup %11844 }
0x4892   : > { %v6775_v53 = vsel %vm14549_vm9, %v11845_v57, 0.0  ;;  %vm14562_vm9 = vcmask 195584  }
0x4893   : > { %6776 = vadd.xlane.f32.xlu1 %v6775_v53 }
0x48a4   : > { %7023 = vrot.lane.b32.xlu1 %v13587_v29, %s14491_s0 }
0x491c   : > { %v6777_v52 = vpop.xlane.xlu1 %6776 }
0x491d   : > { %11846 = vrcp.f32 %v6777_v52 }
0x4920   : > { %v7024_v8 = vpop.permute.xlu1 %7023 }
0x4921   : > { %11349 = vmatpush3.xpose.msk.msra.mxu0 %vm14550_vm2, %v7024_v8  ;;  %vm14563_vm2 = vcmask 261120  }
0x4922   : > { %11358 = vmatprep.subr.mxu0 %v11977_v1 }
0x4924   : > { %11351 = vmatmul.mubr.msk.f32.vlgmr.msra.gmra.mxu0 %vm14551_vm3, %v7022_v9  ;;  %vm14565_vm3 = vmmov %vm14563_vm2 }
0x4925   : > { %11366 = vmatprep.mubr.msk.f32.mxu0 %vm14508_vm8, %v11977_v1 }
0x492a   : > { %v11847_v15 = vpop.eup %11846 }
0x492b   : > { %v6779_v60 = vmul.f32 %v11847_v15, %v11845_v57 }
0x492d   : > { %11336 = vmatmul.mubr.msk.f32.vlgmr.msra.gmra.mxu1 %vm14552_vm4, %v6779_v60  ;;  %vm7526_vm4 = vcmp.eq.s32.totalorder %v13177_v43, 0 }
0x492e   : > { %11339 = vmatpush3.xpose.msk.msra.mxu1 %vm14553_vm6, %v6859_v56  ;;  %11340 = vmatprep.mubr.msk.f32.mxu1 %vm14508_vm8, %v11977_v1  ;;  %v10228_v56 = vld [vmem:[%s14564_s15 + $0x1] ss:$0 sm:$0xff]  ;;  %v7527_v15 = vsel %vm7526_vm4, 1, %v11997_v6  ;;  %vm7539_vm6 = vcmp.eq.s32.totalorder %v13177_v43, 1  ;;  %v10237_v43 = vld [vmem:[%s14389_s12 + $0x38] sm:$0xff]  ;;  %vm7568_vm4 = vcmp.eq.s32.totalorder %v12261_v28, 2 }
0x492f   : > { %11343 = vmatprep.subr.mxu1 %v11977_v1  ;;  %v7540_v60 = vsel %vm7539_vm6, 1, %v11997_v6  ;;  %v10236_v6 = vld [vmem:[%s14389_s12 + $0x30] sm:$0xff]  ;;  %vm7588_vm6 = vcmp.eq.s32.totalorder %v12261_v28, 3 }
0x4931   : > { %11341 = vmatmul.mubr.msk.f32.vlgmr.msra.gmra.mxu1 %vm14554_vm7, %v6857_v7  ;;  %vm14566_vm7 = vmmov %vm14563_vm2 }
0x4932   : > { %11345 = vmatprep.mubr.msk.f32.mxu1 %vm14508_vm8, %v11977_v1 }
0x49e4   : > { %v7095_v41 = vpop.f32.mrf.mxu0 }
0x49e5   : > { %v7096_v61 = vadd.f32 %v7095_v41, %v13357_v54 }
0x49e6   : > { %v11352_v16 = vpop.f32.mrf.mxu0 }
0x49e7   : > { %v7099_v17 = vsel %vm14555_vm10, %v7096_v61, -inf  ;;  %vm14567_vm10 = vmmov %vm14563_vm2 }
0x49e8   : > { %7100 = vmax.xlane.f32.xlu0 %v7099_v17 }
0x49ed   : > { %v6852_v18 = vpop.f32.mrf.mxu1 }
0x49ef   : > { %v11337_v32 = vpop.f32.mrf.mxu1 }
0x49f1   : > { %v6930_v19 = vpop.f32.mrf.mxu1 }
0x49f2   : > { %v6931_v11 = vadd.f32 %v6930_v19, %v13357_v54 }
0x49f3   : > { %v11342_v24 = vpop.f32.mrf.mxu1 }
0x49f4   : > { %v6934_v25 = vsel %vm14556_vm11, %v6931_v11, -inf  ;;  %v10232_v24 = vld [vmem:[%s14387_s10 + $0x1] ss:$0 sm:$0xff] }
0x49f5   : > { %6935 = vmax.xlane.f32.xlu1 %v6934_v25 }
0x4a06   : > { %6945 = vrot.lane.b32.xlu1 %v13587_v29, %s14494_s21 }
0x4a0a   : > { %7187 = vrot.lane.b32.xlu1 %v6852_v18, %s14495_s24  ;;  %v10234_v18 = vld [vmem:[%s14389_s12 + $0x20] sm:$0xff] }
0x4a71   : > { %v7101_v26 = vpop.xlane.xlu0 %7100 }
0x4a72   : > { %v7102_v27 = vsub.f32 %v7096_v61, %v7101_v26  ;;  %v10233_v26 = vld [vmem:[%s14482_s11 + $0x1] ss:$0 sm:$0xff] }
0x4a74   : > { %v7103_v33 = vmul.f32 1.442695, %v7102_v27 }
0x4a76   : > { %11848 = vpow2.f32 %v7103_v33 }
0x4a7e   : > { %v6936_v34 = vpop.xlane.xlu1 %6935 }
0x4a7f   : > { %v6937_v30 = vsub.f32 %v6931_v11, %v6936_v34  ;;  %v10255_v34 = vld [vmem:[%s14391_s14 + $0xf0] sm:$0xff] }
0x4a81   : > { %v6938_v31 = vmul.f32 1.442695, %v6937_v30  ;;  %v10254_v30 = vld [vmem:[%s14391_s14 + $0xe8] sm:$0xff] }
0x4a82   : > { %v6946_v35 = vpop.permute.xlu1 %6945 }
0x4a83   : > { %v11849_v37 = vpop.eup %11848  ;;  %11850 = vpow2.f32 %v6938_v31  ;;  %11344 = vmatpush3.msra.mxu1 %v6946_v35  ;;  %v10253_v31 = vld [vmem:[%s14391_s14 + $0xe0] sm:$0xff]  ;;  %v10252_v35 = vld [vmem:[%s14391_s14 + $0xd8] sm:$0xff] }
0x4a84   : > { %v7105_v54 = vsel %vm14557_vm12, %v11849_v37, 0.0  ;;  %11353 = vmatprep.subr.mxu1 %v11977_v1 }
0x4a85   : > { %7106 = vadd.xlane.f32.xlu0 %v7105_v54  ;;  %v10250_v54 = vld [vmem:[%s14391_s14 + $0xc8] sm:$0xff] }
0x4a86   : > { %v7188_v58 = vpop.permute.xlu1 %7187 }
0x4a87   : > { %v7198_v63 = vsel %vm14547_vm0, %v13617_v47, %v7188_v58 }
0x4a90   : > { %v11851_v38 = vpop.eup %11850 }
0x4a91   : > { %v6940_v10 = vsel %vm14558_vm13, %v11851_v38, 0.0 }
0x4a92   : > { %6941 = vadd.xlane.f32.xlu0 %v6940_v10  ;;  %v10248_v10 = vld [vmem:[%s14391_s14 + $0xb8] sm:$0xff] }
0x4aa8   : > { %7110 = vrot.lane.b32.xlu0 %v13587_v29, %s14493_s25  ;;  %v10226_v29 = vld [vmem:[%s14385_s8 + $0x38] sm:$0xff] }
0x4aa9   : > { %11359 = vmatpush3.msra.mxu0 %v10226_v29  ;;  %v10239_v29 = vld [vmem:[%s14483_s13 + $0x1] ss:$0 sm:$0xff] }
0x4aaa   : > { %11360 = vmatprep.subr.mxu0 %v11977_v1 }
0x4aab   : > { %11361 = vmatpush3.msra.mxu0 %v10225_v45 }
0x4aac   : > { %11362 = vmatprep.subr.mxu0 %v11977_v1 }
0x4aad   : > { %11363 = vmatpush3.msra.mxu0 %v10224_v46 }
0x4aae   : > { %11364 = vmatprep.subr.mxu0 %v11977_v1 }
0x4aaf   : > { %11365 = vmatpush3.msra.mxu0 %v10223_v48 }
0x4ab0   : > { %11380 = vmatprep.subr.mxu0 %v11977_v1 }
0x4b0e   : > { %v7107_v39 = vpop.xlane.xlu0 %7106 }
0x4b1b   : > { %v6942_v40 = vpop.xlane.xlu0 %6941 }
0x4b1c   : > { %11852 = vrcp.f32 %v6942_v40  ;;  %v10246_v40 = vld [vmem:[%s14391_s14 + $0xa8] sm:$0xff] }
0x4b1d   : > { %11854 = vrcp.f32 %v7107_v39  ;;  %v10247_v39 = vld [vmem:[%s14391_s14 + $0xb0] sm:$0xff] }
0x4b1f   : > { %v7111_v14 = vpop.permute.xlu0 %7110 }
0x4b29   : > { %v11853_v23 = vpop.eup %11852 }
0x4b2a   : > { %v6944_v42 = vmul.f32 %v11853_v23, %v11851_v38  ;;  %v11855_v12 = vpop.eup %11854  ;;  %v10249_v38 = vld [vmem:[%s14391_s14 + $0xc0] sm:$0xff] }
0x4b2b   : > { %v7109_v22 = vmul.f32 %v11855_v12, %v11849_v37  ;;  %v10251_v37 = vld [vmem:[%s14391_s14 + $0xd0] sm:$0xff]  ;;  %v10245_v23 = vld [vmem:[%s14391_s14 + $0xa0] sm:$0xff] }
0x4b2c   : > { %11346 = vmatmul.mubr.msk.f32.vlgmr.msra.gmra.mxu1 %vm14559_vm14, %v6944_v42  ;;  %v10244_v42 = vld [vmem:[%s14391_s14 + $0x98] sm:$0xff]  ;;  %v10243_v12 = vld [vmem:[%s14391_s14 + $0x90] sm:$0xff] }
0x4b2d   : > { %11354 = vmatpush3.msra.mxu1 %v7111_v14  ;;  %11355 = vmatprep.mubr.msk.f32.mxu1 %vm14508_vm8, %v11977_v1  ;;  %v10242_v14 = vld [vmem:[%s14391_s14 + $0x88] sm:$0xff] }
0x4b2e   : > { %11369 = vmatprep.subr.mxu1 %v11977_v1 }
0x4b30   : > { %11356 = vmatmul.mubr.msk.f32.vlgmr.msra.gmra.mxu1 %vm14560_vm15, %v7109_v22  ;;  %v10241_v22 = vld [vmem:[%s14391_s14 + $0x80] sm:$0xff] }
0x4b31   : > { %11377 = vmatprep.mubr.msk.f32.mxu1 %vm14508_vm8, %v11977_v1  ;;  %11370 = vmatpush3.msra.mxu1 %v10237_v43 }
0x4b32   : > { %11371 = vmatprep.subr.mxu1 %v11977_v1 }
0x4b33   : > { %11372 = vmatpush3.msra.mxu1 %v10236_v6 }
0x4b34   : > { %11373 = vmatprep.subr.mxu1 %v11977_v1 }
0x4bec   : > { %v7017_v49 = vpop.f32.mrf.mxu1 }
0x4bed   : > { %7191 = vrot.lane.b32.xlu1 %v7017_v49, %s14496_s17 }
0x4bee   : > { %v11347_v50 = vpop.f32.mrf.mxu1 }
0x4bf0   : > { %v7182_v51 = vpop.f32.mrf.mxu1 }
0x4bf1   : > { %7195 = vrot.lane.b32.xlu1 %v7182_v51, %s14500_s20 }
0x4bf2   : > { %v11357_v55 = vpop.f32.mrf.mxu1 }
0x4c5f   : > { %v7192_v59 = vpop.permute.xlu1 %7191 }
0x4c60   : > { %v7199_v0 = vsel %vm14561_vm5, %v7198_v63, %v7192_v59 }
0x4c63   : > { %v7196_v57 = vpop.permute.xlu1 %7195 }
0x4c64   : > { %v7200_v53 = vsel %vm14562_vm9, %v7199_v0, %v7196_v57 }
0x4c65   : > { %11367 = vmatmul.mubr.msk.f32.vlgmr.msra.gmra.mxu0 %vm14563_vm2, %v7200_v53 }
0x4c66   : > { %11412 = vmatprep.mubr.msk.f32.mxu0 %vm14508_vm8, %v11977_v1 }
0x4d25   : > { %v7281_v52 = vpop.f32.mrf.mxu0 }
0x4d26   : > { %v7282_v7 = vadd.f32 %v10228_v56, %v7281_v52 }
0x4d27   : > { %v11368_v8 = vpop.f32.mrf.mxu0 }
0x4d28   : > { %v13692_v9 = vadd.f32 %v7282_v7, %v13556_v3 }
0x4d2a   : > { %v7288_v47 = vsel %vm14565_vm3, %v13692_v9, 0.0  ;;  %vm7548_vm3 = vcmp.eq.s32.totalorder %v12261_v28, 1 }
0x4d2b   : > { %7289 = vadd.xlane.f32.xlu0 %v7288_v47 }
0x4d41   : > { %7529 = vperm.xlu0 %11712, %v7527_v15  }
0x4d45   : > { %11717 = vset.pattern.permute.xlu0 %v11995_v4 }
0x4d46   : > { %7604 = vperm.xlu0 %11717, %v7540_v60  }
0x4db4   : > { %v7290_v41 = vpop.xlane.xlu0 %7289 }
0x4db5   : > { %v7291_v61 = vmul.f32 0.03125, %v7290_v41 }
0x4db7   : > { %v7292_v3 = vsub.f32 %v13692_v9, %v7291_v61 }
0x4db9   : > { %v7293_v16 = vmul.f32 %v7292_v3, %v7292_v3 }
0x4dbb   : > { %v7294_v17 = vsel %vm14566_vm7, %v7293_v16, 0.0  ;;  %vm7608_vm7 = vcmp.eq.s32.totalorder %v12261_v28, 4  ;;  %v10266_v28 = vld [vmem:[%s14384_s7 + $0x58] sm:$0xff] }
0x4dbc   : > { %7295 = vadd.xlane.f32.xlu1 %v7294_v17 }
0x4dcd   : > { %7542 = vperm.xlu1 %11713, %v7540_v60  }
0x4dd1   : > { %11714 = vset.pattern.permute.xlu1 %v11996_v5  ;;  %v10235_v5 = vld [vmem:[%s14389_s12 + $0x28] sm:$0xff] }
0x4dd2   : > { %7557 = vperm.xlu1 %11714, %v7527_v15   ;;  %11374 = vmatpush3.msra.mxu1 %v10235_v5 }
0x4dd3   : > { %11375 = vmatprep.subr.mxu1 %v11977_v1 }
0x4dd4   : > { %11376 = vmatpush3.msra.mxu1 %v10234_v18 }
0x4dd5   : > { %11415 = vmatprep.subr.mxu1 %v11977_v1 }
0x4dd6   : > { %7564 = vperm.xlu1 %11714, %v7540_v60  }
0x4dda   : > { %11715 = vset.pattern.permute.xlu1 %v11999_v20 }
0x4ddb   : > { %7577 = vperm.xlu1 %11715, %v7527_v15  }
0x4ddf   : > { %7584 = vperm.xlu1 %11715, %v7540_v60  }
0x4de3   : > { %11716 = vset.pattern.permute.xlu1 %v11995_v4  ;;  %v10256_v4 = vld [vmem:[%s14391_s14 + $0xf8] sm:$0xff] }
0x4de4   : > { %7597 = vperm.xlu1 %11716, %v7527_v15   ;;  %11381 = vmatpush3.msra.mxu0 %v10256_v4 }
0x4de5   : > { %11382 = vmatprep.subr.mxu0 %v11977_v1 }
0x4de6   : > { %11383 = vmatpush3.msra.mxu0 %v10255_v34 }
0x4de7   : > { %11384 = vmatprep.subr.mxu0 %v11977_v1 }
0x4de8   : > { %11385 = vmatpush3.msra.mxu0 %v10254_v30 }
0x4de9   : > { %11386 = vmatprep.subr.mxu0 %v11977_v1 }
0x4dea   : > { %11387 = vmatpush3.msra.mxu0 %v10253_v31 }
0x4deb   : > { %11388 = vmatprep.subr.mxu0 %v11977_v1 }
0x4dec   : > { %11389 = vmatpush3.msra.mxu0 %v10252_v35  ;;  %v7536_v35 = vrot.slane %v12275_v36, 1 }
0x4ded   : > { %11390 = vmatprep.subr.mxu0 %v11977_v1 }
0x4dee   : > { %11391 = vmatpush3.msra.mxu0 %v10251_v37  ;;  %v7560_v37 = vrot.slane %v12275_v36, 2 }
0x4def   : > { %11392 = vmatprep.subr.mxu0 %v11977_v1 }
0x4df0   : > { %11393 = vmatpush3.msra.mxu0 %v10250_v54  ;;  %v7580_v54 = vrot.slane %v12275_v36, 3 }
0x4df1   : > { %11394 = vmatprep.subr.mxu0 %v11977_v1 }
0x4df2   : > { %11395 = vmatpush3.msra.mxu0 %v10249_v38  ;;  %v7600_v38 = vrot.slane %v12275_v36, 4 }
0x4df3   : > { %11396 = vmatprep.subr.mxu0 %v11977_v1 }
0x4df4   : > { %11397 = vmatpush3.msra.mxu0 %v10248_v10 }
0x4df5   : > { %11398 = vmatprep.subr.mxu0 %v11977_v1 }
0x4df6   : > { %11399 = vmatpush3.msra.mxu0 %v10247_v39 }
0x4df7   : > { %11400 = vmatprep.subr.mxu0 %v11977_v1 }
0x4df8   : > { %11401 = vmatpush3.msra.mxu0 %v10246_v40 }
0x4df9   : > { %11402 = vmatprep.subr.mxu0 %v11977_v1 }
0x4dfa   : > { %11403 = vmatpush3.msra.mxu0 %v10245_v23 }
0x4dfb   : > { %11404 = vmatprep.subr.mxu0 %v11977_v1 }
0x4dfc   : > { %11405 = vmatpush3.msra.mxu0 %v10244_v42 }
0x4dfd   : > { %11406 = vmatprep.subr.mxu0 %v11977_v1 }
0x4dfe   : > { %11407 = vmatpush3.msra.mxu0 %v10243_v12 }
0x4dff   : > { %11408 = vmatprep.subr.mxu0 %v11977_v1 }
0x4e00   : > { %11409 = vmatpush3.msra.mxu0 %v10242_v14 }
0x4e01   : > { %11410 = vmatprep.subr.mxu0 %v11977_v1 }
0x4e02   : > { %11411 = vmatpush3.msra.mxu0 %v10241_v22 }
0x4e03   : > { %11456 = vmatprep.subr.mxu0 %v11977_v1 }
0x4e45   : > { %v7296_v20 = vpop.xlane.xlu1 %7295 }
0x4e46   : > { %v7297_v32 = vmul.f32 0.03125, %v7296_v20 }
0x4e48   : > { %v7298_v19 = vadd.f32 1e-05, %v7297_v32 }
0x4e49   : > { %v7543_v18 = vpop.permute.xlu1 %7542 }
0x4e4a   : > { %11856 = vrsqrt.f32 %v7298_v19  ;;  %vm7544_vm14 = vcmp.eq.s32.totalorder %v7543_v18, 1 }
0x4e4d   : > { %v7558_v20 = vpop.permute.xlu1 %7557 }
0x4e4e   : > { %vm7559_vm15 = vcmp.eq.s32.totalorder %v7558_v20, 1 }
0x4e51   : > { %v7565_v32 = vpop.permute.xlu1 %7564 }
0x4e52   : > { %vm7566_vm0 = vcmp.eq.s32.totalorder %v7565_v32, 1 }
0x4e56   : > { %v7578_v19 = vpop.permute.xlu1 %7577 }
0x4e57   : > { %v11857_v11 = vpop.eup %11856  ;;  %vm7579_vm5 = vcmp.eq.s32.totalorder %v7578_v19, 1 }
0x4e58   : > { %v7300_v25 = vmul.f32 %v11857_v11, %v7292_v3  ;;  %v7530_v11 = vpop.permute.xlu0 %7529 }
0x4e59   : > { %vm7531_vm12 = vcmp.eq.s32.totalorder %v7530_v11, 1 }
0x4e5a   : > { %v7307_v27 = vmul.f32 %v10232_v24, %v7300_v25  ;;  %v10258_v24 = vld [vmem:[%s14568_s22 + $0x1] ss:$0 sm:$0xff]  ;;  %v7585_v25 = vpop.permute.xlu1 %7584 }
0x4e5b   : > { %vm7586_vm9 = vcmp.eq.s32.totalorder %v7585_v25, 1 }
0x4e5c   : > { %v7314_v33 = vadd.f32 %v10233_v26, %v7307_v27  ;;  %v7605_v4 = vpop.permute.xlu0 %7604 }
0x4e5d   : > { %vm7606_vm13 = vcmp.eq.s32.totalorder %v7605_v4, 1 }
0x4e5e   : > { %11378 = vmatmul.mubr.msk.f32.vlgmr.msra.gmra.mxu1 %vm14567_vm10, %v7314_v33 }
0x4e5f   : > { %11423 = vmatprep.mubr.msk.f32.mxu1 %vm14508_vm8, %v11977_v1  ;;  %v7598_v30 = vpop.permute.xlu1 %7597  ;;  %11416 = vmatpush3.msra.mxu1 %v10266_v28 }
0x4e60   : > { %vm7599_vm2 = vcmp.eq.s32.totalorder %v7598_v30, 1  ;;  %11417 = vmatprep.subr.mxu1 %v11977_v1 }
0x4f1e   : > { %v7395_v45 = vpop.f32.mrf.mxu1 }
0x4f1f   : > { %v7396_v46 = vadd.f32 %v10239_v29, %v7395_v45 }
0x4f20   : > { %v11379_v48 = vpop.f32.mrf.mxu1 }
0x4f21   : > { %v7400_v49 = vmul.f32 0.70710677, %v7396_v46  ;;  %v7399_v43 = vmul.f32 0.5, %v7396_v46 }
0x4f23   : > { %v7401_v50 = vand.u32 2147483647, %v7400_v49  ;;  %vm7421_vm11 = vcmp.ge.f32.partialorder %v7400_v49, 0.0 }
0x4f25   : > { %v7402_v51 = vmul.f32 0.3275911, %v7401_v50  ;;  %v7415_v58 = vsub.f32 0.0, %v7401_v50 }
0x4f27   : > { %v7403_v55 = vadd.f32 1.0, %v7402_v51  ;;  %v7416_v59 = vmul.f32 %v7415_v58, %v7401_v50 }
0x4f29   : > { %11858 = vrcp.f32 %v7403_v55  ;;  %v7417_v57 = vmul.f32 1.442695, %v7416_v59 }
0x4f2b   : > { %11860 = vpow2.f32 %v7417_v57 }
0x4f36   : > { %v11859_v63 = vpop.eup %11858 }
0x4f37   : > { %v7406_v0 = vmul.f32 1.0614054, %v11859_v63 }
0x4f38   : > { %v11861_v41 = vpop.eup %11860 }
0x4f39   : > { %v7407_v53 = vadd.f32 -1.4531521, %v7406_v0 }
0x4f3b   : > { %v7408_v56 = vmul.f32 %v11859_v63, %v7407_v53 }
0x4f3d   : > { %v7409_v52 = vadd.f32 1.4214138, %v7408_v56 }
0x4f3f   : > { %v7410_v7 = vmul.f32 %v11859_v63, %v7409_v52  ;;  %v10264_v52 = vld [vmem:[%s14384_s7 + $0x48] sm:$0xff] }
0x4f41   : > { %v7411_v8 = vadd.f32 -0.28449672, %v7410_v7  ;;  %v10263_v7 = vld [vmem:[%s14384_s7 + $0x40] sm:$0xff] }
0x4f43   : > { %v7412_v47 = vmul.f32 %v11859_v63, %v7411_v8 }
0x4f45   : > { %v7413_v15 = vadd.f32 0.2548296, %v7412_v47 }
0x4f47   : > { %v7414_v60 = vmul.f32 %v11859_v63, %v7413_v15 }
0x4f49   : > { %v7419_v61 = vmul.f32 %v11861_v41, %v7414_v60  ;;  %v10261_v41 = vld [vmem:[%s14382_s5 + $0x2] ss:$0 sm:$0xff] }
0x4f4b   : > { %v7420_v3 = vsub.f32 1.0, %v7419_v61 }
0x4f4d   : > { %v7422_v16 = vsub.f32 0.0, %v7420_v3 }
0x4f4f   : > { %v7423_v17 = vsel %vm7421_vm11, %v7420_v3, %v7422_v16  ;;  %v10262_v3 = vld [vmem:[%s14383_s6 + $0x2] ss:$0 sm:$0xff] }
0x4f50   : > { %v7424_v6 = vadd.f32 1.0, %v7423_v17 }
0x4f52   : > { %v7425_v5 = vmul.f32 %v7424_v6, %v7399_v43 }
0x4f54   : > { %11413 = vmatmul.mubr.f32.vlgmr.msra.gmra.mxu0 %v7425_v5 }
0x4f55   : > { %11458 = vmatprep.mubr.msk.f32.mxu0 %vm14508_vm8, %v11977_v1 }
0x5014   : > { %v7515_v26 = vpop.f32.mrf.mxu0 }
0x5015   : > { %v7516_v27 = vadd.f32 %v10258_v24, %v7515_v26 }
0x5016   : > { %v11414_v33 = vpop.f32.mrf.mxu0 }
0x5017   : > { %v7519_v34 = vadd.f32 %v7516_v27, %v13692_v9 }
0x5019   : > { %v7520_v31 = vadd.f32 %v7519_v34, %v13206_v13  ;;  %v7524_v13 = vrot.slane %v7519_v34, %v13180_v44 }
0x501b   : > { %v7533_v10 = vrot.slane %v7520_v31, 1  ;;  %v7545_v39 = vrot.slane %v7520_v31, 2  ;;  %v7525_v46 = vsel %vm742_vm1, %v7524_v13, 0.0  ;;  %vm14569_vm1 = vmmov %vm14567_vm10 }
0x501c   : > { %vm14570_vm11 = vmmov %vm14569_vm1 }
0x501d   : > { %v7538_v9 = vsel %vm7531_vm12, %v7533_v10, %v7536_v35  ;;  %v7562_v40 = vsel %vm7559_vm15, %v7533_v10, %v7560_v37  ;;  %v7582_v23 = vsel %vm7579_vm5, %v7533_v10, %v7580_v54  ;;  %v7602_v42 = vsel %vm7599_vm2, %v7533_v10, %v7600_v38 }
0x501e   : > { %v7547_v12 = vsel %vm7544_vm14, %v7545_v39, %v7538_v9  ;;  %v7567_v14 = vsel %vm7566_vm0, %v7545_v39, %v7562_v40  ;;  %v7587_v22 = vsel %vm7586_vm9, %v7545_v39, %v7582_v23  ;;  %v7607_v45 = vsel %vm7606_vm13, %v7545_v39, %v7602_v42 }
0x501f   : > { %v7554_v36 = vrot.slane %v7547_v12, %v13180_v44  ;;  %v7574_v29 = vrot.slane %v7567_v14, %v13180_v44  ;;  %v7594_v49 = vrot.slane %v7587_v22, %v13180_v44  ;;  %v7614_v51 = vrot.slane %v7607_v45, %v13180_v44  ;;  %v10265_v44 = vld [vmem:[%s14384_s7 + $0x50] sm:$0xff] }
0x5020   : > { %11418 = vmatpush3.msra.mxu1 %v10265_v44  ;;  %vm14571_vm12 = vcmask 64512  }
0x5021   : > { %v7555_v48 = vsel %vm7548_vm3, %v7554_v36, %v7525_v46  ;;  %11419 = vmatprep.subr.mxu1 %v11977_v1  ;;  %vm14572_vm13 = vmmov %vm14571_vm12 }
0x5022   : > { %v7575_v50 = vsel %vm7568_vm4, %v7574_v29, %v7555_v48  ;;  %11420 = vmatpush3.msra.mxu1 %v10264_v52  ;;  %vm14573_vm14 = vmmov %vm14571_vm12 }
0x5023   : > { %v7595_v55 = vsel %vm7588_vm6, %v7594_v49, %v7575_v50  ;;  %11421 = vmatprep.subr.mxu1 %v11977_v1  ;;  %vm14574_vm15 = vmmov %vm14571_vm12 }
0x5024   : > { %v13821_v58 = vsel %vm7608_vm7, %v7614_v51, %v7595_v55  ;;  %11422 = vmatpush3.msra.mxu1 %v10263_v7  ;;  %vm14575_vm0 = vmmov %vm14571_vm12 }
0x5025   : > { %v7618_v59 = vsel %vm14567_vm10, %v13821_v58, 0.0  ;;  %11426 = vmatprep.subr.mxu1 %v11977_v1  ;;  %vm14576_vm5 = vmmov %vm14575_vm0 }
0x5026   : > { %7619 = vadd.xlane.f32.xlu1 %v7618_v59  ;;  %vm14577_vm9 = vmmov %vm14575_vm0 }
0x5027   : > { %vm14578_vm2 = vmmov %vm14575_vm0 }
0x5028   : > { %vm14579_vm3 = vmmov %vm14575_vm0 }
0x5029   : > { %vm14580_vm4 = vmmov %vm14575_vm0 }
0x502a   : > { %vm14581_vm6 = vmmov %vm14575_vm0 }
0x502b   : > { %vm14582_vm7 = vmmov %vm14575_vm0 }
0x502c   : > { %vm14583_vm10 = vmmov %vm14575_vm0 }
0x50af   : > { %v7620_v63 = vpop.xlane.xlu1 %7619 }
0x50b0   : > { %v7621_v0 = vmul.f32 0.03125, %v7620_v63 }
0x50b2   : > { %v7622_v57 = vsub.f32 %v13821_v58, %v7621_v0 }
0x50b4   : > { %v7623_v53 = vmul.f32 %v7622_v57, %v7622_v57 }
0x50b6   : > { %v7624_v56 = vsel %vm14569_vm1, %v7623_v53, 0.0  ;;  %vm14584_vm1 = vmmov %vm14575_vm0 }
0x50b7   : > { %7625 = vadd.xlane.f32.xlu0 %v7624_v56 }
0x5140   : > { %v7626_v8 = vpop.xlane.xlu0 %7625 }
0x5141   : > { %v7627_v47 = vmul.f32 0.03125, %v7626_v8 }
0x5143   : > { %v7628_v15 = vadd.f32 1e-05, %v7627_v47 }
0x5145   : > { %11862 = vrsqrt.f32 %v7628_v15 }
0x5152   : > { %v11863_v60 = vpop.eup %11862 }
0x5153   : > { %v7630_v61 = vmul.f32 %v11863_v60, %v7622_v57 }
0x5155   : > { %v7637_v16 = vmul.f32 %v10261_v41, %v7630_v61 }
0x5157   : > { %v7644_v17 = vadd.f32 %v10262_v3, %v7637_v16 }
0x5159   : > { %11424 = vmatmul.mubr.msk.f32.vlgmr.msra.gmra.mxu1 %vm14570_vm11, %v7644_v17  ;;  %vm14585_vm11 = vmmov %vm14575_vm0 }
0x515a   : > { %11428 = vmatprep.mubr.msk.f32.mxu1 %vm14508_vm8, %v11977_v1 }
0x5219   : > { %v13852_v43 = vpop.f32.mrf.mxu1 }
0x521a   : > { %7723 = vrot.lane.b32.xlu1 %v13852_v43, %s14485_s26 }
0x521b   : > { %v11425_v6 = vpop.f32.mrf.mxu1 }
0x521e   : > { %7888 = vrot.lane.b32.xlu1 %v13852_v43, %s14486_s27 }
0x5222   : > { %7886 = vrot.lane.b32.xlu1 %v13852_v43, %s14487_s23 }
0x528c   : > { %v7724_v5 = vpop.permute.xlu1 %7723 }
0x528d   : > { %11427 = vmatpush3.xpose.msk.msra.mxu1 %vm14571_vm12, %v7724_v5  ;;  %vm14586_vm12 = vmmov %vm14575_vm0 }
0x528e   : > { %11431 = vmatprep.subr.mxu1 %v11977_v1 }
0x5290   : > { %11429 = vmatmul.mubr.msk.f32.vlgmr.msra.gmra.mxu1 %vm14572_vm13, %v13852_v43  ;;  %v7889_v30 = vpop.permute.xlu1 %7888  ;;  %vm14587_vm13 = vmmov %vm14575_vm0 }
0x5291   : > { %11433 = vmatprep.mubr.msk.f32.mxu1 %vm14508_vm8, %v11977_v1 }
0x5294   : > { %v7887_v35 = vpop.permute.xlu1 %7886 }
0x5350   : > { %v7795_v18 = vpop.f32.mrf.mxu1 }
0x5351   : > { %v7796_v20 = vadd.f32 %v7795_v18, %v12327_v62 }
0x5352   : > { %v11430_v32 = vpop.f32.mrf.mxu1 }
0x5353   : > { %v7799_v19 = vsel %vm14573_vm14, %v7796_v20, -inf  ;;  %vm14588_vm14 = vmmov %vm14575_vm0 }
0x5354   : > { %7800 = vmax.xlane.f32.xlu0 %v7799_v19 }
0x53dd   : > { %v7801_v11 = vpop.xlane.xlu0 %7800 }
0x53de   : > { %v7802_v24 = vsub.f32 %v7796_v20, %v7801_v11  ;;  %v10282_v11 = vld [vmem:[%s14385_s8 + $0x50] sm:$0xff] }
0x53e0   : > { %v7803_v25 = vmul.f32 1.442695, %v7802_v24  ;;  %v10281_v24 = vld [vmem:[%s14385_s8 + $0x48] sm:$0xff] }
0x53e2   : > { %11864 = vpow2.f32 %v7803_v25  ;;  %v10280_v25 = vld [vmem:[%s14385_s8 + $0x40] sm:$0xff] }
0x53ef   : > { %v11865_v26 = vpop.eup %11864 }
0x53f0   : > { %v7805_v27 = vsel %vm14574_vm15, %v11865_v26, 0.0  ;;  %vm14589_vm15 = vmmov %vm14575_vm0 }
0x53f1   : > { %7806 = vadd.xlane.f32.xlu0 %v7805_v27 }
0x5407   : > { %7810 = vrot.lane.b32.xlu0 %v13852_v43, %s14498_s9 }
0x547a   : > { %v7807_v33 = vpop.xlane.xlu0 %7806 }
0x547b   : > { %11866 = vrcp.f32 %v7807_v33 }
0x547e   : > { %v7811_v4 = vpop.permute.xlu0 %7810 }
0x547f   : > { %11432 = vmatpush3.msra.mxu1 %v7811_v4 }
0x5480   : > { %11436 = vmatprep.subr.mxu1 %v11977_v1 }
0x5488   : > { %v11867_v34 = vpop.eup %11866 }
0x5489   : > { %v7809_v31 = vmul.f32 %v11867_v34, %v11865_v26 }
0x548b   : > { %11434 = vmatmul.mubr.msk.f32.vlgmr.msra.gmra.mxu1 %vm14575_vm0, %v7809_v31 }
0x548c   : > { %11437 = vmatpush3.xpose.msk.msra.mxu1 %vm14576_vm5, %v7889_v30  ;;  %11438 = vmatprep.mubr.msk.f32.mxu1 %vm14508_vm8, %v11977_v1  ;;  %vm14590_vm5 = vmmov %vm14575_vm0 }
0x548d   : > { %11441 = vmatprep.subr.mxu1 %v11977_v1 }
0x548f   : > { %11439 = vmatmul.mubr.msk.f32.vlgmr.msra.gmra.mxu1 %vm14577_vm9, %v7887_v35  ;;  %vm14591_vm9 = vcmask 130048  }
0x5490   : > { %11443 = vmatprep.mubr.msk.f32.mxu1 %vm14508_vm8, %v11977_v1 }
0x554b   : > { %v13880_v37 = vpop.f32.mrf.mxu1 }
0x554d   : > { %v11435_v54 = vpop.f32.mrf.mxu1 }
0x554f   : > { %v7960_v38 = vpop.f32.mrf.mxu1 }
0x5550   : > { %v7961_v10 = vadd.f32 %v7960_v38, %v12327_v62 }
0x5551   : > { %v11440_v39 = vpop.f32.mrf.mxu1 }
0x5552   : > { %v7964_v13 = vsel %vm14578_vm2, %v7961_v10, -inf  ;;  %vm14592_vm2 = vcmask 195584  }
0x5553   : > { %7965 = vmax.xlane.f32.xlu1 %v7964_v13 }
0x5564   : > { %7975 = vrot.lane.b32.xlu1 %v13852_v43, %s14488_s1 }
0x5568   : > { %8051 = vrot.lane.b32.xlu1 %v13852_v43, %s14490_s30 }
0x556c   : > { %8218 = vrot.lane.b32.xlu1 %v13852_v43, %s14491_s0 }
0x55dc   : > { %v7966_v9 = vpop.xlane.xlu1 %7965 }
0x55dd   : > { %v7967_v40 = vsub.f32 %v7961_v10, %v7966_v9  ;;  %v10285_v10 = vld [vmem:[%s14564_s15 + $0x2] ss:$0 sm:$0xff] }
0x55df   : > { %v7968_v23 = vmul.f32 1.442695, %v7967_v40 }
0x55e0   : > { %v7976_v42 = vpop.permute.xlu1 %7975 }
0x55e1   : > { %11868 = vpow2.f32 %v7968_v23  ;;  %11442 = vmatpush3.msra.mxu1 %v7976_v42 }
0x55e2   : > { %11446 = vmatprep.subr.mxu1 %v11977_v1 }
0x55e4   : > { %v8052_v12 = vpop.permute.xlu1 %8051 }
0x55e8   : > { %v8219_v14 = vpop.permute.xlu1 %8218 }
0x55e9   : > { %11457 = vmatpush3.xpose.msk.msra.mxu0 %vm14579_vm3, %v8219_v14  ;;  %vm14593_vm3 = vcmask 261120  }
0x55ea   : > { %11466 = vmatprep.subr.mxu0 %v11977_v1 }
0x55ee   : > { %v11869_v22 = vpop.eup %11868 }
0x55ef   : > { %v7970_v36 = vsel %vm14580_vm4, %v11869_v22, 0.0  ;;  %vm14594_vm4 = vmmov %vm14593_vm3 }
0x55f0   : > { %7971 = vadd.xlane.f32.xlu0 %v7970_v36  ;;  %v10294_v36 = vld [vmem:[%s14389_s12 + $0x58] sm:$0xff] }
0x5606   : > { %8053 = vrot.lane.b32.xlu0 %v13852_v43, %s14489_s3 }
0x560a   : > { %8216 = vrot.lane.b32.xlu0 %v13852_v43, %s14492_s29 }
0x5679   : > { %v7972_v29 = vpop.xlane.xlu0 %7971 }
0x567a   : > { %11870 = vrcp.f32 %v7972_v29  ;;  %v10292_v29 = vld [vmem:[%s14389_s12 + $0x48] sm:$0xff] }
0x567d   : > { %v8054_v45 = vpop.permute.xlu0 %8053 }
0x5681   : > { %v8217_v46 = vpop.permute.xlu0 %8216 }
0x5682   : > { %11459 = vmatmul.mubr.msk.f32.vlgmr.msra.gmra.mxu0 %vm14581_vm6, %v8217_v46  ;;  %vm14595_vm6 = vmmov %vm14593_vm3 }
0x5683   : > { %11474 = vmatprep.mubr.msk.f32.mxu0 %vm14508_vm8, %v11977_v1 }
0x5687   : > { %v11871_v48 = vpop.eup %11870 }
0x5688   : > { %v7974_v49 = vmul.f32 %v11871_v48, %v11869_v22 }
0x568a   : > { %11444 = vmatmul.mubr.msk.f32.vlgmr.msra.gmra.mxu1 %vm14582_vm7, %v7974_v49  ;;  %vm14597_vm7 = vmmov %vm14593_vm3 }
0x568b   : > { %11447 = vmatpush3.xpose.msk.msra.mxu1 %vm14583_vm10, %v8054_v45  ;;  %11448 = vmatprep.mubr.msk.f32.mxu1 %vm14508_vm8, %v11977_v1  ;;  %v10291_v45 = vld [vmem:[%s14389_s12 + $0x40] sm:$0xff] }
0x568c   : > { %11451 = vmatprep.subr.mxu1 %v11977_v1 }
0x568e   : > { %11449 = vmatmul.mubr.msk.f32.vlgmr.msra.gmra.mxu1 %vm14584_vm1, %v8052_v12  ;;  %vm14599_vm1 = vmmov %vm14593_vm3 }
0x568f   : > { %11453 = vmatprep.mubr.msk.f32.mxu1 %vm14508_vm8, %v11977_v1 }
0x5742   : > { %v8290_v50 = vpop.f32.mrf.mxu0 }
0x5743   : > { %v8291_v51 = vadd.f32 %v8290_v50, %v12327_v62 }
0x5744   : > { %v11460_v55 = vpop.f32.mrf.mxu0 }
0x5745   : > { %v8294_v59 = vsel %vm14585_vm11, %v8291_v51, -inf  ;;  %vm14600_vm11 = vmmov %vm14599_vm1 }
0x5746   : > { %8295 = vmax.xlane.f32.xlu0 %v8294_v59  ;;  %v10290_v59 = vld [vmem:[%s14596_s28 + $0x2] ss:$0 sm:$0xff] }
0x574a   : > { %v8047_v63 = vpop.f32.mrf.mxu1 }
0x574c   : > { %v11445_v0 = vpop.f32.mrf.mxu1 }
0x574e   : > { %v8125_v57 = vpop.f32.mrf.mxu1 }
0x574f   : > { %v8126_v53 = vadd.f32 %v8125_v57, %v12327_v62  ;;  %v10313_v57 = vld [vmem:[%s14391_s14 + $0x178] sm:$0xff] }
0x5750   : > { %v11450_v56 = vpop.f32.mrf.mxu1 }
0x5751   : > { %v8129_v28 = vsel %vm14586_vm12, %v8126_v53, -inf  ;;  %v10311_v56 = vld [vmem:[%s14391_s14 + $0x168] sm:$0xff]  ;;  %vm14601_vm12 = vmmov %vm14599_vm1 }
0x5752   : > { %8130 = vmax.xlane.f32.xlu1 %v8129_v28  ;;  %v10310_v28 = vld [vmem:[%s14391_s14 + $0x160] sm:$0xff] }
0x57cf   : > { %v8296_v44 = vpop.xlane.xlu0 %8295 }
0x57d0   : > { %v8297_v52 = vsub.f32 %v8291_v51, %v8296_v44  ;;  %v10289_v51 = vld [vmem:[%s14387_s10 + $0x2] ss:$0 sm:$0xff]  ;;  %v10309_v44 = vld [vmem:[%s14391_s14 + $0x158] sm:$0xff] }
0x57d2   : > { %v8298_v7 = vmul.f32 1.442695, %v8297_v52  ;;  %v10308_v52 = vld [vmem:[%s14391_s14 + $0x150] sm:$0xff] }
0x57d4   : > { %11872 = vpow2.f32 %v8298_v7  ;;  %v10307_v7 = vld [vmem:[%s14391_s14 + $0x148] sm:$0xff] }
0x57db   : > { %v8131_v8 = vpop.xlane.xlu1 %8130 }
0x57dc   : > { %v8132_v47 = vsub.f32 %v8126_v53, %v8131_v8  ;;  %v10312_v53 = vld [vmem:[%s14391_s14 + $0x170] sm:$0xff]  ;;  %v10306_v8 = vld [vmem:[%s14391_s14 + $0x140] sm:$0xff] }
0x57de   : > { %v8133_v15 = vmul.f32 1.442695, %v8132_v47  ;;  %v10305_v47 = vld [vmem:[%s14391_s14 + $0x138] sm:$0xff] }
0x57e0   : > { %11874 = vpow2.f32 %v8133_v15  ;;  %v10304_v15 = vld [vmem:[%s14391_s14 + $0x130] sm:$0xff] }
0x57e1   : > { %v11873_v60 = vpop.eup %11872 }
0x57e2   : > { %v8300_v41 = vsel %vm14587_vm13, %v11873_v60, 0.0  ;;  %vm14602_vm13 = vmmov %vm14575_vm0 }
0x57e3   : > { %8301 = vadd.xlane.f32.xlu1 %v8300_v41  ;;  %v10302_v41 = vld [vmem:[%s14391_s14 + $0x120] sm:$0xff] }
0x57ed   : > { %v11875_v61 = vpop.eup %11874 }
0x57ee   : > { %v8135_v3 = vsel %vm14588_vm14, %v11875_v61, 0.0  ;;  %vm14603_vm14 = vmmov %vm14575_vm0 }
0x57ef   : > { %8136 = vadd.xlane.f32.xlu0 %v8135_v3  ;;  %v10300_v3 = vld [vmem:[%s14391_s14 + $0x110] sm:$0xff] }
0x57f4   : > { %8305 = vrot.lane.b32.xlu1 %v13852_v43, %s14493_s25 }
0x57f8   : > { %8382 = vrot.lane.b32.xlu1 %v8047_v63, %s14495_s24 }
0x5805   : > { %8140 = vrot.lane.b32.xlu0 %v13852_v43, %s14494_s21  ;;  %v10283_v43 = vld [vmem:[%s14385_s8 + $0x58] sm:$0xff] }
0x5806   : > { %11467 = vmatpush3.msra.mxu0 %v10283_v43 }
0x5807   : > { %11468 = vmatprep.subr.mxu0 %v11977_v1 }
0x5808   : > { %11469 = vmatpush3.msra.mxu0 %v10282_v11 }
0x5809   : > { %11470 = vmatprep.subr.mxu0 %v11977_v1 }
0x580a   : > { %11471 = vmatpush3.msra.mxu0 %v10281_v24 }
0x580b   : > { %11472 = vmatprep.subr.mxu0 %v11977_v1 }
0x580c   : > { %11473 = vmatpush3.msra.mxu0 %v10280_v25 }
0x580d   : > { %11488 = vmatprep.subr.mxu0 %v11977_v1 }
0x586c   : > { %v8302_v16 = vpop.xlane.xlu1 %8301 }
0x5870   : > { %v8306_v32 = vpop.permute.xlu1 %8305 }
0x5874   : > { %v8383_v34 = vpop.permute.xlu1 %8382 }
0x5875   : > { %v8393_v31 = vsel %vm14590_vm5, %v13880_v37, %v8383_v34  ;;  %vm14605_vm5 = vmmov %vm14575_vm0 }
0x5878   : > { %v8137_v17 = vpop.xlane.xlu0 %8136 }
0x5879   : > { %11876 = vrcp.f32 %v8137_v17  ;;  %v10298_v17 = vld [vmem:[%s14391_s14 + $0x100] sm:$0xff] }
0x587a   : > { %11878 = vrcp.f32 %v8302_v16  ;;  %v10299_v16 = vld [vmem:[%s14391_s14 + $0x108] sm:$0xff] }
0x587c   : > { %v8141_v6 = vpop.permute.xlu0 %8140 }
0x587d   : > { %11452 = vmatpush3.msra.mxu1 %v8141_v6  ;;  %v10296_v6 = vld [vmem:[%s14483_s13 + $0x2] ss:$0 sm:$0xff]  ;;  %s12000_s13 = smov [#allocation2]  }
0x587e   : > { %11461 = vmatprep.subr.mxu1 %v11977_v1 }
0x5886   : > { %v11877_v5 = vpop.eup %11876 }
0x5887   : > { %v8139_v18 = vmul.f32 %v11877_v5, %v11875_v61  ;;  %v11879_v20 = vpop.eup %11878  ;;  %v10301_v61 = vld [vmem:[%s14391_s14 + $0x118] sm:$0xff] }
0x5888   : > { %v8304_v19 = vmul.f32 %v11879_v20, %v11873_v60  ;;  %v10303_v60 = vld [vmem:[%s14391_s14 + $0x128] sm:$0xff] }
0x5889   : > { %11454 = vmatmul.mubr.msk.f32.vlgmr.msra.gmra.mxu1 %vm14589_vm15, %v8139_v18  ;;  %vm14604_vm15 = vmmov %vm14575_vm0 }
0x588a   : > { %11462 = vmatpush3.msra.mxu1 %v8306_v32  ;;  %11463 = vmatprep.mubr.msk.f32.mxu1 %vm14508_vm8, %v11977_v1 }
0x588b   : > { %11477 = vmatprep.subr.mxu1 %v11977_v1 }
0x588d   : > { %11464 = vmatmul.mubr.msk.f32.vlgmr.msra.gmra.mxu1 %vm14575_vm0, %v8304_v19 }
0x588e   : > { %11485 = vmatprep.mubr.msk.f32.mxu1 %vm14508_vm8, %v11977_v1  ;;  %11478 = vmatpush3.msra.mxu1 %v10294_v36 }
0x588f   : > { %11479 = vmatprep.subr.mxu1 %v11977_v1 }
0x5949   : > { %v8212_v26 = vpop.f32.mrf.mxu1 }
0x594a   : > { %8386 = vrot.lane.b32.xlu0 %v8212_v26, %s14496_s17 }
0x594b   : > { %v11455_v27 = vpop.f32.mrf.mxu1 }
0x594d   : > { %v8377_v33 = vpop.f32.mrf.mxu1 }
0x594e   : > { %8390 = vrot.lane.b32.xlu1 %v8377_v33, %s14500_s20 }
0x594f   : > { %v11465_v4 = vpop.f32.mrf.mxu1 }
0x59bc   : > { %v8387_v30 = vpop.permute.xlu0 %8386 }
0x59bd   : > { %v8394_v35 = vsel %vm14591_vm9, %v8393_v31, %v8387_v30  ;;  %vm14606_vm9 = vmmov %vm14575_vm0 }
0x59c0   : > { %v8391_v54 = vpop.permute.xlu1 %8390 }
0x59c1   : > { %v8395_v38 = vsel %vm14592_vm2, %v8394_v35, %v8391_v54  ;;  %vm14607_vm2 = vmmov %vm14575_vm0 }
0x59c2   : > { %11475 = vmatmul.mubr.msk.f32.vlgmr.msra.gmra.mxu0 %vm14593_vm3, %v8395_v38  ;;  %vm14608_vm3 = vmmov %vm14575_vm0 }
0x59c3   : > { %11520 = vmatprep.mubr.msk.f32.mxu0 %vm14508_vm8, %v11977_v1  ;;  %11489 = vmatpush3.msra.mxu0 %v10313_v57 }
0x59c4   : > { %11490 = vmatprep.subr.mxu0 %v11977_v1 }
0x59c5   : > { %11491 = vmatpush3.msra.mxu0 %v10312_v53 }
0x59c6   : > { %11492 = vmatprep.subr.mxu0 %v11977_v1 }
0x59c7   : > { %11493 = vmatpush3.msra.mxu0 %v10311_v56 }
0x59c8   : > { %11494 = vmatprep.subr.mxu0 %v11977_v1 }
0x59c9   : > { %11495 = vmatpush3.msra.mxu0 %v10310_v28 }
0x59ca   : > { %11496 = vmatprep.subr.mxu0 %v11977_v1 }
0x59cb   : > { %11497 = vmatpush3.msra.mxu0 %v10309_v44  ;;  %v10318_v44 = vld [vmem:[%s14382_s5 + $0x3] ss:$0 sm:$0xff] }
0x59cc   : > { %11498 = vmatprep.subr.mxu0 %v11977_v1 }
0x59cd   : > { %11499 = vmatpush3.msra.mxu0 %v10308_v52 }
0x59ce   : > { %11500 = vmatprep.subr.mxu0 %v11977_v1 }
0x59cf   : > { %11501 = vmatpush3.msra.mxu0 %v10307_v7  ;;  %v10319_v7 = vld [vmem:[%s14383_s6 + $0x3] ss:$0 sm:$0xff] }
0x59d0   : > { %11502 = vmatprep.subr.mxu0 %v11977_v1 }
0x59d1   : > { %11503 = vmatpush3.msra.mxu0 %v10306_v8 }
0x59d2   : > { %11504 = vmatprep.subr.mxu0 %v11977_v1 }
0x59d3   : > { %11505 = vmatpush3.msra.mxu0 %v10305_v47 }
0x59d4   : > { %11506 = vmatprep.subr.mxu0 %v11977_v1 }
0x59d5   : > { %11507 = vmatpush3.msra.mxu0 %v10304_v15 }
0x59d6   : > { %11508 = vmatprep.subr.mxu0 %v11977_v1 }
0x59d7   : > { %11509 = vmatpush3.msra.mxu0 %v10303_v60 }
0x59d8   : > { %11510 = vmatprep.subr.mxu0 %v11977_v1 }
0x59d9   : > { %11511 = vmatpush3.msra.mxu0 %v10302_v41 }
0x59da   : > { %11512 = vmatprep.subr.mxu0 %v11977_v1 }
0x59db   : > { %11513 = vmatpush3.msra.mxu0 %v10301_v61 }
0x59dc   : > { %11514 = vmatprep.subr.mxu0 %v11977_v1 }
0x59dd   : > { %11515 = vmatpush3.msra.mxu0 %v10300_v3 }
0x59de   : > { %11516 = vmatprep.subr.mxu0 %v11977_v1 }
0x59df   : > { %11517 = vmatpush3.msra.mxu0 %v10299_v16 }
0x59e0   : > { %11518 = vmatprep.subr.mxu0 %v11977_v1 }
0x59e1   : > { %11519 = vmatpush3.msra.mxu0 %v10298_v17 }
0x59e2   : > { %11564 = vmatprep.subr.mxu0 %v11977_v1 }
0x5a82   : > { %v8476_v39 = vpop.f32.mrf.mxu0 }
0x5a83   : > { %v8477_v13 = vadd.f32 %v10285_v10, %v8476_v39 }
0x5a84   : > { %v11476_v9 = vpop.f32.mrf.mxu0 }
0x5a85   : > { %v13957_v40 = vadd.f32 %v8477_v13, %v13821_v58  ;;  %v10293_v58 = vld [vmem:[%s14389_s12 + $0x50] sm:$0xff] }
0x5a86   : > { %11480 = vmatpush3.msra.mxu1 %v10293_v58 }
0x5a87   : > { %v8483_v37 = vsel %vm14594_vm4, %v13957_v40, 0.0  ;;  %11481 = vmatprep.subr.mxu1 %v11977_v1  ;;  %vm14609_vm4 = vmmov %vm14575_vm0 }
0x5a88   : > { %8484 = vadd.xlane.f32.xlu0 %v8483_v37  ;;  %11482 = vmatpush3.msra.mxu1 %v10292_v29 }
0x5a89   : > { %11483 = vmatprep.subr.mxu1 %v11977_v1 }
0x5a8a   : > { %11484 = vmatpush3.msra.mxu1 %v10291_v45 }
0x5a8b   : > { %11523 = vmatprep.subr.mxu1 %v11977_v1 }
0x5b11   : > { %v8485_v23 = vpop.xlane.xlu0 %8484 }
0x5b12   : > { %v8486_v42 = vmul.f32 0.03125, %v8485_v23 }
0x5b14   : > { %v8487_v12 = vsub.f32 %v13957_v40, %v8486_v42 }
0x5b16   : > { %v8488_v14 = vmul.f32 %v8487_v12, %v8487_v12 }
0x5b18   : > { %v8489_v22 = vsel %vm14595_vm6, %v8488_v14, 0.0  ;;  %vm14610_vm6 = vmmov %vm14575_vm0 }
0x5b19   : > { %8490 = vadd.xlane.f32.xlu1 %v8489_v22  ;;  %v10315_v22 = vld [vmem:[%s14598_s16 + $0x2] ss:$0 sm:$0xff] }
0x5ba2   : > { %v8491_v46 = vpop.xlane.xlu1 %8490 }
0x5ba3   : > { %v8492_v48 = vmul.f32 0.03125, %v8491_v46 }
0x5ba5   : > { %v8493_v49 = vadd.f32 1e-05, %v8492_v48 }
0x5ba7   : > { %11880 = vrsqrt.f32 %v8493_v49 }
0x5bb4   : > { %v11881_v50 = vpop.eup %11880 }
0x5bb5   : > { %v8495_v55 = vmul.f32 %v11881_v50, %v8487_v12 }
0x5bb7   : > { %v8502_v63 = vmul.f32 %v10289_v51, %v8495_v55 }
0x5bb9   : > { %v8509_v0 = vadd.f32 %v10290_v59, %v8502_v63  ;;  %v10323_v59 = vld [vmem:[%s14384_s7 + $0x78] sm:$0xff]  ;;  %v10321_v63 = vld [vmem:[%s14384_s7 + $0x68] sm:$0xff] }
0x5bbb   : > { %11486 = vmatmul.mubr.msk.f32.vlgmr.msra.gmra.mxu1 %vm14597_vm7, %v8509_v0  ;;  %v10320_v0 = vld [vmem:[%s14384_s7 + $0x60] sm:$0xff]  ;;  %vm14611_vm7 = vmmov %vm14575_vm0 }
0x5bbc   : > { %11531 = vmatprep.mubr.msk.f32.mxu1 %vm14508_vm8, %v11977_v1  ;;  %11524 = vmatpush3.msra.mxu1 %v10323_v59 }
0x5bbd   : > { %11525 = vmatprep.subr.mxu1 %v11977_v1 }
0x5c7b   : > { %v8590_v5 = vpop.f32.mrf.mxu1 }
0x5c7c   : > { %v8591_v18 = vadd.f32 %v10296_v6, %v8590_v5 }
0x5c7d   : > { %v11487_v20 = vpop.f32.mrf.mxu1 }
0x5c7e   : > { %v8595_v32 = vmul.f32 0.70710677, %v8591_v18  ;;  %v8594_v42 = vmul.f32 0.5, %v8591_v18 }
0x5c80   : > { %v8596_v19 = vand.u32 2147483647, %v8595_v32  ;;  %vm8616_vm10 = vcmp.ge.f32.partialorder %v8595_v32, 0.0 }
0x5c82   : > { %v8597_v43 = vmul.f32 0.3275911, %v8596_v19  ;;  %v8610_v24 = vsub.f32 0.0, %v8596_v19 }
0x5c84   : > { %v8598_v11 = vadd.f32 1.0, %v8597_v43  ;;  %v8611_v25 = vmul.f32 %v8610_v24, %v8596_v19 }
0x5c86   : > { %11882 = vrcp.f32 %v8598_v11  ;;  %v8612_v33 = vmul.f32 1.442695, %v8611_v25 }
0x5c88   : > { %11884 = vpow2.f32 %v8612_v33 }
0x5c93   : > { %v11883_v26 = vpop.eup %11882 }
0x5c94   : > { %v8601_v27 = vmul.f32 1.0614054, %v11883_v26 }
0x5c95   : > { %v11885_v39 = vpop.eup %11884 }
0x5c96   : > { %v8602_v4 = vadd.f32 -1.4531521, %v8601_v27 }
0x5c98   : > { %v8603_v34 = vmul.f32 %v11883_v26, %v8602_v4 }
0x5c9a   : > { %v8604_v30 = vadd.f32 1.4214138, %v8603_v34 }
0x5c9c   : > { %v8605_v31 = vmul.f32 %v11883_v26, %v8604_v30 }
0x5c9e   : > { %v8606_v35 = vadd.f32 -0.28449672, %v8605_v31 }
0x5ca0   : > { %v8607_v54 = vmul.f32 %v11883_v26, %v8606_v35 }
0x5ca2   : > { %v8608_v38 = vadd.f32 0.2548296, %v8607_v54 }
0x5ca4   : > { %v8609_v10 = vmul.f32 %v11883_v26, %v8608_v38 }
0x5ca6   : > { %v8614_v13 = vmul.f32 %v11885_v39, %v8609_v10 }
0x5ca8   : > { %v8615_v9 = vsub.f32 1.0, %v8614_v13 }
0x5caa   : > { %v8617_v37 = vsub.f32 0.0, %v8615_v9 }
0x5cac   : > { %v8618_v23 = vsel %vm8616_vm10, %v8615_v9, %v8617_v37  ;;  %vm14612_vm10 = vmmov %vm14575_vm0 }
0x5cad   : > { %v8619_v12 = vadd.f32 1.0, %v8618_v23 }
0x5caf   : > { %v8620_v14 = vmul.f32 %v8619_v12, %v8594_v42 }
0x5cb1   : > { %11521 = vmatmul.mubr.f32.vlgmr.msra.gmra.mxu0 %v8620_v14 }
0x5cb2   : > { %11566 = vmatprep.mubr.msk.f32.mxu0 %vm14508_vm8, %v11977_v1 }
0x5d71   : > { %v8710_v36 = vpop.f32.mrf.mxu0 }
0x5d72   : > { %v8711_v58 = vadd.f32 %v10315_v22, %v8710_v36 }
0x5d73   : > { %v11522_v29 = vpop.f32.mrf.mxu0 }
0x5d74   : > { %v14061_v45 = vadd.f32 %v8711_v58, %v13957_v40  ;;  %v10322_v40 = vld [vmem:[%s14384_s7 + $0x70] sm:$0xff] }
0x5d75   : > { %11526 = vmatpush3.msra.mxu1 %v10322_v40 }
0x5d76   : > { %v8717_v46 = vsel %vm14599_vm1, %v14061_v45, 0.0  ;;  %11527 = vmatprep.subr.mxu1 %v11977_v1  ;;  %vm14613_vm1 = vmmov %vm14575_vm0 }
0x5d77   : > { %8718 = vadd.xlane.f32.xlu0 %v8717_v46  ;;  %11528 = vmatpush3.msra.mxu1 %v10321_v63 }
0x5d78   : > { %11529 = vmatprep.subr.mxu1 %v11977_v1 }
0x5d79   : > { %11530 = vmatpush3.msra.mxu1 %v10320_v0 }
0x5d7a   : > { %11534 = vmatprep.subr.mxu1 %v11977_v1 }
0x5e00   : > { %v8719_v48 = vpop.xlane.xlu0 %8718 }
0x5e01   : > { %v8720_v49 = vmul.f32 0.03125, %v8719_v48 }
0x5e03   : > { %v8721_v50 = vsub.f32 %v14061_v45, %v8720_v49 }
0x5e05   : > { %v8722_v51 = vmul.f32 %v8721_v50, %v8721_v50 }
0x5e07   : > { %v8723_v55 = vsel %vm14600_vm11, %v8722_v51, 0.0  ;;  %vm14614_vm11 = vmmov %vm14575_vm0 }
0x5e08   : > { %8724 = vadd.xlane.f32.xlu0 %v8723_v55 }
0x5e91   : > { %v8725_v57 = vpop.xlane.xlu0 %8724 }
0x5e92   : > { %v8726_v53 = vmul.f32 0.03125, %v8725_v57 }
0x5e94   : > { %v8727_v56 = vadd.f32 1e-05, %v8726_v53 }
0x5e96   : > { %11886 = vrsqrt.f32 %v8727_v56 }
0x5ea3   : > { %v11887_v28 = vpop.eup %11886 }
0x5ea4   : > { %v8729_v52 = vmul.f32 %v11887_v28, %v8721_v50 }
0x5ea6   : > { %v8736_v8 = vmul.f32 %v10318_v44, %v8729_v52 }
0x5ea8   : > { %v8743_v47 = vadd.f32 %v10319_v7, %v8736_v8 }
0x5eaa   : > { %11532 = vmatmul.mubr.msk.f32.vlgmr.msra.gmra.mxu1 %vm14601_vm12, %v8743_v47  ;;  %vm14615_vm12 = vmmov %vm14575_vm0 }
0x5eab   : > { %11536 = vmatprep.mubr.msk.f32.mxu1 %vm14508_vm8, %v11977_v1 }
0x5f6a   : > { %v14092_v15 = vpop.f32.mrf.mxu1 }
0x5f6b   : > { %8822 = vrot.lane.b32.xlu1 %v14092_v15, %s14485_s26 }
0x5f6c   : > { %v11533_v60 = vpop.f32.mrf.mxu1 }
0x5f6f   : > { %8987 = vrot.lane.b32.xlu1 %v14092_v15, %s14486_s27  ;;  %s14632_s27 = sld [smem:[#allocation23_spill]] }
0x5f73   : > { %8985 = vrot.lane.b32.xlu1 %v14092_v15, %s14487_s23 }
0x5fdd   : > { %v8823_v41 = vpop.permute.xlu1 %8822 }
0x5fde   : > { %11535 = vmatpush3.xpose.msk.msra.mxu1 %vm14602_vm13, %v8823_v41  ;;  %vm14616_vm13 = vmmov %vm14575_vm0 }
0x5fdf   : > { %11539 = vmatprep.subr.mxu1 %v11977_v1 }
0x5fe1   : > { %11537 = vmatmul.mubr.msk.f32.vlgmr.msra.gmra.mxu1 %vm14603_vm14, %v14092_v15  ;;  %v8988_v24 = vpop.permute.xlu1 %8987  ;;  %vm14617_vm14 = vmmov %vm14575_vm0 }
0x5fe2   : > { %11541 = vmatprep.mubr.msk.f32.mxu1 %vm14508_vm8, %v11977_v1 }
0x5fe5   : > { %v8986_v26 = vpop.permute.xlu1 %8985 }
0x60a1   : > { %v8894_v61 = vpop.f32.mrf.mxu1 }
0x60a2   : > { %v8895_v3 = vadd.f32 %v8894_v61, %v12327_v62 }
0x60a3   : > { %v11538_v16 = vpop.f32.mrf.mxu1 }
0x60a4   : > { %v8898_v17 = vsel %vm14604_vm15, %v8895_v3, -inf  ;;  %vm14618_vm15 = vmmov %vm14575_vm0 }
0x60a5   : > { %8899 = vmax.xlane.f32.xlu0 %v8898_v17  ;;  %v10339_v17 = vld [vmem:[%s14385_s8 + $0x70] sm:$0xff] }
0x612e   : > { %v8900_v6 = vpop.xlane.xlu0 %8899 }
0x612f   : > { %v8901_v5 = vsub.f32 %v8895_v3, %v8900_v6  ;;  %v10338_v6 = vld [vmem:[%s14385_s8 + $0x68] sm:$0xff] }
0x6131   : > { %v8902_v18 = vmul.f32 1.442695, %v8901_v5  ;;  %v10337_v5 = vld [vmem:[%s14385_s8 + $0x60] sm:$0xff] }
0x6133   : > { %11888 = vpow2.f32 %v8902_v18 }
0x6140   : > { %v11889_v20 = vpop.eup %11888 }
0x6141   : > { %v8904_v32 = vsel %vm14575_vm0, %v11889_v20, 0.0 }
0x6142   : > { %8905 = vadd.xlane.f32.xlu0 %v8904_v32 }
0x6158   : > { %8909 = vrot.lane.b32.xlu0 %v14092_v15, %s14498_s9  ;;  %s14628_s9 = sld [smem:[#allocation21_spill]] }
0x61cb   : > { %v8906_v19 = vpop.xlane.xlu0 %8905 }
0x61cc   : > { %11890 = vrcp.f32 %v8906_v19 }
0x61cf   : > { %v8910_v43 = vpop.permute.xlu0 %8909 }
0x61d0   : > { %11540 = vmatpush3.msra.mxu1 %v8910_v43 }
0x61d1   : > { %11544 = vmatprep.subr.mxu1 %v11977_v1 }
0x61d9   : > { %v11891_v11 = vpop.eup %11890 }
0x61da   : > { %v8908_v25 = vmul.f32 %v11891_v11, %v11889_v20 }
0x61dc   : > { %11542 = vmatmul.mubr.msk.f32.vlgmr.msra.gmra.mxu1 %vm14605_vm5, %v8908_v25  ;;  %vm14619_vm5 = vmmov %vm14575_vm0 }
0x61dd   : > { %11545 = vmatpush3.xpose.msk.msra.mxu1 %vm14606_vm9, %v8988_v24  ;;  %11546 = vmatprep.mubr.msk.f32.mxu1 %vm14508_vm8, %v11977_v1  ;;  %vm14620_vm9 = vmmov %vm14575_vm0 }
0x61de   : > { %11549 = vmatprep.subr.mxu1 %v11977_v1 }
0x61e0   : > { %11547 = vmatmul.mubr.msk.f32.vlgmr.msra.gmra.mxu1 %vm14607_vm2, %v8986_v26  ;;  %vm14621_vm2 = vcmask 130048  }
0x61e1   : > { %11551 = vmatprep.mubr.msk.f32.mxu1 %vm14508_vm8, %v11977_v1 }
0x629c   : > { %v14120_v27 = vpop.f32.mrf.mxu1 }
0x629e   : > { %v11543_v33 = vpop.f32.mrf.mxu1 }
0x62a0   : > { %v9059_v4 = vpop.f32.mrf.mxu1 }
0x62a1   : > { %v9060_v34 = vadd.f32 %v9059_v4, %v12327_v62  ;;  %v10179_v4 = vld [vmem:[%s14598_s16 + $0x3] ss:$0 sm:$0xff] }
0x62a2   : > { %v11548_v30 = vpop.f32.mrf.mxu1 }
0x62a3   : > { %v9063_v31 = vsel %vm14608_vm3, %v9060_v34, -inf  ;;  %vm14622_vm3 = vcmask 195584  }
0x62a4   : > { %9064 = vmax.xlane.f32.xlu1 %v9063_v31 }
0x62b5   : > { %9074 = vrot.lane.b32.xlu1 %v14092_v15, %s14488_s1 }
0x62b9   : > { %9150 = vrot.lane.b32.xlu1 %v14092_v15, %s14490_s30 }
0x62bd   : > { %9317 = vrot.lane.b32.xlu1 %v14092_v15, %s14491_s0 }
0x632d   : > { %v9065_v35 = vpop.xlane.xlu1 %9064 }
0x632e   : > { %v9066_v54 = vsub.f32 %v9060_v34, %v9065_v35  ;;  %v10342_v34 = vld [vmem:[%s14564_s15 + $0x3] ss:$0 sm:$0xff] }
0x6330   : > { %v9067_v38 = vmul.f32 1.442695, %v9066_v54 }
0x6331   : > { %v9075_v10 = vpop.permute.xlu1 %9074 }
0x6332   : > { %11892 = vpow2.f32 %v9067_v38  ;;  %11550 = vmatpush3.msra.mxu1 %v9075_v10 }
0x6333   : > { %11554 = vmatprep.subr.mxu1 %v11977_v1 }
0x6335   : > { %v9151_v39 = vpop.permute.xlu1 %9150 }
0x6339   : > { %v9318_v13 = vpop.permute.xlu1 %9317 }
0x633a   : > { %11565 = vmatpush3.xpose.msk.msra.mxu0 %vm14609_vm4, %v9318_v13  ;;  %vm14623_vm4 = vcmask 261120  }
0x633b   : > { %11574 = vmatprep.subr.mxu0 %v11977_v1 }
0x633f   : > { %v11893_v9 = vpop.eup %11892 }
0x6340   : > { %v9069_v37 = vsel %vm14610_vm6, %v11893_v9, 0.0  ;;  %vm14624_vm6 = vmmov %vm14623_vm4 }
0x6341   : > { %9070 = vadd.xlane.f32.xlu0 %v9069_v37 }
0x6357   : > { %9152 = vrot.lane.b32.xlu0 %v14092_v15, %s14489_s3  ;;  %s14633_s3 = sld [smem:[#allocation24_spill]] }
0x635b   : > { %9315 = vrot.lane.b32.xlu0 %v14092_v15, %s14492_s29 }
0x63ca   : > { %v9071_v23 = vpop.xlane.xlu0 %9070 }
0x63cb   : > { %11894 = vrcp.f32 %v9071_v23 }
0x63ce   : > { %v9153_v42 = vpop.permute.xlu0 %9152 }
0x63d2   : > { %v9316_v12 = vpop.permute.xlu0 %9315 }
0x63d3   : > { %11567 = vmatmul.mubr.msk.f32.vlgmr.msra.gmra.mxu0 %vm14611_vm7, %v9316_v12  ;;  %vm5192_vm7 = vcmask 253952  }
0x63d4   : > { %11582 = vmatprep.mubr.msk.f32.mxu0 %vm14508_vm8, %v11977_v1 }
0x63d8   : > { %v11895_v14 = vpop.eup %11894 }
0x63d9   : > { %v9073_v22 = vmul.f32 %v11895_v14, %v11893_v9 }
0x63db   : > { %11552 = vmatmul.mubr.msk.f32.vlgmr.msra.gmra.mxu1 %vm14612_vm10, %v9073_v22  ;;  %vm14625_vm10 = vmmov %vm14623_vm4  ;;  %v10351_v22 = vld [vmem:[%s14389_s12 + $0x78] sm:$0xff] }
0x63dc   : > { %11555 = vmatpush3.xpose.msk.msra.mxu1 %vm14613_vm1, %v9153_v42  ;;  %11556 = vmatprep.mubr.msk.f32.mxu1 %vm14508_vm8, %v11977_v1  ;;  %vm14627_vm1 = vmmov %vm14623_vm4 }
0x63dd   : > { %11559 = vmatprep.subr.mxu1 %v11977_v1 }
0x63df   : > { %11557 = vmatmul.mubr.msk.f32.vlgmr.msra.gmra.mxu1 %vm14614_vm11, %v9151_v39  ;;  %vm14634_vm11 = vmmov %vm14627_vm1 }
0x63e0   : > { %11561 = vmatprep.mubr.msk.f32.mxu1 %vm14508_vm8, %v11977_v1 }
0x6493   : > { %v9389_v36 = vpop.f32.mrf.mxu0 }
0x6494   : > { %v9390_v58 = vadd.f32 %v9389_v36, %v12327_v62  ;;  %v10350_v36 = vld [vmem:[%s14389_s12 + $0x70] sm:$0xff] }
0x6495   : > { %v11568_v29 = vpop.f32.mrf.mxu0 }
0x6496   : > { %v9393_v46 = vsel %vm14615_vm12, %v9390_v58, -inf  ;;  %v10348_v29 = vld [vmem:[%s14389_s12 + $0x60] sm:$0xff] }
0x6497   : > { %9394 = vmax.xlane.f32.xlu0 %v9393_v46 }
0x649b   : > { %v9146_v48 = vpop.f32.mrf.mxu1 }
0x649d   : > { %v11553_v49 = vpop.f32.mrf.mxu1 }
0x649f   : > { %v9224_v50 = vpop.f32.mrf.mxu1 }
0x64a0   : > { %v9225_v51 = vadd.f32 %v9224_v50, %v12327_v62 }
0x64a1   : > { %v11558_v55 = vpop.f32.mrf.mxu1 }
0x64a2   : > { %v9228_v59 = vsel %vm14616_vm13, %v9225_v51, -inf }
0x64a3   : > { %9229 = vmax.xlane.f32.xlu1 %v9228_v59 }
0x6520   : > { %v9395_v40 = vpop.xlane.xlu0 %9394 }
0x6521   : > { %v9396_v63 = vsub.f32 %v9390_v58, %v9395_v40  ;;  %v10349_v58 = vld [vmem:[%s14389_s12 + $0x68] sm:$0xff] }
0x6523   : > { %v9397_v0 = vmul.f32 1.442695, %v9396_v63 }
0x6525   : > { %11896 = vpow2.f32 %v9397_v0  ;;  %v10370_v0 = vld [vmem:[%s14391_s14 + $0x1f8] sm:$0xff] }
0x652c   : > { %v9230_v57 = vpop.xlane.xlu1 %9229 }
0x652d   : > { %v9231_v53 = vsub.f32 %v9225_v51, %v9230_v57  ;;  %v10346_v51 = vld [vmem:[%s14387_s10 + $0x3] ss:$0 sm:$0xff]  ;;  %v10369_v57 = vld [vmem:[%s14391_s14 + $0x1f0] sm:$0xff] }
0x652f   : > { %v9232_v56 = vmul.f32 1.442695, %v9231_v53  ;;  %v10368_v53 = vld [vmem:[%s14391_s14 + $0x1e8] sm:$0xff] }
0x6531   : > { %11898 = vpow2.f32 %v9232_v56  ;;  %v10367_v56 = vld [vmem:[%s14391_s14 + $0x1e0] sm:$0xff] }
0x6532   : > { %v11897_v28 = vpop.eup %11896 }
0x6533   : > { %v9399_v44 = vsel %vm14617_vm14, %v11897_v28, 0.0 }
0x6534   : > { %9400 = vadd.xlane.f32.xlu1 %v9399_v44  ;;  %v10365_v44 = vld [vmem:[%s14391_s14 + $0x1d0] sm:$0xff] }
0x653e   : > { %v11899_v52 = vpop.eup %11898 }
0x653f   : > { %v9234_v7 = vsel %vm14618_vm15, %v11899_v52, 0.0 }
0x6540   : > { %9235 = vadd.xlane.f32.xlu0 %v9234_v7  ;;  %v10363_v7 = vld [vmem:[%s14391_s14 + $0x1c0] sm:$0xff] }
0x6545   : > { %9404 = vrot.lane.b32.xlu1 %v14092_v15, %s14493_s25 }
0x6549   : > { %9481 = vrot.lane.b32.xlu1 %v9146_v48, %s14495_s24  ;;  %s14626_s24 = sld [smem:[#allocation20_spill]] }
0x654f   : > { %v10347_v59 = vld [vmem:[%s14626_s24 + $0x3] ss:$0 sm:$0xff]  ;;  %s14630_s24 = sld [smem:[#allocation6_spill]] }
0x6555   : > { %s620_s0 = sand.u32 1, %s14630_s24   ;;  %s11919_s24 = sshll.u32 %s12000_s13, 4  ;;  %s11920_s24 = int_to_ptr.vmem [resolvable:$false] %s11919_s24 }
0x6556   : > { %9239 = vrot.lane.b32.xlu0 %v14092_v15, %s14494_s21  ;;  %v10340_v15 = vld [vmem:[%s14385_s8 + $0x78] sm:$0xff]  ;;  %s14631_s21 = sld [smem:[#allocation9_spill]]  ;;  %s621_s15 = scalar_lea.vmem [#allocation2], %s620_s0 }
0x6557   : > { %11575 = vmatpush3.msra.mxu0 %v10340_v15  ;;  %v10353_v15 = vld [vmem:[%s14628_s9 + $0x3] ss:$0 sm:$0xff]  ;;  %s14636_s9 = sld [smem:[#allocation26_spill]]  ;;  %s9923_s18 = sshll.u32 %s621_s15, 4  ;;  %s9924_s18 = int_to_ptr.vmem [resolvable:$true] %s9923_s18 }
0x6558   : > { %11576 = vmatprep.subr.mxu0 %v11977_v1  ;;  %s9911_s19 = scalar_lea.sflag [#allocation3], %s620_s0  ;;  %s11915_s11 = scalar_lea.vmem %s9924_s18, 16 }
0x6559   : > { %11577 = vmatpush3.msra.mxu0 %v10339_v17  ;;  %p11916_p11 = scmp.ne.s32.totalorder %s9924_s18, %s11915_s11  ;;  %p11922_p0 = scmp.lt.s32.totalorder %s9924_s18, %s11920_s24 }
0x655a   : > { %11578 = vmatprep.subr.mxu0 %v11977_v1 }
0x655b   : > { %11579 = vmatpush3.msra.mxu0 %v10338_v6  ;;  %p11917_p12 = pnand %p11916_p11, %p12144_p5 }
0x655c   : > { %11580 = vmatprep.subr.mxu0 %v11977_v1 }
0x655d   : > { %11581 = vmatpush3.msra.mxu0 %v10337_v5  ;;  %p11918_p13 = pneg %p11917_p12 }
0x655e   : > { %11596 = vmatprep.subr.mxu0 %v11977_v1 }
0x65bd   : > { %v9401_v62 = vpop.xlane.xlu1 %9400 }
0x65c1   : > { %v9405_v3 = vpop.permute.xlu1 %9404 }
0x65c5   : > { %v9482_v43 = vpop.permute.xlu1 %9481 }
0x65c6   : > { %v9492_v24 = vsel %vm14620_vm9, %v14120_v27, %v9482_v43  ;;  %v5188_v27 = vadd.f32 %v10179_v4, %v13353_v2 }
0x65c8   : > { %v5191_v38 = vadd.f32 %v5188_v27, %v13214_v21 }
0x65c9   : > { %v9236_v8 = vpop.xlane.xlu0 %9235 }
0x65ca   : > { %11900 = vrcp.f32 %v9236_v8  ;;  %v5193_v39 = vsel %vm5192_vm7, %v5191_v38, 0.0  ;;  %v10361_v8 = vld [vmem:[%s14391_s14 + $0x1b0] sm:$0xff] }
0x65cb   : > { %11902 = vrcp.f32 %v9401_v62  ;;  %v10362_v62 = vld [vmem:[%s14391_s14 + $0x1b8] sm:$0xff] }
0x65cd   : > { %v9240_v47 = vpop.permute.xlu0 %9239 }
0x65ce   : > { %11560 = vmatpush3.msra.mxu1 %v9240_v47  ;;  %v10360_v47 = vld [vmem:[%s14391_s14 + $0x1a8] sm:$0xff] }
0x65cf   : > { %11569 = vmatprep.subr.mxu1 %v11977_v1 }
0x65d7   : > { %v11901_v60 = vpop.eup %11900 }
0x65d8   : > { %v9238_v41 = vmul.f32 %v11901_v60, %v11899_v52  ;;  %v11903_v61 = vpop.eup %11902  ;;  %v10364_v52 = vld [vmem:[%s14391_s14 + $0x1c8] sm:$0xff]  ;;  %v10359_v60 = vld [vmem:[%s14391_s14 + $0x1a0] sm:$0xff] }
0x65d9   : > { %v9403_v16 = vmul.f32 %v11903_v61, %v11897_v28  ;;  %v10366_v28 = vld [vmem:[%s14391_s14 + $0x1d8] sm:$0xff]  ;;  %v10357_v61 = vld [vmem:[%s14391_s14 + $0x190] sm:$0xff] }
0x65da   : > { %11562 = vmatmul.mubr.msk.f32.vlgmr.msra.gmra.mxu1 %vm14575_vm0, %v9238_v41  ;;  %v10358_v41 = vld [vmem:[%s14391_s14 + $0x198] sm:$0xff] }
0x65db   : > { %11570 = vmatpush3.msra.mxu1 %v9405_v3  ;;  %11571 = vmatprep.mubr.msk.f32.mxu1 %vm14508_vm8, %v11977_v1  ;;  %v10356_v3 = vld [vmem:[%s14391_s14 + $0x188] sm:$0xff] }
0x65dc   : > { %11585 = vmatprep.subr.mxu1 %v11977_v1 }
0x65de   : > { %11572 = vmatmul.mubr.msk.f32.vlgmr.msra.gmra.mxu1 %vm14619_vm5, %v9403_v16  ;;  %v10355_v16 = vld [vmem:[%s14391_s14 + $0x180] sm:$0xff] }
0x65df   : > { %11593 = vmatprep.mubr.msk.f32.mxu1 %vm14508_vm8, %v11977_v1  ;;  %11586 = vmatpush3.msra.mxu1 %v10351_v22 }
0x65e0   : > { %11587 = vmatprep.subr.mxu1 %v11977_v1 }
0x65e1   : > { %11588 = vmatpush3.msra.mxu1 %v10350_v36 }
0x65e2   : > { %11589 = vmatprep.subr.mxu1 %v11977_v1 }
0x65e3   : > { %11590 = vmatpush3.msra.mxu1 %v10349_v58 }
0x65e4   : > { %11591 = vmatprep.subr.mxu1 %v11977_v1 }
0x65e5   : > { %11592 = vmatpush3.msra.mxu1 %v10348_v29 }
0x65e6   : > { %11631 = vmatprep.subr.mxu1 %v11977_v1 }
0x669a   : > { %v9311_v18 = vpop.f32.mrf.mxu1 }
0x669b   : > { %9485 = vrot.lane.b32.xlu0 %v9311_v18, %s14496_s17 }
0x669c   : > { %v11563_v20 = vpop.f32.mrf.mxu1 }
0x669e   : > { %v9476_v32 = vpop.f32.mrf.mxu1 }
0x669f   : > { %9489 = vrot.lane.b32.xlu1 %v9476_v32, %s14500_s20  ;;  %s10374_s20 = sshll.u32 %s14631_s21, 4  ;;  %s11921_s21 = scalar_lea.vmem %s11920_s24, 32 }
0x66a0   : > { %v11573_v19 = vpop.f32.mrf.mxu1  ;;  %s14342_s22 = scalar_lea.hbm %s14637_s4, %s10374_s20  ;;  %p11923_p1 = scmp.lt.s32.totalorder %s11921_s21, %s11915_s11 }
0x66a2   : > { %p11924_p2 = por %p11923_p1, %p11922_p0 }
0x66a4   : > { %p11925_p3 = pnand %p11924_p2, %p11918_p13 }
0x670d   : > { %v9486_v11 = vpop.permute.xlu0 %9485 }
0x670e   : > { %v9493_v25 = vsel %vm14621_vm2, %v9492_v24, %v9486_v11 }
0x6711   : > { %v9490_v26 = vpop.permute.xlu1 %9489 }
0x6712   : > { %v9494_v33 = vsel %vm14622_vm3, %v9493_v25, %v9490_v26 }
0x6713   : > { %11583 = vmatmul.mubr.msk.f32.vlgmr.msra.gmra.mxu0 %vm14623_vm4, %v9494_v33 }
0x6714   : > { %11628 = vmatprep.mubr.msk.f32.mxu0 %vm14508_vm8, %v11977_v1  ;;  %11597 = vmatpush3.msra.mxu0 %v10370_v0 }
0x6715   : > { %11598 = vmatprep.subr.mxu0 %v11977_v1 }
0x6716   : > { %11599 = vmatpush3.msra.mxu0 %v10369_v57 }
0x6717   : > { %11600 = vmatprep.subr.mxu0 %v11977_v1 }
0x6718   : > { %11601 = vmatpush3.msra.mxu0 %v10368_v53 }
0x6719   : > { %11602 = vmatprep.subr.mxu0 %v11977_v1 }
0x671a   : > { %11603 = vmatpush3.msra.mxu0 %v10367_v56 }
0x671b   : > { %11604 = vmatprep.subr.mxu0 %v11977_v1 }
0x671c   : > { %11605 = vmatpush3.msra.mxu0 %v10366_v28 }
0x671d   : > { %11606 = vmatprep.subr.mxu0 %v11977_v1 }
0x671e   : > { %11607 = vmatpush3.msra.mxu0 %v10365_v44 }
0x671f   : > { %11608 = vmatprep.subr.mxu0 %v11977_v1 }
0x6720   : > { %11609 = vmatpush3.msra.mxu0 %v10364_v52  ;;  %v631_v52 = vld [vmem:[%s14632_s27] sm:$0x1] }
0x6721   : > { %11610 = vmatprep.subr.mxu0 %v11977_v1 }
0x6722   : > { %11611 = vmatpush3.msra.mxu0 %v10363_v7 }
0x6723   : > { %11612 = vmatprep.subr.mxu0 %v11977_v1 }
0x6724   : > { %11613 = vmatpush3.msra.mxu0 %v10362_v62 }
0x6725   : > { %11614 = vmatprep.subr.mxu0 %v11977_v1 }
0x6726   : > { %11615 = vmatpush3.msra.mxu0 %v10361_v8  ;;  %v632_v8 = vld [vmem:[%s14633_s3] sm:$0x1] }
0x6727   : > { %11616 = vmatprep.subr.mxu0 %v11977_v1 }
0x6728   : > { %11617 = vmatpush3.msra.mxu0 %v10360_v47 }
0x6729   : > { %11618 = vmatprep.subr.mxu0 %v11977_v1 }
0x672a   : > { %11619 = vmatpush3.msra.mxu0 %v10359_v60 }
0x672b   : > { %11620 = vmatprep.subr.mxu0 %v11977_v1 }
0x672c   : > { %11621 = vmatpush3.msra.mxu0 %v10358_v41 }
0x672d   : > { %11622 = vmatprep.subr.mxu0 %v11977_v1 }
0x672e   : > { %11623 = vmatpush3.msra.mxu0 %v10357_v61 }
0x672f   : > { %11624 = vmatprep.subr.mxu0 %v11977_v1 }
0x6730   : > { %11625 = vmatpush3.msra.mxu0 %v10356_v3 }
0x6731   : > { %11626 = vmatprep.subr.mxu0 %v11977_v1 }
0x6732   : > { %11627 = vmatpush3.msra.mxu0 %v10355_v16 }
0x67d3   : > { %v9575_v30 = vpop.f32.mrf.mxu0 }
0x67d4   : > { %v9576_v31 = vadd.f32 %v10342_v34, %v9575_v30 }
0x67d5   : > { %v11584_v35 = vpop.f32.mrf.mxu0 }
0x67d6   : > { %v14201_v54 = vadd.f32 %v9576_v31, %v14061_v45 }
0x67d8   : > { %v9582_v10 = vsel %vm14624_vm6, %v14201_v54, 0.0 }
0x67d9   : > { %9583 = vadd.xlane.f32.xlu0 %v9582_v10 }
0x67dd   : > { %5194 = vadd.xlane.f32.xlu0 %v5193_v39 }
0x6862   : > { %v9584_v13 = vpop.xlane.xlu0 %9583 }
0x6863   : > { %v9585_v9 = vmul.f32 0.03125, %v9584_v13 }
0x6865   : > { %v9586_v37 = vsub.f32 %v14201_v54, %v9585_v9 }
0x6866   : > { %v5195_v2 = vpop.xlane.xlu0 %5194 }
0x6867   : > { %v5196_v23 = vmul.f32 0.03125, %v5195_v2  ;;  %v9587_v42 = vmul.f32 %v9586_v37, %v9586_v37 }
0x6869   : > { %v14208_v12 = vsub.f32 %v5191_v38, %v5196_v23  ;;  %v9588_v45 = vsel %vm14625_vm10, %v9587_v42, 0.0 }
0x686a   : > { %9589 = vadd.xlane.f32.xlu1 %v9588_v45  ;;  %v10372_v45 = vld [vmem:[%s14598_s16 + $0x3] ss:$0 sm:$0xff] }
0x686b   : > { %v5198_v21 = vmul.f32 %v14208_v12, %v14208_v12 }
0x686d   : > { %v5199_v14 = vsel %vm5192_vm7, %v5198_v21, 0.0 }
0x686e   : > { %5200 = vadd.xlane.f32.xlu1 %v5199_v14 }
0x68f3   : > { %v9590_v46 = vpop.xlane.xlu1 %9589 }
0x68f4   : > { %v9591_v48 = vmul.f32 0.03125, %v9590_v46 }
0x68f6   : > { %v9592_v49 = vadd.f32 1e-05, %v9591_v48 }
0x68f8   : > { %11904 = vrsqrt.f32 %v9592_v49 }
0x6905   : > { %v11905_v50 = vpop.eup %11904 }
0x6906   : > { %v9594_v55 = vmul.f32 %v11905_v50, %v9586_v37 }
0x6908   : > { %v9601_v40 = vmul.f32 %v10346_v51, %v9594_v55  ;;  %v9834_v51 = vld [vmem:[%s14629_s2 + $0x18] sm:$0xff]  ;;  %v9833_v55 = vld [vmem:[%s14629_s2 + $0x10] sm:$0xff] }
0x690a   : > { %v9608_v63 = vadd.f32 %v10347_v59, %v9601_v40  ;;  %v9831_v59 = vld [vmem:[%s14629_s2] sm:$0xff]  ;;  %v5201_v40 = vpop.xlane.xlu1 %5200 }
0x690c   : > { %11594 = vmatmul.mubr.msk.f32.vlgmr.msra.gmra.mxu1 %vm14627_vm1, %v9608_v63  ;;  %v5202_v63 = vmul.f32 0.03125, %v5201_v40 }
0x690d   : > { %11639 = vmatprep.mubr.msk.f32.mxu1 %vm14508_vm8, %v11977_v1  ;;  %11632 = vmatpush3.msra.mxu1 %v9834_v51 }
0x690e   : > { %11633 = vmatprep.subr.mxu1 %v11977_v1  ;;  %v5203_v0 = vadd.f32 1e-05, %v5202_v63 }
0x690f   : > { %11634 = vmatpush3.msra.mxu1 %v9833_v55 }
0x6910   : > { %11635 = vmatprep.subr.mxu1 %v11977_v1 }
0x69cc   : > { %v9689_v17 = vpop.f32.mrf.mxu1 }
0x69cd   : > { %v9690_v6 = vadd.f32 %v10353_v15, %v9689_v17 }
0x69ce   : > { %v11595_v5 = vpop.f32.mrf.mxu1 }
0x69cf   : > { %v9694_v18 = vmul.f32 0.70710677, %v9690_v6  ;;  %v9693_v2 = vmul.f32 0.5, %v9690_v6 }
0x69d1   : > { %v9695_v20 = vand.u32 2147483647, %v9694_v18  ;;  %vm9715_vm8 = vcmp.ge.f32.partialorder %v9694_v18, 0.0 }
0x69d3   : > { %v9696_v32 = vmul.f32 0.3275911, %v9695_v20  ;;  %v9709_v43 = vsub.f32 0.0, %v9695_v20 }
0x69d5   : > { %v9697_v19 = vadd.f32 1.0, %v9696_v32  ;;  %v9710_v11 = vmul.f32 %v9709_v43, %v9695_v20 }
0x69d7   : > { %11906 = vrcp.f32 %v9697_v19  ;;  %v9711_v26 = vmul.f32 1.442695, %v9710_v11 }
0x69d9   : > { %11908 = vpow2.f32 %v9711_v26 }
0x69da   : > { %11910 = vrsqrt.f32 %v5203_v0 }
0x69e4   : > { %v11907_v24 = vpop.eup %11906 }
0x69e5   : > { %v9700_v25 = vmul.f32 1.0614054, %v11907_v24 }
0x69e6   : > { %v11909_v10 = vpop.eup %11908 }
0x69e7   : > { %v9701_v33 = vadd.f32 -1.4531521, %v9700_v25  ;;  %v11911_v28 = vpop.eup %11910 }
0x69e8   : > { %v5205_v44 = vmul.f32 %v11911_v28, %v14208_v12  ;;  %v9835_v12 = vld [vmem:[%s14636_s9] sm:$0x1] }
0x69e9   : > { %v9702_v4 = vmul.f32 %v11907_v24, %v9701_v33 }
0x69eb   : > { %v9703_v34 = vadd.f32 1.4214138, %v9702_v4 }
0x69ed   : > { %v9704_v30 = vmul.f32 %v11907_v24, %v9703_v34 }
0x69ef   : > { %v9705_v27 = vadd.f32 -0.28449672, %v9704_v30 }
0x69f1   : > { %v9706_v31 = vmul.f32 %v11907_v24, %v9705_v27 }
0x69f3   : > { %v9707_v35 = vadd.f32 0.2548296, %v9706_v31 }
0x69f5   : > { %v9708_v38 = vmul.f32 %v11907_v24, %v9707_v35 }
0x69f7   : > { %v9713_v39 = vmul.f32 %v11909_v10, %v9708_v38 }
0x69f9   : > { %v9714_v13 = vsub.f32 1.0, %v9713_v39 }
0x69fb   : > { %v9716_v9 = vsub.f32 0.0, %v9714_v13 }
0x69fd   : > { %v9717_v37 = vsel %vm9715_vm8, %v9714_v13, %v9716_v9 }
0x69fe   : > { %v9718_v23 = vadd.f32 1.0, %v9717_v37 }
0x6a00   : > { %v9719_v42 = vmul.f32 %v9718_v23, %v9693_v2 }
0x6a02   : > { %11629 = vmatmul.mubr.f32.vlgmr.msra.gmra.mxu0 %v9719_v42 }
0x6ac2   : > { %v9809_v21 = vpop.f32.mrf.mxu0 }
0x6ac3   : > { %v9810_v14 = vadd.f32 %v10372_v45, %v9809_v21 }
0x6ac4   : > { %v11630_v22 = vpop.f32.mrf.mxu0 }
0x6ac5   : > { %v9813_v36 = vadd.f32 %v9810_v14, %v14201_v54  ;;  %v9832_v54 = vld [vmem:[%s14629_s2 + $0x8] sm:$0xff] }
0x6ac6   : > { %11636 = vmatpush3.msra.mxu1 %v9832_v54 }
0x6ac7   : > { %v9814_v58 = vsel %vm5192_vm7, %v9813_v36, 0.0  ;;  %11637 = vmatprep.subr.mxu1 %v11977_v1  ;;  %v5206_v1 = vmul.f32 %v5205_v44, %v631_v52 }
0x6ac8   : > { %9815 = vadd.xlane.f32.xlu0 %v9814_v58  ;;  %11638 = vmatpush3.msra.mxu1 %v9831_v59 }
0x6ac9   : > { %v5207_v60 = vadd.f32 %v5206_v1, %v632_v8 }
0x6b51   : > { %v9816_v29 = vpop.xlane.xlu0 %9815 }
0x6b52   : > { %v9817_v46 = vmul.f32 0.03125, %v9816_v29 }
0x6b54   : > { %v9818_v48 = vsub.f32 %v9813_v36, %v9817_v46 }
0x6b56   : > { %v9819_v49 = vmul.f32 %v9818_v48, %v9818_v48 }
0x6b58   : > { %v9820_v50 = vsel %vm5192_vm7, %v9819_v49, 0.0 }
0x6b59   : > { %9821 = vadd.xlane.f32.xlu0 %v9820_v50 }
0x6be2   : > { %v9822_v57 = vpop.xlane.xlu0 %9821 }
0x6be3   : > { %v9823_v53 = vmul.f32 0.03125, %v9822_v57 }
0x6be5   : > { %v9824_v56 = vadd.f32 1e-05, %v9823_v53 }
0x6be7   : > { %11912 = vrsqrt.f32 %v9824_v56 }
0x6bf4   : > { %v11913_v7 = vpop.eup %11912 }
0x6bf5   : > { %v9826_v62 = vmul.f32 %v11913_v7, %v9818_v48 }
0x6bf7   : > { %v9827_v47 = vmul.f32 %v9826_v62, %v631_v52 }
0x6bf9   : > { %v9828_v41 = vadd.f32 %v9827_v47, %v632_v8 }
0x6bfb   : > { %v9829_v61 = vadd.f32 %v9828_v41, %v5207_v60 }
0x6bfd   : > { %v9830_v3 = vmul.f32 0.5, %v9829_v61 }
0x6bff   : > { %11640 = vmatmul.mubr.msk.f32.vlgmr.msra.gmra.mxu1 %vm14634_vm11, %v9830_v3 }
0x6cbf   : > { %v9905_v16 = vpop.f32.mrf.mxu1 }
0x6cc0   : > { %v9906_v15 = vadd.f32 %v9905_v16, %v9835_v12 }
0x6cc1   : > { %v11641_v17 = vpop.f32.mrf.mxu1 }
0x6cc2   : > { %9909 = vst [vmem:[%s621_s15] sm:$0x1] %v9906_v15 }
0x6cc3   : > { %11928 = shalt.err (!%p11925_p3)
}
0x6cc4   : > { %s11929_s25 = scalar_lea.hbm %s14342_s22, 16  ;;  %s11933_s23 = scalar_lea.hbm %s14637_s4, 32 }
0x6cc5   : > { %p11930_p4 = scmp.ne.s32.totalorder %s14342_s22, %s11929_s25  ;;  %p11934_p9 = scmp.lt.s32.totalorder %s14342_s22, %s14637_s4 }
0x6cc6   : > { %p11935_p10 = scmp.lt.s32.totalorder %s11933_s23, %s11929_s25 }
0x6cc7   : > { %p11931_p7 = pnand %p11930_p4, %p12144_p5 }
0x6cc8   : > { %p11936_p11 = por %p11935_p10, %p11934_p9 }
0x6cc9   : > { %p11932_p8 = pneg %p11931_p7 }
0x6ccb   : > { %p11937_p12 = pnand %p11936_p11, %p11932_p8 }
0x6ccd   : > { %11940 = shalt.err (!%p11937_p12)
}
0x6cce   : > { %11642 = dma.vmem_to_hbm [thread:$0]  (%p12144_p5), %s9924_s18, 16, %s14342_s22, %s9911_s19  }
0x6ccf PF: > { %s14638_s0 = sld [smem:[#allocation8_spill]] }
0x6cd0   : > { %s14639_s29 = sld [smem:[#allocation5_spill]] }
0x6cd5   : > { %p11648_p13 = scmp.ge.s32.totalorder %s14638_s0, 2 }
0x6cd6   : > { %s9935_s9 = sand.u32 1, %s14639_s29  }
0x6cd7   : > { %p11645_p0 = pnand %p11648_p13, %p12148_p6  ;;  %s9936_s20 = scalar_lea.sflag [#allocation3], %s9935_s9 }
0x6cd9   : > { %p11646_p1 = pneg %p11645_p0 }
0x6cdb   : > { %11958 = dma.done.wait (%p11646_p1), %s9936_s20, 16  }
0x6cdc   : > { %11960 = vsyncadd (%p11646_p1), %s9936_s20, 4294967280  ;;  %s14641_s24 = sld [smem:[#allocation10_spill]] }
0x6cdd   : > { %s14642_s1 = sld [smem:[#allocation6_spill]] }
0x6cde   : > { %s14643_s22 = sld [smem:[#allocation7_spill]] }
0x6cdf   : > { %s14644_s23 = sld [smem:[#allocation11_spill]] }
0x6ce2   : > { %p30_p2 = scmp.ge.s32.totalorder %s14641_s24, 4  }
0x6ce4   :  { %32 = sbr.rel (!%p30_p2) target bundleno = 18 (0x12), region = 168 }
0x6ce9   :  { %9940 = vsyncpa [#allocation3], 1 }
0x6cea   :  { %9942 = vsyncpa [#allocation3 + $0x1], 1 }

</bundles_post_ra>
